<compile_context>
chip_gen: v6e
topology: v6e:2x2x1
jax: 0.10.0
libtpu: 0.0.40
codegen_flags: <defaults>
</compile_context>

<pallas_src>
import functools
import math

import jax
import jax.numpy as jnp
from jax.experimental import pallas as pl
from jax.experimental.pallas import tpu as pltpu

_BN_EPS = 1e-5
_VMEM_LIMIT = 48 << 20          # <= 64 MiB physical VMEM on v7x


def _round_up(x, m):
    return (x + m - 1) // m * m


# ----------------------------- Pallas kernels ------------------------------

def _mm_bn_kernel(p_ref, w_ref, s_ref, b_ref, o_ref, acc_ref, *, relu):
    # bf16 (tm, tk) @ bf16 (tk, tn) -> f32 accumulator; epilogue at last K step.
    @pl.when(pl.program_id(2) == 0)
    def _():
        acc_ref[...] = jnp.zeros_like(acc_ref)

    acc_ref[...] += jnp.dot(p_ref[...], w_ref[...],
                            preferred_element_type=jnp.float32)

    @pl.when(pl.program_id(2) == pl.num_programs(2) - 1)
    def _():
        y = acc_ref[...] * s_ref[...] + b_ref[...]
        if relu:
            y = jnp.maximum(y, 0.0)
        o_ref[...] = y


def _mm_bn_res_kernel(p_ref, w_ref, s_ref, b_ref, r_ref, o_ref, acc_ref, *, relu):
    # Same as above, plus residual (identity / downsample branch) add in f32.
    @pl.when(pl.program_id(2) == 0)
    def _():
        acc_ref[...] = jnp.zeros_like(acc_ref)

    acc_ref[...] += jnp.dot(p_ref[...], w_ref[...],
                            preferred_element_type=jnp.float32)

    @pl.when(pl.program_id(2) == pl.num_programs(2) - 1)
    def _():
        y = acc_ref[...] * s_ref[...] + b_ref[...] + r_ref[...]
        if relu:
            y = jnp.maximum(y, 0.0)
        o_ref[...] = y


def _maxpool_kernel(s00_ref, s01_ref, s10_ref, s11_ref, o_ref, *, ho, wo):
    # Each s* block: (1, ho+1, wo+1, C) phase slab of the padded input.
    s00 = s00_ref[0]
    s01 = s01_ref[0]
    s10 = s10_ref[0]
    s11 = s11_ref[0]

    def win(a, di, dj):
        return a[di:di + ho, dj:dj + wo, :]

    m = win(s00, 0, 0)                       # window offset (0, 0)
    m = jnp.maximum(m, win(s01, 0, 0))       # (0, 1)
    m = jnp.maximum(m, win(s00, 0, 1))       # (0, 2)
    m = jnp.maximum(m, win(s10, 0, 0))       # (1, 0)
    m = jnp.maximum(m, win(s11, 0, 0))       # (1, 1)
    m = jnp.maximum(m, win(s10, 0, 1))       # (1, 2)
    m = jnp.maximum(m, win(s00, 1, 0))       # (2, 0)
    m = jnp.maximum(m, win(s01, 1, 0))       # (2, 1)
    m = jnp.maximum(m, win(s00, 1, 1))       # (2, 2)
    o_ref[0] = m


# ------------------------------ Pallas wrappers -----------------------------

def _pick_tm(m):
    mp = _round_up(m, 8)
    if mp >= 4096:
        tm = 1024
    elif mp >= 1024:
        tm = 512
    elif mp >= 256:
        tm = 256
    else:
        return mp, mp
    return tm, _round_up(m, tm)


def _pick_tk(kp):
    for cand in (512, 256, 128):
        if kp % cand == 0:
            return cand
    return 128


def _matmul_bn(patches, w2, scale, bias, relu, residual=None):
    """patches: (M, K) bf16, w2: (K, C_out) bf16, scale/bias: (C_out,) f32,
    residual: (M, C_out) f32 or None. Returns (M, C_out) f32."""
    M, K = patches.shape
    c_out = w2.shape[1]

    # Pad K to a multiple of 128 (conv1 K=147, 1x1 downsample K=64).
    Kp = _round_up(K, 128)
    if Kp != K:
        patches = jnp.pad(patches, ((0, 0), (0, Kp - K)))
        w2 = jnp.pad(w2, ((0, Kp - K), (0, 0)))
    tk = _pick_tk(Kp)

    # Pad M to a multiple of the row tile.
    tm, Mp = _pick_tm(M)
    if Mp != M:
        patches = jnp.pad(patches, ((0, Mp - M), (0, 0)))
        if residual is not None:
            residual = jnp.pad(residual, ((0, Mp - M), (0, 0)))

    tn = c_out if c_out <= 256 else 256
    grid = (Mp // tm, c_out // tn, Kp // tk)

    scale2 = scale.reshape(1, c_out).astype(jnp.float32)
    bias2 = bias.reshape(1, c_out).astype(jnp.float32)

    in_specs = [
        pl.BlockSpec((tm, tk), lambda i, j, k: (i, k)),
        pl.BlockSpec((tk, tn), lambda i, j, k: (k, j)),
        pl.BlockSpec((1, tn), lambda i, j, k: (0, j)),
        pl.BlockSpec((1, tn), lambda i, j, k: (0, j)),
    ]
    args = [patches, w2, scale2, bias2]
    if residual is None:
        kernel = functools.partial(_mm_bn_kernel, relu=relu)
    else:
        in_specs.append(pl.BlockSpec((tm, tn), lambda i, j, k: (i, j)))
        args.append(residual.astype(jnp.float32))
        kernel = functools.partial(_mm_bn_res_kernel, relu=relu)

    out = pl.pallas_call(
        kernel,
        out_shape=jax.ShapeDtypeStruct((Mp, c_out), jnp.float32),
        grid=grid,
        in_specs=in_specs,
        out_specs=pl.BlockSpec((tm, tn), lambda i, j, k: (i, j)),
        scratch_shapes=[pltpu.VMEM((tm, tn), jnp.float32)],
        compiler_params=pltpu.CompilerParams(
            dimension_semantics=("parallel", "parallel", "arbitrary"),
            vmem_limit_bytes=_VMEM_LIMIT,
        ),
    )(*args)
    return out[:M] if Mp != M else out


def _im2col(x, k, stride, pad):
    # x: (N, H, W, C) bf16 -> patches (N*Ho*Wo, k*k*C), K order = (kh, kw, C_in)
    N, H, W, C = x.shape
    Ho = (H + 2 * pad - k) // stride + 1
    Wo = (W + 2 * pad - k) // stride + 1
    xp = jnp.pad(x, ((0, 0), (pad, pad), (pad, pad), (0, 0)))
    cols = []
    for i in range(k):
        for j in range(k):
            sl = xp[:, i:i + stride * (Ho - 1) + 1:stride,
                       j:j + stride * (Wo - 1) + 1:stride, :]
            cols.append(sl)
    patches = jnp.stack(cols, axis=3)            # (N, Ho, Wo, k*k, C) bf16
    patches = patches.reshape(N * Ho * Wo, k * k * C)
    return patches, (N, Ho, Wo)


def _conv_bn(x, w, bn, stride, pad, relu, residual=None):
    # w: PyTorch layout (C_out, C_in, k, k); bn = (scale, bias) folded affine
    c_out, c_in, k, _ = w.shape
    x_bf = x.astype(jnp.bfloat16)                              # bf16 MXU inputs
    patches, (N, Ho, Wo) = _im2col(x_bf, k, stride, pad)
    w2 = jnp.transpose(w, (2, 3, 1, 0)).reshape(k * k * c_in, c_out)
    w2 = w2.astype(jnp.bfloat16)
    res_flat = None if residual is None else residual.reshape(-1, c_out)
    out = _matmul_bn(patches, w2, bn[0], bn[1], relu, res_flat)
    return out.reshape(N, Ho, Wo, c_out)


def _maxpool2d(x, k=3, stride=2, pad=1):
    """3x3 / stride-2 / pad-1 max pool. De-interleaves the padded map into four
    stride-2 phase slabs (~1x bytes, no 9x window expansion) and takes the
    9-term window max inside a Pallas kernel gridded over the batch."""
    assert k == 3 and stride == 2 and pad == 1
    N, H, W, C = x.shape
    Ho = (H + 2 * pad - k) // stride + 1
    Wo = (W + 2 * pad - k) // stride + 1
    neg = -3.0e38
    Hp, Wp = 2 * Ho + 2, 2 * Wo + 2
    xp = jnp.pad(x, ((0, 0), (pad, Hp - H - pad), (pad, Wp - W - pad), (0, 0)),
                 constant_values=neg)
    s00 = xp[:, 0::2, 0::2, :]                   # (N, Ho+1, Wo+1, C)
    s01 = xp[:, 0::2, 1::2, :]
    s10 = xp[:, 1::2, 0::2, :]
    s11 = xp[:, 1::2, 1::2, :]

    in_spec = pl.BlockSpec((1, Ho + 1, Wo + 1, C), lambda n: (n, 0, 0, 0))
    out = pl.pallas_call(
        functools.partial(_maxpool_kernel, ho=Ho, wo=Wo),
        out_shape=jax.ShapeDtypeStruct((N, Ho, Wo, C), jnp.float32),
        grid=(N,),
        in_specs=[in_spec, in_spec, in_spec, in_spec],
        out_specs=pl.BlockSpec((1, Ho, Wo, C), lambda n: (n, 0, 0, 0)),
        compiler_params=pltpu.CompilerParams(
            dimension_semantics=("parallel",),
            vmem_limit_bytes=_VMEM_LIMIT,
        ),
    )(s00, s01, s10, s11)
    return out


# ----------------------------- parameter setup ------------------------------

def _bn_fold(c):
    # BN init per module: weight=1, bias=0; running stats default 0/1 (eval fold)
    gamma = jnp.ones((c,), jnp.float32)
    beta = jnp.zeros((c,), jnp.float32)
    mean = jnp.zeros((c,), jnp.float32)
    var = jnp.ones((c,), jnp.float32)
    scale = gamma / jnp.sqrt(var + _BN_EPS)
    bias = beta - mean * scale
    return scale, bias


def _conv_weight(key, c_in, c_out, k):
    # kaiming_normal_, mode='fan_out', nonlinearity='relu'
    std = math.sqrt(2.0 / (c_out * k * k))
    return std * jax.random.normal(key, (c_out, c_in, k, k), jnp.float32)


def init_resnet18_params(key, num_input_images=1):
    keys = iter(jax.random.split(key, 64))
    params = {
        "conv1_w": _conv_weight(next(keys), 3 * num_input_images, 64, 7),
        "bn1": _bn_fold(64),
    }
    layer_cfg = [(64, 64, 1), (64, 128, 2), (128, 256, 2), (256, 512, 2)]
    layers = []
    for c_in, c_out, stride in layer_cfg:
        blocks = []
        for b in range(2):                         # resnet18: [2, 2, 2, 2] BasicBlocks
            s = stride if b == 0 else 1
            bc_in = c_in if b == 0 else c_out
            blk = {
                "conv1_w": _conv_weight(next(keys), bc_in, c_out, 3),
                "bn1": _bn_fold(c_out),
                "conv2_w": _conv_weight(next(keys), c_out, c_out, 3),
                "bn2": _bn_fold(c_out),
                "stride": s,
                "down": None,
            }
            if s != 1 or bc_in != c_out:
                blk["down"] = {"w": _conv_weight(next(keys), bc_in, c_out, 1),
                               "bn": _bn_fold(c_out)}
            blocks.append(blk)
        layers.append(blocks)
    params["layers"] = layers
    return params


# ------------------------------- forward pass -------------------------------

def _basic_block(x, blk):
    s = blk["stride"]
    identity = x
    out = _conv_bn(x, blk["conv1_w"], blk["bn1"], stride=s, pad=1, relu=True)
    if blk["down"] is not None:
        identity = _conv_bn(x, blk["down"]["w"], blk["down"]["bn"],
                            stride=s, pad=0, relu=False)
    # conv2 + bn2 + residual add + final ReLU fused in one Pallas kernel
    out = _conv_bn(out, blk["conv2_w"], blk["bn2"], stride=1, pad=1,
                   relu=True, residual=identity)
    return out


def resnet_encoder_forward(params, x_nchw):
    """Mirror of ResnetEncoder.forward (ResNet-18, pretrained=False).
    Returns the 5 feature maps in NCHW like PyTorch."""
    # TODO(synk): BatchNorm is applied in eval mode (folded running stats);
    # training-mode batch statistics are not reproduced.
    x = jnp.transpose(x_nchw, (0, 2, 3, 1))       # NCHW -> NHWC
    features = []
    f0 = _conv_bn(x, params["conv1_w"], params["bn1"], stride=2, pad=3, relu=True)
    features.append(f0)
    y = _maxpool2d(f0, k=3, stride=2, pad=1)
    for blocks in params["layers"]:
        for blk in blocks:
            y = _basic_block(y, blk)
        features.append(y)
    return [jnp.transpose(f, (0, 3, 1, 2)) for f in features]   # back to NCHW


# ----------------------------------- main ------------------------------------

if __name__ == "__main__":
    key = jax.random.PRNGKey(0)
    pkey, xkey = jax.random.split(key)
    params = init_resnet18_params(pkey, num_input_images=1)
    x = jax.random.normal(xkey, (2, 3, 32, 32), jnp.float32)   # NCHW, like PyTorch

    fwd = jax.jit(lambda inp: resnet_encoder_forward(params, inp))
    feats = fwd(x)
    feats = jax.block_until_ready(feats)

    expected = [(2, 64, 16, 16), (2, 64, 8, 8), (2, 128, 4, 4),
                (2, 256, 2, 2), (2, 512, 1, 1)]
    got = [tuple(f.shape) for f in feats]
    assert got == expected, f"shape mismatch: {got} vs {expected}"
    assert all(bool(jnp.all(jnp.isfinite(f))) for f in feats)
    print("KERNEL_OK")
</pallas_src>

<mosaic_0001>
module attributes {stable_mosaic.version = 11 : i64} {
  func.func @_mm_bn_kernel(%arg0: i32, %arg1: i32, %arg2: i32, %arg3: memref<256x256xbf16, #tpu.memory_space<vmem>>, %arg4: memref<256x64xbf16, #tpu.memory_space<vmem>>, %arg5: memref<1x64xf32, #tpu.memory_space<vmem>>, %arg6: memref<1x64xf32, #tpu.memory_space<vmem>>, %arg7: memref<256x64xf32, #tpu.memory_space<vmem>>, %arg8: memref<256x64xf32, #tpu.memory_space<vmem>>) attributes {dimension_semantics = [#tpu.dimension_semantics<parallel>, #tpu.dimension_semantics<parallel>, #tpu.dimension_semantics<arbitrary>], iteration_bounds = array<i64: 2, 1, 1>, scalar_prefetch = 0 : i64, scratch_operands = 1 : i64, tpu.core_type = #tpu.core_type<tc>, window_params = [{transform_indices = @transform_0, window_bounds = array<i64: 256, 256>}, {transform_indices = @transform_1, window_bounds = array<i64: 256, 64>}, {transform_indices = @transform_2, window_bounds = array<i64: 1, 64>}, {transform_indices = @transform_3, window_bounds = array<i64: 1, 64>}, {transform_indices = @transform_4, window_bounds = array<i64: 256, 64>}]} {
    %c0_i32 = arith.constant 0 : i32
    %0 = arith.cmpi eq, %arg2, %c0_i32 : i32
    %1 = arith.extui %0 : i1 to i32
    %c0_i32_0 = arith.constant 0 : i32
    %2 = arith.cmpi ne, %1, %c0_i32_0 : i32
    scf.if %2 {
      %cst_10 = arith.constant 0.000000e+00 : f32
      %12 = vector.broadcast %cst_10 : f32 to vector<256x64xf32>
      %c0_11 = arith.constant 0 : index
      %c0_12 = arith.constant 0 : index
      %13 = vector.load %arg8[%c0_11, %c0_12] : memref<256x64xf32, #tpu.memory_space<vmem>>, vector<256x64xf32>
      tpu.vector_store %arg8[%c0_11, %c0_12], %12 {strides = array<i32>} : memref<256x64xf32, #tpu.memory_space<vmem>>, vector<256x64xf32>,
    } else {
    }
    %c0 = arith.constant 0 : index
    %c0_1 = arith.constant 0 : index
    %3 = vector.load %arg8[%c0, %c0_1] : memref<256x64xf32, #tpu.memory_space<vmem>>, vector<256x64xf32>
    %c0_2 = arith.constant 0 : index
    %c0_3 = arith.constant 0 : index
    %4 = vector.load %arg3[%c0_2, %c0_3] : memref<256x256xbf16, #tpu.memory_space<vmem>>, vector<256x256xbf16>
    %c0_4 = arith.constant 0 : index
    %c0_5 = arith.constant 0 : index
    %5 = vector.load %arg4[%c0_4, %c0_5] : memref<256x64xbf16, #tpu.memory_space<vmem>>, vector<256x64xbf16>
    %cst = arith.constant dense<0.000000e+00> : vector<256x64xf32>
    %6 = tpu.matmul %4, %5, %cst {dimension_numbers = #tpu.dot_dimension_numbers<[1], [0], [0], [1], [0, 0, 1, 1], [], []>} : vector<256x256xbf16>, vector<256x64xbf16>, vector<256x64xf32> -> vector<256x64xf32>
    %7 = arith.addf %3, %6 : vector<256x64xf32>
    %c0_6 = arith.constant 0 : index
    %c0_7 = arith.constant 0 : index
    %8 = vector.load %arg8[%c0_6, %c0_7] : memref<256x64xf32, #tpu.memory_space<vmem>>, vector<256x64xf32>
    tpu.vector_store %arg8[%c0_6, %c0_7], %7 {strides = array<i32>} : memref<256x64xf32, #tpu.memory_space<vmem>>, vector<256x64xf32>,
    %c0_i32_8 = arith.constant 0 : i32
    %9 = arith.cmpi eq, %arg2, %c0_i32_8 : i32
    %10 = arith.extui %9 : i1 to i32
    %c0_i32_9 = arith.constant 0 : i32
    %11 = arith.cmpi ne, %10, %c0_i32_9 : i32
    scf.if %11 {
      %c0_10 = arith.constant 0 : index
      %c0_11 = arith.constant 0 : index
      %12 = vector.load %arg8[%c0_10, %c0_11] : memref<256x64xf32, #tpu.memory_space<vmem>>, vector<256x64xf32>
      %c0_12 = arith.constant 0 : index
      %c0_13 = arith.constant 0 : index
      %13 = vector.load %arg5[%c0_12, %c0_13] : memref<1x64xf32, #tpu.memory_space<vmem>>, vector<1x64xf32>
      %14 = vector.broadcast %13 : vector<1x64xf32> to vector<256x64xf32>
      %15 = arith.mulf %12, %14 : vector<256x64xf32>
      %c0_14 = arith.constant 0 : index
      %c0_15 = arith.constant 0 : index
      %16 = vector.load %arg6[%c0_14, %c0_15] : memref<1x64xf32, #tpu.memory_space<vmem>>, vector<1x64xf32>
      %17 = vector.broadcast %16 : vector<1x64xf32> to vector<256x64xf32>
      %18 = arith.addf %15, %17 : vector<256x64xf32>
      %cst_16 = arith.constant 0.000000e+00 : f32
      %19 = vector.broadcast %cst_16 : f32 to vector<256x64xf32>
      %20 = arith.maximumf %18, %19 : vector<256x64xf32>
      %c0_17 = arith.constant 0 : index
      %c0_18 = arith.constant 0 : index
      %21 = vector.load %arg7[%c0_17, %c0_18] : memref<256x64xf32, #tpu.memory_space<vmem>>, vector<256x64xf32>
      tpu.vector_store %arg7[%c0_17, %c0_18], %20 {strides = array<i32>} : memref<256x64xf32, #tpu.memory_space<vmem>>, vector<256x64xf32>,
    } else {
    }
    return
  }
  func.func @transform_0(%arg0: i32, %arg1: i32, %arg2: i32) -> (i32, i32) {
    %c0_i32 = arith.constant 0 : i32
    return %arg0, %arg2 : i32, i32
  }
  func.func @transform_1(%arg0: i32, %arg1: i32, %arg2: i32) -> (i32, i32) {
    %c0_i32 = arith.constant 0 : i32
    return %arg2, %arg1 : i32, i32
  }
  func.func @transform_2(%arg0: i32, %arg1: i32, %arg2: i32) -> (i32, i32) {
    %c0_i32 = arith.constant 0 : i32
    %c0_i32_0 = arith.constant 0 : i32
    return %c0_i32, %arg1 : i32, i32
  }
  func.func @transform_3(%arg0: i32, %arg1: i32, %arg2: i32) -> (i32, i32) {
    %c0_i32 = arith.constant 0 : i32
    %c0_i32_0 = arith.constant 0 : i32
    return %c0_i32, %arg1 : i32, i32
  }
  func.func @transform_4(%arg0: i32, %arg1: i32, %arg2: i32) -> (i32, i32) {
    %c0_i32 = arith.constant 0 : i32
    return %arg0, %arg1 : i32, i32
  }
}

module attributes {stable_mosaic.version = 11 : i64} {
  func.func @_maxpool_kernel(%arg0: i32, %arg1: memref<1x9x9x64xf32, #tpu.memory_space<vmem>>, %arg2: memref<1x9x9x64xf32, #tpu.memory_space<vmem>>, %arg3: memref<1x9x9x64xf32, #tpu.memory_space<vmem>>, %arg4: memref<1x9x9x64xf32, #tpu.memory_space<vmem>>, %arg5: memref<1x8x8x64xf32, #tpu.memory_space<vmem>>) attributes {dimension_semantics = [#tpu.dimension_semantics<parallel>], iteration_bounds = array<i64: 2>, scalar_prefetch = 0 : i64, scratch_operands = 0 : i64, tpu.core_type = #tpu.core_type<tc>, window_params = [{transform_indices = @transform_0, window_bounds = array<i64: 1, 9, 9, 64>}, {transform_indices = @transform_1, window_bounds = array<i64: 1, 9, 9, 64>}, {transform_indices = @transform_2, window_bounds = array<i64: 1, 9, 9, 64>}, {transform_indices = @transform_3, window_bounds = array<i64: 1, 9, 9, 64>}, {transform_indices = @transform_4, window_bounds = array<i64: 1, 8, 8, 64>}]} {
    %c0 = arith.constant 0 : index
    %c0_0 = arith.constant 0 : index
    %c0_1 = arith.constant 0 : index
    %c0_2 = arith.constant 0 : index
    %0 = vector.load %arg1[%c0, %c0_0, %c0_1, %c0_2] : memref<1x9x9x64xf32, #tpu.memory_space<vmem>>, vector<1x9x9x64xf32>
    %1 = vector.shape_cast %0 : vector<1x9x9x64xf32> to vector<9x9x64xf32>
    %c0_3 = arith.constant 0 : index
    %c0_4 = arith.constant 0 : index
    %c0_5 = arith.constant 0 : index
    %c0_6 = arith.constant 0 : index
    %2 = vector.load %arg2[%c0_3, %c0_4, %c0_5, %c0_6] : memref<1x9x9x64xf32, #tpu.memory_space<vmem>>, vector<1x9x9x64xf32>
    %3 = vector.shape_cast %2 : vector<1x9x9x64xf32> to vector<9x9x64xf32>
    %c0_7 = arith.constant 0 : index
    %c0_8 = arith.constant 0 : index
    %c0_9 = arith.constant 0 : index
    %c0_10 = arith.constant 0 : index
    %4 = vector.load %arg3[%c0_7, %c0_8, %c0_9, %c0_10] : memref<1x9x9x64xf32, #tpu.memory_space<vmem>>, vector<1x9x9x64xf32>
    %5 = vector.shape_cast %4 : vector<1x9x9x64xf32> to vector<9x9x64xf32>
    %c0_11 = arith.constant 0 : index
    %c0_12 = arith.constant 0 : index
    %c0_13 = arith.constant 0 : index
    %c0_14 = arith.constant 0 : index
    %6 = vector.load %arg4[%c0_11, %c0_12, %c0_13, %c0_14] : memref<1x9x9x64xf32, #tpu.memory_space<vmem>>, vector<1x9x9x64xf32>
    %7 = vector.shape_cast %6 : vector<1x9x9x64xf32> to vector<9x9x64xf32>
    %8 = vector.extract_strided_slice %1 {offsets = [0, 0, 0], sizes = [8, 8, 64], strides = [1, 1, 1]} : vector<9x9x64xf32> to vector<8x8x64xf32>
    %9 = vector.extract_strided_slice %3 {offsets = [0, 0, 0], sizes = [8, 8, 64], strides = [1, 1, 1]} : vector<9x9x64xf32> to vector<8x8x64xf32>
    %10 = arith.maximumf %8, %9 : vector<8x8x64xf32>
    %11 = vector.extract_strided_slice %1 {offsets = [0, 1, 0], sizes = [8, 8, 64], strides = [1, 1, 1]} : vector<9x9x64xf32> to vector<8x8x64xf32>
    %12 = arith.maximumf %10, %11 : vector<8x8x64xf32>
    %13 = vector.extract_strided_slice %5 {offsets = [0, 0, 0], sizes = [8, 8, 64], strides = [1, 1, 1]} : vector<9x9x64xf32> to vector<8x8x64xf32>
    %14 = arith.maximumf %12, %13 : vector<8x8x64xf32>
    %15 = vector.extract_strided_slice %7 {offsets = [0, 0, 0], sizes = [8, 8, 64], strides = [1, 1, 1]} : vector<9x9x64xf32> to vector<8x8x64xf32>
    %16 = arith.maximumf %14, %15 : vector<8x8x64xf32>
    %17 = vector.extract_strided_slice %5 {offsets = [0, 1, 0], sizes = [8, 8, 64], strides = [1, 1, 1]} : vector<9x9x64xf32> to vector<8x8x64xf32>
    %18 = arith.maximumf %16, %17 : vector<8x8x64xf32>
    %19 = vector.extract_strided_slice %1 {offsets = [1, 0, 0], sizes = [8, 8, 64], strides = [1, 1, 1]} : vector<9x9x64xf32> to vector<8x8x64xf32>
    %20 = arith.maximumf %18, %19 : vector<8x8x64xf32>
    %21 = vector.extract_strided_slice %3 {offsets = [1, 0, 0], sizes = [8, 8, 64], strides = [1, 1, 1]} : vector<9x9x64xf32> to vector<8x8x64xf32>
    %22 = arith.maximumf %20, %21 : vector<8x8x64xf32>
    %23 = vector.extract_strided_slice %1 {offsets = [1, 1, 0], sizes = [8, 8, 64], strides = [1, 1, 1]} : vector<9x9x64xf32> to vector<8x8x64xf32>
    %24 = arith.maximumf %22, %23 : vector<8x8x64xf32>
    %c0_15 = arith.constant 0 : index
    %c0_16 = arith.constant 0 : index
    %c0_17 = arith.constant 0 : index
    %c0_18 = arith.constant 0 : index
    %25 = vector.load %arg5[%c0_15, %c0_16, %c0_17, %c0_18] : memref<1x8x8x64xf32, #tpu.memory_space<vmem>>, vector<1x8x8x64xf32>
    %26 = vector.shape_cast %25 : vector<1x8x8x64xf32> to vector<8x8x64xf32>
    %27 = vector.shape_cast %24 : vector<8x8x64xf32> to vector<1x8x8x64xf32>
    tpu.vector_store %arg5[%c0_15, %c0_16, %c0_17, %c0_18], %27 {strides = array<i32>} : memref<1x8x8x64xf32, #tpu.memory_space<vmem>>, vector<1x8x8x64xf32>,
    return
  }
  func.func @transform_0(%arg0: i32) -> (i32, i32, i32, i32) {
    %c0_i32 = arith.constant 0 : i32
    %c0_i32_0 = arith.constant 0 : i32
    %c0_i32_1 = arith.constant 0 : i32
    %c0_i32_2 = arith.constant 0 : i32
    return %arg0, %c0_i32, %c0_i32_0, %c0_i32_1 : i32, i32, i32, i32
  }
  func.func @transform_1(%arg0: i32) -> (i32, i32, i32, i32) {
    %c0_i32 = arith.constant 0 : i32
    %c0_i32_0 = arith.constant 0 : i32
    %c0_i32_1 = arith.constant 0 : i32
    %c0_i32_2 = arith.constant 0 : i32
    return %arg0, %c0_i32, %c0_i32_0, %c0_i32_1 : i32, i32, i32, i32
  }
  func.func @transform_2(%arg0: i32) -> (i32, i32, i32, i32) {
    %c0_i32 = arith.constant 0 : i32
    %c0_i32_0 = arith.constant 0 : i32
    %c0_i32_1 = arith.constant 0 : i32
    %c0_i32_2 = arith.constant 0 : i32
    return %arg0, %c0_i32, %c0_i32_0, %c0_i32_1 : i32, i32, i32, i32
  }
  func.func @transform_3(%arg0: i32) -> (i32, i32, i32, i32) {
    %c0_i32 = arith.constant 0 : i32
    %c0_i32_0 = arith.constant 0 : i32
    %c0_i32_1 = arith.constant 0 : i32
    %c0_i32_2 = arith.constant 0 : i32
    return %arg0, %c0_i32, %c0_i32_0, %c0_i32_1 : i32, i32, i32, i32
  }
  func.func @transform_4(%arg0: i32) -> (i32, i32, i32, i32) {
    %c0_i32 = arith.constant 0 : i32
    %c0_i32_0 = arith.constant 0 : i32
    %c0_i32_1 = arith.constant 0 : i32
    %c0_i32_2 = arith.constant 0 : i32
    return %arg0, %c0_i32, %c0_i32_0, %c0_i32_1 : i32, i32, i32, i32
  }
}

module attributes {stable_mosaic.version = 11 : i64} {
  func.func @_mm_bn_kernel(%arg0: i32, %arg1: i32, %arg2: i32, %arg3: memref<128x128xbf16, #tpu.memory_space<vmem>>, %arg4: memref<128x64xbf16, #tpu.memory_space<vmem>>, %arg5: memref<1x64xf32, #tpu.memory_space<vmem>>, %arg6: memref<1x64xf32, #tpu.memory_space<vmem>>, %arg7: memref<128x64xf32, #tpu.memory_space<vmem>>, %arg8: memref<128x64xf32, #tpu.memory_space<vmem>>) attributes {dimension_semantics = [#tpu.dimension_semantics<parallel>, #tpu.dimension_semantics<parallel>, #tpu.dimension_semantics<arbitrary>], iteration_bounds = array<i64: 1, 1, 5>, scalar_prefetch = 0 : i64, scratch_operands = 1 : i64, tpu.core_type = #tpu.core_type<tc>, window_params = [{transform_indices = @transform_0, window_bounds = array<i64: 128, 128>}, {transform_indices = @transform_1, window_bounds = array<i64: 128, 64>}, {transform_indices = @transform_2, window_bounds = array<i64: 1, 64>}, {transform_indices = @transform_3, window_bounds = array<i64: 1, 64>}, {transform_indices = @transform_4, window_bounds = array<i64: 128, 64>}]} {
    %c0_i32 = arith.constant 0 : i32
    %0 = arith.cmpi eq, %arg2, %c0_i32 : i32
    %1 = arith.extui %0 : i1 to i32
    %c0_i32_0 = arith.constant 0 : i32
    %2 = arith.cmpi ne, %1, %c0_i32_0 : i32
    scf.if %2 {
      %cst_9 = arith.constant 0.000000e+00 : f32
      %12 = vector.broadcast %cst_9 : f32 to vector<128x64xf32>
      %c0_10 = arith.constant 0 : index
      %c0_11 = arith.constant 0 : index
      %13 = vector.load %arg8[%c0_10, %c0_11] : memref<128x64xf32, #tpu.memory_space<vmem>>, vector<128x64xf32>
      tpu.vector_store %arg8[%c0_10, %c0_11], %12 {strides = array<i32>} : memref<128x64xf32, #tpu.memory_space<vmem>>, vector<128x64xf32>,
    } else {
    }
    %c0 = arith.constant 0 : index
    %c0_1 = arith.constant 0 : index
    %3 = vector.load %arg8[%c0, %c0_1] : memref<128x64xf32, #tpu.memory_space<vmem>>, vector<128x64xf32>
    %c0_2 = arith.constant 0 : index
    %c0_3 = arith.constant 0 : index
    %4 = vector.load %arg3[%c0_2, %c0_3] : memref<128x128xbf16, #tpu.memory_space<vmem>>, vector<128x128xbf16>
    %c0_4 = arith.constant 0 : index
    %c0_5 = arith.constant 0 : index
    %5 = vector.load %arg4[%c0_4, %c0_5] : memref<128x64xbf16, #tpu.memory_space<vmem>>, vector<128x64xbf16>
    %cst = arith.constant dense<0.000000e+00> : vector<128x64xf32>
    %6 = tpu.matmul %4, %5, %cst {dimension_numbers = #tpu.dot_dimension_numbers<[1], [0], [0], [1], [0, 0, 1, 1], [], []>} : vector<128x128xbf16>, vector<128x64xbf16>, vector<128x64xf32> -> vector<128x64xf32>
    %7 = arith.addf %3, %6 : vector<128x64xf32>
    %c0_6 = arith.constant 0 : index
    %c0_7 = arith.constant 0 : index
    %8 = vector.load %arg8[%c0_6, %c0_7] : memref<128x64xf32, #tpu.memory_space<vmem>>, vector<128x64xf32>
    tpu.vector_store %arg8[%c0_6, %c0_7], %7 {strides = array<i32>} : memref<128x64xf32, #tpu.memory_space<vmem>>, vector<128x64xf32>,
    %c4_i32 = arith.constant 4 : i32
    %9 = arith.cmpi eq, %arg2, %c4_i32 : i32
    %10 = arith.extui %9 : i1 to i32
    %c0_i32_8 = arith.constant 0 : i32
    %11 = arith.cmpi ne, %10, %c0_i32_8 : i32
    scf.if %11 {
      %c0_9 = arith.constant 0 : index
      %c0_10 = arith.constant 0 : index
      %12 = vector.load %arg8[%c0_9, %c0_10] : memref<128x64xf32, #tpu.memory_space<vmem>>, vector<128x64xf32>
      %c0_11 = arith.constant 0 : index
      %c0_12 = arith.constant 0 : index
      %13 = vector.load %arg5[%c0_11, %c0_12] : memref<1x64xf32, #tpu.memory_space<vmem>>, vector<1x64xf32>
      %14 = vector.broadcast %13 : vector<1x64xf32> to vector<128x64xf32>
      %15 = arith.mulf %12, %14 : vector<128x64xf32>
      %c0_13 = arith.constant 0 : index
      %c0_14 = arith.constant 0 : index
      %16 = vector.load %arg6[%c0_13, %c0_14] : memref<1x64xf32, #tpu.memory_space<vmem>>, vector<1x64xf32>
      %17 = vector.broadcast %16 : vector<1x64xf32> to vector<128x64xf32>
      %18 = arith.addf %15, %17 : vector<128x64xf32>
      %cst_15 = arith.constant 0.000000e+00 : f32
      %19 = vector.broadcast %cst_15 : f32 to vector<128x64xf32>
      %20 = arith.maximumf %18, %19 : vector<128x64xf32>
      %c0_16 = arith.constant 0 : index
      %c0_17 = arith.constant 0 : index
      %21 = vector.load %arg7[%c0_16, %c0_17] : memref<128x64xf32, #tpu.memory_space<vmem>>, vector<128x64xf32>
      tpu.vector_store %arg7[%c0_16, %c0_17], %20 {strides = array<i32>} : memref<128x64xf32, #tpu.memory_space<vmem>>, vector<128x64xf32>,
    } else {
    }
    return
  }
  func.func @transform_0(%arg0: i32, %arg1: i32, %arg2: i32) -> (i32, i32) {
    %c0_i32 = arith.constant 0 : i32
    return %arg0, %arg2 : i32, i32
  }
  func.func @transform_1(%arg0: i32, %arg1: i32, %arg2: i32) -> (i32, i32) {
    %c0_i32 = arith.constant 0 : i32
    return %arg2, %arg1 : i32, i32
  }
  func.func @transform_2(%arg0: i32, %arg1: i32, %arg2: i32) -> (i32, i32) {
    %c0_i32 = arith.constant 0 : i32
    %c0_i32_0 = arith.constant 0 : i32
    return %c0_i32, %arg1 : i32, i32
  }
  func.func @transform_3(%arg0: i32, %arg1: i32, %arg2: i32) -> (i32, i32) {
    %c0_i32 = arith.constant 0 : i32
    %c0_i32_0 = arith.constant 0 : i32
    return %c0_i32, %arg1 : i32, i32
  }
  func.func @transform_4(%arg0: i32, %arg1: i32, %arg2: i32) -> (i32, i32) {
    %c0_i32 = arith.constant 0 : i32
    return %arg0, %arg1 : i32, i32
  }
}

module attributes {stable_mosaic.version = 11 : i64} {
  func.func @_mm_bn_res_kernel(%arg0: i32, %arg1: i32, %arg2: i32, %arg3: memref<128x128xbf16, #tpu.memory_space<vmem>>, %arg4: memref<128x64xbf16, #tpu.memory_space<vmem>>, %arg5: memref<1x64xf32, #tpu.memory_space<vmem>>, %arg6: memref<1x64xf32, #tpu.memory_space<vmem>>, %arg7: memref<128x64xf32, #tpu.memory_space<vmem>>, %arg8: memref<128x64xf32, #tpu.memory_space<vmem>>, %arg9: memref<128x64xf32, #tpu.memory_space<vmem>>) attributes {dimension_semantics = [#tpu.dimension_semantics<parallel>, #tpu.dimension_semantics<parallel>, #tpu.dimension_semantics<arbitrary>], iteration_bounds = array<i64: 1, 1, 5>, scalar_prefetch = 0 : i64, scratch_operands = 1 : i64, tpu.core_type = #tpu.core_type<tc>, window_params = [{transform_indices = @transform_0, window_bounds = array<i64: 128, 128>}, {transform_indices = @transform_1, window_bounds = array<i64: 128, 64>}, {transform_indices = @transform_2, window_bounds = array<i64: 1, 64>}, {transform_indices = @transform_3, window_bounds = array<i64: 1, 64>}, {transform_indices = @transform_4, window_bounds = array<i64: 128, 64>}, {transform_indices = @transform_5, window_bounds = array<i64: 128, 64>}]} {
    %c0_i32 = arith.constant 0 : i32
    %0 = arith.cmpi eq, %arg2, %c0_i32 : i32
    %1 = arith.extui %0 : i1 to i32
    %c0_i32_0 = arith.constant 0 : i32
    %2 = arith.cmpi ne, %1, %c0_i32_0 : i32
    scf.if %2 {
      %cst_9 = arith.constant 0.000000e+00 : f32
      %12 = vector.broadcast %cst_9 : f32 to vector<128x64xf32>
      %c0_10 = arith.constant 0 : index
      %c0_11 = arith.constant 0 : index
      %13 = vector.load %arg9[%c0_10, %c0_11] : memref<128x64xf32, #tpu.memory_space<vmem>>, vector<128x64xf32>
      tpu.vector_store %arg9[%c0_10, %c0_11], %12 {strides = array<i32>} : memref<128x64xf32, #tpu.memory_space<vmem>>, vector<128x64xf32>,
    } else {
    }
    %c0 = arith.constant 0 : index
    %c0_1 = arith.constant 0 : index
    %3 = vector.load %arg9[%c0, %c0_1] : memref<128x64xf32, #tpu.memory_space<vmem>>, vector<128x64xf32>
    %c0_2 = arith.constant 0 : index
    %c0_3 = arith.constant 0 : index
    %4 = vector.load %arg3[%c0_2, %c0_3] : memref<128x128xbf16, #tpu.memory_space<vmem>>, vector<128x128xbf16>
    %c0_4 = arith.constant 0 : index
    %c0_5 = arith.constant 0 : index
    %5 = vector.load %arg4[%c0_4, %c0_5] : memref<128x64xbf16, #tpu.memory_space<vmem>>, vector<128x64xbf16>
    %cst = arith.constant dense<0.000000e+00> : vector<128x64xf32>
    %6 = tpu.matmul %4, %5, %cst {dimension_numbers = #tpu.dot_dimension_numbers<[1], [0], [0], [1], [0, 0, 1, 1], [], []>} : vector<128x128xbf16>, vector<128x64xbf16>, vector<128x64xf32> -> vector<128x64xf32>
    %7 = arith.addf %3, %6 : vector<128x64xf32>
    %c0_6 = arith.constant 0 : index
    %c0_7 = arith.constant 0 : index
    %8 = vector.load %arg9[%c0_6, %c0_7] : memref<128x64xf32, #tpu.memory_space<vmem>>, vector<128x64xf32>
    tpu.vector_store %arg9[%c0_6, %c0_7], %7 {strides = array<i32>} : memref<128x64xf32, #tpu.memory_space<vmem>>, vector<128x64xf32>,
    %c4_i32 = arith.constant 4 : i32
    %9 = arith.cmpi eq, %arg2, %c4_i32 : i32
    %10 = arith.extui %9 : i1 to i32
    %c0_i32_8 = arith.constant 0 : i32
    %11 = arith.cmpi ne, %10, %c0_i32_8 : i32
    scf.if %11 {
      %c0_9 = arith.constant 0 : index
      %c0_10 = arith.constant 0 : index
      %12 = vector.load %arg9[%c0_9, %c0_10] : memref<128x64xf32, #tpu.memory_space<vmem>>, vector<128x64xf32>
      %c0_11 = arith.constant 0 : index
      %c0_12 = arith.constant 0 : index
      %13 = vector.load %arg5[%c0_11, %c0_12] : memref<1x64xf32, #tpu.memory_space<vmem>>, vector<1x64xf32>
      %14 = vector.broadcast %13 : vector<1x64xf32> to vector<128x64xf32>
      %15 = arith.mulf %12, %14 : vector<128x64xf32>
      %c0_13 = arith.constant 0 : index
      %c0_14 = arith.constant 0 : index
      %16 = vector.load %arg6[%c0_13, %c0_14] : memref<1x64xf32, #tpu.memory_space<vmem>>, vector<1x64xf32>
      %17 = vector.broadcast %16 : vector<1x64xf32> to vector<128x64xf32>
      %18 = arith.addf %15, %17 : vector<128x64xf32>
      %c0_15 = arith.constant 0 : index
      %c0_16 = arith.constant 0 : index
      %19 = vector.load %arg7[%c0_15, %c0_16] : memref<128x64xf32, #tpu.memory_space<vmem>>, vector<128x64xf32>
      %20 = arith.addf %18, %19 : vector<128x64xf32>
      %cst_17 = arith.constant 0.000000e+00 : f32
      %21 = vector.broadcast %cst_17 : f32 to vector<128x64xf32>
      %22 = arith.maximumf %20, %21 : vector<128x64xf32>
      %c0_18 = arith.constant 0 : index
      %c0_19 = arith.constant 0 : index
      %23 = vector.load %arg8[%c0_18, %c0_19] : memref<128x64xf32, #tpu.memory_space<vmem>>, vector<128x64xf32>
      tpu.vector_store %arg8[%c0_18, %c0_19], %22 {strides = array<i32>} : memref<128x64xf32, #tpu.memory_space<vmem>>, vector<128x64xf32>,
    } else {
    }
    return
  }
  func.func @transform_0(%arg0: i32, %arg1: i32, %arg2: i32) -> (i32, i32) {
    %c0_i32 = arith.constant 0 : i32
    return %arg0, %arg2 : i32, i32
  }
  func.func @transform_1(%arg0: i32, %arg1: i32, %arg2: i32) -> (i32, i32) {
    %c0_i32 = arith.constant 0 : i32
    return %arg2, %arg1 : i32, i32
  }
  func.func @transform_2(%arg0: i32, %arg1: i32, %arg2: i32) -> (i32, i32) {
    %c0_i32 = arith.constant 0 : i32
    %c0_i32_0 = arith.constant 0 : i32
    return %c0_i32, %arg1 : i32, i32
  }
  func.func @transform_3(%arg0: i32, %arg1: i32, %arg2: i32) -> (i32, i32) {
    %c0_i32 = arith.constant 0 : i32
    %c0_i32_0 = arith.constant 0 : i32
    return %c0_i32, %arg1 : i32, i32
  }
  func.func @transform_4(%arg0: i32, %arg1: i32, %arg2: i32) -> (i32, i32) {
    %c0_i32 = arith.constant 0 : i32
    return %arg0, %arg1 : i32, i32
  }
  func.func @transform_5(%arg0: i32, %arg1: i32, %arg2: i32) -> (i32, i32) {
    %c0_i32 = arith.constant 0 : i32
    return %arg0, %arg1 : i32, i32
  }
}

module attributes {stable_mosaic.version = 11 : i64} {
  func.func @_mm_bn_kernel(%arg0: i32, %arg1: i32, %arg2: i32, %arg3: memref<32x128xbf16, #tpu.memory_space<vmem>>, %arg4: memref<128x128xbf16, #tpu.memory_space<vmem>>, %arg5: memref<1x128xf32, #tpu.memory_space<vmem>>, %arg6: memref<1x128xf32, #tpu.memory_space<vmem>>, %arg7: memref<32x128xf32, #tpu.memory_space<vmem>>, %arg8: memref<32x128xf32, #tpu.memory_space<vmem>>) attributes {dimension_semantics = [#tpu.dimension_semantics<parallel>, #tpu.dimension_semantics<parallel>, #tpu.dimension_semantics<arbitrary>], iteration_bounds = array<i64: 1, 1, 5>, scalar_prefetch = 0 : i64, scratch_operands = 1 : i64, tpu.core_type = #tpu.core_type<tc>, window_params = [{transform_indices = @transform_0, window_bounds = array<i64: 32, 128>}, {transform_indices = @transform_1, window_bounds = array<i64: 128, 128>}, {transform_indices = @transform_2, window_bounds = array<i64: 1, 128>}, {transform_indices = @transform_3, window_bounds = array<i64: 1, 128>}, {transform_indices = @transform_4, window_bounds = array<i64: 32, 128>}]} {
    %c0_i32 = arith.constant 0 : i32
    %0 = arith.cmpi eq, %arg2, %c0_i32 : i32
    %1 = arith.extui %0 : i1 to i32
    %c0_i32_0 = arith.constant 0 : i32
    %2 = arith.cmpi ne, %1, %c0_i32_0 : i32
    scf.if %2 {
      %cst_9 = arith.constant 0.000000e+00 : f32
      %12 = vector.broadcast %cst_9 : f32 to vector<32x128xf32>
      %c0_10 = arith.constant 0 : index
      %c0_11 = arith.constant 0 : index
      %13 = vector.load %arg8[%c0_10, %c0_11] : memref<32x128xf32, #tpu.memory_space<vmem>>, vector<32x128xf32>
      tpu.vector_store %arg8[%c0_10, %c0_11], %12 {strides = array<i32>} : memref<32x128xf32, #tpu.memory_space<vmem>>, vector<32x128xf32>,
    } else {
    }
    %c0 = arith.constant 0 : index
    %c0_1 = arith.constant 0 : index
    %3 = vector.load %arg8[%c0, %c0_1] : memref<32x128xf32, #tpu.memory_space<vmem>>, vector<32x128xf32>
    %c0_2 = arith.constant 0 : index
    %c0_3 = arith.constant 0 : index
    %4 = vector.load %arg3[%c0_2, %c0_3] : memref<32x128xbf16, #tpu.memory_space<vmem>>, vector<32x128xbf16>
    %c0_4 = arith.constant 0 : index
    %c0_5 = arith.constant 0 : index
    %5 = vector.load %arg4[%c0_4, %c0_5] : memref<128x128xbf16, #tpu.memory_space<vmem>>, vector<128x128xbf16>
    %cst = arith.constant dense<0.000000e+00> : vector<32x128xf32>
    %6 = tpu.matmul %4, %5, %cst {dimension_numbers = #tpu.dot_dimension_numbers<[1], [0], [0], [1], [0, 0, 1, 1], [], []>} : vector<32x128xbf16>, vector<128x128xbf16>, vector<32x128xf32> -> vector<32x128xf32>
    %7 = arith.addf %3, %6 : vector<32x128xf32>
    %c0_6 = arith.constant 0 : index
    %c0_7 = arith.constant 0 : index
    %8 = vector.load %arg8[%c0_6, %c0_7] : memref<32x128xf32, #tpu.memory_space<vmem>>, vector<32x128xf32>
    tpu.vector_store %arg8[%c0_6, %c0_7], %7 {strides = array<i32>} : memref<32x128xf32, #tpu.memory_space<vmem>>, vector<32x128xf32>,
    %c4_i32 = arith.constant 4 : i32
    %9 = arith.cmpi eq, %arg2, %c4_i32 : i32
    %10 = arith.extui %9 : i1 to i32
    %c0_i32_8 = arith.constant 0 : i32
    %11 = arith.cmpi ne, %10, %c0_i32_8 : i32
    scf.if %11 {
      %c0_9 = arith.constant 0 : index
      %c0_10 = arith.constant 0 : index
      %12 = vector.load %arg8[%c0_9, %c0_10] : memref<32x128xf32, #tpu.memory_space<vmem>>, vector<32x128xf32>
      %c0_11 = arith.constant 0 : index
      %c0_12 = arith.constant 0 : index
      %13 = vector.load %arg5[%c0_11, %c0_12] : memref<1x128xf32, #tpu.memory_space<vmem>>, vector<1x128xf32>
      %14 = vector.broadcast %13 : vector<1x128xf32> to vector<32x128xf32>
      %15 = arith.mulf %12, %14 : vector<32x128xf32>
      %c0_13 = arith.constant 0 : index
      %c0_14 = arith.constant 0 : index
      %16 = vector.load %arg6[%c0_13, %c0_14] : memref<1x128xf32, #tpu.memory_space<vmem>>, vector<1x128xf32>
      %17 = vector.broadcast %16 : vector<1x128xf32> to vector<32x128xf32>
      %18 = arith.addf %15, %17 : vector<32x128xf32>
      %cst_15 = arith.constant 0.000000e+00 : f32
      %19 = vector.broadcast %cst_15 : f32 to vector<32x128xf32>
      %20 = arith.maximumf %18, %19 : vector<32x128xf32>
      %c0_16 = arith.constant 0 : index
      %c0_17 = arith.constant 0 : index
      %21 = vector.load %arg7[%c0_16, %c0_17] : memref<32x128xf32, #tpu.memory_space<vmem>>, vector<32x128xf32>
      tpu.vector_store %arg7[%c0_16, %c0_17], %20 {strides = array<i32>} : memref<32x128xf32, #tpu.memory_space<vmem>>, vector<32x128xf32>,
    } else {
    }
    return
  }
  func.func @transform_0(%arg0: i32, %arg1: i32, %arg2: i32) -> (i32, i32) {
    %c0_i32 = arith.constant 0 : i32
    return %arg0, %arg2 : i32, i32
  }
  func.func @transform_1(%arg0: i32, %arg1: i32, %arg2: i32) -> (i32, i32) {
    %c0_i32 = arith.constant 0 : i32
    return %arg2, %arg1 : i32, i32
  }
  func.func @transform_2(%arg0: i32, %arg1: i32, %arg2: i32) -> (i32, i32) {
    %c0_i32 = arith.constant 0 : i32
    %c0_i32_0 = arith.constant 0 : i32
    return %c0_i32, %arg1 : i32, i32
  }
  func.func @transform_3(%arg0: i32, %arg1: i32, %arg2: i32) -> (i32, i32) {
    %c0_i32 = arith.constant 0 : i32
    %c0_i32_0 = arith.constant 0 : i32
    return %c0_i32, %arg1 : i32, i32
  }
  func.func @transform_4(%arg0: i32, %arg1: i32, %arg2: i32) -> (i32, i32) {
    %c0_i32 = arith.constant 0 : i32
    return %arg0, %arg1 : i32, i32
  }
}

module attributes {stable_mosaic.version = 11 : i64} {
  func.func @_mm_bn_kernel(%arg0: i32, %arg1: i32, %arg2: i32, %arg3: memref<32x128xbf16, #tpu.memory_space<vmem>>, %arg4: memref<128x128xbf16, #tpu.memory_space<vmem>>, %arg5: memref<1x128xf32, #tpu.memory_space<vmem>>, %arg6: memref<1x128xf32, #tpu.memory_space<vmem>>, %arg7: memref<32x128xf32, #tpu.memory_space<vmem>>, %arg8: memref<32x128xf32, #tpu.memory_space<vmem>>) attributes {dimension_semantics = [#tpu.dimension_semantics<parallel>, #tpu.dimension_semantics<parallel>, #tpu.dimension_semantics<arbitrary>], iteration_bounds = array<i64: 1, 1, 9>, scalar_prefetch = 0 : i64, scratch_operands = 1 : i64, tpu.core_type = #tpu.core_type<tc>, window_params = [{transform_indices = @transform_0, window_bounds = array<i64: 32, 128>}, {transform_indices = @transform_1, window_bounds = array<i64: 128, 128>}, {transform_indices = @transform_2, window_bounds = array<i64: 1, 128>}, {transform_indices = @transform_3, window_bounds = array<i64: 1, 128>}, {transform_indices = @transform_4, window_bounds = array<i64: 32, 128>}]} {
    %c0_i32 = arith.constant 0 : i32
    %0 = arith.cmpi eq, %arg2, %c0_i32 : i32
    %1 = arith.extui %0 : i1 to i32
    %c0_i32_0 = arith.constant 0 : i32
    %2 = arith.cmpi ne, %1, %c0_i32_0 : i32
    scf.if %2 {
      %cst_9 = arith.constant 0.000000e+00 : f32
      %12 = vector.broadcast %cst_9 : f32 to vector<32x128xf32>
      %c0_10 = arith.constant 0 : index
      %c0_11 = arith.constant 0 : index
      %13 = vector.load %arg8[%c0_10, %c0_11] : memref<32x128xf32, #tpu.memory_space<vmem>>, vector<32x128xf32>
      tpu.vector_store %arg8[%c0_10, %c0_11], %12 {strides = array<i32>} : memref<32x128xf32, #tpu.memory_space<vmem>>, vector<32x128xf32>,
    } else {
    }
    %c0 = arith.constant 0 : index
    %c0_1 = arith.constant 0 : index
    %3 = vector.load %arg8[%c0, %c0_1] : memref<32x128xf32, #tpu.memory_space<vmem>>, vector<32x128xf32>
    %c0_2 = arith.constant 0 : index
    %c0_3 = arith.constant 0 : index
    %4 = vector.load %arg3[%c0_2, %c0_3] : memref<32x128xbf16, #tpu.memory_space<vmem>>, vector<32x128xbf16>
    %c0_4 = arith.constant 0 : index
    %c0_5 = arith.constant 0 : index
    %5 = vector.load %arg4[%c0_4, %c0_5] : memref<128x128xbf16, #tpu.memory_space<vmem>>, vector<128x128xbf16>
    %cst = arith.constant dense<0.000000e+00> : vector<32x128xf32>
    %6 = tpu.matmul %4, %5, %cst {dimension_numbers = #tpu.dot_dimension_numbers<[1], [0], [0], [1], [0, 0, 1, 1], [], []>} : vector<32x128xbf16>, vector<128x128xbf16>, vector<32x128xf32> -> vector<32x128xf32>
    %7 = arith.addf %3, %6 : vector<32x128xf32>
    %c0_6 = arith.constant 0 : index
    %c0_7 = arith.constant 0 : index
    %8 = vector.load %arg8[%c0_6, %c0_7] : memref<32x128xf32, #tpu.memory_space<vmem>>, vector<32x128xf32>
    tpu.vector_store %arg8[%c0_6, %c0_7], %7 {strides = array<i32>} : memref<32x128xf32, #tpu.memory_space<vmem>>, vector<32x128xf32>,
    %c8_i32 = arith.constant 8 : i32
    %9 = arith.cmpi eq, %arg2, %c8_i32 : i32
    %10 = arith.extui %9 : i1 to i32
    %c0_i32_8 = arith.constant 0 : i32
    %11 = arith.cmpi ne, %10, %c0_i32_8 : i32
    scf.if %11 {
      %c0_9 = arith.constant 0 : index
      %c0_10 = arith.constant 0 : index
      %12 = vector.load %arg8[%c0_9, %c0_10] : memref<32x128xf32, #tpu.memory_space<vmem>>, vector<32x128xf32>
      %c0_11 = arith.constant 0 : index
      %c0_12 = arith.constant 0 : index
      %13 = vector.load %arg5[%c0_11, %c0_12] : memref<1x128xf32, #tpu.memory_space<vmem>>, vector<1x128xf32>
      %14 = vector.broadcast %13 : vector<1x128xf32> to vector<32x128xf32>
      %15 = arith.mulf %12, %14 : vector<32x128xf32>
      %c0_13 = arith.constant 0 : index
      %c0_14 = arith.constant 0 : index
      %16 = vector.load %arg6[%c0_13, %c0_14] : memref<1x128xf32, #tpu.memory_space<vmem>>, vector<1x128xf32>
      %17 = vector.broadcast %16 : vector<1x128xf32> to vector<32x128xf32>
      %18 = arith.addf %15, %17 : vector<32x128xf32>
      %cst_15 = arith.constant 0.000000e+00 : f32
      %19 = vector.broadcast %cst_15 : f32 to vector<32x128xf32>
      %20 = arith.maximumf %18, %19 : vector<32x128xf32>
      %c0_16 = arith.constant 0 : index
      %c0_17 = arith.constant 0 : index
      %21 = vector.load %arg7[%c0_16, %c0_17] : memref<32x128xf32, #tpu.memory_space<vmem>>, vector<32x128xf32>
      tpu.vector_store %arg7[%c0_16, %c0_17], %20 {strides = array<i32>} : memref<32x128xf32, #tpu.memory_space<vmem>>, vector<32x128xf32>,
    } else {
    }
    return
  }
  func.func @transform_0(%arg0: i32, %arg1: i32, %arg2: i32) -> (i32, i32) {
    %c0_i32 = arith.constant 0 : i32
    return %arg0, %arg2 : i32, i32
  }
  func.func @transform_1(%arg0: i32, %arg1: i32, %arg2: i32) -> (i32, i32) {
    %c0_i32 = arith.constant 0 : i32
    return %arg2, %arg1 : i32, i32
  }
  func.func @transform_2(%arg0: i32, %arg1: i32, %arg2: i32) -> (i32, i32) {
    %c0_i32 = arith.constant 0 : i32
    %c0_i32_0 = arith.constant 0 : i32
    return %c0_i32, %arg1 : i32, i32
  }
  func.func @transform_3(%arg0: i32, %arg1: i32, %arg2: i32) -> (i32, i32) {
    %c0_i32 = arith.constant 0 : i32
    %c0_i32_0 = arith.constant 0 : i32
    return %c0_i32, %arg1 : i32, i32
  }
  func.func @transform_4(%arg0: i32, %arg1: i32, %arg2: i32) -> (i32, i32) {
    %c0_i32 = arith.constant 0 : i32
    return %arg0, %arg1 : i32, i32
  }
}

module attributes {stable_mosaic.version = 11 : i64} {
  func.func @_mm_bn_kernel(%arg0: i32, %arg1: i32, %arg2: i32, %arg3: memref<32x128xbf16, #tpu.memory_space<vmem>>, %arg4: memref<128x128xbf16, #tpu.memory_space<vmem>>, %arg5: memref<1x128xf32, #tpu.memory_space<vmem>>, %arg6: memref<1x128xf32, #tpu.memory_space<vmem>>, %arg7: memref<32x128xf32, #tpu.memory_space<vmem>>, %arg8: memref<32x128xf32, #tpu.memory_space<vmem>>) attributes {dimension_semantics = [#tpu.dimension_semantics<parallel>, #tpu.dimension_semantics<parallel>, #tpu.dimension_semantics<arbitrary>], iteration_bounds = array<i64: 1, 1, 1>, scalar_prefetch = 0 : i64, scratch_operands = 1 : i64, tpu.core_type = #tpu.core_type<tc>, window_params = [{transform_indices = @transform_0, window_bounds = array<i64: 32, 128>}, {transform_indices = @transform_1, window_bounds = array<i64: 128, 128>}, {transform_indices = @transform_2, window_bounds = array<i64: 1, 128>}, {transform_indices = @transform_3, window_bounds = array<i64: 1, 128>}, {transform_indices = @transform_4, window_bounds = array<i64: 32, 128>}]} {
    %c0_i32 = arith.constant 0 : i32
    %0 = arith.cmpi eq, %arg2, %c0_i32 : i32
    %1 = arith.extui %0 : i1 to i32
    %c0_i32_0 = arith.constant 0 : i32
    %2 = arith.cmpi ne, %1, %c0_i32_0 : i32
    scf.if %2 {
      %cst_10 = arith.constant 0.000000e+00 : f32
      %12 = vector.broadcast %cst_10 : f32 to vector<32x128xf32>
      %c0_11 = arith.constant 0 : index
      %c0_12 = arith.constant 0 : index
      %13 = vector.load %arg8[%c0_11, %c0_12] : memref<32x128xf32, #tpu.memory_space<vmem>>, vector<32x128xf32>
      tpu.vector_store %arg8[%c0_11, %c0_12], %12 {strides = array<i32>} : memref<32x128xf32, #tpu.memory_space<vmem>>, vector<32x128xf32>,
    } else {
    }
    %c0 = arith.constant 0 : index
    %c0_1 = arith.constant 0 : index
    %3 = vector.load %arg8[%c0, %c0_1] : memref<32x128xf32, #tpu.memory_space<vmem>>, vector<32x128xf32>
    %c0_2 = arith.constant 0 : index
    %c0_3 = arith.constant 0 : index
    %4 = vector.load %arg3[%c0_2, %c0_3] : memref<32x128xbf16, #tpu.memory_space<vmem>>, vector<32x128xbf16>
    %c0_4 = arith.constant 0 : index
    %c0_5 = arith.constant 0 : index
    %5 = vector.load %arg4[%c0_4, %c0_5] : memref<128x128xbf16, #tpu.memory_space<vmem>>, vector<128x128xbf16>
    %cst = arith.constant dense<0.000000e+00> : vector<32x128xf32>
    %6 = tpu.matmul %4, %5, %cst {dimension_numbers = #tpu.dot_dimension_numbers<[1], [0], [0], [1], [0, 0, 1, 1], [], []>} : vector<32x128xbf16>, vector<128x128xbf16>, vector<32x128xf32> -> vector<32x128xf32>
    %7 = arith.addf %3, %6 : vector<32x128xf32>
    %c0_6 = arith.constant 0 : index
    %c0_7 = arith.constant 0 : index
    %8 = vector.load %arg8[%c0_6, %c0_7] : memref<32x128xf32, #tpu.memory_space<vmem>>, vector<32x128xf32>
    tpu.vector_store %arg8[%c0_6, %c0_7], %7 {strides = array<i32>} : memref<32x128xf32, #tpu.memory_space<vmem>>, vector<32x128xf32>,
    %c0_i32_8 = arith.constant 0 : i32
    %9 = arith.cmpi eq, %arg2, %c0_i32_8 : i32
    %10 = arith.extui %9 : i1 to i32
    %c0_i32_9 = arith.constant 0 : i32
    %11 = arith.cmpi ne, %10, %c0_i32_9 : i32
    scf.if %11 {
      %c0_10 = arith.constant 0 : index
      %c0_11 = arith.constant 0 : index
      %12 = vector.load %arg8[%c0_10, %c0_11] : memref<32x128xf32, #tpu.memory_space<vmem>>, vector<32x128xf32>
      %c0_12 = arith.constant 0 : index
      %c0_13 = arith.constant 0 : index
      %13 = vector.load %arg5[%c0_12, %c0_13] : memref<1x128xf32, #tpu.memory_space<vmem>>, vector<1x128xf32>
      %14 = vector.broadcast %13 : vector<1x128xf32> to vector<32x128xf32>
      %15 = arith.mulf %12, %14 : vector<32x128xf32>
      %c0_14 = arith.constant 0 : index
      %c0_15 = arith.constant 0 : index
      %16 = vector.load %arg6[%c0_14, %c0_15] : memref<1x128xf32, #tpu.memory_space<vmem>>, vector<1x128xf32>
      %17 = vector.broadcast %16 : vector<1x128xf32> to vector<32x128xf32>
      %18 = arith.addf %15, %17 : vector<32x128xf32>
      %c0_16 = arith.constant 0 : index
      %c0_17 = arith.constant 0 : index
      %19 = vector.load %arg7[%c0_16, %c0_17] : memref<32x128xf32, #tpu.memory_space<vmem>>, vector<32x128xf32>
      tpu.vector_store %arg7[%c0_16, %c0_17], %18 {strides = array<i32>} : memref<32x128xf32, #tpu.memory_space<vmem>>, vector<32x128xf32>,
    } else {
    }
    return
  }
  func.func @transform_0(%arg0: i32, %arg1: i32, %arg2: i32) -> (i32, i32) {
    %c0_i32 = arith.constant 0 : i32
    return %arg0, %arg2 : i32, i32
  }
  func.func @transform_1(%arg0: i32, %arg1: i32, %arg2: i32) -> (i32, i32) {
    %c0_i32 = arith.constant 0 : i32
    return %arg2, %arg1 : i32, i32
  }
  func.func @transform_2(%arg0: i32, %arg1: i32, %arg2: i32) -> (i32, i32) {
    %c0_i32 = arith.constant 0 : i32
    %c0_i32_0 = arith.constant 0 : i32
    return %c0_i32, %arg1 : i32, i32
  }
  func.func @transform_3(%arg0: i32, %arg1: i32, %arg2: i32) -> (i32, i32) {
    %c0_i32 = arith.constant 0 : i32
    %c0_i32_0 = arith.constant 0 : i32
    return %c0_i32, %arg1 : i32, i32
  }
  func.func @transform_4(%arg0: i32, %arg1: i32, %arg2: i32) -> (i32, i32) {
    %c0_i32 = arith.constant 0 : i32
    return %arg0, %arg1 : i32, i32
  }
}

module attributes {stable_mosaic.version = 11 : i64} {
  func.func @_mm_bn_res_kernel(%arg0: i32, %arg1: i32, %arg2: i32, %arg3: memref<32x128xbf16, #tpu.memory_space<vmem>>, %arg4: memref<128x128xbf16, #tpu.memory_space<vmem>>, %arg5: memref<1x128xf32, #tpu.memory_space<vmem>>, %arg6: memref<1x128xf32, #tpu.memory_space<vmem>>, %arg7: memref<32x128xf32, #tpu.memory_space<vmem>>, %arg8: memref<32x128xf32, #tpu.memory_space<vmem>>, %arg9: memref<32x128xf32, #tpu.memory_space<vmem>>) attributes {dimension_semantics = [#tpu.dimension_semantics<parallel>, #tpu.dimension_semantics<parallel>, #tpu.dimension_semantics<arbitrary>], iteration_bounds = array<i64: 1, 1, 9>, scalar_prefetch = 0 : i64, scratch_operands = 1 : i64, tpu.core_type = #tpu.core_type<tc>, window_params = [{transform_indices = @transform_0, window_bounds = array<i64: 32, 128>}, {transform_indices = @transform_1, window_bounds = array<i64: 128, 128>}, {transform_indices = @transform_2, window_bounds = array<i64: 1, 128>}, {transform_indices = @transform_3, window_bounds = array<i64: 1, 128>}, {transform_indices = @transform_4, window_bounds = array<i64: 32, 128>}, {transform_indices = @transform_5, window_bounds = array<i64: 32, 128>}]} {
    %c0_i32 = arith.constant 0 : i32
    %0 = arith.cmpi eq, %arg2, %c0_i32 : i32
    %1 = arith.extui %0 : i1 to i32
    %c0_i32_0 = arith.constant 0 : i32
    %2 = arith.cmpi ne, %1, %c0_i32_0 : i32
    scf.if %2 {
      %cst_9 = arith.constant 0.000000e+00 : f32
      %12 = vector.broadcast %cst_9 : f32 to vector<32x128xf32>
      %c0_10 = arith.constant 0 : index
      %c0_11 = arith.constant 0 : index
      %13 = vector.load %arg9[%c0_10, %c0_11] : memref<32x128xf32, #tpu.memory_space<vmem>>, vector<32x128xf32>
      tpu.vector_store %arg9[%c0_10, %c0_11], %12 {strides = array<i32>} : memref<32x128xf32, #tpu.memory_space<vmem>>, vector<32x128xf32>,
    } else {
    }
    %c0 = arith.constant 0 : index
    %c0_1 = arith.constant 0 : index
    %3 = vector.load %arg9[%c0, %c0_1] : memref<32x128xf32, #tpu.memory_space<vmem>>, vector<32x128xf32>
    %c0_2 = arith.constant 0 : index
    %c0_3 = arith.constant 0 : index
    %4 = vector.load %arg3[%c0_2, %c0_3] : memref<32x128xbf16, #tpu.memory_space<vmem>>, vector<32x128xbf16>
    %c0_4 = arith.constant 0 : index
    %c0_5 = arith.constant 0 : index
    %5 = vector.load %arg4[%c0_4, %c0_5] : memref<128x128xbf16, #tpu.memory_space<vmem>>, vector<128x128xbf16>
    %cst = arith.constant dense<0.000000e+00> : vector<32x128xf32>
    %6 = tpu.matmul %4, %5, %cst {dimension_numbers = #tpu.dot_dimension_numbers<[1], [0], [0], [1], [0, 0, 1, 1], [], []>} : vector<32x128xbf16>, vector<128x128xbf16>, vector<32x128xf32> -> vector<32x128xf32>
    %7 = arith.addf %3, %6 : vector<32x128xf32>
    %c0_6 = arith.constant 0 : index
    %c0_7 = arith.constant 0 : index
    %8 = vector.load %arg9[%c0_6, %c0_7] : memref<32x128xf32, #tpu.memory_space<vmem>>, vector<32x128xf32>
    tpu.vector_store %arg9[%c0_6, %c0_7], %7 {strides = array<i32>} : memref<32x128xf32, #tpu.memory_space<vmem>>, vector<32x128xf32>,
    %c8_i32 = arith.constant 8 : i32
    %9 = arith.cmpi eq, %arg2, %c8_i32 : i32
    %10 = arith.extui %9 : i1 to i32
    %c0_i32_8 = arith.constant 0 : i32
    %11 = arith.cmpi ne, %10, %c0_i32_8 : i32
    scf.if %11 {
      %c0_9 = arith.constant 0 : index
      %c0_10 = arith.constant 0 : index
      %12 = vector.load %arg9[%c0_9, %c0_10] : memref<32x128xf32, #tpu.memory_space<vmem>>, vector<32x128xf32>
      %c0_11 = arith.constant 0 : index
      %c0_12 = arith.constant 0 : index
      %13 = vector.load %arg5[%c0_11, %c0_12] : memref<1x128xf32, #tpu.memory_space<vmem>>, vector<1x128xf32>
      %14 = vector.broadcast %13 : vector<1x128xf32> to vector<32x128xf32>
      %15 = arith.mulf %12, %14 : vector<32x128xf32>
      %c0_13 = arith.constant 0 : index
      %c0_14 = arith.constant 0 : index
      %16 = vector.load %arg6[%c0_13, %c0_14] : memref<1x128xf32, #tpu.memory_space<vmem>>, vector<1x128xf32>
      %17 = vector.broadcast %16 : vector<1x128xf32> to vector<32x128xf32>
      %18 = arith.addf %15, %17 : vector<32x128xf32>
      %c0_15 = arith.constant 0 : index
      %c0_16 = arith.constant 0 : index
      %19 = vector.load %arg7[%c0_15, %c0_16] : memref<32x128xf32, #tpu.memory_space<vmem>>, vector<32x128xf32>
      %20 = arith.addf %18, %19 : vector<32x128xf32>
      %cst_17 = arith.constant 0.000000e+00 : f32
      %21 = vector.broadcast %cst_17 : f32 to vector<32x128xf32>
      %22 = arith.maximumf %20, %21 : vector<32x128xf32>
      %c0_18 = arith.constant 0 : index
      %c0_19 = arith.constant 0 : index
      %23 = vector.load %arg8[%c0_18, %c0_19] : memref<32x128xf32, #tpu.memory_space<vmem>>, vector<32x128xf32>
      tpu.vector_store %arg8[%c0_18, %c0_19], %22 {strides = array<i32>} : memref<32x128xf32, #tpu.memory_space<vmem>>, vector<32x128xf32>,
    } else {
    }
    return
  }
  func.func @transform_0(%arg0: i32, %arg1: i32, %arg2: i32) -> (i32, i32) {
    %c0_i32 = arith.constant 0 : i32
    return %arg0, %arg2 : i32, i32
  }
  func.func @transform_1(%arg0: i32, %arg1: i32, %arg2: i32) -> (i32, i32) {
    %c0_i32 = arith.constant 0 : i32
    return %arg2, %arg1 : i32, i32
  }
  func.func @transform_2(%arg0: i32, %arg1: i32, %arg2: i32) -> (i32, i32) {
    %c0_i32 = arith.constant 0 : i32
    %c0_i32_0 = arith.constant 0 : i32
    return %c0_i32, %arg1 : i32, i32
  }
  func.func @transform_3(%arg0: i32, %arg1: i32, %arg2: i32) -> (i32, i32) {
    %c0_i32 = arith.constant 0 : i32
    %c0_i32_0 = arith.constant 0 : i32
    return %c0_i32, %arg1 : i32, i32
  }
  func.func @transform_4(%arg0: i32, %arg1: i32, %arg2: i32) -> (i32, i32) {
    %c0_i32 = arith.constant 0 : i32
    return %arg0, %arg1 : i32, i32
  }
  func.func @transform_5(%arg0: i32, %arg1: i32, %arg2: i32) -> (i32, i32) {
    %c0_i32 = arith.constant 0 : i32
    return %arg0, %arg1 : i32, i32
  }
}

module attributes {stable_mosaic.version = 11 : i64} {
  func.func @_mm_bn_kernel(%arg0: i32, %arg1: i32, %arg2: i32, %arg3: memref<8x128xbf16, #tpu.memory_space<vmem>>, %arg4: memref<128x256xbf16, #tpu.memory_space<vmem>>, %arg5: memref<1x256xf32, #tpu.memory_space<vmem>>, %arg6: memref<1x256xf32, #tpu.memory_space<vmem>>, %arg7: memref<8x256xf32, #tpu.memory_space<vmem>>, %arg8: memref<8x256xf32, #tpu.memory_space<vmem>>) attributes {dimension_semantics = [#tpu.dimension_semantics<parallel>, #tpu.dimension_semantics<parallel>, #tpu.dimension_semantics<arbitrary>], iteration_bounds = array<i64: 1, 1, 9>, scalar_prefetch = 0 : i64, scratch_operands = 1 : i64, tpu.core_type = #tpu.core_type<tc>, window_params = [{transform_indices = @transform_0, window_bounds = array<i64: 8, 128>}, {transform_indices = @transform_1, window_bounds = array<i64: 128, 256>}, {transform_indices = @transform_2, window_bounds = array<i64: 1, 256>}, {transform_indices = @transform_3, window_bounds = array<i64: 1, 256>}, {transform_indices = @transform_4, window_bounds = array<i64: 8, 256>}]} {
    %c0_i32 = arith.constant 0 : i32
    %0 = arith.cmpi eq, %arg2, %c0_i32 : i32
    %1 = arith.extui %0 : i1 to i32
    %c0_i32_0 = arith.constant 0 : i32
    %2 = arith.cmpi ne, %1, %c0_i32_0 : i32
    scf.if %2 {
      %cst_9 = arith.constant 0.000000e+00 : f32
      %12 = vector.broadcast %cst_9 : f32 to vector<8x256xf32>
      %c0_10 = arith.constant 0 : index
      %c0_11 = arith.constant 0 : index
      %13 = vector.load %arg8[%c0_10, %c0_11] : memref<8x256xf32, #tpu.memory_space<vmem>>, vector<8x256xf32>
      tpu.vector_store %arg8[%c0_10, %c0_11], %12 {strides = array<i32>} : memref<8x256xf32, #tpu.memory_space<vmem>>, vector<8x256xf32>,
    } else {
    }
    %c0 = arith.constant 0 : index
    %c0_1 = arith.constant 0 : index
    %3 = vector.load %arg8[%c0, %c0_1] : memref<8x256xf32, #tpu.memory_space<vmem>>, vector<8x256xf32>
    %c0_2 = arith.constant 0 : index
    %c0_3 = arith.constant 0 : index
    %4 = vector.load %arg3[%c0_2, %c0_3] : memref<8x128xbf16, #tpu.memory_space<vmem>>, vector<8x128xbf16>
    %c0_4 = arith.constant 0 : index
    %c0_5 = arith.constant 0 : index
    %5 = vector.load %arg4[%c0_4, %c0_5] : memref<128x256xbf16, #tpu.memory_space<vmem>>, vector<128x256xbf16>
    %cst = arith.constant dense<0.000000e+00> : vector<8x256xf32>
    %6 = tpu.matmul %4, %5, %cst {dimension_numbers = #tpu.dot_dimension_numbers<[1], [0], [0], [1], [0, 0, 1, 1], [], []>} : vector<8x128xbf16>, vector<128x256xbf16>, vector<8x256xf32> -> vector<8x256xf32>
    %7 = arith.addf %3, %6 : vector<8x256xf32>
    %c0_6 = arith.constant 0 : index
    %c0_7 = arith.constant 0 : index
    %8 = vector.load %arg8[%c0_6, %c0_7] : memref<8x256xf32, #tpu.memory_space<vmem>>, vector<8x256xf32>
    tpu.vector_store %arg8[%c0_6, %c0_7], %7 {strides = array<i32>} : memref<8x256xf32, #tpu.memory_space<vmem>>, vector<8x256xf32>,
    %c8_i32 = arith.constant 8 : i32
    %9 = arith.cmpi eq, %arg2, %c8_i32 : i32
    %10 = arith.extui %9 : i1 to i32
    %c0_i32_8 = arith.constant 0 : i32
    %11 = arith.cmpi ne, %10, %c0_i32_8 : i32
    scf.if %11 {
      %c0_9 = arith.constant 0 : index
      %c0_10 = arith.constant 0 : index
      %12 = vector.load %arg8[%c0_9, %c0_10] : memref<8x256xf32, #tpu.memory_space<vmem>>, vector<8x256xf32>
      %c0_11 = arith.constant 0 : index
      %c0_12 = arith.constant 0 : index
      %13 = vector.load %arg5[%c0_11, %c0_12] : memref<1x256xf32, #tpu.memory_space<vmem>>, vector<1x256xf32>
      %14 = vector.broadcast %13 : vector<1x256xf32> to vector<8x256xf32>
      %15 = arith.mulf %12, %14 : vector<8x256xf32>
      %c0_13 = arith.constant 0 : index
      %c0_14 = arith.constant 0 : index
      %16 = vector.load %arg6[%c0_13, %c0_14] : memref<1x256xf32, #tpu.memory_space<vmem>>, vector<1x256xf32>
      %17 = vector.broadcast %16 : vector<1x256xf32> to vector<8x256xf32>
      %18 = arith.addf %15, %17 : vector<8x256xf32>
      %cst_15 = arith.constant 0.000000e+00 : f32
      %19 = vector.broadcast %cst_15 : f32 to vector<8x256xf32>
      %20 = arith.maximumf %18, %19 : vector<8x256xf32>
      %c0_16 = arith.constant 0 : index
      %c0_17 = arith.constant 0 : index
      %21 = vector.load %arg7[%c0_16, %c0_17] : memref<8x256xf32, #tpu.memory_space<vmem>>, vector<8x256xf32>
      tpu.vector_store %arg7[%c0_16, %c0_17], %20 {strides = array<i32>} : memref<8x256xf32, #tpu.memory_space<vmem>>, vector<8x256xf32>,
    } else {
    }
    return
  }
  func.func @transform_0(%arg0: i32, %arg1: i32, %arg2: i32) -> (i32, i32) {
    %c0_i32 = arith.constant 0 : i32
    return %arg0, %arg2 : i32, i32
  }
  func.func @transform_1(%arg0: i32, %arg1: i32, %arg2: i32) -> (i32, i32) {
    %c0_i32 = arith.constant 0 : i32
    return %arg2, %arg1 : i32, i32
  }
  func.func @transform_2(%arg0: i32, %arg1: i32, %arg2: i32) -> (i32, i32) {
    %c0_i32 = arith.constant 0 : i32
    %c0_i32_0 = arith.constant 0 : i32
    return %c0_i32, %arg1 : i32, i32
  }
  func.func @transform_3(%arg0: i32, %arg1: i32, %arg2: i32) -> (i32, i32) {
    %c0_i32 = arith.constant 0 : i32
    %c0_i32_0 = arith.constant 0 : i32
    return %c0_i32, %arg1 : i32, i32
  }
  func.func @transform_4(%arg0: i32, %arg1: i32, %arg2: i32) -> (i32, i32) {
    %c0_i32 = arith.constant 0 : i32
    return %arg0, %arg1 : i32, i32
  }
}

module attributes {stable_mosaic.version = 11 : i64} {
  func.func @_mm_bn_kernel(%arg0: i32, %arg1: i32, %arg2: i32, %arg3: memref<8x128xbf16, #tpu.memory_space<vmem>>, %arg4: memref<128x256xbf16, #tpu.memory_space<vmem>>, %arg5: memref<1x256xf32, #tpu.memory_space<vmem>>, %arg6: memref<1x256xf32, #tpu.memory_space<vmem>>, %arg7: memref<8x256xf32, #tpu.memory_space<vmem>>, %arg8: memref<8x256xf32, #tpu.memory_space<vmem>>) attributes {dimension_semantics = [#tpu.dimension_semantics<parallel>, #tpu.dimension_semantics<parallel>, #tpu.dimension_semantics<arbitrary>], iteration_bounds = array<i64: 1, 1, 1>, scalar_prefetch = 0 : i64, scratch_operands = 1 : i64, tpu.core_type = #tpu.core_type<tc>, window_params = [{transform_indices = @transform_0, window_bounds = array<i64: 8, 128>}, {transform_indices = @transform_1, window_bounds = array<i64: 128, 256>}, {transform_indices = @transform_2, window_bounds = array<i64: 1, 256>}, {transform_indices = @transform_3, window_bounds = array<i64: 1, 256>}, {transform_indices = @transform_4, window_bounds = array<i64: 8, 256>}]} {
    %c0_i32 = arith.constant 0 : i32
    %0 = arith.cmpi eq, %arg2, %c0_i32 : i32
    %1 = arith.extui %0 : i1 to i32
    %c0_i32_0 = arith.constant 0 : i32
    %2 = arith.cmpi ne, %1, %c0_i32_0 : i32
    scf.if %2 {
      %cst_10 = arith.constant 0.000000e+00 : f32
      %12 = vector.broadcast %cst_10 : f32 to vector<8x256xf32>
      %c0_11 = arith.constant 0 : index
      %c0_12 = arith.constant 0 : index
      %13 = vector.load %arg8[%c0_11, %c0_12] : memref<8x256xf32, #tpu.memory_space<vmem>>, vector<8x256xf32>
      tpu.vector_store %arg8[%c0_11, %c0_12], %12 {strides = array<i32>} : memref<8x256xf32, #tpu.memory_space<vmem>>, vector<8x256xf32>,
    } else {
    }
    %c0 = arith.constant 0 : index
    %c0_1 = arith.constant 0 : index
    %3 = vector.load %arg8[%c0, %c0_1] : memref<8x256xf32, #tpu.memory_space<vmem>>, vector<8x256xf32>
    %c0_2 = arith.constant 0 : index
    %c0_3 = arith.constant 0 : index
    %4 = vector.load %arg3[%c0_2, %c0_3] : memref<8x128xbf16, #tpu.memory_space<vmem>>, vector<8x128xbf16>
    %c0_4 = arith.constant 0 : index
    %c0_5 = arith.constant 0 : index
    %5 = vector.load %arg4[%c0_4, %c0_5] : memref<128x256xbf16, #tpu.memory_space<vmem>>, vector<128x256xbf16>
    %cst = arith.constant dense<0.000000e+00> : vector<8x256xf32>
    %6 = tpu.matmul %4, %5, %cst {dimension_numbers = #tpu.dot_dimension_numbers<[1], [0], [0], [1], [0, 0, 1, 1], [], []>} : vector<8x128xbf16>, vector<128x256xbf16>, vector<8x256xf32> -> vector<8x256xf32>
    %7 = arith.addf %3, %6 : vector<8x256xf32>
    %c0_6 = arith.constant 0 : index
    %c0_7 = arith.constant 0 : index
    %8 = vector.load %arg8[%c0_6, %c0_7] : memref<8x256xf32, #tpu.memory_space<vmem>>, vector<8x256xf32>
    tpu.vector_store %arg8[%c0_6, %c0_7], %7 {strides = array<i32>} : memref<8x256xf32, #tpu.memory_space<vmem>>, vector<8x256xf32>,
    %c0_i32_8 = arith.constant 0 : i32
    %9 = arith.cmpi eq, %arg2, %c0_i32_8 : i32
    %10 = arith.extui %9 : i1 to i32
    %c0_i32_9 = arith.constant 0 : i32
    %11 = arith.cmpi ne, %10, %c0_i32_9 : i32
    scf.if %11 {
      %c0_10 = arith.constant 0 : index
      %c0_11 = arith.constant 0 : index
      %12 = vector.load %arg8[%c0_10, %c0_11] : memref<8x256xf32, #tpu.memory_space<vmem>>, vector<8x256xf32>
      %c0_12 = arith.constant 0 : index
      %c0_13 = arith.constant 0 : index
      %13 = vector.load %arg5[%c0_12, %c0_13] : memref<1x256xf32, #tpu.memory_space<vmem>>, vector<1x256xf32>
      %14 = vector.broadcast %13 : vector<1x256xf32> to vector<8x256xf32>
      %15 = arith.mulf %12, %14 : vector<8x256xf32>
      %c0_14 = arith.constant 0 : index
      %c0_15 = arith.constant 0 : index
      %16 = vector.load %arg6[%c0_14, %c0_15] : memref<1x256xf32, #tpu.memory_space<vmem>>, vector<1x256xf32>
      %17 = vector.broadcast %16 : vector<1x256xf32> to vector<8x256xf32>
      %18 = arith.addf %15, %17 : vector<8x256xf32>
      %c0_16 = arith.constant 0 : index
      %c0_17 = arith.constant 0 : index
      %19 = vector.load %arg7[%c0_16, %c0_17] : memref<8x256xf32, #tpu.memory_space<vmem>>, vector<8x256xf32>
      tpu.vector_store %arg7[%c0_16, %c0_17], %18 {strides = array<i32>} : memref<8x256xf32, #tpu.memory_space<vmem>>, vector<8x256xf32>,
    } else {
    }
    return
  }
  func.func @transform_0(%arg0: i32, %arg1: i32, %arg2: i32) -> (i32, i32) {
    %c0_i32 = arith.constant 0 : i32
    return %arg0, %arg2 : i32, i32
  }
  func.func @transform_1(%arg0: i32, %arg1: i32, %arg2: i32) -> (i32, i32) {
    %c0_i32 = arith.constant 0 : i32
    return %arg2, %arg1 : i32, i32
  }
  func.func @transform_2(%arg0: i32, %arg1: i32, %arg2: i32) -> (i32, i32) {
    %c0_i32 = arith.constant 0 : i32
    %c0_i32_0 = arith.constant 0 : i32
    return %c0_i32, %arg1 : i32, i32
  }
  func.func @transform_3(%arg0: i32, %arg1: i32, %arg2: i32) -> (i32, i32) {
    %c0_i32 = arith.constant 0 : i32
    %c0_i32_0 = arith.constant 0 : i32
    return %c0_i32, %arg1 : i32, i32
  }
  func.func @transform_4(%arg0: i32, %arg1: i32, %arg2: i32) -> (i32, i32) {
    %c0_i32 = arith.constant 0 : i32
    return %arg0, %arg1 : i32, i32
  }
}

module attributes {stable_mosaic.version = 11 : i64} {
  func.func @_mm_bn_res_kernel(%arg0: i32, %arg1: i32, %arg2: i32, %arg3: memref<8x256xbf16, #tpu.memory_space<vmem>>, %arg4: memref<256x256xbf16, #tpu.memory_space<vmem>>, %arg5: memref<1x256xf32, #tpu.memory_space<vmem>>, %arg6: memref<1x256xf32, #tpu.memory_space<vmem>>, %arg7: memref<8x256xf32, #tpu.memory_space<vmem>>, %arg8: memref<8x256xf32, #tpu.memory_space<vmem>>, %arg9: memref<8x256xf32, #tpu.memory_space<vmem>>) attributes {dimension_semantics = [#tpu.dimension_semantics<parallel>, #tpu.dimension_semantics<parallel>, #tpu.dimension_semantics<arbitrary>], iteration_bounds = array<i64: 1, 1, 9>, scalar_prefetch = 0 : i64, scratch_operands = 1 : i64, tpu.core_type = #tpu.core_type<tc>, window_params = [{transform_indices = @transform_0, window_bounds = array<i64: 8, 256>}, {transform_indices = @transform_1, window_bounds = array<i64: 256, 256>}, {transform_indices = @transform_2, window_bounds = array<i64: 1, 256>}, {transform_indices = @transform_3, window_bounds = array<i64: 1, 256>}, {transform_indices = @transform_4, window_bounds = array<i64: 8, 256>}, {transform_indices = @transform_5, window_bounds = array<i64: 8, 256>}]} {
    %c0_i32 = arith.constant 0 : i32
    %0 = arith.cmpi eq, %arg2, %c0_i32 : i32
    %1 = arith.extui %0 : i1 to i32
    %c0_i32_0 = arith.constant 0 : i32
    %2 = arith.cmpi ne, %1, %c0_i32_0 : i32
    scf.if %2 {
      %cst_9 = arith.constant 0.000000e+00 : f32
      %12 = vector.broadcast %cst_9 : f32 to vector<8x256xf32>
      %c0_10 = arith.constant 0 : index
      %c0_11 = arith.constant 0 : index
      %13 = vector.load %arg9[%c0_10, %c0_11] : memref<8x256xf32, #tpu.memory_space<vmem>>, vector<8x256xf32>
      tpu.vector_store %arg9[%c0_10, %c0_11], %12 {strides = array<i32>} : memref<8x256xf32, #tpu.memory_space<vmem>>, vector<8x256xf32>,
    } else {
    }
    %c0 = arith.constant 0 : index
    %c0_1 = arith.constant 0 : index
    %3 = vector.load %arg9[%c0, %c0_1] : memref<8x256xf32, #tpu.memory_space<vmem>>, vector<8x256xf32>
    %c0_2 = arith.constant 0 : index
    %c0_3 = arith.constant 0 : index
    %4 = vector.load %arg3[%c0_2, %c0_3] : memref<8x256xbf16, #tpu.memory_space<vmem>>, vector<8x256xbf16>
    %c0_4 = arith.constant 0 : index
    %c0_5 = arith.constant 0 : index
    %5 = vector.load %arg4[%c0_4, %c0_5] : memref<256x256xbf16, #tpu.memory_space<vmem>>, vector<256x256xbf16>
    %cst = arith.constant dense<0.000000e+00> : vector<8x256xf32>
    %6 = tpu.matmul %4, %5, %cst {dimension_numbers = #tpu.dot_dimension_numbers<[1], [0], [0], [1], [0, 0, 1, 1], [], []>} : vector<8x256xbf16>, vector<256x256xbf16>, vector<8x256xf32> -> vector<8x256xf32>
    %7 = arith.addf %3, %6 : vector<8x256xf32>
    %c0_6 = arith.constant 0 : index
    %c0_7 = arith.constant 0 : index
    %8 = vector.load %arg9[%c0_6, %c0_7] : memref<8x256xf32, #tpu.memory_space<vmem>>, vector<8x256xf32>
    tpu.vector_store %arg9[%c0_6, %c0_7], %7 {strides = array<i32>} : memref<8x256xf32, #tpu.memory_space<vmem>>, vector<8x256xf32>,
    %c8_i32 = arith.constant 8 : i32
    %9 = arith.cmpi eq, %arg2, %c8_i32 : i32
    %10 = arith.extui %9 : i1 to i32
    %c0_i32_8 = arith.constant 0 : i32
    %11 = arith.cmpi ne, %10, %c0_i32_8 : i32
    scf.if %11 {
      %c0_9 = arith.constant 0 : index
      %c0_10 = arith.constant 0 : index
      %12 = vector.load %arg9[%c0_9, %c0_10] : memref<8x256xf32, #tpu.memory_space<vmem>>, vector<8x256xf32>
      %c0_11 = arith.constant 0 : index
      %c0_12 = arith.constant 0 : index
      %13 = vector.load %arg5[%c0_11, %c0_12] : memref<1x256xf32, #tpu.memory_space<vmem>>, vector<1x256xf32>
      %14 = vector.broadcast %13 : vector<1x256xf32> to vector<8x256xf32>
      %15 = arith.mulf %12, %14 : vector<8x256xf32>
      %c0_13 = arith.constant 0 : index
      %c0_14 = arith.constant 0 : index
      %16 = vector.load %arg6[%c0_13, %c0_14] : memref<1x256xf32, #tpu.memory_space<vmem>>, vector<1x256xf32>
      %17 = vector.broadcast %16 : vector<1x256xf32> to vector<8x256xf32>
      %18 = arith.addf %15, %17 : vector<8x256xf32>
      %c0_15 = arith.constant 0 : index
      %c0_16 = arith.constant 0 : index
      %19 = vector.load %arg7[%c0_15, %c0_16] : memref<8x256xf32, #tpu.memory_space<vmem>>, vector<8x256xf32>
      %20 = arith.addf %18, %19 : vector<8x256xf32>
      %cst_17 = arith.constant 0.000000e+00 : f32
      %21 = vector.broadcast %cst_17 : f32 to vector<8x256xf32>
      %22 = arith.maximumf %20, %21 : vector<8x256xf32>
      %c0_18 = arith.constant 0 : index
      %c0_19 = arith.constant 0 : index
      %23 = vector.load %arg8[%c0_18, %c0_19] : memref<8x256xf32, #tpu.memory_space<vmem>>, vector<8x256xf32>
      tpu.vector_store %arg8[%c0_18, %c0_19], %22 {strides = array<i32>} : memref<8x256xf32, #tpu.memory_space<vmem>>, vector<8x256xf32>,
    } else {
    }
    return
  }
  func.func @transform_0(%arg0: i32, %arg1: i32, %arg2: i32) -> (i32, i32) {
    %c0_i32 = arith.constant 0 : i32
    return %arg0, %arg2 : i32, i32
  }
  func.func @transform_1(%arg0: i32, %arg1: i32, %arg2: i32) -> (i32, i32) {
    %c0_i32 = arith.constant 0 : i32
    return %arg2, %arg1 : i32, i32
  }
  func.func @transform_2(%arg0: i32, %arg1: i32, %arg2: i32) -> (i32, i32) {
    %c0_i32 = arith.constant 0 : i32
    %c0_i32_0 = arith.constant 0 : i32
    return %c0_i32, %arg1 : i32, i32
  }
  func.func @transform_3(%arg0: i32, %arg1: i32, %arg2: i32) -> (i32, i32) {
    %c0_i32 = arith.constant 0 : i32
    %c0_i32_0 = arith.constant 0 : i32
    return %c0_i32, %arg1 : i32, i32
  }
  func.func @transform_4(%arg0: i32, %arg1: i32, %arg2: i32) -> (i32, i32) {
    %c0_i32 = arith.constant 0 : i32
    return %arg0, %arg1 : i32, i32
  }
  func.func @transform_5(%arg0: i32, %arg1: i32, %arg2: i32) -> (i32, i32) {
    %c0_i32 = arith.constant 0 : i32
    return %arg0, %arg1 : i32, i32
  }
}

module attributes {stable_mosaic.version = 11 : i64} {
  func.func @_mm_bn_kernel(%arg0: i32, %arg1: i32, %arg2: i32, %arg3: memref<8x256xbf16, #tpu.memory_space<vmem>>, %arg4: memref<256x256xbf16, #tpu.memory_space<vmem>>, %arg5: memref<1x256xf32, #tpu.memory_space<vmem>>, %arg6: memref<1x256xf32, #tpu.memory_space<vmem>>, %arg7: memref<8x256xf32, #tpu.memory_space<vmem>>, %arg8: memref<8x256xf32, #tpu.memory_space<vmem>>) attributes {dimension_semantics = [#tpu.dimension_semantics<parallel>, #tpu.dimension_semantics<parallel>, #tpu.dimension_semantics<arbitrary>], iteration_bounds = array<i64: 1, 1, 9>, scalar_prefetch = 0 : i64, scratch_operands = 1 : i64, tpu.core_type = #tpu.core_type<tc>, window_params = [{transform_indices = @transform_0, window_bounds = array<i64: 8, 256>}, {transform_indices = @transform_1, window_bounds = array<i64: 256, 256>}, {transform_indices = @transform_2, window_bounds = array<i64: 1, 256>}, {transform_indices = @transform_3, window_bounds = array<i64: 1, 256>}, {transform_indices = @transform_4, window_bounds = array<i64: 8, 256>}]} {
    %c0_i32 = arith.constant 0 : i32
    %0 = arith.cmpi eq, %arg2, %c0_i32 : i32
    %1 = arith.extui %0 : i1 to i32
    %c0_i32_0 = arith.constant 0 : i32
    %2 = arith.cmpi ne, %1, %c0_i32_0 : i32
    scf.if %2 {
      %cst_9 = arith.constant 0.000000e+00 : f32
      %12 = vector.broadcast %cst_9 : f32 to vector<8x256xf32>
      %c0_10 = arith.constant 0 : index
      %c0_11 = arith.constant 0 : index
      %13 = vector.load %arg8[%c0_10, %c0_11] : memref<8x256xf32, #tpu.memory_space<vmem>>, vector<8x256xf32>
      tpu.vector_store %arg8[%c0_10, %c0_11], %12 {strides = array<i32>} : memref<8x256xf32, #tpu.memory_space<vmem>>, vector<8x256xf32>,
    } else {
    }
    %c0 = arith.constant 0 : index
    %c0_1 = arith.constant 0 : index
    %3 = vector.load %arg8[%c0, %c0_1] : memref<8x256xf32, #tpu.memory_space<vmem>>, vector<8x256xf32>
    %c0_2 = arith.constant 0 : index
    %c0_3 = arith.constant 0 : index
    %4 = vector.load %arg3[%c0_2, %c0_3] : memref<8x256xbf16, #tpu.memory_space<vmem>>, vector<8x256xbf16>
    %c0_4 = arith.constant 0 : index
    %c0_5 = arith.constant 0 : index
    %5 = vector.load %arg4[%c0_4, %c0_5] : memref<256x256xbf16, #tpu.memory_space<vmem>>, vector<256x256xbf16>
    %cst = arith.constant dense<0.000000e+00> : vector<8x256xf32>
    %6 = tpu.matmul %4, %5, %cst {dimension_numbers = #tpu.dot_dimension_numbers<[1], [0], [0], [1], [0, 0, 1, 1], [], []>} : vector<8x256xbf16>, vector<256x256xbf16>, vector<8x256xf32> -> vector<8x256xf32>
    %7 = arith.addf %3, %6 : vector<8x256xf32>
    %c0_6 = arith.constant 0 : index
    %c0_7 = arith.constant 0 : index
    %8 = vector.load %arg8[%c0_6, %c0_7] : memref<8x256xf32, #tpu.memory_space<vmem>>, vector<8x256xf32>
    tpu.vector_store %arg8[%c0_6, %c0_7], %7 {strides = array<i32>} : memref<8x256xf32, #tpu.memory_space<vmem>>, vector<8x256xf32>,
    %c8_i32 = arith.constant 8 : i32
    %9 = arith.cmpi eq, %arg2, %c8_i32 : i32
    %10 = arith.extui %9 : i1 to i32
    %c0_i32_8 = arith.constant 0 : i32
    %11 = arith.cmpi ne, %10, %c0_i32_8 : i32
    scf.if %11 {
      %c0_9 = arith.constant 0 : index
      %c0_10 = arith.constant 0 : index
      %12 = vector.load %arg8[%c0_9, %c0_10] : memref<8x256xf32, #tpu.memory_space<vmem>>, vector<8x256xf32>
      %c0_11 = arith.constant 0 : index
      %c0_12 = arith.constant 0 : index
      %13 = vector.load %arg5[%c0_11, %c0_12] : memref<1x256xf32, #tpu.memory_space<vmem>>, vector<1x256xf32>
      %14 = vector.broadcast %13 : vector<1x256xf32> to vector<8x256xf32>
      %15 = arith.mulf %12, %14 : vector<8x256xf32>
      %c0_13 = arith.constant 0 : index
      %c0_14 = arith.constant 0 : index
      %16 = vector.load %arg6[%c0_13, %c0_14] : memref<1x256xf32, #tpu.memory_space<vmem>>, vector<1x256xf32>
      %17 = vector.broadcast %16 : vector<1x256xf32> to vector<8x256xf32>
      %18 = arith.addf %15, %17 : vector<8x256xf32>
      %cst_15 = arith.constant 0.000000e+00 : f32
      %19 = vector.broadcast %cst_15 : f32 to vector<8x256xf32>
      %20 = arith.maximumf %18, %19 : vector<8x256xf32>
      %c0_16 = arith.constant 0 : index
      %c0_17 = arith.constant 0 : index
      %21 = vector.load %arg7[%c0_16, %c0_17] : memref<8x256xf32, #tpu.memory_space<vmem>>, vector<8x256xf32>
      tpu.vector_store %arg7[%c0_16, %c0_17], %20 {strides = array<i32>} : memref<8x256xf32, #tpu.memory_space<vmem>>, vector<8x256xf32>,
    } else {
    }
    return
  }
  func.func @transform_0(%arg0: i32, %arg1: i32, %arg2: i32) -> (i32, i32) {
    %c0_i32 = arith.constant 0 : i32
    return %arg0, %arg2 : i32, i32
  }
  func.func @transform_1(%arg0: i32, %arg1: i32, %arg2: i32) -> (i32, i32) {
    %c0_i32 = arith.constant 0 : i32
    return %arg2, %arg1 : i32, i32
  }
  func.func @transform_2(%arg0: i32, %arg1: i32, %arg2: i32) -> (i32, i32) {
    %c0_i32 = arith.constant 0 : i32
    %c0_i32_0 = arith.constant 0 : i32
    return %c0_i32, %arg1 : i32, i32
  }
  func.func @transform_3(%arg0: i32, %arg1: i32, %arg2: i32) -> (i32, i32) {
    %c0_i32 = arith.constant 0 : i32
    %c0_i32_0 = arith.constant 0 : i32
    return %c0_i32, %arg1 : i32, i32
  }
  func.func @transform_4(%arg0: i32, %arg1: i32, %arg2: i32) -> (i32, i32) {
    %c0_i32 = arith.constant 0 : i32
    return %arg0, %arg1 : i32, i32
  }
}

module attributes {stable_mosaic.version = 11 : i64} {
  func.func @_mm_bn_kernel(%arg0: i32, %arg1: i32, %arg2: i32, %arg3: memref<8x256xbf16, #tpu.memory_space<vmem>>, %arg4: memref<256x256xbf16, #tpu.memory_space<vmem>>, %arg5: memref<1x256xf32, #tpu.memory_space<vmem>>, %arg6: memref<1x256xf32, #tpu.memory_space<vmem>>, %arg7: memref<8x256xf32, #tpu.memory_space<vmem>>, %arg8: memref<8x256xf32, #tpu.memory_space<vmem>>) attributes {dimension_semantics = [#tpu.dimension_semantics<parallel>, #tpu.dimension_semantics<parallel>, #tpu.dimension_semantics<arbitrary>], iteration_bounds = array<i64: 1, 2, 9>, scalar_prefetch = 0 : i64, scratch_operands = 1 : i64, tpu.core_type = #tpu.core_type<tc>, window_params = [{transform_indices = @transform_0, window_bounds = array<i64: 8, 256>}, {transform_indices = @transform_1, window_bounds = array<i64: 256, 256>}, {transform_indices = @transform_2, window_bounds = array<i64: 1, 256>}, {transform_indices = @transform_3, window_bounds = array<i64: 1, 256>}, {transform_indices = @transform_4, window_bounds = array<i64: 8, 256>}]} {
    %c0_i32 = arith.constant 0 : i32
    %0 = arith.cmpi eq, %arg2, %c0_i32 : i32
    %1 = arith.extui %0 : i1 to i32
    %c0_i32_0 = arith.constant 0 : i32
    %2 = arith.cmpi ne, %1, %c0_i32_0 : i32
    scf.if %2 {
      %cst_9 = arith.constant 0.000000e+00 : f32
      %12 = vector.broadcast %cst_9 : f32 to vector<8x256xf32>
      %c0_10 = arith.constant 0 : index
      %c0_11 = arith.constant 0 : index
      %13 = vector.load %arg8[%c0_10, %c0_11] : memref<8x256xf32, #tpu.memory_space<vmem>>, vector<8x256xf32>
      tpu.vector_store %arg8[%c0_10, %c0_11], %12 {strides = array<i32>} : memref<8x256xf32, #tpu.memory_space<vmem>>, vector<8x256xf32>,
    } else {
    }
    %c0 = arith.constant 0 : index
    %c0_1 = arith.constant 0 : index
    %3 = vector.load %arg8[%c0, %c0_1] : memref<8x256xf32, #tpu.memory_space<vmem>>, vector<8x256xf32>
    %c0_2 = arith.constant 0 : index
    %c0_3 = arith.constant 0 : index
    %4 = vector.load %arg3[%c0_2, %c0_3] : memref<8x256xbf16, #tpu.memory_space<vmem>>, vector<8x256xbf16>
    %c0_4 = arith.constant 0 : index
    %c0_5 = arith.constant 0 : index
    %5 = vector.load %arg4[%c0_4, %c0_5] : memref<256x256xbf16, #tpu.memory_space<vmem>>, vector<256x256xbf16>
    %cst = arith.constant dense<0.000000e+00> : vector<8x256xf32>
    %6 = tpu.matmul %4, %5, %cst {dimension_numbers = #tpu.dot_dimension_numbers<[1], [0], [0], [1], [0, 0, 1, 1], [], []>} : vector<8x256xbf16>, vector<256x256xbf16>, vector<8x256xf32> -> vector<8x256xf32>
    %7 = arith.addf %3, %6 : vector<8x256xf32>
    %c0_6 = arith.constant 0 : index
    %c0_7 = arith.constant 0 : index
    %8 = vector.load %arg8[%c0_6, %c0_7] : memref<8x256xf32, #tpu.memory_space<vmem>>, vector<8x256xf32>
    tpu.vector_store %arg8[%c0_6, %c0_7], %7 {strides = array<i32>} : memref<8x256xf32, #tpu.memory_space<vmem>>, vector<8x256xf32>,
    %c8_i32 = arith.constant 8 : i32
    %9 = arith.cmpi eq, %arg2, %c8_i32 : i32
    %10 = arith.extui %9 : i1 to i32
    %c0_i32_8 = arith.constant 0 : i32
    %11 = arith.cmpi ne, %10, %c0_i32_8 : i32
    scf.if %11 {
      %c0_9 = arith.constant 0 : index
      %c0_10 = arith.constant 0 : index
      %12 = vector.load %arg8[%c0_9, %c0_10] : memref<8x256xf32, #tpu.memory_space<vmem>>, vector<8x256xf32>
      %c0_11 = arith.constant 0 : index
      %c0_12 = arith.constant 0 : index
      %13 = vector.load %arg5[%c0_11, %c0_12] : memref<1x256xf32, #tpu.memory_space<vmem>>, vector<1x256xf32>
      %14 = vector.broadcast %13 : vector<1x256xf32> to vector<8x256xf32>
      %15 = arith.mulf %12, %14 : vector<8x256xf32>
      %c0_13 = arith.constant 0 : index
      %c0_14 = arith.constant 0 : index
      %16 = vector.load %arg6[%c0_13, %c0_14] : memref<1x256xf32, #tpu.memory_space<vmem>>, vector<1x256xf32>
      %17 = vector.broadcast %16 : vector<1x256xf32> to vector<8x256xf32>
      %18 = arith.addf %15, %17 : vector<8x256xf32>
      %cst_15 = arith.constant 0.000000e+00 : f32
      %19 = vector.broadcast %cst_15 : f32 to vector<8x256xf32>
      %20 = arith.maximumf %18, %19 : vector<8x256xf32>
      %c0_16 = arith.constant 0 : index
      %c0_17 = arith.constant 0 : index
      %21 = vector.load %arg7[%c0_16, %c0_17] : memref<8x256xf32, #tpu.memory_space<vmem>>, vector<8x256xf32>
      tpu.vector_store %arg7[%c0_16, %c0_17], %20 {strides = array<i32>} : memref<8x256xf32, #tpu.memory_space<vmem>>, vector<8x256xf32>,
    } else {
    }
    return
  }
  func.func @transform_0(%arg0: i32, %arg1: i32, %arg2: i32) -> (i32, i32) {
    %c0_i32 = arith.constant 0 : i32
    return %arg0, %arg2 : i32, i32
  }
  func.func @transform_1(%arg0: i32, %arg1: i32, %arg2: i32) -> (i32, i32) {
    %c0_i32 = arith.constant 0 : i32
    return %arg2, %arg1 : i32, i32
  }
  func.func @transform_2(%arg0: i32, %arg1: i32, %arg2: i32) -> (i32, i32) {
    %c0_i32 = arith.constant 0 : i32
    %c0_i32_0 = arith.constant 0 : i32
    return %c0_i32, %arg1 : i32, i32
  }
  func.func @transform_3(%arg0: i32, %arg1: i32, %arg2: i32) -> (i32, i32) {
    %c0_i32 = arith.constant 0 : i32
    %c0_i32_0 = arith.constant 0 : i32
    return %c0_i32, %arg1 : i32, i32
  }
  func.func @transform_4(%arg0: i32, %arg1: i32, %arg2: i32) -> (i32, i32) {
    %c0_i32 = arith.constant 0 : i32
    return %arg0, %arg1 : i32, i32
  }
}

module attributes {stable_mosaic.version = 11 : i64} {
  func.func @_mm_bn_kernel(%arg0: i32, %arg1: i32, %arg2: i32, %arg3: memref<8x256xbf16, #tpu.memory_space<vmem>>, %arg4: memref<256x256xbf16, #tpu.memory_space<vmem>>, %arg5: memref<1x256xf32, #tpu.memory_space<vmem>>, %arg6: memref<1x256xf32, #tpu.memory_space<vmem>>, %arg7: memref<8x256xf32, #tpu.memory_space<vmem>>, %arg8: memref<8x256xf32, #tpu.memory_space<vmem>>) attributes {dimension_semantics = [#tpu.dimension_semantics<parallel>, #tpu.dimension_semantics<parallel>, #tpu.dimension_semantics<arbitrary>], iteration_bounds = array<i64: 1, 2, 1>, scalar_prefetch = 0 : i64, scratch_operands = 1 : i64, tpu.core_type = #tpu.core_type<tc>, window_params = [{transform_indices = @transform_0, window_bounds = array<i64: 8, 256>}, {transform_indices = @transform_1, window_bounds = array<i64: 256, 256>}, {transform_indices = @transform_2, window_bounds = array<i64: 1, 256>}, {transform_indices = @transform_3, window_bounds = array<i64: 1, 256>}, {transform_indices = @transform_4, window_bounds = array<i64: 8, 256>}]} {
    %c0_i32 = arith.constant 0 : i32
    %0 = arith.cmpi eq, %arg2, %c0_i32 : i32
    %1 = arith.extui %0 : i1 to i32
    %c0_i32_0 = arith.constant 0 : i32
    %2 = arith.cmpi ne, %1, %c0_i32_0 : i32
    scf.if %2 {
      %cst_10 = arith.constant 0.000000e+00 : f32
      %12 = vector.broadcast %cst_10 : f32 to vector<8x256xf32>
      %c0_11 = arith.constant 0 : index
      %c0_12 = arith.constant 0 : index
      %13 = vector.load %arg8[%c0_11, %c0_12] : memref<8x256xf32, #tpu.memory_space<vmem>>, vector<8x256xf32>
      tpu.vector_store %arg8[%c0_11, %c0_12], %12 {strides = array<i32>} : memref<8x256xf32, #tpu.memory_space<vmem>>, vector<8x256xf32>,
    } else {
    }
    %c0 = arith.constant 0 : index
    %c0_1 = arith.constant 0 : index
    %3 = vector.load %arg8[%c0, %c0_1] : memref<8x256xf32, #tpu.memory_space<vmem>>, vector<8x256xf32>
    %c0_2 = arith.constant 0 : index
    %c0_3 = arith.constant 0 : index
    %4 = vector.load %arg3[%c0_2, %c0_3] : memref<8x256xbf16, #tpu.memory_space<vmem>>, vector<8x256xbf16>
    %c0_4 = arith.constant 0 : index
    %c0_5 = arith.constant 0 : index
    %5 = vector.load %arg4[%c0_4, %c0_5] : memref<256x256xbf16, #tpu.memory_space<vmem>>, vector<256x256xbf16>
    %cst = arith.constant dense<0.000000e+00> : vector<8x256xf32>
    %6 = tpu.matmul %4, %5, %cst {dimension_numbers = #tpu.dot_dimension_numbers<[1], [0], [0], [1], [0, 0, 1, 1], [], []>} : vector<8x256xbf16>, vector<256x256xbf16>, vector<8x256xf32> -> vector<8x256xf32>
    %7 = arith.addf %3, %6 : vector<8x256xf32>
    %c0_6 = arith.constant 0 : index
    %c0_7 = arith.constant 0 : index
    %8 = vector.load %arg8[%c0_6, %c0_7] : memref<8x256xf32, #tpu.memory_space<vmem>>, vector<8x256xf32>
    tpu.vector_store %arg8[%c0_6, %c0_7], %7 {strides = array<i32>} : memref<8x256xf32, #tpu.memory_space<vmem>>, vector<8x256xf32>,
    %c0_i32_8 = arith.constant 0 : i32
    %9 = arith.cmpi eq, %arg2, %c0_i32_8 : i32
    %10 = arith.extui %9 : i1 to i32
    %c0_i32_9 = arith.constant 0 : i32
    %11 = arith.cmpi ne, %10, %c0_i32_9 : i32
    scf.if %11 {
      %c0_10 = arith.constant 0 : index
      %c0_11 = arith.constant 0 : index
      %12 = vector.load %arg8[%c0_10, %c0_11] : memref<8x256xf32, #tpu.memory_space<vmem>>, vector<8x256xf32>
      %c0_12 = arith.constant 0 : index
      %c0_13 = arith.constant 0 : index
      %13 = vector.load %arg5[%c0_12, %c0_13] : memref<1x256xf32, #tpu.memory_space<vmem>>, vector<1x256xf32>
      %14 = vector.broadcast %13 : vector<1x256xf32> to vector<8x256xf32>
      %15 = arith.mulf %12, %14 : vector<8x256xf32>
      %c0_14 = arith.constant 0 : index
      %c0_15 = arith.constant 0 : index
      %16 = vector.load %arg6[%c0_14, %c0_15] : memref<1x256xf32, #tpu.memory_space<vmem>>, vector<1x256xf32>
      %17 = vector.broadcast %16 : vector<1x256xf32> to vector<8x256xf32>
      %18 = arith.addf %15, %17 : vector<8x256xf32>
      %c0_16 = arith.constant 0 : index
      %c0_17 = arith.constant 0 : index
      %19 = vector.load %arg7[%c0_16, %c0_17] : memref<8x256xf32, #tpu.memory_space<vmem>>, vector<8x256xf32>
      tpu.vector_store %arg7[%c0_16, %c0_17], %18 {strides = array<i32>} : memref<8x256xf32, #tpu.memory_space<vmem>>, vector<8x256xf32>,
    } else {
    }
    return
  }
  func.func @transform_0(%arg0: i32, %arg1: i32, %arg2: i32) -> (i32, i32) {
    %c0_i32 = arith.constant 0 : i32
    return %arg0, %arg2 : i32, i32
  }
  func.func @transform_1(%arg0: i32, %arg1: i32, %arg2: i32) -> (i32, i32) {
    %c0_i32 = arith.constant 0 : i32
    return %arg2, %arg1 : i32, i32
  }
  func.func @transform_2(%arg0: i32, %arg1: i32, %arg2: i32) -> (i32, i32) {
    %c0_i32 = arith.constant 0 : i32
    %c0_i32_0 = arith.constant 0 : i32
    return %c0_i32, %arg1 : i32, i32
  }
  func.func @transform_3(%arg0: i32, %arg1: i32, %arg2: i32) -> (i32, i32) {
    %c0_i32 = arith.constant 0 : i32
    %c0_i32_0 = arith.constant 0 : i32
    return %c0_i32, %arg1 : i32, i32
  }
  func.func @transform_4(%arg0: i32, %arg1: i32, %arg2: i32) -> (i32, i32) {
    %c0_i32 = arith.constant 0 : i32
    return %arg0, %arg1 : i32, i32
  }
}

module attributes {stable_mosaic.version = 11 : i64} {
  func.func @_mm_bn_res_kernel(%arg0: i32, %arg1: i32, %arg2: i32, %arg3: memref<8x512xbf16, #tpu.memory_space<vmem>>, %arg4: memref<512x256xbf16, #tpu.memory_space<vmem>>, %arg5: memref<1x256xf32, #tpu.memory_space<vmem>>, %arg6: memref<1x256xf32, #tpu.memory_space<vmem>>, %arg7: memref<8x256xf32, #tpu.memory_space<vmem>>, %arg8: memref<8x256xf32, #tpu.memory_space<vmem>>, %arg9: memref<8x256xf32, #tpu.memory_space<vmem>>) attributes {dimension_semantics = [#tpu.dimension_semantics<parallel>, #tpu.dimension_semantics<parallel>, #tpu.dimension_semantics<arbitrary>], iteration_bounds = array<i64: 1, 2, 9>, scalar_prefetch = 0 : i64, scratch_operands = 1 : i64, tpu.core_type = #tpu.core_type<tc>, window_params = [{transform_indices = @transform_0, window_bounds = array<i64: 8, 512>}, {transform_indices = @transform_1, window_bounds = array<i64: 512, 256>}, {transform_indices = @transform_2, window_bounds = array<i64: 1, 256>}, {transform_indices = @transform_3, window_bounds = array<i64: 1, 256>}, {transform_indices = @transform_4, window_bounds = array<i64: 8, 256>}, {transform_indices = @transform_5, window_bounds = array<i64: 8, 256>}]} {
    %c0_i32 = arith.constant 0 : i32
    %0 = arith.cmpi eq, %arg2, %c0_i32 : i32
    %1 = arith.extui %0 : i1 to i32
    %c0_i32_0 = arith.constant 0 : i32
    %2 = arith.cmpi ne, %1, %c0_i32_0 : i32
    scf.if %2 {
      %cst_9 = arith.constant 0.000000e+00 : f32
      %12 = vector.broadcast %cst_9 : f32 to vector<8x256xf32>
      %c0_10 = arith.constant 0 : index
      %c0_11 = arith.constant 0 : index
      %13 = vector.load %arg9[%c0_10, %c0_11] : memref<8x256xf32, #tpu.memory_space<vmem>>, vector<8x256xf32>
      tpu.vector_store %arg9[%c0_10, %c0_11], %12 {strides = array<i32>} : memref<8x256xf32, #tpu.memory_space<vmem>>, vector<8x256xf32>,
    } else {
    }
    %c0 = arith.constant 0 : index
    %c0_1 = arith.constant 0 : index
    %3 = vector.load %arg9[%c0, %c0_1] : memref<8x256xf32, #tpu.memory_space<vmem>>, vector<8x256xf32>
    %c0_2 = arith.constant 0 : index
    %c0_3 = arith.constant 0 : index
    %4 = vector.load %arg3[%c0_2, %c0_3] : memref<8x512xbf16, #tpu.memory_space<vmem>>, vector<8x512xbf16>
    %c0_4 = arith.constant 0 : index
    %c0_5 = arith.constant 0 : index
    %5 = vector.load %arg4[%c0_4, %c0_5] : memref<512x256xbf16, #tpu.memory_space<vmem>>, vector<512x256xbf16>
    %cst = arith.constant dense<0.000000e+00> : vector<8x256xf32>
    %6 = tpu.matmul %4, %5, %cst {dimension_numbers = #tpu.dot_dimension_numbers<[1], [0], [0], [1], [0, 0, 1, 1], [], []>} : vector<8x512xbf16>, vector<512x256xbf16>, vector<8x256xf32> -> vector<8x256xf32>
    %7 = arith.addf %3, %6 : vector<8x256xf32>
    %c0_6 = arith.constant 0 : index
    %c0_7 = arith.constant 0 : index
    %8 = vector.load %arg9[%c0_6, %c0_7] : memref<8x256xf32, #tpu.memory_space<vmem>>, vector<8x256xf32>
    tpu.vector_store %arg9[%c0_6, %c0_7], %7 {strides = array<i32>} : memref<8x256xf32, #tpu.memory_space<vmem>>, vector<8x256xf32>,
    %c8_i32 = arith.constant 8 : i32
    %9 = arith.cmpi eq, %arg2, %c8_i32 : i32
    %10 = arith.extui %9 : i1 to i32
    %c0_i32_8 = arith.constant 0 : i32
    %11 = arith.cmpi ne, %10, %c0_i32_8 : i32
    scf.if %11 {
      %c0_9 = arith.constant 0 : index
      %c0_10 = arith.constant 0 : index
      %12 = vector.load %arg9[%c0_9, %c0_10] : memref<8x256xf32, #tpu.memory_space<vmem>>, vector<8x256xf32>
      %c0_11 = arith.constant 0 : index
      %c0_12 = arith.constant 0 : index
      %13 = vector.load %arg5[%c0_11, %c0_12] : memref<1x256xf32, #tpu.memory_space<vmem>>, vector<1x256xf32>
      %14 = vector.broadcast %13 : vector<1x256xf32> to vector<8x256xf32>
      %15 = arith.mulf %12, %14 : vector<8x256xf32>
      %c0_13 = arith.constant 0 : index
      %c0_14 = arith.constant 0 : index
      %16 = vector.load %arg6[%c0_13, %c0_14] : memref<1x256xf32, #tpu.memory_space<vmem>>, vector<1x256xf32>
      %17 = vector.broadcast %16 : vector<1x256xf32> to vector<8x256xf32>
      %18 = arith.addf %15, %17 : vector<8x256xf32>
      %c0_15 = arith.constant 0 : index
      %c0_16 = arith.constant 0 : index
      %19 = vector.load %arg7[%c0_15, %c0_16] : memref<8x256xf32, #tpu.memory_space<vmem>>, vector<8x256xf32>
      %20 = arith.addf %18, %19 : vector<8x256xf32>
      %cst_17 = arith.constant 0.000000e+00 : f32
      %21 = vector.broadcast %cst_17 : f32 to vector<8x256xf32>
      %22 = arith.maximumf %20, %21 : vector<8x256xf32>
      %c0_18 = arith.constant 0 : index
      %c0_19 = arith.constant 0 : index
      %23 = vector.load %arg8[%c0_18, %c0_19] : memref<8x256xf32, #tpu.memory_space<vmem>>, vector<8x256xf32>
      tpu.vector_store %arg8[%c0_18, %c0_19], %22 {strides = array<i32>} : memref<8x256xf32, #tpu.memory_space<vmem>>, vector<8x256xf32>,
    } else {
    }
    return
  }
  func.func @transform_0(%arg0: i32, %arg1: i32, %arg2: i32) -> (i32, i32) {
    %c0_i32 = arith.constant 0 : i32
    return %arg0, %arg2 : i32, i32
  }
  func.func @transform_1(%arg0: i32, %arg1: i32, %arg2: i32) -> (i32, i32) {
    %c0_i32 = arith.constant 0 : i32
    return %arg2, %arg1 : i32, i32
  }
  func.func @transform_2(%arg0: i32, %arg1: i32, %arg2: i32) -> (i32, i32) {
    %c0_i32 = arith.constant 0 : i32
    %c0_i32_0 = arith.constant 0 : i32
    return %c0_i32, %arg1 : i32, i32
  }
  func.func @transform_3(%arg0: i32, %arg1: i32, %arg2: i32) -> (i32, i32) {
    %c0_i32 = arith.constant 0 : i32
    %c0_i32_0 = arith.constant 0 : i32
    return %c0_i32, %arg1 : i32, i32
  }
  func.func @transform_4(%arg0: i32, %arg1: i32, %arg2: i32) -> (i32, i32) {
    %c0_i32 = arith.constant 0 : i32
    return %arg0, %arg1 : i32, i32
  }
  func.func @transform_5(%arg0: i32, %arg1: i32, %arg2: i32) -> (i32, i32) {
    %c0_i32 = arith.constant 0 : i32
    return %arg0, %arg1 : i32, i32
  }
}

module attributes {stable_mosaic.version = 11 : i64} {
  func.func @_mm_bn_kernel(%arg0: i32, %arg1: i32, %arg2: i32, %arg3: memref<8x512xbf16, #tpu.memory_space<vmem>>, %arg4: memref<512x256xbf16, #tpu.memory_space<vmem>>, %arg5: memref<1x256xf32, #tpu.memory_space<vmem>>, %arg6: memref<1x256xf32, #tpu.memory_space<vmem>>, %arg7: memref<8x256xf32, #tpu.memory_space<vmem>>, %arg8: memref<8x256xf32, #tpu.memory_space<vmem>>) attributes {dimension_semantics = [#tpu.dimension_semantics<parallel>, #tpu.dimension_semantics<parallel>, #tpu.dimension_semantics<arbitrary>], iteration_bounds = array<i64: 1, 2, 9>, scalar_prefetch = 0 : i64, scratch_operands = 1 : i64, tpu.core_type = #tpu.core_type<tc>, window_params = [{transform_indices = @transform_0, window_bounds = array<i64: 8, 512>}, {transform_indices = @transform_1, window_bounds = array<i64: 512, 256>}, {transform_indices = @transform_2, window_bounds = array<i64: 1, 256>}, {transform_indices = @transform_3, window_bounds = array<i64: 1, 256>}, {transform_indices = @transform_4, window_bounds = array<i64: 8, 256>}]} {
    %c0_i32 = arith.constant 0 : i32
    %0 = arith.cmpi eq, %arg2, %c0_i32 : i32
    %1 = arith.extui %0 : i1 to i32
    %c0_i32_0 = arith.constant 0 : i32
    %2 = arith.cmpi ne, %1, %c0_i32_0 : i32
    scf.if %2 {
      %cst_9 = arith.constant 0.000000e+00 : f32
      %12 = vector.broadcast %cst_9 : f32 to vector<8x256xf32>
      %c0_10 = arith.constant 0 : index
      %c0_11 = arith.constant 0 : index
      %13 = vector.load %arg8[%c0_10, %c0_11] : memref<8x256xf32, #tpu.memory_space<vmem>>, vector<8x256xf32>
      tpu.vector_store %arg8[%c0_10, %c0_11], %12 {strides = array<i32>} : memref<8x256xf32, #tpu.memory_space<vmem>>, vector<8x256xf32>,
    } else {
    }
    %c0 = arith.constant 0 : index
    %c0_1 = arith.constant 0 : index
    %3 = vector.load %arg8[%c0, %c0_1] : memref<8x256xf32, #tpu.memory_space<vmem>>, vector<8x256xf32>
    %c0_2 = arith.constant 0 : index
    %c0_3 = arith.constant 0 : index
    %4 = vector.load %arg3[%c0_2, %c0_3] : memref<8x512xbf16, #tpu.memory_space<vmem>>, vector<8x512xbf16>
    %c0_4 = arith.constant 0 : index
    %c0_5 = arith.constant 0 : index
    %5 = vector.load %arg4[%c0_4, %c0_5] : memref<512x256xbf16, #tpu.memory_space<vmem>>, vector<512x256xbf16>
    %cst = arith.constant dense<0.000000e+00> : vector<8x256xf32>
    %6 = tpu.matmul %4, %5, %cst {dimension_numbers = #tpu.dot_dimension_numbers<[1], [0], [0], [1], [0, 0, 1, 1], [], []>} : vector<8x512xbf16>, vector<512x256xbf16>, vector<8x256xf32> -> vector<8x256xf32>
    %7 = arith.addf %3, %6 : vector<8x256xf32>
    %c0_6 = arith.constant 0 : index
    %c0_7 = arith.constant 0 : index
    %8 = vector.load %arg8[%c0_6, %c0_7] : memref<8x256xf32, #tpu.memory_space<vmem>>, vector<8x256xf32>
    tpu.vector_store %arg8[%c0_6, %c0_7], %7 {strides = array<i32>} : memref<8x256xf32, #tpu.memory_space<vmem>>, vector<8x256xf32>,
    %c8_i32 = arith.constant 8 : i32
    %9 = arith.cmpi eq, %arg2, %c8_i32 : i32
    %10 = arith.extui %9 : i1 to i32
    %c0_i32_8 = arith.constant 0 : i32
    %11 = arith.cmpi ne, %10, %c0_i32_8 : i32
    scf.if %11 {
      %c0_9 = arith.constant 0 : index
      %c0_10 = arith.constant 0 : index
      %12 = vector.load %arg8[%c0_9, %c0_10] : memref<8x256xf32, #tpu.memory_space<vmem>>, vector<8x256xf32>
      %c0_11 = arith.constant 0 : index
      %c0_12 = arith.constant 0 : index
      %13 = vector.load %arg5[%c0_11, %c0_12] : memref<1x256xf32, #tpu.memory_space<vmem>>, vector<1x256xf32>
      %14 = vector.broadcast %13 : vector<1x256xf32> to vector<8x256xf32>
      %15 = arith.mulf %12, %14 : vector<8x256xf32>
      %c0_13 = arith.constant 0 : index
      %c0_14 = arith.constant 0 : index
      %16 = vector.load %arg6[%c0_13, %c0_14] : memref<1x256xf32, #tpu.memory_space<vmem>>, vector<1x256xf32>
      %17 = vector.broadcast %16 : vector<1x256xf32> to vector<8x256xf32>
      %18 = arith.addf %15, %17 : vector<8x256xf32>
      %cst_15 = arith.constant 0.000000e+00 : f32
      %19 = vector.broadcast %cst_15 : f32 to vector<8x256xf32>
      %20 = arith.maximumf %18, %19 : vector<8x256xf32>
      %c0_16 = arith.constant 0 : index
      %c0_17 = arith.constant 0 : index
      %21 = vector.load %arg7[%c0_16, %c0_17] : memref<8x256xf32, #tpu.memory_space<vmem>>, vector<8x256xf32>
      tpu.vector_store %arg7[%c0_16, %c0_17], %20 {strides = array<i32>} : memref<8x256xf32, #tpu.memory_space<vmem>>, vector<8x256xf32>,
    } else {
    }
    return
  }
  func.func @transform_0(%arg0: i32, %arg1: i32, %arg2: i32) -> (i32, i32) {
    %c0_i32 = arith.constant 0 : i32
    return %arg0, %arg2 : i32, i32
  }
  func.func @transform_1(%arg0: i32, %arg1: i32, %arg2: i32) -> (i32, i32) {
    %c0_i32 = arith.constant 0 : i32
    return %arg2, %arg1 : i32, i32
  }
  func.func @transform_2(%arg0: i32, %arg1: i32, %arg2: i32) -> (i32, i32) {
    %c0_i32 = arith.constant 0 : i32
    %c0_i32_0 = arith.constant 0 : i32
    return %c0_i32, %arg1 : i32, i32
  }
  func.func @transform_3(%arg0: i32, %arg1: i32, %arg2: i32) -> (i32, i32) {
    %c0_i32 = arith.constant 0 : i32
    %c0_i32_0 = arith.constant 0 : i32
    return %c0_i32, %arg1 : i32, i32
  }
  func.func @transform_4(%arg0: i32, %arg1: i32, %arg2: i32) -> (i32, i32) {
    %c0_i32 = arith.constant 0 : i32
    return %arg0, %arg1 : i32, i32
  }
}

</mosaic_0001>

<bundles_post_ra>
// kernel: _lambda_.21
= control target key start
LH: loop header
LB: loop body
LE: loop exit
PB: predicated region body
PF: predicated region fallthrough
CT: control target
= control target key end

     0   :  { %s1560_s15 = smov 0   ;;  %s1562_s16 = smov 0   ;;  %s1886_s0 = inlined_call_operand.vmem [shape: bf16[512,256], index: 0, kind: input, shape index: {}]   ;;  %s1887_s1 = inlined_call_operand.vmem [shape: bf16[256,64], index: 1, kind: input, shape index: {}]   ;;  %s1888_s2 = inlined_call_operand.vmem [shape: f32[1,64], index: 2, kind: input, shape index: {}]   ;;  %s1889_s3 = inlined_call_operand.vmem [shape: f32[1,64], index: 3, kind: input, shape index: {}]   ;;  %s1890_s4 = inlined_call_operand.vmem [shape: f32[512,64], index: 4, kind: output, shape index: {}]  }
   0x1   :  { %s1564_s17 = smov 0  }
   0x2 LB: > { %s33_s18 = sadd.s32 1, %s1528_s16  ;;  %p1234_p0 = scmp.ge.s32.totalorder %s1532_s17, 1  ;;  %s1532_s17 = sphi %s1564_s17, %s14_s17   ;;  %s1528_s16 = sphi %s1562_s16, %s1892_s16   ;;  %s1524_s15 = sphi %s1560_s15, %s1891_s15  }
   0x3   : > { %p35_p1 = scmp.ge.s32.totalorder %s33_s18, 2  ;;  %p224_p2 = scmp.lt.s32.totalorder %s1532_s17, 3 }
   0x5   : > { %s1894_s18 = smov (%p35_p1, %s33_s18), 0  ;;  %p225_p3 = pnand %p1234_p0, %p224_p2 }
   0x6   : > { %s1235_s21 = sshll.u32 (!%p225_p3), %s1524_s15, 5 }
   0x7   : > { %228 = sbr.rel (%p225_p3) target bundleno = 320 (0x140), region = 36  ;;  %p274_p4 = scmp.lt.s32.totalorder (!%p225_p3), %s1235_s21, 63 }
   0xc   : > { %v1446_v0 = vld [vmem:[%s1887_s1 + $0x78] sm:$0xff]   ;;  %v1448_v2 = vld [vmem:[%s1887_s1 + $0x70] sm:$0xff]   ;;  %v1450_v4 = vld [vmem:[%s1887_s1 + $0x68] sm:$0xff]   ;;  %s1896_s21 = smov (!%p274_p4, %s1235_s21), 63  ;;  %vm313_vm0 = vcmask 523264   ;;  %v1534_v48 = vmov 0.0  }
   0xd   : > { %v1447_v1 = vld [vmem:[%s1887_s1 + $0x38] sm:$0xff]   ;;  %1293 = vmatprep.subr.bf16.mxu0 %v1446_v0  ;;  %1405 = vmatprep.subr.bf16.mxu1 %v1446_v0  ;;  %v1449_v3 = vld [vmem:[%s1887_s1 + $0x30] sm:$0xff]   ;;  %v1451_v5 = vld [vmem:[%s1887_s1 + $0x28] sm:$0xff]   ;;  %s1292_s10 = sshll.u32 %s1896_s21, 3  ;;  %314 = vst.msk [vmem:[#allocation2] sm:$0xff] %vm313_vm0, %v1534_v48 }
   0xe   : > { %1294 = vmatpush3.bf16.msra.mxu0 %v1447_v1  ;;  %1413 = vmatpush3.bf16.msra.mxu1 %v1447_v1  ;;  %v1452_v6 = vld [vmem:[%s1887_s1 + $0x60] sm:$0xff]   ;;  %v1454_v8 = vld [vmem:[%s1887_s1 + $0x58] sm:$0xff]   ;;  %s1613_s15 = scalar_lea.vmem %s1886_s0, %s1292_s10  ;;  %v1456_v10 = vld [vmem:[%s1887_s1 + $0x50] sm:$0xff]   ;;  %315 = vst.msk [vmem:[#allocation2 + $0x8] sm:$0xff] %vm313_vm0, %v1534_v48 }
   0xf   : > { %1295 = vmatprep.subr.bf16.mxu0 %v1448_v2  ;;  %1406 = vmatprep.subr.bf16.mxu1 %v1448_v2  ;;  %v1453_v7 = vld [vmem:[%s1887_s1 + $0x20] sm:$0xff]   ;;  %v1455_v9 = vld [vmem:[%s1887_s1 + $0x18] sm:$0xff]   ;;  %v1457_v13 = vld [vmem:[%s1887_s1 + $0x10] sm:$0xff]   ;;  %316 = vst.msk [vmem:[#allocation2 + $0x10] sm:$0xff] %vm313_vm0, %v1534_v48 }
  0x10   : > { %v1464_v11 = vld [vmem:[%s1613_s15 + $0x4] ss:$8 sps:$4 sm:$0xff]   ;;  %v1462_v18 = vld [vmem:[%s1613_s15] ss:$8 sps:$4 sm:$0xff]   ;;  %v1468_v20 = vld [vmem:[%s1613_s15 + $0x14] ss:$8 sps:$4 sm:$0xff]  }
  0x11   : > { %v1467_v12 = vld [vmem:[%s1613_s15 + $0x84] ss:$8 sps:$4 sm:$0xff]   ;;  %730 = vmatprep.mubr.bf16.mxu0 %v1464_v11  ;;  %v1465_v19 = vld [vmem:[%s1613_s15 + $0x80] ss:$8 sps:$4 sm:$0xff]   ;;  %v1470_v21 = vld [vmem:[%s1613_s15 + $0x94] ss:$8 sps:$4 sm:$0xff]  }
  0x12   : > { %1296 = vmatpush3.bf16.msra.mxu0 %v1449_v3  ;;  %1414 = vmatpush3.bf16.msra.mxu1 %v1449_v3  ;;  %v1458_v14 = vld [vmem:[%s1887_s1 + $0x48] sm:$0xff]   ;;  %v1460_v16 = vld [vmem:[%s1887_s1 + $0x40] sm:$0xff]   ;;  %v1472_v22 = vld [vmem:[%s1613_s15 + $0x10] ss:$8 sps:$4 sm:$0xff]   ;;  %317 = vst.msk [vmem:[#allocation2 + $0x18] sm:$0xff] %vm313_vm0, %v1534_v48 }
  0x13   : > { %1297 = vmatprep.subr.bf16.mxu0 %v1450_v4  ;;  %1407 = vmatprep.subr.bf16.mxu1 %v1450_v4  ;;  %v1459_v15 = vld [vmem:[%s1887_s1 + $0x8] sm:$0xff]   ;;  %v1461_v17 = vld [vmem:[%s1887_s1] sm:$0xff]   ;;  %v1473_v23 = vld [vmem:[%s1613_s15 + $0x90] ss:$8 sps:$4 sm:$0xff]   ;;  %318 = vst.msk [vmem:[#allocation2 + $0x20] sm:$0xff] %vm313_vm0, %v1534_v48 }
  0x14   : > { %794 = vmatprep.mubr.bf16.mxu1 %v1467_v12  ;;  %v1474_v24 = vld [vmem:[%s1613_s15 + $0x24] ss:$8 sps:$4 sm:$0xff]   ;;  %v1478_v26 = vld [vmem:[%s1613_s15 + $0x20] ss:$8 sps:$4 sm:$0xff]   ;;  %v1480_v28 = vld [vmem:[%s1613_s15 + $0x34] ss:$8 sps:$4 sm:$0xff]  }
  0x15   : > { %v1476_v25 = vld [vmem:[%s1613_s15 + $0xa4] ss:$8 sps:$4 sm:$0xff]   ;;  %v1479_v27 = vld [vmem:[%s1613_s15 + $0xa0] ss:$8 sps:$4 sm:$0xff]   ;;  %v1482_v29 = vld [vmem:[%s1613_s15 + $0xb4] ss:$8 sps:$4 sm:$0xff]  }
  0x16   : > { %1298 = vmatpush3.bf16.msra.mxu0 %v1451_v5  ;;  %1415 = vmatpush3.bf16.msra.mxu1 %v1451_v5  ;;  %v1484_v30 = vld [vmem:[%s1613_s15 + $0x30] ss:$8 sps:$4 sm:$0xff]   ;;  %v1486_v32 = vld [vmem:[%s1613_s15 + $0x44] ss:$8 sps:$4 sm:$0xff]   ;;  %v1490_v34 = vld [vmem:[%s1613_s15 + $0x40] ss:$8 sps:$4 sm:$0xff]  }
  0x17   : > { %1299 = vmatprep.subr.bf16.mxu0 %v1452_v6  ;;  %1408 = vmatprep.subr.bf16.mxu1 %v1452_v6  ;;  %v1485_v31 = vld [vmem:[%s1613_s15 + $0xb0] ss:$8 sps:$4 sm:$0xff]   ;;  %v1488_v33 = vld [vmem:[%s1613_s15 + $0xc4] ss:$8 sps:$4 sm:$0xff]   ;;  %v1491_v35 = vld [vmem:[%s1613_s15 + $0xc0] ss:$8 sps:$4 sm:$0xff]  }
  0x18   : > { %v1492_v36 = vld [vmem:[%s1613_s15 + $0x54] ss:$8 sps:$4 sm:$0xff]   ;;  %v1496_v38 = vld [vmem:[%s1613_s15 + $0x50] ss:$8 sps:$4 sm:$0xff]   ;;  %v1498_v40 = vld [vmem:[%s1613_s15 + $0x64] ss:$8 sps:$4 sm:$0xff]  }
  0x19   : > { %v1494_v37 = vld [vmem:[%s1613_s15 + $0xd4] ss:$8 sps:$4 sm:$0xff]   ;;  %v1497_v39 = vld [vmem:[%s1613_s15 + $0xd0] ss:$8 sps:$4 sm:$0xff]   ;;  %v1500_v41 = vld [vmem:[%s1613_s15 + $0xe4] ss:$8 sps:$4 sm:$0xff]  }
  0x1a   : > { %1300 = vmatpush3.bf16.msra.mxu0 %v1453_v7  ;;  %1416 = vmatpush3.bf16.msra.mxu1 %v1453_v7  ;;  %v1502_v42 = vld [vmem:[%s1613_s15 + $0x60] ss:$8 sps:$4 sm:$0xff]   ;;  %v1504_v44 = vld [vmem:[%s1613_s15 + $0x74] ss:$8 sps:$4 sm:$0xff]   ;;  %v1508_v46 = vld [vmem:[%s1613_s15 + $0x70] ss:$8 sps:$4 sm:$0xff]  }
  0x1b   : > { %1301 = vmatprep.subr.bf16.mxu0 %v1454_v8  ;;  %1409 = vmatprep.subr.bf16.mxu1 %v1454_v8  ;;  %v1503_v43 = vld [vmem:[%s1613_s15 + $0xe0] ss:$8 sps:$4 sm:$0xff]   ;;  %v1506_v45 = vld [vmem:[%s1613_s15 + $0xf4] ss:$8 sps:$4 sm:$0xff]   ;;  %v1509_v47 = vld [vmem:[%s1613_s15 + $0xf0] ss:$8 sps:$4 sm:$0xff]   ;;  %s1725_s15 = scalar_lea.vmem %s1890_s4, %s1292_s10 }
  0x1c   : > { %319 = vst.msk [vmem:[#allocation2 + $0x28] sm:$0xff] %vm313_vm0, %v1534_v48  ;;  %320 = vst.msk [vmem:[#allocation2 + $0x30] sm:$0xff] %vm313_vm0, %v1534_v48  ;;  %v346_v51 = vld [vmem:[#allocation2] sm:$0xff]  ;;  %v347_v61 = vld [vmem:[#allocation2 + $0x8] sm:$0xff] }
  0x1d   : > { %321 = vst.msk [vmem:[#allocation2 + $0x38] sm:$0xff] %vm313_vm0, %v1534_v48  ;;  %322 = vst.msk [vmem:[#allocation2 + $0x40] sm:$0xff] %vm313_vm0, %v1534_v48  ;;  %v348_v7 = vld [vmem:[#allocation2 + $0x10] sm:$0xff] }
  0x1e   : > { %1302 = vmatpush3.bf16.msra.mxu0 %v1455_v9  ;;  %1417 = vmatpush3.bf16.msra.mxu1 %v1455_v9  ;;  %323 = vst.msk [vmem:[#allocation2 + $0x48] sm:$0xff] %vm313_vm0, %v1534_v48  ;;  %324 = vst.msk [vmem:[#allocation2 + $0x50] sm:$0xff] %vm313_vm0, %v1534_v48 }
  0x1f   : > { %1303 = vmatprep.subr.bf16.mxu0 %v1456_v10  ;;  %1410 = vmatprep.subr.bf16.mxu1 %v1456_v10  ;;  %325 = vst.msk [vmem:[#allocation2 + $0x58] sm:$0xff] %vm313_vm0, %v1534_v48  ;;  %326 = vst.msk [vmem:[#allocation2 + $0x60] sm:$0xff] %vm313_vm0, %v1534_v48 }
  0x20   : > { %327 = vst.msk [vmem:[#allocation2 + $0x68] sm:$0xff] %vm313_vm0, %v1534_v48  ;;  %328 = vst.msk [vmem:[#allocation2 + $0x70] sm:$0xff] %vm313_vm0, %v1534_v48 }
  0x21   : > { %329 = vst.msk [vmem:[#allocation2 + $0x78] sm:$0xff] %vm313_vm0, %v1534_v48  ;;  %330 = vst.msk [vmem:[#allocation2 + $0x80] sm:$0xff] %vm313_vm0, %v1534_v48 }
  0x22   : > { %1304 = vmatpush3.bf16.msra.mxu0 %v1457_v13  ;;  %1418 = vmatpush3.bf16.msra.mxu1 %v1457_v13  ;;  %331 = vst.msk [vmem:[#allocation2 + $0x88] sm:$0xff] %vm313_vm0, %v1534_v48  ;;  %332 = vst.msk [vmem:[#allocation2 + $0x90] sm:$0xff] %vm313_vm0, %v1534_v48  ;;  %v1707_v13 = vld [vmem:[%s1888_s2] ss:$0 sm:$0xff] }
  0x23   : > { %1305 = vmatprep.subr.bf16.mxu0 %v1458_v14  ;;  %1411 = vmatprep.subr.bf16.mxu1 %v1458_v14  ;;  %333 = vst.msk [vmem:[#allocation2 + $0x98] sm:$0xff] %vm313_vm0, %v1534_v48  ;;  %334 = vst.msk [vmem:[#allocation2 + $0xa0] sm:$0xff] %vm313_vm0, %v1534_v48 }
  0x24   : > { %335 = vst.msk [vmem:[#allocation2 + $0xa8] sm:$0xff] %vm313_vm0, %v1534_v48  ;;  %336 = vst.msk [vmem:[#allocation2 + $0xb0] sm:$0xff] %vm313_vm0, %v1534_v48 }
  0x25   : > { %337 = vst.msk [vmem:[#allocation2 + $0xb8] sm:$0xff] %vm313_vm0, %v1534_v48  ;;  %338 = vst.msk [vmem:[#allocation2 + $0xc0] sm:$0xff] %vm313_vm0, %v1534_v48 }
  0x26   : > { %1306 = vmatpush3.bf16.msra.mxu0 %v1459_v15  ;;  %1419 = vmatpush3.bf16.msra.mxu1 %v1459_v15  ;;  %339 = vst.msk [vmem:[#allocation2 + $0xc8] sm:$0xff] %vm313_vm0, %v1534_v48  ;;  %340 = vst.msk [vmem:[#allocation2 + $0xd0] sm:$0xff] %vm313_vm0, %v1534_v48 }
  0x27   : > { %1307 = vmatprep.subr.bf16.mxu0 %v1460_v16  ;;  %1412 = vmatprep.subr.bf16.mxu1 %v1460_v16  ;;  %341 = vst.msk [vmem:[#allocation2 + $0xd8] sm:$0xff] %vm313_vm0, %v1534_v48  ;;  %342 = vst.msk [vmem:[#allocation2 + $0xe0] sm:$0xff] %vm313_vm0, %v1534_v48  ;;  %v1712_v16 = vld [vmem:[%s1889_s3] ss:$0 sm:$0xff] }
  0x28   : > { %343 = vst.msk [vmem:[#allocation2 + $0xe8] sm:$0xff] %vm313_vm0, %v1534_v48  ;;  %344 = vst.msk [vmem:[#allocation2 + $0xf0] sm:$0xff] %vm313_vm0, %v1534_v48  ;;  %v362_v53 = vld [vmem:[#allocation2 + $0x80] sm:$0xff] }
  0x29   : > { %345 = vst.msk [vmem:[#allocation2 + $0xf8] sm:$0xff] %vm313_vm0, %v1534_v48  ;;  %v363_v63 = vld [vmem:[#allocation2 + $0x88] sm:$0xff]  ;;  %v364_v9 = vld [vmem:[#allocation2 + $0x90] sm:$0xff] }
  0x2a   : > { %1308 = vmatpush3.bf16.msra.mxu0 %v1461_v17  ;;  %1420 = vmatpush3.bf16.msra.mxu1 %v1461_v17 }
  0x2d   : > { %731 = vmatmul.mubr.bf16.vlgmr.msra.gmra.mxu0 %v1462_v18  ;;  %795 = vmatmul.mubr.bf16.vlgmr.msra.gmra.mxu1 %v1465_v19  ;;  %v349_v19 = vld [vmem:[#allocation2 + $0x18] sm:$0xff] }
  0x2e   : > { %738 = vmatprep.mubr.bf16.mxu0 %v1468_v20  ;;  %802 = vmatprep.mubr.bf16.mxu1 %v1470_v21 }
  0x35   : > { %739 = vmatmul.mubr.bf16.gmra.mxu0 %v1472_v22  ;;  %803 = vmatmul.mubr.bf16.gmra.mxu1 %v1473_v23  ;;  %v365_v23 = vld [vmem:[#allocation2 + $0x98] sm:$0xff] }
  0x36   : > { %746 = vmatprep.mubr.bf16.mxu0 %v1474_v24  ;;  %810 = vmatprep.mubr.bf16.mxu1 %v1476_v25 }
  0x3d   : > { %747 = vmatmul.mubr.bf16.gmra.mxu0 %v1478_v26  ;;  %811 = vmatmul.mubr.bf16.gmra.mxu1 %v1479_v27 }
  0x3e   : > { %754 = vmatprep.mubr.bf16.mxu0 %v1480_v28  ;;  %818 = vmatprep.mubr.bf16.mxu1 %v1482_v29 }
  0x45   : > { %755 = vmatmul.mubr.bf16.gmra.mxu0 %v1484_v30  ;;  %819 = vmatmul.mubr.bf16.gmra.mxu1 %v1485_v31 }
  0x46   : > { %762 = vmatprep.mubr.bf16.mxu0 %v1486_v32  ;;  %826 = vmatprep.mubr.bf16.mxu1 %v1488_v33 }
  0x4d   : > { %763 = vmatmul.mubr.bf16.gmra.mxu0 %v1490_v34  ;;  %827 = vmatmul.mubr.bf16.gmra.mxu1 %v1491_v35 }
  0x4e   : > { %770 = vmatprep.mubr.bf16.mxu0 %v1492_v36  ;;  %834 = vmatprep.mubr.bf16.mxu1 %v1494_v37 }
  0x55   : > { %771 = vmatmul.mubr.bf16.gmra.mxu0 %v1496_v38  ;;  %835 = vmatmul.mubr.bf16.gmra.mxu1 %v1497_v39 }
  0x56   : > { %778 = vmatprep.mubr.bf16.mxu0 %v1498_v40  ;;  %842 = vmatprep.mubr.bf16.mxu1 %v1500_v41 }
  0x5d   : > { %779 = vmatmul.mubr.bf16.gmra.mxu0 %v1502_v42  ;;  %843 = vmatmul.mubr.bf16.gmra.mxu1 %v1503_v43  ;;  %v350_v43 = vld [vmem:[#allocation2 + $0x20] sm:$0xff] }
  0x5e   : > { %786 = vmatprep.mubr.bf16.mxu0 %v1504_v44  ;;  %850 = vmatprep.mubr.bf16.mxu1 %v1506_v45  ;;  %v366_v44 = vld [vmem:[#allocation2 + $0xa0] sm:$0xff] }
  0x65   : > { %787 = vmatmul.mubr.bf16.gmra.mxu0 %v1508_v46  ;;  %851 = vmatmul.mubr.bf16.gmra.mxu1 %v1509_v47 }
  0xed   : > { %v1309_v49 = vpop.f32.mrf.mxu0  ;;  %v1357_v50 = vpop.f32.mrf.mxu1 }
  0xef   : > { %v1310_v52 = vpop.f32.mrf.mxu0  ;;  %v1358_v54 = vpop.f32.mrf.mxu1 }
  0xf0   : > { %v1311_v55 = vadd.f32 %v1310_v52, %v1309_v49  ;;  %v1359_v56 = vadd.f32 %v1358_v54, %v1357_v50 }
  0xf1   : > { %v1312_v57 = vpop.f32.mrf.mxu0  ;;  %v1360_v58 = vpop.f32.mrf.mxu1 }
  0xf2   : > { %v859_v59 = vadd.f32 %v1311_v55, %v346_v51  ;;  %v875_v60 = vadd.f32 %v1359_v56, %v362_v53 }
  0xf3   : > { %v1313_v62 = vpop.f32.mrf.mxu0  ;;  %v1361_v0 = vpop.f32.mrf.mxu1 }
  0xf4   : > { %892 = vst.msk [vmem:[#allocation2] sm:$0xff] %vm313_vm0, %v859_v59  ;;  %908 = vst.msk [vmem:[#allocation2 + $0x80] sm:$0xff] %vm313_vm0, %v875_v60  ;;  %v1314_v1 = vadd.f32 %v1313_v62, %v1312_v57  ;;  %v1362_v2 = vadd.f32 %v1361_v0, %v1360_v58  ;;  %v367_v62 = vld [vmem:[#allocation2 + $0xa8] sm:$0xff] }
  0xf5   : > { %v1315_v3 = vpop.f32.mrf.mxu0  ;;  %v1363_v4 = vpop.f32.mrf.mxu1 }
  0xf6   : > { %v860_v5 = vadd.f32 %v1314_v1, %v347_v61  ;;  %v876_v6 = vadd.f32 %v1362_v2, %v363_v63  ;;  %v351_v61 = vld [vmem:[#allocation2 + $0x28] sm:$0xff] }
  0xf7   : > { %v1316_v8 = vpop.f32.mrf.mxu0  ;;  %v1364_v10 = vpop.f32.mrf.mxu1 }
  0xf8   : > { %893 = vst.msk [vmem:[#allocation2 + $0x8] sm:$0xff] %vm313_vm0, %v860_v5  ;;  %909 = vst.msk [vmem:[#allocation2 + $0x88] sm:$0xff] %vm313_vm0, %v876_v6  ;;  %v1317_v11 = vadd.f32 %v1316_v8, %v1315_v3  ;;  %v1365_v12 = vadd.f32 %v1364_v10, %v1363_v4 }
  0xf9   : > { %v1318_v14 = vpop.f32.mrf.mxu0  ;;  %v1366_v15 = vpop.f32.mrf.mxu1 }
  0xfa   : > { %v861_v17 = vadd.f32 %v1317_v11, %v348_v7  ;;  %v877_v18 = vadd.f32 %v1365_v12, %v364_v9 }
  0xfb   : > { %v927_v20 = vld [vmem:[#allocation2] sm:$0xff]  ;;  %v1319_v22 = vpop.f32.mrf.mxu0  ;;  %v1367_v24 = vpop.f32.mrf.mxu1 }
  0xfc   : > { %v943_v21 = vld [vmem:[#allocation2 + $0x80] sm:$0xff]  ;;  %v966_v25 = vmul.f32 %v1707_v13, %v927_v20  ;;  %894 = vst.msk [vmem:[#allocation2 + $0x10] sm:$0xff] %vm313_vm0, %v861_v17  ;;  %910 = vst.msk [vmem:[#allocation2 + $0x90] sm:$0xff] %vm313_vm0, %v877_v18  ;;  %v1320_v27 = vadd.f32 %v1319_v22, %v1318_v14  ;;  %v1368_v28 = vadd.f32 %v1367_v24, %v1366_v15  ;;  %v352_v17 = vld [vmem:[#allocation2 + $0x30] sm:$0xff] }
  0xfd   : > { %v982_v26 = vmul.f32 %v1707_v13, %v943_v21  ;;  %v1321_v29 = vpop.f32.mrf.mxu0  ;;  %v1369_v30 = vpop.f32.mrf.mxu1  ;;  %v368_v18 = vld [vmem:[#allocation2 + $0xb0] sm:$0xff] }
  0xfe   : > { %v1005_v31 = vadd.f32 %v1712_v16, %v966_v25  ;;  %v862_v33 = vadd.f32 %v1320_v27, %v349_v19  ;;  %v878_v34 = vadd.f32 %v1368_v28, %v365_v23  ;;  %v353_v27 = vld [vmem:[#allocation2 + $0x38] sm:$0xff] }
  0xff   : > { %v1021_v32 = vadd.f32 %v1712_v16, %v982_v26  ;;  %v928_v35 = vld [vmem:[#allocation2 + $0x8] sm:$0xff]  ;;  %v1322_v37 = vpop.f32.mrf.mxu0  ;;  %v1370_v38 = vpop.f32.mrf.mxu1 }
 0x100   : > { %v944_v36 = vld [vmem:[#allocation2 + $0x88] sm:$0xff]  ;;  %v1037_v39 = vmax.f32 %v1005_v31, 0.0  ;;  %v967_v41 = vmul.f32 %v1707_v13, %v928_v35  ;;  %895 = vst.msk [vmem:[#allocation2 + $0x18] sm:$0xff] %vm313_vm0, %v862_v33  ;;  %911 = vst.msk [vmem:[#allocation2 + $0x98] sm:$0xff] %vm313_vm0, %v878_v34  ;;  %v1323_v45 = vadd.f32 %v1322_v37, %v1321_v29  ;;  %v1371_v46 = vadd.f32 %v1370_v38, %v1369_v30  ;;  %v369_v29 = vld [vmem:[#allocation2 + $0xb8] sm:$0xff] }
 0x101   : > { %v1053_v40 = vmax.f32 %v1021_v32, 0.0  ;;  %v983_v42 = vmul.f32 %v1707_v13, %v944_v36  ;;  %v1324_v47 = vpop.f32.mrf.mxu0  ;;  %v1372_v48 = vpop.f32.mrf.mxu1 }
 0x102   : > { %1069 = vst.msk [vmem:[%s1725_s15] sm:$0xff] %vm313_vm0, %v1037_v39  ;;  %v1006_v49 = vadd.f32 %v1712_v16, %v967_v41  ;;  %v863_v53 = vadd.f32 %v1323_v45, %v350_v43  ;;  %v879_v54 = vadd.f32 %v1371_v46, %v366_v44  ;;  %v354_v45 = vld [vmem:[#allocation2 + $0x40] sm:$0xff] }
 0x103   : > { %1085 = vst.msk [vmem:[%s1725_s15 + $0x80] sm:$0xff] %vm313_vm0, %v1053_v40  ;;  %v1022_v50 = vadd.f32 %v1712_v16, %v983_v42  ;;  %v929_v51 = vld [vmem:[#allocation2 + $0x10] sm:$0xff]  ;;  %v1325_v55 = vpop.f32.mrf.mxu0  ;;  %v1373_v56 = vpop.f32.mrf.mxu1 }
 0x104   : > { %v945_v52 = vld [vmem:[#allocation2 + $0x90] sm:$0xff]  ;;  %v1038_v57 = vmax.f32 %v1006_v49, 0.0  ;;  %v968_v59 = vmul.f32 %v1707_v13, %v929_v51  ;;  %896 = vst.msk [vmem:[#allocation2 + $0x20] sm:$0xff] %vm313_vm0, %v863_v53  ;;  %912 = vst.msk [vmem:[#allocation2 + $0xa0] sm:$0xff] %vm313_vm0, %v879_v54  ;;  %v1326_v63 = vadd.f32 %v1325_v55, %v1324_v47  ;;  %v1374_v0 = vadd.f32 %v1373_v56, %v1372_v48  ;;  %v370_v47 = vld [vmem:[#allocation2 + $0xc0] sm:$0xff] }
 0x105   : > { %v1054_v58 = vmax.f32 %v1022_v50, 0.0  ;;  %v984_v60 = vmul.f32 %v1707_v13, %v945_v52  ;;  %v1327_v1 = vpop.f32.mrf.mxu0  ;;  %v1375_v2 = vpop.f32.mrf.mxu1 }
 0x106   : > { %1070 = vst.msk [vmem:[%s1725_s15 + $0x8] sm:$0xff] %vm313_vm0, %v1038_v57  ;;  %v1007_v3 = vadd.f32 %v1712_v16, %v968_v59  ;;  %v864_v7 = vadd.f32 %v1326_v63, %v351_v61  ;;  %v880_v8 = vadd.f32 %v1374_v0, %v367_v62  ;;  %v355_v63 = vld [vmem:[#allocation2 + $0x48] sm:$0xff] }
 0x107   : > { %1086 = vst.msk [vmem:[%s1725_s15 + $0x88] sm:$0xff] %vm313_vm0, %v1054_v58  ;;  %v1023_v4 = vadd.f32 %v1712_v16, %v984_v60  ;;  %v930_v5 = vld [vmem:[#allocation2 + $0x18] sm:$0xff]  ;;  %v1328_v9 = vpop.f32.mrf.mxu0  ;;  %v1376_v10 = vpop.f32.mrf.mxu1 }
 0x108   : > { %v946_v6 = vld [vmem:[#allocation2 + $0x98] sm:$0xff]  ;;  %v1039_v11 = vmax.f32 %v1007_v3, 0.0  ;;  %v969_v14 = vmul.f32 %v1707_v13, %v930_v5  ;;  %897 = vst.msk [vmem:[#allocation2 + $0x28] sm:$0xff] %vm313_vm0, %v864_v7  ;;  %913 = vst.msk [vmem:[#allocation2 + $0xa8] sm:$0xff] %vm313_vm0, %v880_v8  ;;  %v1329_v19 = vadd.f32 %v1328_v9, %v1327_v1  ;;  %v1377_v20 = vadd.f32 %v1376_v10, %v1375_v2  ;;  %v371_v1 = vld [vmem:[#allocation2 + $0xc8] sm:$0xff] }
 0x109   : > { %v1055_v12 = vmax.f32 %v1023_v4, 0.0  ;;  %v985_v15 = vmul.f32 %v1707_v13, %v946_v6  ;;  %v1330_v21 = vpop.f32.mrf.mxu0  ;;  %v1378_v22 = vpop.f32.mrf.mxu1 }
 0x10a   : > { %1071 = vst.msk [vmem:[%s1725_s15 + $0x10] sm:$0xff] %vm313_vm0, %v1039_v11  ;;  %v1008_v23 = vadd.f32 %v1712_v16, %v969_v14  ;;  %v865_v25 = vadd.f32 %v1329_v19, %v352_v17  ;;  %v881_v26 = vadd.f32 %v1377_v20, %v368_v18  ;;  %v356_v17 = vld [vmem:[#allocation2 + $0x50] sm:$0xff] }
 0x10b   : > { %1087 = vst.msk [vmem:[%s1725_s15 + $0x90] sm:$0xff] %vm313_vm0, %v1055_v12  ;;  %v1024_v24 = vadd.f32 %v1712_v16, %v985_v15  ;;  %v1331_v28 = vpop.f32.mrf.mxu0  ;;  %v1379_v30 = vpop.f32.mrf.mxu1  ;;  %v931_v33 = vld [vmem:[#allocation2 + $0x20] sm:$0xff] }
 0x10c   : > { %v1040_v31 = vmax.f32 %v1008_v23, 0.0  ;;  %v947_v34 = vld [vmem:[#allocation2 + $0xa0] sm:$0xff]  ;;  %v1332_v35 = vadd.f32 %v1331_v28, %v1330_v21  ;;  %v1380_v36 = vadd.f32 %v1379_v30, %v1378_v22  ;;  %v970_v37 = vmul.f32 %v1707_v13, %v931_v33  ;;  %898 = vst.msk [vmem:[#allocation2 + $0x30] sm:$0xff] %vm313_vm0, %v865_v25  ;;  %914 = vst.msk [vmem:[#allocation2 + $0xb0] sm:$0xff] %vm313_vm0, %v881_v26  ;;  %v372_v23 = vld [vmem:[#allocation2 + $0xd0] sm:$0xff] }
 0x10d   : > { %v1056_v32 = vmax.f32 %v1024_v24, 0.0  ;;  %v986_v38 = vmul.f32 %v1707_v13, %v947_v34  ;;  %v1333_v39 = vpop.f32.mrf.mxu0  ;;  %v1381_v40 = vpop.f32.mrf.mxu1 }
 0x10e   : > { %1072 = vst.msk [vmem:[%s1725_s15 + $0x18] sm:$0xff] %vm313_vm0, %v1040_v31  ;;  %v866_v41 = vadd.f32 %v1332_v35, %v353_v27  ;;  %v882_v42 = vadd.f32 %v1380_v36, %v369_v29  ;;  %v1009_v43 = vadd.f32 %v1712_v16, %v970_v37 }
 0x10f   : > { %1088 = vst.msk [vmem:[%s1725_s15 + $0x98] sm:$0xff] %vm313_vm0, %v1056_v32  ;;  %v1025_v44 = vadd.f32 %v1712_v16, %v986_v38  ;;  %v1334_v46 = vpop.f32.mrf.mxu0  ;;  %v1382_v48 = vpop.f32.mrf.mxu1  ;;  %v932_v49 = vld [vmem:[#allocation2 + $0x28] sm:$0xff] }
 0x110   : > { %v948_v50 = vld [vmem:[#allocation2 + $0xa8] sm:$0xff]  ;;  %899 = vst.msk [vmem:[#allocation2 + $0x38] sm:$0xff] %vm313_vm0, %v866_v41  ;;  %915 = vst.msk [vmem:[#allocation2 + $0xb8] sm:$0xff] %vm313_vm0, %v882_v42  ;;  %v1335_v51 = vadd.f32 %v1334_v46, %v1333_v39  ;;  %v1383_v52 = vadd.f32 %v1382_v48, %v1381_v40  ;;  %v1041_v53 = vmax.f32 %v1009_v43, 0.0  ;;  %v971_v55 = vmul.f32 %v1707_v13, %v932_v49  ;;  %v373_v46 = vld [vmem:[#allocation2 + $0xd8] sm:$0xff] }
 0x111   : > { %v1057_v54 = vmax.f32 %v1025_v44, 0.0  ;;  %v987_v56 = vmul.f32 %v1707_v13, %v948_v50  ;;  %v1336_v57 = vpop.f32.mrf.mxu0  ;;  %v1384_v58 = vpop.f32.mrf.mxu1 }
 0x112   : > { %v867_v59 = vadd.f32 %v1335_v51, %v354_v45  ;;  %v883_v60 = vadd.f32 %v1383_v52, %v370_v47  ;;  %1073 = vst.msk [vmem:[%s1725_s15 + $0x20] sm:$0xff] %vm313_vm0, %v1041_v53  ;;  %v1010_v61 = vadd.f32 %v1712_v16, %v971_v55  ;;  %v357_v45 = vld [vmem:[#allocation2 + $0x58] sm:$0xff] }
 0x113   : > { %1089 = vst.msk [vmem:[%s1725_s15 + $0xa0] sm:$0xff] %vm313_vm0, %v1057_v54  ;;  %v1026_v62 = vadd.f32 %v1712_v16, %v987_v56  ;;  %v1337_v0 = vpop.f32.mrf.mxu0  ;;  %v1385_v2 = vpop.f32.mrf.mxu1  ;;  %v933_v3 = vld [vmem:[#allocation2 + $0x30] sm:$0xff] }
 0x114   : > { %v949_v4 = vld [vmem:[#allocation2 + $0xb0] sm:$0xff]  ;;  %900 = vst.msk [vmem:[#allocation2 + $0x40] sm:$0xff] %vm313_vm0, %v867_v59  ;;  %916 = vst.msk [vmem:[#allocation2 + $0xc0] sm:$0xff] %vm313_vm0, %v883_v60  ;;  %v1338_v5 = vadd.f32 %v1337_v0, %v1336_v57  ;;  %v1386_v6 = vadd.f32 %v1385_v2, %v1384_v58  ;;  %v1042_v7 = vmax.f32 %v1010_v61, 0.0  ;;  %v972_v9 = vmul.f32 %v1707_v13, %v933_v3  ;;  %v374_v0 = vld [vmem:[#allocation2 + $0xe0] sm:$0xff] }
 0x115   : > { %v1058_v8 = vmax.f32 %v1026_v62, 0.0  ;;  %v988_v10 = vmul.f32 %v1707_v13, %v949_v4  ;;  %v1339_v11 = vpop.f32.mrf.mxu0  ;;  %v1387_v12 = vpop.f32.mrf.mxu1 }
 0x116   : > { %v868_v14 = vadd.f32 %v1338_v5, %v355_v63  ;;  %v884_v15 = vadd.f32 %v1386_v6, %v371_v1  ;;  %1074 = vst.msk [vmem:[%s1725_s15 + $0x28] sm:$0xff] %vm313_vm0, %v1042_v7  ;;  %v1011_v18 = vadd.f32 %v1712_v16, %v972_v9  ;;  %v358_v63 = vld [vmem:[#allocation2 + $0x60] sm:$0xff] }
 0x117   : > { %1090 = vst.msk [vmem:[%s1725_s15 + $0xa8] sm:$0xff] %vm313_vm0, %v1058_v8  ;;  %v1027_v19 = vadd.f32 %v1712_v16, %v988_v10  ;;  %v934_v20 = vld [vmem:[#allocation2 + $0x38] sm:$0xff]  ;;  %v1340_v22 = vpop.f32.mrf.mxu0  ;;  %v1388_v24 = vpop.f32.mrf.mxu1 }
 0x118   : > { %v950_v21 = vld [vmem:[#allocation2 + $0xb8] sm:$0xff]  ;;  %v973_v25 = vmul.f32 %v1707_v13, %v934_v20  ;;  %901 = vst.msk [vmem:[#allocation2 + $0x48] sm:$0xff] %vm313_vm0, %v868_v14  ;;  %917 = vst.msk [vmem:[#allocation2 + $0xc8] sm:$0xff] %vm313_vm0, %v884_v15  ;;  %v1341_v27 = vadd.f32 %v1340_v22, %v1339_v11  ;;  %v1389_v28 = vadd.f32 %v1388_v24, %v1387_v12  ;;  %v1043_v29 = vmax.f32 %v1011_v18, 0.0  ;;  %v375_v20 = vld [vmem:[#allocation2 + $0xe8] sm:$0xff] }
 0x119   : > { %v989_v26 = vmul.f32 %v1707_v13, %v950_v21  ;;  %v1059_v30 = vmax.f32 %v1027_v19, 0.0  ;;  %v1342_v31 = vpop.f32.mrf.mxu0  ;;  %v1390_v32 = vpop.f32.mrf.mxu1  ;;  %v359_v19 = vld [vmem:[#allocation2 + $0x68] sm:$0xff] }
 0x11a   : > { %v1012_v33 = vadd.f32 %v1712_v16, %v973_v25  ;;  %v869_v35 = vadd.f32 %v1341_v27, %v356_v17  ;;  %v885_v36 = vadd.f32 %v1389_v28, %v372_v23  ;;  %1075 = vst.msk [vmem:[%s1725_s15 + $0x30] sm:$0xff] %vm313_vm0, %v1043_v29  ;;  %v360_v29 = vld [vmem:[#allocation2 + $0x70] sm:$0xff] }
 0x11b   : > { %v1028_v34 = vadd.f32 %v1712_v16, %v989_v26  ;;  %1091 = vst.msk [vmem:[%s1725_s15 + $0xb0] sm:$0xff] %vm313_vm0, %v1059_v30  ;;  %v935_v37 = vld [vmem:[#allocation2 + $0x40] sm:$0xff]  ;;  %v1343_v39 = vpop.f32.mrf.mxu0  ;;  %v1391_v40 = vpop.f32.mrf.mxu1 }
 0x11c   : > { %v951_v38 = vld [vmem:[#allocation2 + $0xc0] sm:$0xff]  ;;  %v1044_v41 = vmax.f32 %v1012_v33, 0.0  ;;  %v974_v43 = vmul.f32 %v1707_v13, %v935_v37  ;;  %902 = vst.msk [vmem:[#allocation2 + $0x50] sm:$0xff] %vm313_vm0, %v869_v35  ;;  %918 = vst.msk [vmem:[#allocation2 + $0xd0] sm:$0xff] %vm313_vm0, %v885_v36  ;;  %v1344_v47 = vadd.f32 %v1343_v39, %v1342_v31  ;;  %v1392_v48 = vadd.f32 %v1391_v40, %v1390_v32  ;;  %v376_v31 = vld [vmem:[#allocation2 + $0xf0] sm:$0xff] }
 0x11d   : > { %v1060_v42 = vmax.f32 %v1028_v34, 0.0  ;;  %v990_v44 = vmul.f32 %v1707_v13, %v951_v38  ;;  %v1345_v49 = vpop.f32.mrf.mxu0  ;;  %v1393_v50 = vpop.f32.mrf.mxu1 }
 0x11e   : > { %1076 = vst.msk [vmem:[%s1725_s15 + $0x38] sm:$0xff] %vm313_vm0, %v1044_v41  ;;  %v1013_v51 = vadd.f32 %v1712_v16, %v974_v43  ;;  %v870_v55 = vadd.f32 %v1344_v47, %v357_v45  ;;  %v886_v56 = vadd.f32 %v1392_v48, %v373_v46  ;;  %v361_v47 = vld [vmem:[#allocation2 + $0x78] sm:$0xff] }
 0x11f   : > { %1092 = vst.msk [vmem:[%s1725_s15 + $0xb8] sm:$0xff] %vm313_vm0, %v1060_v42  ;;  %v1029_v52 = vadd.f32 %v1712_v16, %v990_v44  ;;  %v936_v53 = vld [vmem:[#allocation2 + $0x48] sm:$0xff]  ;;  %v1346_v57 = vpop.f32.mrf.mxu0  ;;  %v1394_v58 = vpop.f32.mrf.mxu1 }
 0x120   : > { %v952_v54 = vld [vmem:[#allocation2 + $0xc8] sm:$0xff]  ;;  %v1045_v59 = vmax.f32 %v1013_v51, 0.0  ;;  %v975_v61 = vmul.f32 %v1707_v13, %v936_v53  ;;  %903 = vst.msk [vmem:[#allocation2 + $0x58] sm:$0xff] %vm313_vm0, %v870_v55  ;;  %919 = vst.msk [vmem:[#allocation2 + $0xd8] sm:$0xff] %vm313_vm0, %v886_v56  ;;  %v1347_v1 = vadd.f32 %v1346_v57, %v1345_v49  ;;  %v1395_v2 = vadd.f32 %v1394_v58, %v1393_v50  ;;  %v377_v49 = vld [vmem:[#allocation2 + $0xf8] sm:$0xff] }
 0x121   : > { %v1061_v60 = vmax.f32 %v1029_v52, 0.0  ;;  %v991_v62 = vmul.f32 %v1707_v13, %v952_v54  ;;  %v1348_v3 = vpop.f32.mrf.mxu0  ;;  %v1396_v4 = vpop.f32.mrf.mxu1 }
 0x122   : > { %1077 = vst.msk [vmem:[%s1725_s15 + $0x40] sm:$0xff] %vm313_vm0, %v1045_v59  ;;  %v1014_v5 = vadd.f32 %v1712_v16, %v975_v61  ;;  %v871_v9 = vadd.f32 %v1347_v1, %v358_v63  ;;  %v887_v10 = vadd.f32 %v1395_v2, %v374_v0 }
 0x123   : > { %1093 = vst.msk [vmem:[%s1725_s15 + $0xc0] sm:$0xff] %vm313_vm0, %v1061_v60  ;;  %v1030_v6 = vadd.f32 %v1712_v16, %v991_v62  ;;  %v937_v7 = vld [vmem:[#allocation2 + $0x50] sm:$0xff]  ;;  %v1349_v11 = vpop.f32.mrf.mxu0  ;;  %v1397_v12 = vpop.f32.mrf.mxu1 }
 0x124   : > { %v953_v8 = vld [vmem:[#allocation2 + $0xd0] sm:$0xff]  ;;  %v1046_v14 = vmax.f32 %v1014_v5, 0.0  ;;  %v976_v17 = vmul.f32 %v1707_v13, %v937_v7  ;;  %904 = vst.msk [vmem:[#allocation2 + $0x60] sm:$0xff] %vm313_vm0, %v871_v9  ;;  %920 = vst.msk [vmem:[#allocation2 + $0xe0] sm:$0xff] %vm313_vm0, %v887_v10  ;;  %v1350_v21 = vadd.f32 %v1349_v11, %v1348_v3  ;;  %v1398_v22 = vadd.f32 %v1397_v12, %v1396_v4 }
 0x125   : > { %v1062_v15 = vmax.f32 %v1030_v6, 0.0  ;;  %v992_v18 = vmul.f32 %v1707_v13, %v953_v8  ;;  %v1351_v23 = vpop.f32.mrf.mxu0  ;;  %v1399_v24 = vpop.f32.mrf.mxu1 }
 0x126   : > { %1078 = vst.msk [vmem:[%s1725_s15 + $0x48] sm:$0xff] %vm313_vm0, %v1046_v14  ;;  %v1015_v25 = vadd.f32 %v1712_v16, %v976_v17  ;;  %v872_v27 = vadd.f32 %v1350_v21, %v359_v19  ;;  %v888_v28 = vadd.f32 %v1398_v22, %v375_v20 }
 0x127   : > { %1094 = vst.msk [vmem:[%s1725_s15 + $0xc8] sm:$0xff] %vm313_vm0, %v1062_v15  ;;  %v1031_v26 = vadd.f32 %v1712_v16, %v992_v18  ;;  %v1352_v30 = vpop.f32.mrf.mxu0  ;;  %v1400_v32 = vpop.f32.mrf.mxu1  ;;  %v938_v35 = vld [vmem:[#allocation2 + $0x58] sm:$0xff] }
 0x128   : > { %v1047_v33 = vmax.f32 %v1015_v25, 0.0  ;;  %v954_v36 = vld [vmem:[#allocation2 + $0xd8] sm:$0xff]  ;;  %v1353_v37 = vadd.f32 %v1352_v30, %v1351_v23  ;;  %v1401_v38 = vadd.f32 %v1400_v32, %v1399_v24  ;;  %v977_v39 = vmul.f32 %v1707_v13, %v938_v35  ;;  %905 = vst.msk [vmem:[#allocation2 + $0x68] sm:$0xff] %vm313_vm0, %v872_v27  ;;  %921 = vst.msk [vmem:[#allocation2 + $0xe8] sm:$0xff] %vm313_vm0, %v888_v28 }
 0x129   : > { %v1063_v34 = vmax.f32 %v1031_v26, 0.0  ;;  %v993_v40 = vmul.f32 %v1707_v13, %v954_v36  ;;  %v1354_v41 = vpop.f32.mrf.mxu0  ;;  %v1402_v42 = vpop.f32.mrf.mxu1 }
 0x12a   : > { %1079 = vst.msk [vmem:[%s1725_s15 + $0x50] sm:$0xff] %vm313_vm0, %v1047_v33  ;;  %v873_v43 = vadd.f32 %v1353_v37, %v360_v29  ;;  %v889_v44 = vadd.f32 %v1401_v38, %v376_v31  ;;  %v1016_v45 = vadd.f32 %v1712_v16, %v977_v39 }
 0x12b   : > { %1095 = vst.msk [vmem:[%s1725_s15 + $0xd0] sm:$0xff] %vm313_vm0, %v1063_v34  ;;  %v1032_v46 = vadd.f32 %v1712_v16, %v993_v40  ;;  %v1355_v48 = vpop.f32.mrf.mxu0  ;;  %v1403_v50 = vpop.f32.mrf.mxu1  ;;  %v939_v51 = vld [vmem:[#allocation2 + $0x60] sm:$0xff] }
 0x12c   : > { %v955_v52 = vld [vmem:[#allocation2 + $0xe0] sm:$0xff]  ;;  %906 = vst.msk [vmem:[#allocation2 + $0x70] sm:$0xff] %vm313_vm0, %v873_v43  ;;  %922 = vst.msk [vmem:[#allocation2 + $0xf0] sm:$0xff] %vm313_vm0, %v889_v44  ;;  %v1356_v53 = vadd.f32 %v1355_v48, %v1354_v41  ;;  %v1404_v54 = vadd.f32 %v1403_v50, %v1402_v42  ;;  %v1048_v55 = vmax.f32 %v1016_v45, 0.0  ;;  %v978_v57 = vmul.f32 %v1707_v13, %v939_v51 }
 0x12d   : > { %v1064_v56 = vmax.f32 %v1032_v46, 0.0  ;;  %v994_v58 = vmul.f32 %v1707_v13, %v955_v52 }
 0x12e   : > { %v874_v59 = vadd.f32 %v1356_v53, %v361_v47  ;;  %v890_v60 = vadd.f32 %v1404_v54, %v377_v49  ;;  %1080 = vst.msk [vmem:[%s1725_s15 + $0x58] sm:$0xff] %vm313_vm0, %v1048_v55  ;;  %v1017_v61 = vadd.f32 %v1712_v16, %v978_v57 }
 0x12f   : > { %1096 = vst.msk [vmem:[%s1725_s15 + $0xd8] sm:$0xff] %vm313_vm0, %v1064_v56  ;;  %v1033_v62 = vadd.f32 %v1712_v16, %v994_v58  ;;  %v940_v63 = vld [vmem:[#allocation2 + $0x68] sm:$0xff] }
 0x130   : > { %v956_v0 = vld [vmem:[#allocation2 + $0xe8] sm:$0xff]  ;;  %907 = vst.msk [vmem:[#allocation2 + $0x78] sm:$0xff] %vm313_vm0, %v874_v59  ;;  %923 = vst.msk [vmem:[#allocation2 + $0xf8] sm:$0xff] %vm313_vm0, %v890_v60  ;;  %v1049_v1 = vmax.f32 %v1017_v61, 0.0  ;;  %v979_v3 = vmul.f32 %v1707_v13, %v940_v63 }
 0x131   : > { %v1065_v2 = vmax.f32 %v1033_v62, 0.0  ;;  %v995_v4 = vmul.f32 %v1707_v13, %v956_v0 }
 0x132   : > { %1081 = vst.msk [vmem:[%s1725_s15 + $0x60] sm:$0xff] %vm313_vm0, %v1049_v1  ;;  %v1018_v5 = vadd.f32 %v1712_v16, %v979_v3 }
 0x133   : > { %1097 = vst.msk [vmem:[%s1725_s15 + $0xe0] sm:$0xff] %vm313_vm0, %v1065_v2  ;;  %v1034_v6 = vadd.f32 %v1712_v16, %v995_v4  ;;  %v941_v7 = vld [vmem:[#allocation2 + $0x70] sm:$0xff] }
 0x134   : > { %v957_v8 = vld [vmem:[#allocation2 + $0xf0] sm:$0xff]  ;;  %v980_v9 = vmul.f32 %v1707_v13, %v941_v7  ;;  %v1050_v11 = vmax.f32 %v1018_v5, 0.0 }
 0x135   : > { %v996_v10 = vmul.f32 %v1707_v13, %v957_v8  ;;  %v1066_v12 = vmax.f32 %v1034_v6, 0.0 }
 0x136   : > { %v1019_v14 = vadd.f32 %v1712_v16, %v980_v9  ;;  %1082 = vst.msk [vmem:[%s1725_s15 + $0x68] sm:$0xff] %vm313_vm0, %v1050_v11 }
 0x137   : > { %v1035_v15 = vadd.f32 %v1712_v16, %v996_v10  ;;  %1098 = vst.msk [vmem:[%s1725_s15 + $0xe8] sm:$0xff] %vm313_vm0, %v1066_v12  ;;  %v942_v17 = vld [vmem:[#allocation2 + $0x78] sm:$0xff] }
 0x138   : > { %v958_v18 = vld [vmem:[#allocation2 + $0xf8] sm:$0xff]  ;;  %v1051_v19 = vmax.f32 %v1019_v14, 0.0  ;;  %v981_v21 = vmul.f32 %v1707_v13, %v942_v17 }
 0x139   : > { %v1067_v20 = vmax.f32 %v1035_v15, 0.0  ;;  %v997_v22 = vmul.f32 %v1707_v13, %v958_v18 }
 0x13a   : > { %1083 = vst.msk [vmem:[%s1725_s15 + $0x70] sm:$0xff] %vm313_vm0, %v1051_v19  ;;  %v1020_v23 = vadd.f32 %v1712_v16, %v981_v21 }
 0x13b   : > { %1099 = vst.msk [vmem:[%s1725_s15 + $0xf0] sm:$0xff] %vm313_vm0, %v1067_v20  ;;  %v1036_v24 = vadd.f32 %v1712_v16, %v997_v22 }
 0x13c   : > { %v1052_v25 = vmax.f32 %v1020_v23, 0.0 }
 0x13d   : > { %v1068_v26 = vmax.f32 %v1036_v24, 0.0 }
 0x13e   : > { %1084 = vst.msk [vmem:[%s1725_s15 + $0x78] sm:$0xff] %vm313_vm0, %v1052_v25 }
 0x13f   : > { %1100 = vst.msk [vmem:[%s1725_s15 + $0xf8] sm:$0xff] %vm313_vm0, %v1068_v26 }
 0x140 PF: > { %s14_s17 = sadd.s32 1, %s1532_s17   ;;  %s1891_s15 = smov %s1528_s16 }
 0x141   : > { %p11_p5 = scmp.ge.s32.totalorder %s14_s17, 4   ;;  %s1892_s16 = smov %s1894_s18 }
 0x143   :  { %13 = sbr.rel (!%p11_p5) target bundleno = 2 (0x2), region = 83 }

// kernel: _lambda_.22
= control target key start
LH: loop header
LB: loop body
LE: loop exit
PB: predicated region body
PF: predicated region fallthrough
CT: control target
= control target key end

     0   :  { %s632_s15 = smov 0   ;;  %s799_s0 = inlined_call_operand.vmem [shape: f32[2,9,9,64], index: 0, kind: input, shape index: {}]   ;;  %s800_s1 = inlined_call_operand.vmem [shape: f32[2,9,9,64], index: 1, kind: input, shape index: {}]   ;;  %s801_s2 = inlined_call_operand.vmem [shape: f32[2,9,9,64], index: 2, kind: input, shape index: {}]   ;;  %s802_s3 = inlined_call_operand.vmem [shape: f32[2,9,9,64], index: 3, kind: input, shape index: {}]   ;;  %s803_s4 = inlined_call_operand.vmem [shape: f32[2,8,8,64], index: 4, kind: output, shape index: {}]  }
   0x1 LB: > { %s576_s16 = sadd.s32 4294967295, %s605_s15   ;;  %p580_p0 = scmp.ge.s32.totalorder %s605_s15, 1  ;;  %s605_s15 = sphi %s632_s15, %s14_s15  }
   0x2   : > { %p192_p1 = scmp.lt.s32.totalorder %s605_s15, 3 }
   0x4   : > { %p193_p2 = pnand %p580_p0, %p192_p1 }
   0x5   : > { %p233_p3 = scmp.lt.s32.totalorder (!%p193_p2), %s576_s16, 1 }
   0x6   : > { %196 = sbr.rel (%p193_p2) target bundleno = 56 (0x38), region = 36 }
   0xb   : > { %s805_s16 = smov (!%p233_p3, %s576_s16), 1  ;;  %vm333_vm0 = vcmask 1046528   ;;  %vm476_vm1 = vcmask 523264  }
   0xc   : > { %s590_s17 = smul.u32 144, %s805_s16  ;;  %s589_s30 = sshll.u32 %s805_s16, 6 }
   0xd   : > { %s740_s7 = scalar_lea.vmem %s803_s4, %s589_s30 }
   0xe   : > { %s646_s20 = scalar_lea.vmem %s799_s0, %s590_s17  ;;  %s651_s23 = scalar_lea.vmem %s800_s1, %s590_s17 }
   0xf   : > { %s656_s26 = scalar_lea.vmem %s801_s2, %s590_s17  ;;  %s661_s29 = scalar_lea.vmem %s802_s3, %s590_s17  ;;  %v258_v0 = vld [vmem:[%s646_s20] sm:$0xff]  ;;  %v259_v1 = vld [vmem:[%s646_s20 + $0x8] sm:$0x1]  ;;  %v666_v2 = vld [vmem:[%s646_s20 + $0x10] sm:$0xff] }
  0x10   : > { %v261_v3 = vld [vmem:[%s646_s20 + $0x18] sm:$0x1]  ;;  %v276_v4 = vld [vmem:[%s651_s23] sm:$0xff]  ;;  %v671_v5 = vld [vmem:[%s651_s23 + $0x10] sm:$0xff]  ;;  %v334_v6 = vrot.slane %v258_v0, 1  ;;  %v335_v7 = vrot.slane %v259_v1, 1 }
  0x11   : > { %v285_v8 = vld [vmem:[%s656_s26] sm:$0xff]  ;;  %v286_v9 = vld [vmem:[%s656_s26 + $0x8] sm:$0x1]  ;;  %v287_v10 = vld [vmem:[%s656_s26 + $0x10] sm:$0xff]  ;;  %v309_v11 = vmax.f32 %v258_v0, %v276_v4  ;;  %v310_v12 = vmax.f32 %v666_v2, %v671_v5  ;;  %v337_v13 = vrot.slane %v666_v2, 1  ;;  %v338_v14 = vrot.slane %v261_v3, 1 }
  0x12   : > { %v301_v15 = vld [vmem:[%s661_s29] sm:$0xff]  ;;  %v336_v16 = vsel %vm333_vm0, %v334_v6, %v335_v7  ;;  %v406_v17 = vrot.slane %v285_v8, 1  ;;  %v407_v18 = vrot.slane %v286_v9, 1  ;;  %v409_v19 = vrot.slane %v287_v10, 1  ;;  %v263_v23 = vld [vmem:[%s646_s20 + $0x28] sm:$0x1] }
  0x13   : > { %v262_v20 = vld [vmem:[%s646_s20 + $0x20] sm:$0xff]  ;;  %v683_v21 = vsel %vm333_vm0, %v337_v13, %v338_v14  ;;  %v366_v22 = vmax.f32 %v309_v11, %v336_v16  ;;  %v288_v25 = vld [vmem:[%s656_s26 + $0x18] sm:$0x1]  ;;  %v302_v27 = vld [vmem:[%s661_s29 + $0x10] sm:$0xff]  ;;  %v341_v31 = vrot.slane %v263_v23, 1 }
  0x14   : > { %v687_v24 = vld [vmem:[%s651_s23 + $0x20] sm:$0xff]  ;;  %v340_v26 = vrot.slane %v262_v20, 1  ;;  %v367_v28 = vmax.f32 %v310_v12, %v683_v21  ;;  %v264_v32 = vld [vmem:[%s646_s20 + $0x30] sm:$0xff]  ;;  %v408_v34 = vsel %vm333_vm0, %v406_v17, %v407_v18  ;;  %v410_v35 = vrot.slane %v288_v25, 1  ;;  %v265_v37 = vld [vmem:[%s646_s20 + $0x38] sm:$0x1] }
  0x15   : > { %v289_v29 = vld [vmem:[%s656_s26 + $0x20] sm:$0xff]  ;;  %v311_v30 = vmax.f32 %v262_v20, %v687_v24  ;;  %v374_v33 = vmax.f32 %v366_v22, %v285_v8  ;;  %v698_v38 = vld [vmem:[%s651_s23 + $0x30] sm:$0xff]  ;;  %v290_v42 = vld [vmem:[%s656_s26 + $0x28] sm:$0x1]  ;;  %v343_v44 = vrot.slane %v264_v32, 1  ;;  %v344_v49 = vrot.slane %v265_v37, 1 }
  0x16   : > { %v412_v36 = vrot.slane %v289_v29, 1  ;;  %v291_v39 = vld [vmem:[%s656_s26 + $0x30] sm:$0xff]  ;;  %v375_v40 = vmax.f32 %v367_v28, %v287_v10  ;;  %v342_v41 = vsel %vm333_vm0, %v340_v26, %v341_v31  ;;  %v312_v43 = vmax.f32 %v264_v32, %v698_v38  ;;  %v705_v45 = vld [vmem:[%s646_s20 + $0x40] sm:$0xff]  ;;  %v267_v50 = vld [vmem:[%s646_s20 + $0x48] sm:$0x1] }
  0x17   : > { %v382_v46 = vmax.f32 %v374_v33, %v301_v15  ;;  %v368_v47 = vmax.f32 %v311_v30, %v342_v41  ;;  %v411_v48 = vsel %vm333_vm0, %v409_v19, %v410_v35  ;;  %v710_v51 = vld [vmem:[%s651_s23 + $0x40] sm:$0xff]  ;;  %v413_v54 = vrot.slane %v290_v42, 1  ;;  %v292_v56 = vld [vmem:[%s656_s26 + $0x38] sm:$0x1]  ;;  %v720_v63 = vld [vmem:[%s646_s20 + $0x50] sm:$0xff] }
  0x18   : > { %v383_v52 = vmax.f32 %v375_v40, %v302_v27  ;;  %v303_v53 = vld [vmem:[%s661_s29 + $0x20] sm:$0xff]  ;;  %v415_v55 = vrot.slane %v291_v39, 1  ;;  %v313_v58 = vmax.f32 %v705_v45, %v710_v51  ;;  %v345_v61 = vsel %vm333_vm0, %v343_v44, %v344_v49  ;;  %v723_v0 = vld [vmem:[%s651_s23 + $0x50] sm:$0xff]  ;;  %v269_v12 = vld [vmem:[%s646_s20 + $0x58] sm:$0x1] }
  0x19   : > { %v293_v57 = vld [vmem:[%s656_s26 + $0x40] sm:$0xff]  ;;  %v438_v59 = vmax.f32 %v382_v46, %v408_v34  ;;  %v376_v60 = vmax.f32 %v368_v47, %v289_v29  ;;  %v346_v62 = vrot.slane %v705_v45, 1  ;;  %v369_v3 = vmax.f32 %v312_v43, %v345_v61  ;;  %v304_v9 = vld [vmem:[%s661_s29 + $0x30] sm:$0xff]  ;;  %v294_v16 = vld [vmem:[%s656_s26 + $0x48] sm:$0x1] }
  0x1a   : > { %v439_v1 = vmax.f32 %v383_v52, %v411_v48  ;;  %v414_v4 = vsel %vm333_vm0, %v412_v36, %v413_v54  ;;  %v347_v6 = vrot.slane %v267_v50, 1  ;;  %v416_v10 = vrot.slane %v292_v56, 1  ;;  %v295_v23 = vld [vmem:[%s656_s26 + $0x50] sm:$0xff]  ;;  %v305_v26 = vld [vmem:[%s661_s29 + $0x40] sm:$0xff]  ;;  %v271_v34 = vld [vmem:[%s646_s20 + $0x68] sm:$0x1] }
  0x1b   : > { %v446_v7 = vmax.f32 %v438_v59, %v666_v2  ;;  %v384_v8 = vmax.f32 %v376_v60, %v303_v53  ;;  %v418_v11 = vrot.slane %v293_v57, 1  ;;  %v377_v14 = vmax.f32 %v369_v3, %v291_v39  ;;  %v270_v33 = vld [vmem:[%s646_s20 + $0x60] sm:$0xff]  ;;  %v296_v40 = vld [vmem:[%s656_s26 + $0x58] sm:$0x1]  ;;  %v272_v46 = vld [vmem:[%s646_s20 + $0x70] sm:$0xff] }
  0x1c   : > { %v447_v13 = vmax.f32 %v439_v1, %v262_v20  ;;  %v348_v15 = vsel %vm333_vm0, %v346_v62, %v347_v6  ;;  %v314_v17 = vmax.f32 %v720_v63, %v723_v0  ;;  %v417_v22 = vsel %vm333_vm0, %v415_v55, %v416_v10  ;;  %v749_v35 = vld [vmem:[%s651_s23 + $0x60] sm:$0xff]  ;;  %v283_v47 = vld [vmem:[%s651_s23 + $0x70] sm:$0xff]  ;;  %v273_v56 = vld [vmem:[%s646_s20 + $0x78] sm:$0x1] }
  0x1d   : > { %v454_v18 = vmax.f32 %v446_v7, %v671_v5  ;;  %v440_v19 = vmax.f32 %v384_v8, %v414_v4  ;;  %v370_v2 = vmax.f32 %v313_v58, %v348_v15  ;;  %v385_v25 = vmax.f32 %v377_v14, %v304_v9  ;;  %v297_v44 = vld [vmem:[%s656_s26 + $0x60] sm:$0xff]  ;;  %v306_v48 = vld [vmem:[%s661_s29 + $0x50] sm:$0xff]  ;;  %v300_v6 = vld [vmem:[%s656_s26 + $0x78] sm:$0x1] }
  0x1e   : > { %v455_v20 = vmax.f32 %v447_v13, %v687_v24  ;;  %v349_v5 = vrot.slane %v720_v63, 1  ;;  %v350_v27 = vrot.slane %v269_v12, 1  ;;  %v419_v31 = vrot.slane %v294_v16, 1  ;;  %v299_v4 = vld [vmem:[%s656_s26 + $0x70] sm:$0xff]  ;;  %v307_v8 = vld [vmem:[%s661_s29 + $0x60] sm:$0xff] }
  0x1f   : > { %v468_v28 = vmax.f32 %v454_v18, %v683_v21  ;;  %v448_v29 = vmax.f32 %v440_v19, %v264_v32  ;;  %v378_v30 = vmax.f32 %v370_v2, %v293_v57  ;;  %v441_v36 = vmax.f32 %v385_v25, %v417_v22  ;;  %v298_v57 = vld [vmem:[%s656_s26 + $0x68] sm:$0x1]  ;;  %v308_v22 = vld [vmem:[%s661_s29 + $0x70] sm:$0xff]  ;;  %v274_v25 = vld [vmem:[%s646_s20 + $0x80] sm:$0xff] }
  0x20   : > { %v469_v24 = vmax.f32 %v455_v20, %v342_v41  ;;  %v351_v37 = vsel %vm333_vm0, %v349_v5, %v350_v27  ;;  %v421_v39 = vrot.slane %v295_v23, 1  ;;  %v420_v43 = vsel %vm333_vm0, %v418_v11, %v419_v31 }
  0x21   : > { %477 = vst.msk [vmem:[%s740_s7] sm:$0xff] %vm476_vm1, %v468_v28  ;;  %v456_v21 = vmax.f32 %v448_v29, %v698_v38  ;;  %v386_v32 = vmax.f32 %v378_v30, %v305_v26  ;;  %v371_v42 = vmax.f32 %v314_v17, %v351_v37  ;;  %v449_v41 = vmax.f32 %v441_v36, %v705_v45  ;;  %v275_v26 = vld [vmem:[%s646_s20 + $0x88] sm:$0x1] }
  0x22   : > { %478 = vst.msk [vmem:[%s740_s7 + $0x8] sm:$0xff] %vm476_vm1, %v469_v24  ;;  %v315_v49 = vmax.f32 %v270_v33, %v749_v35  ;;  %v352_v50 = vrot.slane %v270_v33, 1  ;;  %v353_v52 = vrot.slane %v271_v34, 1  ;;  %v422_v55 = vrot.slane %v296_v40, 1  ;;  %v284_v24 = vld [vmem:[%s651_s23 + $0x80] sm:$0xff] }
  0x23   : > { %v470_v38 = vmax.f32 %v456_v21, %v345_v61  ;;  %v379_v53 = vmax.f32 %v371_v42, %v295_v23  ;;  %v442_v54 = vmax.f32 %v386_v32, %v420_v43  ;;  %v457_v58 = vmax.f32 %v449_v41, %v710_v51 }
  0x24   : > { %v354_v59 = vsel %vm333_vm0, %v352_v50, %v353_v52  ;;  %v424_v60 = vrot.slane %v297_v44, 1  ;;  %v316_v45 = vmax.f32 %v272_v46, %v283_v47  ;;  %v423_v3 = vsel %vm333_vm0, %v421_v39, %v422_v55 }
  0x25   : > { %479 = vst.msk [vmem:[%s740_s7 + $0x10] sm:$0xff] %vm476_vm1, %v470_v38  ;;  %v387_v62 = vmax.f32 %v379_v53, %v306_v48  ;;  %v450_v1 = vmax.f32 %v442_v54, %v720_v63  ;;  %v372_v61 = vmax.f32 %v315_v49, %v354_v59  ;;  %v471_v7 = vmax.f32 %v457_v58, %v348_v15 }
  0x26   : > { %v355_v9 = vrot.slane %v272_v46, 1  ;;  %v356_v51 = vrot.slane %v273_v56, 1  ;;  %v425_v10 = vrot.slane %v298_v57, 1  ;;  %v427_v16 = vrot.slane %v299_v4, 1 }
  0x27   : > { %v458_v11 = vmax.f32 %v450_v1, %v723_v0  ;;  %v380_v12 = vmax.f32 %v372_v61, %v297_v44  ;;  %v443_v13 = vmax.f32 %v387_v62, %v423_v3  ;;  %480 = vst.msk [vmem:[%s740_s7 + $0x18] sm:$0xff] %vm476_vm1, %v471_v7  ;;  %v428_v15 = vrot.slane %v300_v6, 1 }
  0x28   : > { %v357_v63 = vsel %vm333_vm0, %v355_v9, %v356_v51  ;;  %v426_v14 = vsel %vm333_vm0, %v424_v60, %v425_v10  ;;  %v464_v30 = vrot.slane %v274_v25, 1  ;;  %v465_v31 = vrot.slane %v275_v26, 1 }
  0x29   : > { %v472_v17 = vmax.f32 %v458_v11, %v351_v37  ;;  %v388_v18 = vmax.f32 %v380_v12, %v307_v8  ;;  %v451_v19 = vmax.f32 %v443_v13, %v270_v33  ;;  %v373_v2 = vmax.f32 %v316_v45, %v357_v63 }
  0x2a   : > { %v429_v5 = vsel %vm333_vm0, %v427_v16, %v428_v15  ;;  %v466_v37 = vsel %vm333_vm0, %v464_v30, %v465_v31 }
  0x2b   : > { %481 = vst.msk [vmem:[%s740_s7 + $0x20] sm:$0xff] %vm476_vm1, %v472_v17  ;;  %v459_v0 = vmax.f32 %v451_v19, %v749_v35  ;;  %v381_v23 = vmax.f32 %v373_v2, %v299_v4  ;;  %v444_v20 = vmax.f32 %v388_v18, %v426_v14 }
  0x2d   : > { %v473_v27 = vmax.f32 %v459_v0, %v354_v59  ;;  %v389_v28 = vmax.f32 %v381_v23, %v308_v22  ;;  %v452_v29 = vmax.f32 %v444_v20, %v272_v46 }
  0x2f   : > { %482 = vst.msk [vmem:[%s740_s7 + $0x28] sm:$0xff] %vm476_vm1, %v473_v27  ;;  %v460_v33 = vmax.f32 %v452_v29, %v283_v47  ;;  %v445_v34 = vmax.f32 %v389_v28, %v429_v5 }
  0x31   : > { %v474_v36 = vmax.f32 %v460_v33, %v357_v63  ;;  %v453_v35 = vmax.f32 %v445_v34, %v274_v25 }
  0x33   : > { %483 = vst.msk [vmem:[%s740_s7 + $0x30] sm:$0xff] %vm476_vm1, %v474_v36  ;;  %v461_v39 = vmax.f32 %v453_v35, %v284_v24 }
  0x35   : > { %v475_v40 = vmax.f32 %v461_v39, %v466_v37 }
  0x37   : > { %484 = vst.msk [vmem:[%s740_s7 + $0x38] sm:$0xff] %vm476_vm1, %v475_v40 }
  0x38 PF: > { %s14_s15 = sadd.s32 1, %s605_s15  }
  0x39   : > { %p11_p4 = scmp.ge.s32.totalorder %s14_s15, 4  }
  0x3b   :  { %13 = sbr.rel (!%p11_p4) target bundleno = 1 (0x1), region = 75 }

// kernel: _lambda_.23
= control target key start
LH: loop header
LB: loop body
LE: loop exit
PB: predicated region body
PF: predicated region fallthrough
CT: control target
= control target key end

     0   :  { %s1134_s15 = smov 0   ;;  %s1136_s16 = smov 0   ;;  %s1359_s0 = inlined_call_operand.vmem [shape: bf16[128,640], index: 0, kind: input, shape index: {}]   ;;  %s1360_s1 = inlined_call_operand.vmem [shape: bf16[640,64], index: 1, kind: input, shape index: {}]   ;;  %s1361_s2 = inlined_call_operand.vmem [shape: f32[1,64], index: 2, kind: input, shape index: {}]   ;;  %s1362_s3 = inlined_call_operand.vmem [shape: f32[1,64], index: 3, kind: input, shape index: {}]   ;;  %s1363_s4 = inlined_call_operand.vmem [shape: f32[128,64], index: 4, kind: output, shape index: {}]  }
   0x1   :  { %s1138_s17 = smov 0   ;;  %s1140_s18 = smov 0  }
   0x2   :  { %s1142_s19 = smov 0  }
   0x3 LB: > { %s26_s20 = sadd.s32 1, %s1102_s18  ;;  %p49_p1 = scmp.ne.s32.totalorder %s1094_s16, %s1090_s15  ;;  %s1106_s19 = sphi %s1142_s19, %s14_s19   ;;  %s1102_s18 = sphi %s1140_s18, %s1367_s18   ;;  %s1098_s17 = sphi %s1138_s17, %s1366_s17   ;;  %s1094_s16 = sphi %s1136_s16, %s1365_s16   ;;  %s1090_s15 = sphi %s1134_s15, %s1364_s15  }
   0x4   : > { %p27_p0 = scmp.ge.s32.totalorder %s26_s20, 5  ;;  %p50_p2 = scmp.eq.s32.totalorder %s1106_s19, 0 }
   0x5   : > { %s42_s22 = sadd.s32 1, %s1094_s16  ;;  %p916_p5 = scmp.ge.s32.totalorder %s1106_s19, 5 }
   0x6   : > { %s1369_s20 = smov (%p27_p0, %s26_s20), 0  ;;  %p51_p3 = por %p50_p2, %p49_p1 }
   0x7   : > { %s38_s21 = ssub.s32 %s1102_s18, %s1369_s20  ;;  %195 = sbr.rel (%p916_p5) target bundleno = 26 (0x1a), region = 24 }
   0x8   : > { %p40_p4 = scmp.eq.s32.totalorder %s38_s21, 0 }
   0xa   : > { %s1169_s23 = scalar_select %p40_p4, %s1094_s16, %s42_s22  }
   0xc   : > { %198 = sbr.rel (!%p51_p3) target bundleno = 26 (0x1a), region = 28  ;;  %s200_s24 = sand.u32 (%p51_p3), 1, %s1094_s16  }
   0xd   : > { %s918_s25 = sshll.u32 (%p51_p3), %s1102_s18, 2  ;;  %s917_s26 = sshll.u32 (%p51_p3), %s200_s24, 6 }
   0xe   : > { %s1177_s29 = scalar_lea.vmem (%p51_p3), %s1359_s0, %s918_s25  ;;  %s202_s30 = scalar_lea.vmem (%p51_p3), [#allocation3], %s917_s26 }
   0xf   : > { %v224_v0 = vld [vmem:[%s1177_s29] sm:$0xf] (%p51_p3)  ;;  %v226_v1 = vld [vmem:[%s1177_s29 + $0x14] sm:$0xf] (%p51_p3)  ;;  %v228_v2 = vld [vmem:[%s1177_s29 + $0x28] sm:$0xf] (%p51_p3) }
  0x10   : > { %225 = vst [vmem:[%s202_s30] sm:$0xf] (%p51_p3), %v224_v0  ;;  %227 = vst [vmem:[%s202_s30 + $0x4] sm:$0xf] (%p51_p3), %v226_v1  ;;  %v230_v3 = vld [vmem:[%s1177_s29 + $0x3c] sm:$0xf] (%p51_p3) }
  0x11   : > { %v232_v4 = vld [vmem:[%s1177_s29 + $0x50] sm:$0xf]  ;;  %229 = vst [vmem:[%s202_s30 + $0x8] sm:$0xf] %v228_v2  ;;  %231 = vst [vmem:[%s202_s30 + $0xc] sm:$0xf] %v230_v3 }
  0x12   : > { %233 = vst [vmem:[%s202_s30 + $0x10] sm:$0xf] %v232_v4  ;;  %v234_v5 = vld [vmem:[%s1177_s29 + $0x64] sm:$0xf]  ;;  %v236_v6 = vld [vmem:[%s1177_s29 + $0x78] sm:$0xf] }
  0x13   : > { %v238_v7 = vld [vmem:[%s1177_s29 + $0x8c] sm:$0xf]  ;;  %235 = vst [vmem:[%s202_s30 + $0x14] sm:$0xf] %v234_v5  ;;  %237 = vst [vmem:[%s202_s30 + $0x18] sm:$0xf] %v236_v6 }
  0x14   : > { %239 = vst [vmem:[%s202_s30 + $0x1c] sm:$0xf] %v238_v7  ;;  %v240_v8 = vld [vmem:[%s1177_s29 + $0xa0] sm:$0xf]  ;;  %v242_v9 = vld [vmem:[%s1177_s29 + $0xb4] sm:$0xf] }
  0x15   : > { %v244_v10 = vld [vmem:[%s1177_s29 + $0xc8] sm:$0xf]  ;;  %241 = vst [vmem:[%s202_s30 + $0x20] sm:$0xf] %v240_v8  ;;  %243 = vst [vmem:[%s202_s30 + $0x24] sm:$0xf] %v242_v9 }
  0x16   : > { %245 = vst [vmem:[%s202_s30 + $0x28] sm:$0xf] %v244_v10  ;;  %v246_v11 = vld [vmem:[%s1177_s29 + $0xdc] sm:$0xf]  ;;  %v248_v12 = vld [vmem:[%s1177_s29 + $0xf0] sm:$0xf] }
  0x17   : > { %v250_v13 = vld [vmem:[%s1177_s29 + $0x104] sm:$0xf]  ;;  %247 = vst [vmem:[%s202_s30 + $0x2c] sm:$0xf] %v246_v11  ;;  %249 = vst [vmem:[%s202_s30 + $0x30] sm:$0xf] %v248_v12 }
  0x18   : > { %251 = vst [vmem:[%s202_s30 + $0x34] sm:$0xf] %v250_v13  ;;  %v252_v14 = vld [vmem:[%s1177_s29 + $0x118] sm:$0xf]  ;;  %v254_v15 = vld [vmem:[%s1177_s29 + $0x12c] sm:$0xf] }
  0x19   : > { %253 = vst [vmem:[%s202_s30 + $0x38] sm:$0xf] %v252_v14  ;;  %255 = vst [vmem:[%s202_s30 + $0x3c] sm:$0xf] %v254_v15 }
  0x1a PF: > { %p919_p6 = scmp.ge.s32.totalorder %s1106_s19, 1  ;;  %p322_p7 = scmp.lt.s32.totalorder %s1106_s19, 6 }
  0x1c   : > { %p323_p8 = pnand %p919_p6, %p322_p7 }
  0x1d   : > { %s329_s5 = sand.u32 (!%p323_p8), 1, %s1090_s15   ;;  %s921_s6 = sshll.u32 (!%p323_p8), %s1098_s17, 4 }
  0x1e   : > { %326 = sbr.rel (%p323_p8) target bundleno = 310 (0x136), region = 73  ;;  %s920_s7 = sshll.u32 (!%p323_p8), %s329_s5, 6 }
  0x1f   : > { %p373_p9 = scmp.lt.s32.totalorder (!%p323_p8), %s921_s6, 79  ;;  %s1204_s12 = scalar_lea.vmem (!%p323_p8), [#allocation3], %s920_s7 }
  0x20   : > { %p923_p10 = scmp.ne.s32.totalorder (!%p323_p8), %s1098_s17, 0 }
  0x23   : > { %s1371_s6 = smov (!%p373_p9, %s921_s6), 79  ;;  %400 = sbr.rel (%p923_p10) target bundleno = 49 (0x31), region = 81 }
  0x24   : > { %s922_s8 = sshll.u32 %s1371_s6, 2 }
  0x25   : > { %s1202_s11 = scalar_lea.vmem %s1360_s1, %s922_s8 }
  0x28   : > { %vm401_vm0 = vcmask 523264   ;;  %v1108_v16 = vmov 0.0  }
  0x29   : > { %402 = vst.msk [vmem:[#allocation2] sm:$0xff] %vm401_vm0, %v1108_v16  ;;  %403 = vst.msk [vmem:[#allocation2 + $0x8] sm:$0xff] %vm401_vm0, %v1108_v16 }
  0x2a   : > { %404 = vst.msk [vmem:[#allocation2 + $0x10] sm:$0xff] %vm401_vm0, %v1108_v16  ;;  %405 = vst.msk [vmem:[#allocation2 + $0x18] sm:$0xff] %vm401_vm0, %v1108_v16 }
  0x2b   : > { %406 = vst.msk [vmem:[#allocation2 + $0x20] sm:$0xff] %vm401_vm0, %v1108_v16  ;;  %407 = vst.msk [vmem:[#allocation2 + $0x28] sm:$0xff] %vm401_vm0, %v1108_v16 }
  0x2c   : > { %408 = vst.msk [vmem:[#allocation2 + $0x30] sm:$0xff] %vm401_vm0, %v1108_v16  ;;  %409 = vst.msk [vmem:[#allocation2 + $0x38] sm:$0xff] %vm401_vm0, %v1108_v16 }
  0x2d   : > { %410 = vst.msk [vmem:[#allocation2 + $0x40] sm:$0xff] %vm401_vm0, %v1108_v16  ;;  %411 = vst.msk [vmem:[#allocation2 + $0x48] sm:$0xff] %vm401_vm0, %v1108_v16 }
  0x2e   : > { %412 = vst.msk [vmem:[#allocation2 + $0x50] sm:$0xff] %vm401_vm0, %v1108_v16  ;;  %413 = vst.msk [vmem:[#allocation2 + $0x58] sm:$0xff] %vm401_vm0, %v1108_v16 }
  0x2f   : > { %414 = vst.msk [vmem:[#allocation2 + $0x60] sm:$0xff] %vm401_vm0, %v1108_v16  ;;  %415 = vst.msk [vmem:[#allocation2 + $0x68] sm:$0xff] %vm401_vm0, %v1108_v16 }
  0x30   : > { %416 = vst.msk [vmem:[#allocation2 + $0x70] sm:$0xff] %vm401_vm0, %v1108_v16  ;;  %417 = vst.msk [vmem:[#allocation2 + $0x78] sm:$0xff] %vm401_vm0, %v1108_v16 }
  0x31 PF: > { %v1052_v17 = vld [vmem:[%s1202_s11 + $0x38] sm:$0xff]   ;;  %v1053_v18 = vld [vmem:[%s1202_s11 + $0x30] sm:$0xff]   ;;  %v1054_v19 = vld [vmem:[%s1202_s11 + $0x28] sm:$0xff]   ;;  %vm675_vm1 = vcmask 523264   ;;  %p940_p11 = scmp.ne.s32.totalorder %s1098_s17, 4 }
  0x32   : > { %963 = vmatprep.subr.bf16.mxu0 %v1052_v17  ;;  %995 = vmatprep.subr.bf16.mxu1 %v1052_v17  ;;  %v1055_v20 = vld [vmem:[%s1202_s11 + $0x20] sm:$0xff]   ;;  %v1056_v23 = vld [vmem:[%s1202_s11 + $0x18] sm:$0xff]   ;;  %v1057_v24 = vld [vmem:[%s1202_s11 + $0x10] sm:$0xff]  }
  0x33   : > { %964 = vmatpush3.bf16.msra.mxu0 %v1052_v17  ;;  %1003 = vmatpush3.bf16.msra.mxu1 %v1052_v17  ;;  %v1060_v21 = vld [vmem:[%s1204_s12] sm:$0xff]   ;;  %v1058_v25 = vld [vmem:[%s1202_s11 + $0x8] sm:$0xff]   ;;  %v1064_v29 = vld [vmem:[%s1204_s12 + $0x10] sm:$0xff]  }
  0x34   : > { %965 = vmatprep.subr.bf16.mxu0 %v1053_v18  ;;  %996 = vmatprep.subr.bf16.mxu1 %v1053_v18  ;;  %v1061_v22 = vld [vmem:[%s1204_s12 + $0x20] sm:$0xff]   ;;  %v1062_v27 = vld [vmem:[%s1204_s12 + $0x8] sm:$0xff]   ;;  %v1065_v30 = vld [vmem:[%s1204_s12 + $0x30] sm:$0xff]  }
  0x35   : > { %979 = vmatprep.mubr.bf16.mxu0 %v1060_v21  ;;  %987 = vmatprep.mubr.bf16.mxu1 %v1061_v22  ;;  %v1059_v26 = vld [vmem:[%s1202_s11] sm:$0xff]   ;;  %v1063_v28 = vld [vmem:[%s1204_s12 + $0x28] sm:$0xff]   ;;  %v1066_v31 = vld [vmem:[%s1204_s12 + $0x18] sm:$0xff]  }
  0x36   : > { %v1067_v32 = vld [vmem:[%s1204_s12 + $0x38] sm:$0xff]   ;;  %v420_v33 = vld [vmem:[#allocation2 + $0x10] sm:$0xff]  ;;  %v418_v37 = vld [vmem:[#allocation2] sm:$0xff] }
  0x37   : > { %966 = vmatpush3.bf16.msra.mxu0 %v1053_v18  ;;  %1004 = vmatpush3.bf16.msra.mxu1 %v1053_v18  ;;  %v428_v34 = vld [vmem:[#allocation2 + $0x50] sm:$0xff]  ;;  %v426_v38 = vld [vmem:[#allocation2 + $0x40] sm:$0xff]  ;;  %v421_v43 = vld [vmem:[#allocation2 + $0x18] sm:$0xff] }
  0x38   : > { %967 = vmatprep.subr.bf16.mxu0 %v1054_v19  ;;  %997 = vmatprep.subr.bf16.mxu1 %v1054_v19  ;;  %v429_v44 = vld [vmem:[#allocation2 + $0x58] sm:$0xff]  ;;  %v419_v49 = vld [vmem:[#allocation2 + $0x8] sm:$0xff]  ;;  %v424_v55 = vld [vmem:[#allocation2 + $0x30] sm:$0xff] }
  0x39   : > { %v427_v50 = vld [vmem:[#allocation2 + $0x48] sm:$0xff]  ;;  %v432_v56 = vld [vmem:[#allocation2 + $0x70] sm:$0xff]  ;;  %v422_v61 = vld [vmem:[#allocation2 + $0x20] sm:$0xff] }
  0x3a   : > { %v430_v62 = vld [vmem:[#allocation2 + $0x60] sm:$0xff]  ;;  %v425_v3 = vld [vmem:[#allocation2 + $0x38] sm:$0xff]  ;;  %v423_v9 = vld [vmem:[#allocation2 + $0x28] sm:$0xff] }
  0x3b   : > { %968 = vmatpush3.bf16.msra.mxu0 %v1054_v19  ;;  %1005 = vmatpush3.bf16.msra.mxu1 %v1054_v19  ;;  %v433_v4 = vld [vmem:[#allocation2 + $0x78] sm:$0xff]  ;;  %v431_v10 = vld [vmem:[#allocation2 + $0x68] sm:$0xff] }
  0x3c   : > { %969 = vmatprep.subr.bf16.mxu0 %v1055_v20  ;;  %998 = vmatprep.subr.bf16.mxu1 %v1055_v20 }
  0x3f   : > { %970 = vmatpush3.bf16.msra.mxu0 %v1055_v20  ;;  %1006 = vmatpush3.bf16.msra.mxu1 %v1055_v20 }
  0x40   : > { %971 = vmatprep.subr.bf16.mxu0 %v1056_v23  ;;  %999 = vmatprep.subr.bf16.mxu1 %v1056_v23 }
  0x43   : > { %972 = vmatpush3.bf16.msra.mxu0 %v1056_v23  ;;  %1007 = vmatpush3.bf16.msra.mxu1 %v1056_v23 }
  0x44   : > { %973 = vmatprep.subr.bf16.mxu0 %v1057_v24  ;;  %1000 = vmatprep.subr.bf16.mxu1 %v1057_v24 }
  0x47   : > { %974 = vmatpush3.bf16.msra.mxu0 %v1057_v24  ;;  %1008 = vmatpush3.bf16.msra.mxu1 %v1057_v24 }
  0x48   : > { %975 = vmatprep.subr.bf16.mxu0 %v1058_v25  ;;  %1001 = vmatprep.subr.bf16.mxu1 %v1058_v25 }
  0x4b   : > { %976 = vmatpush3.bf16.msra.mxu0 %v1058_v25  ;;  %1009 = vmatpush3.bf16.msra.mxu1 %v1058_v25 }
  0x4c   : > { %977 = vmatprep.subr.bf16.mxu0 %v1059_v26  ;;  %1002 = vmatprep.subr.bf16.mxu1 %v1059_v26 }
  0x4f   : > { %978 = vmatpush3.bf16.msra.mxu0 %v1059_v26  ;;  %1010 = vmatpush3.bf16.msra.mxu1 %v1059_v26 }
  0x52   : > { %980 = vmatmul.mubr.bf16.vlgmr.msra.gmra.mxu0 %v1062_v27  ;;  %988 = vmatmul.mubr.bf16.vlgmr.msra.gmra.mxu1 %v1063_v28 }
  0x53   : > { %983 = vmatprep.mubr.bf16.mxu0 %v1064_v29  ;;  %991 = vmatprep.mubr.bf16.mxu1 %v1065_v30 }
  0x5a   : > { %984 = vmatmul.mubr.bf16.gmra.mxu0 %v1066_v31  ;;  %992 = vmatmul.mubr.bf16.gmra.mxu1 %v1067_v32 }
 0x112   : > { %v981_v35 = vpop.f32.mrf.mxu0  ;;  %v989_v36 = vpop.f32.mrf.mxu1 }
 0x113   : > { %v661_v39 = vadd.f32 %v981_v35, %v420_v33  ;;  %v669_v40 = vadd.f32 %v989_v36, %v428_v34 }
 0x114   : > { %v596_v41 = vpop.f32.mrf.mxu0  ;;  %v628_v42 = vpop.f32.mrf.mxu1 }
 0x115   : > { %678 = vst.msk [vmem:[#allocation2 + $0x10] sm:$0xff] %vm675_vm1, %v661_v39  ;;  %686 = vst.msk [vmem:[#allocation2 + $0x50] sm:$0xff] %vm675_vm1, %v669_v40  ;;  %v659_v45 = vadd.f32 %v596_v41, %v418_v37  ;;  %v667_v46 = vadd.f32 %v628_v42, %v426_v38 }
 0x116   : > { %v982_v47 = vpop.f32.mrf.mxu0  ;;  %v990_v48 = vpop.f32.mrf.mxu1 }
 0x117   : > { %676 = vst.msk [vmem:[#allocation2] sm:$0xff] %vm675_vm1, %v659_v45  ;;  %684 = vst.msk [vmem:[#allocation2 + $0x40] sm:$0xff] %vm675_vm1, %v667_v46  ;;  %v662_v51 = vadd.f32 %v982_v47, %v421_v43  ;;  %v670_v52 = vadd.f32 %v990_v48, %v429_v44 }
 0x118   : > { %v599_v53 = vpop.f32.mrf.mxu0  ;;  %v631_v54 = vpop.f32.mrf.mxu1 }
 0x119   : > { %679 = vst.msk [vmem:[#allocation2 + $0x18] sm:$0xff] %vm675_vm1, %v662_v51  ;;  %687 = vst.msk [vmem:[#allocation2 + $0x58] sm:$0xff] %vm675_vm1, %v670_v52  ;;  %v660_v57 = vadd.f32 %v599_v53, %v419_v49  ;;  %v668_v58 = vadd.f32 %v631_v54, %v427_v50 }
 0x11a   : > { %v985_v59 = vpop.f32.mrf.mxu0  ;;  %v993_v60 = vpop.f32.mrf.mxu1 }
 0x11b   : > { %677 = vst.msk [vmem:[#allocation2 + $0x8] sm:$0xff] %vm675_vm1, %v660_v57  ;;  %685 = vst.msk [vmem:[#allocation2 + $0x48] sm:$0xff] %vm675_vm1, %v668_v58  ;;  %v665_v63 = vadd.f32 %v985_v59, %v424_v55  ;;  %v673_v0 = vadd.f32 %v993_v60, %v432_v56 }
 0x11c   : > { %v612_v1 = vpop.f32.mrf.mxu0  ;;  %v644_v2 = vpop.f32.mrf.mxu1 }
 0x11d   : > { %682 = vst.msk [vmem:[#allocation2 + $0x30] sm:$0xff] %vm675_vm1, %v665_v63  ;;  %690 = vst.msk [vmem:[#allocation2 + $0x70] sm:$0xff] %vm675_vm1, %v673_v0  ;;  %v663_v5 = vadd.f32 %v612_v1, %v422_v61  ;;  %v671_v6 = vadd.f32 %v644_v2, %v430_v62 }
 0x11e   : > { %v986_v7 = vpop.f32.mrf.mxu0  ;;  %v994_v8 = vpop.f32.mrf.mxu1 }
 0x11f   : > { %680 = vst.msk [vmem:[#allocation2 + $0x20] sm:$0xff] %vm675_vm1, %v663_v5  ;;  %688 = vst.msk [vmem:[#allocation2 + $0x60] sm:$0xff] %vm675_vm1, %v671_v6  ;;  %v666_v11 = vadd.f32 %v986_v7, %v425_v3  ;;  %v674_v12 = vadd.f32 %v994_v8, %v433_v4  ;;  %695 = sbr.rel (%p940_p11) target bundleno = 310 (0x136), region = 85 }
 0x120   : > { %v615_v13 = vpop.f32.mrf.mxu0  ;;  %v647_v14 = vpop.f32.mrf.mxu1 }
 0x121   : > { %683 = vst.msk [vmem:[#allocation2 + $0x38] sm:$0xff] %vm675_vm1, %v666_v11  ;;  %691 = vst.msk [vmem:[#allocation2 + $0x78] sm:$0xff] %vm675_vm1, %v674_v12  ;;  %v664_v15 = vadd.f32 %v615_v13, %v423_v9  ;;  %v672_v16 = vadd.f32 %v647_v14, %v431_v10 }
 0x123   : > { %681 = vst.msk [vmem:[#allocation2 + $0x28] sm:$0xff] %vm675_vm1, %v664_v15  ;;  %689 = vst.msk [vmem:[#allocation2 + $0x68] sm:$0xff] %vm675_vm1, %v672_v16 }
 0x124   : > { %v696_v17 = vld [vmem:[#allocation2] sm:$0xff]  ;;  %v697_v21 = vld [vmem:[#allocation2 + $0x8] sm:$0xff]  ;;  %v698_v22 = vld [vmem:[#allocation2 + $0x10] sm:$0xff] }
 0x125   : > { %v941_v18 = vld [vmem:[%s1361_s2] ss:$0 sm:$0xff]  ;;  %v699_v23 = vld [vmem:[#allocation2 + $0x18] sm:$0xff]  ;;  %v702_v29 = vld [vmem:[#allocation2 + $0x30] sm:$0xff] }
 0x126   : > { %v1262_v19 = vld [vmem:[%s1362_s3] ss:$0 sm:$0xff]  ;;  %v719_v20 = vmul.f32 %v941_v18, %v696_v17  ;;  %v720_v24 = vmul.f32 %v941_v18, %v697_v21  ;;  %v721_v25 = vmul.f32 %v941_v18, %v698_v22  ;;  %v722_v26 = vmul.f32 %v941_v18, %v699_v23  ;;  %v705_v44 = vld [vmem:[#allocation2 + $0x48] sm:$0xff]  ;;  %v706_v45 = vld [vmem:[#allocation2 + $0x50] sm:$0xff] }
 0x127   : > { %v700_v27 = vld [vmem:[#allocation2 + $0x20] sm:$0xff]  ;;  %v725_v33 = vmul.f32 %v941_v18, %v702_v29  ;;  %v707_v46 = vld [vmem:[#allocation2 + $0x58] sm:$0xff]  ;;  %v710_v53 = vld [vmem:[#allocation2 + $0x70] sm:$0xff]  ;;  %v728_v60 = vmul.f32 %v941_v18, %v705_v44  ;;  %v729_v61 = vmul.f32 %v941_v18, %v706_v45 }
 0x128   : > { %v742_v30 = vadd.f32 %v1262_v19, %v719_v20  ;;  %v723_v31 = vmul.f32 %v941_v18, %v700_v27  ;;  %v703_v34 = vld [vmem:[#allocation2 + $0x38] sm:$0xff]  ;;  %v743_v35 = vadd.f32 %v1262_v19, %v720_v24  ;;  %v744_v36 = vadd.f32 %v1262_v19, %v721_v25  ;;  %v704_v39 = vld [vmem:[#allocation2 + $0x40] sm:$0xff] }
 0x129   : > { %v745_v37 = vadd.f32 %v1262_v19, %v722_v26  ;;  %v726_v38 = vmul.f32 %v941_v18, %v703_v34  ;;  %v748_v43 = vadd.f32 %v1262_v19, %v725_v33  ;;  %v708_v51 = vld [vmem:[#allocation2 + $0x60] sm:$0xff]  ;;  %v727_v57 = vmul.f32 %v941_v18, %v704_v39  ;;  %v711_v58 = vld [vmem:[#allocation2 + $0x78] sm:$0xff] }
 0x12a   : > { %v701_v28 = vld [vmem:[#allocation2 + $0x28] sm:$0xff]  ;;  %v758_v40 = vmax.f32 %v742_v30, 0.0  ;;  %v746_v41 = vadd.f32 %v1262_v19, %v723_v31  ;;  %v759_v47 = vmax.f32 %v743_v35, 0.0  ;;  %v760_v48 = vmax.f32 %v744_v36, 0.0 }
 0x12b   : > { %v724_v32 = vmul.f32 %v941_v18, %v701_v28  ;;  %v761_v49 = vmax.f32 %v745_v37, 0.0  ;;  %v749_v50 = vadd.f32 %v1262_v19, %v726_v38  ;;  %v709_v52 = vld [vmem:[#allocation2 + $0x68] sm:$0xff]  ;;  %v764_v56 = vmax.f32 %v748_v43, 0.0 }
 0x12c   : > { %774 = vst.msk [vmem:[%s1363_s4] sm:$0xff] %vm675_vm1, %v758_v40  ;;  %v762_v54 = vmax.f32 %v746_v41, 0.0  ;;  %775 = vst.msk [vmem:[%s1363_s4 + $0x8] sm:$0xff] %vm675_vm1, %v759_v47  ;;  %v730_v62 = vmul.f32 %v941_v18, %v707_v46  ;;  %v750_v63 = vadd.f32 %v1262_v19, %v727_v57  ;;  %v731_v0 = vmul.f32 %v941_v18, %v708_v51 }
 0x12d   : > { %v747_v42 = vadd.f32 %v1262_v19, %v724_v32  ;;  %776 = vst.msk [vmem:[%s1363_s4 + $0x10] sm:$0xff] %vm675_vm1, %v760_v48  ;;  %777 = vst.msk [vmem:[%s1363_s4 + $0x18] sm:$0xff] %vm675_vm1, %v761_v49  ;;  %v765_v59 = vmax.f32 %v749_v50, 0.0  ;;  %v732_v1 = vmul.f32 %v941_v18, %v709_v52  ;;  %v733_v2 = vmul.f32 %v941_v18, %v710_v53 }
 0x12e   : > { %778 = vst.msk [vmem:[%s1363_s4 + $0x20] sm:$0xff] %vm675_vm1, %v762_v54  ;;  %780 = vst.msk [vmem:[%s1363_s4 + $0x30] sm:$0xff] %vm675_vm1, %v764_v56  ;;  %v751_v3 = vadd.f32 %v1262_v19, %v728_v60  ;;  %v752_v4 = vadd.f32 %v1262_v19, %v729_v61  ;;  %v753_v5 = vadd.f32 %v1262_v19, %v730_v62  ;;  %v766_v7 = vmax.f32 %v750_v63, 0.0 }
 0x12f   : > { %v763_v55 = vmax.f32 %v747_v42, 0.0  ;;  %781 = vst.msk [vmem:[%s1363_s4 + $0x38] sm:$0xff] %vm675_vm1, %v765_v59  ;;  %v734_v6 = vmul.f32 %v941_v18, %v711_v58  ;;  %v754_v8 = vadd.f32 %v1262_v19, %v731_v0  ;;  %v755_v9 = vadd.f32 %v1262_v19, %v732_v1 }
 0x130   : > { %v756_v10 = vadd.f32 %v1262_v19, %v733_v2  ;;  %v767_v11 = vmax.f32 %v751_v3, 0.0  ;;  %v768_v12 = vmax.f32 %v752_v4, 0.0  ;;  %v769_v13 = vmax.f32 %v753_v5, 0.0  ;;  %782 = vst.msk [vmem:[%s1363_s4 + $0x40] sm:$0xff] %vm675_vm1, %v766_v7 }
 0x131   : > { %779 = vst.msk [vmem:[%s1363_s4 + $0x28] sm:$0xff] %vm675_vm1, %v763_v55  ;;  %v757_v14 = vadd.f32 %v1262_v19, %v734_v6  ;;  %v770_v15 = vmax.f32 %v754_v8, 0.0  ;;  %v771_v16 = vmax.f32 %v755_v9, 0.0 }
 0x132   : > { %v772_v17 = vmax.f32 %v756_v10, 0.0  ;;  %783 = vst.msk [vmem:[%s1363_s4 + $0x48] sm:$0xff] %vm675_vm1, %v767_v11  ;;  %784 = vst.msk [vmem:[%s1363_s4 + $0x50] sm:$0xff] %vm675_vm1, %v768_v12 }
 0x133   : > { %785 = vst.msk [vmem:[%s1363_s4 + $0x58] sm:$0xff] %vm675_vm1, %v769_v13  ;;  %v773_v18 = vmax.f32 %v757_v14, 0.0  ;;  %786 = vst.msk [vmem:[%s1363_s4 + $0x60] sm:$0xff] %vm675_vm1, %v770_v15 }
 0x134   : > { %787 = vst.msk [vmem:[%s1363_s4 + $0x68] sm:$0xff] %vm675_vm1, %v771_v16  ;;  %788 = vst.msk [vmem:[%s1363_s4 + $0x70] sm:$0xff] %vm675_vm1, %v772_v17 }
 0x135   : > { %789 = vst.msk [vmem:[%s1363_s4 + $0x78] sm:$0xff] %vm675_vm1, %v773_v18 }
 0x136 PF: > { %s14_s19 = sadd.s32 1, %s1106_s19   ;;  %s1364_s15 = smov %s1094_s16 }
 0x137   : > { %p11_p12 = scmp.ge.s32.totalorder %s14_s19, 7   ;;  %s1365_s16 = smov %s1169_s23 }
 0x138   : > { %s1366_s17 = smov %s1102_s18  ;;  %s1367_s18 = smov %s1369_s20 }
 0x139   :  { %13 = sbr.rel (!%p11_p12) target bundleno = 3 (0x3), region = 129 }

// kernel: _lambda_.24
= control target key start
LH: loop header
LB: loop body
LE: loop exit
PB: predicated region body
PF: predicated region fallthrough
CT: control target
= control target key end

     0   :  { %s1250_s18 = smov 0   ;;  %s1252_s19 = smov 0   ;;  %s1541_s0 = inlined_call_operand.vmem [shape: bf16[128,640], index: 0, kind: input, shape index: {}]   ;;  %s1542_s1 = inlined_call_operand.vmem [shape: bf16[640,64], index: 1, kind: input, shape index: {}]   ;;  %s1543_s2 = inlined_call_operand.vmem [shape: f32[1,64], index: 2, kind: input, shape index: {}]   ;;  %s1544_s3 = inlined_call_operand.vmem [shape: f32[1,64], index: 3, kind: input, shape index: {}]   ;;  %s1545_s4 = inlined_call_operand.vmem [shape: f32[128,64], index: 4, kind: input, shape index: {}]   ;;  %s1546_s5 = inlined_call_operand.vmem [shape: f32[128,64], index: 5, kind: output, shape index: {}]  }
   0x1   :  { %s1254_s20 = smov 0   ;;  %s1256_s21 = smov 0  }
   0x2   :  { %s1258_s22 = smov 0  }
   0x3 LB: > { %s27_s23 = sadd.s32 1, %s1213_s21  ;;  %p50_p1 = scmp.ne.s32.totalorder %s1205_s19, %s1201_s18  ;;  %s1217_s22 = sphi %s1258_s22, %s15_s22   ;;  %s1213_s21 = sphi %s1256_s21, %s1550_s21   ;;  %s1209_s20 = sphi %s1254_s20, %s1549_s20   ;;  %s1205_s19 = sphi %s1252_s19, %s1548_s19   ;;  %s1201_s18 = sphi %s1250_s18, %s1547_s18  }
   0x4   : > { %p28_p0 = scmp.ge.s32.totalorder %s27_s23, 5  ;;  %p51_p2 = scmp.eq.s32.totalorder %s1217_s22, 0 }
   0x5   : > { %s43_s25 = sadd.s32 1, %s1205_s19  ;;  %p1027_p5 = scmp.ge.s32.totalorder %s1217_s22, 5 }
   0x6   : > { %s1552_s23 = smov (%p28_p0, %s27_s23), 0  ;;  %p52_p3 = por %p51_p2, %p50_p1 }
   0x7   : > { %s39_s24 = ssub.s32 %s1213_s21, %s1552_s23  ;;  %236 = sbr.rel (%p1027_p5) target bundleno = 26 (0x1a), region = 28 }
   0x8   : > { %p41_p4 = scmp.eq.s32.totalorder %s39_s24, 0 }
   0xa   : > { %s1285_s26 = scalar_select %p41_p4, %s1205_s19, %s43_s25  }
   0xc   : > { %239 = sbr.rel (!%p52_p3) target bundleno = 26 (0x1a), region = 32  ;;  %s241_s27 = sand.u32 (%p52_p3), 1, %s1205_s19  }
   0xd   : > { %s1029_s28 = sshll.u32 (%p52_p3), %s1213_s21, 2  ;;  %s1028_s29 = sshll.u32 (%p52_p3), %s241_s27, 6 }
   0xe   : > { %s1293_s7 = scalar_lea.vmem (%p52_p3), %s1541_s0, %s1029_s28  ;;  %s243_s8 = scalar_lea.vmem (%p52_p3), [#allocation3], %s1028_s29 }
   0xf   : > { %v265_v0 = vld [vmem:[%s1293_s7] sm:$0xf] (%p52_p3)  ;;  %v267_v1 = vld [vmem:[%s1293_s7 + $0x14] sm:$0xf] (%p52_p3)  ;;  %v269_v2 = vld [vmem:[%s1293_s7 + $0x28] sm:$0xf] (%p52_p3) }
  0x10   : > { %266 = vst [vmem:[%s243_s8] sm:$0xf] (%p52_p3), %v265_v0  ;;  %268 = vst [vmem:[%s243_s8 + $0x4] sm:$0xf] (%p52_p3), %v267_v1  ;;  %v271_v3 = vld [vmem:[%s1293_s7 + $0x3c] sm:$0xf] (%p52_p3) }
  0x11   : > { %v273_v4 = vld [vmem:[%s1293_s7 + $0x50] sm:$0xf]  ;;  %270 = vst [vmem:[%s243_s8 + $0x8] sm:$0xf] %v269_v2  ;;  %272 = vst [vmem:[%s243_s8 + $0xc] sm:$0xf] %v271_v3 }
  0x12   : > { %274 = vst [vmem:[%s243_s8 + $0x10] sm:$0xf] %v273_v4  ;;  %v275_v5 = vld [vmem:[%s1293_s7 + $0x64] sm:$0xf]  ;;  %v277_v6 = vld [vmem:[%s1293_s7 + $0x78] sm:$0xf] }
  0x13   : > { %v279_v7 = vld [vmem:[%s1293_s7 + $0x8c] sm:$0xf]  ;;  %276 = vst [vmem:[%s243_s8 + $0x14] sm:$0xf] %v275_v5  ;;  %278 = vst [vmem:[%s243_s8 + $0x18] sm:$0xf] %v277_v6 }
  0x14   : > { %280 = vst [vmem:[%s243_s8 + $0x1c] sm:$0xf] %v279_v7  ;;  %v281_v8 = vld [vmem:[%s1293_s7 + $0xa0] sm:$0xf]  ;;  %v283_v9 = vld [vmem:[%s1293_s7 + $0xb4] sm:$0xf] }
  0x15   : > { %v285_v10 = vld [vmem:[%s1293_s7 + $0xc8] sm:$0xf]  ;;  %282 = vst [vmem:[%s243_s8 + $0x20] sm:$0xf] %v281_v8  ;;  %284 = vst [vmem:[%s243_s8 + $0x24] sm:$0xf] %v283_v9 }
  0x16   : > { %286 = vst [vmem:[%s243_s8 + $0x28] sm:$0xf] %v285_v10  ;;  %v287_v11 = vld [vmem:[%s1293_s7 + $0xdc] sm:$0xf]  ;;  %v289_v12 = vld [vmem:[%s1293_s7 + $0xf0] sm:$0xf] }
  0x17   : > { %v291_v13 = vld [vmem:[%s1293_s7 + $0x104] sm:$0xf]  ;;  %288 = vst [vmem:[%s243_s8 + $0x2c] sm:$0xf] %v287_v11  ;;  %290 = vst [vmem:[%s243_s8 + $0x30] sm:$0xf] %v289_v12 }
  0x18   : > { %292 = vst [vmem:[%s243_s8 + $0x34] sm:$0xf] %v291_v13  ;;  %v293_v14 = vld [vmem:[%s1293_s7 + $0x118] sm:$0xf]  ;;  %v295_v15 = vld [vmem:[%s1293_s7 + $0x12c] sm:$0xf] }
  0x19   : > { %294 = vst [vmem:[%s243_s8 + $0x38] sm:$0xf] %v293_v14  ;;  %296 = vst [vmem:[%s243_s8 + $0x3c] sm:$0xf] %v295_v15 }
  0x1a PF: > { %p1030_p6 = scmp.ge.s32.totalorder %s1217_s22, 1  ;;  %p363_p7 = scmp.lt.s32.totalorder %s1217_s22, 6 }
  0x1c   : > { %p364_p8 = pnand %p1030_p6, %p363_p7 }
  0x1d   : > { %s370_s9 = sand.u32 (!%p364_p8), 1, %s1201_s18   ;;  %s1032_s10 = sshll.u32 (!%p364_p8), %s1209_s20, 4 }
  0x1e   : > { %367 = sbr.rel (%p364_p8) target bundleno = 316 (0x13c), region = 77  ;;  %s1031_s11 = sshll.u32 (!%p364_p8), %s370_s9, 6 }
  0x1f   : > { %p424_p9 = scmp.lt.s32.totalorder (!%p364_p8), %s1032_s10, 79  ;;  %s1320_s16 = scalar_lea.vmem (!%p364_p8), [#allocation3], %s1031_s11 }
  0x20   : > { %p1034_p10 = scmp.ne.s32.totalorder (!%p364_p8), %s1209_s20, 0 }
  0x23   : > { %s1554_s10 = smov (!%p424_p9, %s1032_s10), 79  ;;  %460 = sbr.rel (%p1034_p10) target bundleno = 49 (0x31), region = 85 }
  0x24   : > { %s1033_s12 = sshll.u32 %s1554_s10, 2 }
  0x25   : > { %s1318_s15 = scalar_lea.vmem %s1542_s1, %s1033_s12 }
  0x28   : > { %vm461_vm0 = vcmask 523264   ;;  %v1219_v16 = vmov 0.0  }
  0x29   : > { %462 = vst.msk [vmem:[#allocation2] sm:$0xff] %vm461_vm0, %v1219_v16  ;;  %463 = vst.msk [vmem:[#allocation2 + $0x8] sm:$0xff] %vm461_vm0, %v1219_v16 }
  0x2a   : > { %464 = vst.msk [vmem:[#allocation2 + $0x10] sm:$0xff] %vm461_vm0, %v1219_v16  ;;  %465 = vst.msk [vmem:[#allocation2 + $0x18] sm:$0xff] %vm461_vm0, %v1219_v16 }
  0x2b   : > { %466 = vst.msk [vmem:[#allocation2 + $0x20] sm:$0xff] %vm461_vm0, %v1219_v16  ;;  %467 = vst.msk [vmem:[#allocation2 + $0x28] sm:$0xff] %vm461_vm0, %v1219_v16 }
  0x2c   : > { %468 = vst.msk [vmem:[#allocation2 + $0x30] sm:$0xff] %vm461_vm0, %v1219_v16  ;;  %469 = vst.msk [vmem:[#allocation2 + $0x38] sm:$0xff] %vm461_vm0, %v1219_v16 }
  0x2d   : > { %470 = vst.msk [vmem:[#allocation2 + $0x40] sm:$0xff] %vm461_vm0, %v1219_v16  ;;  %471 = vst.msk [vmem:[#allocation2 + $0x48] sm:$0xff] %vm461_vm0, %v1219_v16 }
  0x2e   : > { %472 = vst.msk [vmem:[#allocation2 + $0x50] sm:$0xff] %vm461_vm0, %v1219_v16  ;;  %473 = vst.msk [vmem:[#allocation2 + $0x58] sm:$0xff] %vm461_vm0, %v1219_v16 }
  0x2f   : > { %474 = vst.msk [vmem:[#allocation2 + $0x60] sm:$0xff] %vm461_vm0, %v1219_v16  ;;  %475 = vst.msk [vmem:[#allocation2 + $0x68] sm:$0xff] %vm461_vm0, %v1219_v16 }
  0x30   : > { %476 = vst.msk [vmem:[#allocation2 + $0x70] sm:$0xff] %vm461_vm0, %v1219_v16  ;;  %477 = vst.msk [vmem:[#allocation2 + $0x78] sm:$0xff] %vm461_vm0, %v1219_v16 }
  0x31 PF: > { %v1163_v17 = vld [vmem:[%s1318_s15 + $0x38] sm:$0xff]   ;;  %v1164_v18 = vld [vmem:[%s1318_s15 + $0x30] sm:$0xff]   ;;  %v1165_v19 = vld [vmem:[%s1318_s15 + $0x28] sm:$0xff]   ;;  %vm735_vm1 = vcmask 523264   ;;  %p1051_p11 = scmp.ne.s32.totalorder %s1209_s20, 4 }
  0x32   : > { %1074 = vmatprep.subr.bf16.mxu0 %v1163_v17  ;;  %1106 = vmatprep.subr.bf16.mxu1 %v1163_v17  ;;  %v1166_v20 = vld [vmem:[%s1318_s15 + $0x20] sm:$0xff]   ;;  %v1167_v23 = vld [vmem:[%s1318_s15 + $0x18] sm:$0xff]   ;;  %v1168_v24 = vld [vmem:[%s1318_s15 + $0x10] sm:$0xff]  }
  0x33   : > { %1075 = vmatpush3.bf16.msra.mxu0 %v1163_v17  ;;  %1114 = vmatpush3.bf16.msra.mxu1 %v1163_v17  ;;  %v1171_v21 = vld [vmem:[%s1320_s16] sm:$0xff]   ;;  %v1169_v25 = vld [vmem:[%s1318_s15 + $0x8] sm:$0xff]   ;;  %v1175_v29 = vld [vmem:[%s1320_s16 + $0x10] sm:$0xff]  }
  0x34   : > { %1076 = vmatprep.subr.bf16.mxu0 %v1164_v18  ;;  %1107 = vmatprep.subr.bf16.mxu1 %v1164_v18  ;;  %v1172_v22 = vld [vmem:[%s1320_s16 + $0x20] sm:$0xff]   ;;  %v1173_v27 = vld [vmem:[%s1320_s16 + $0x8] sm:$0xff]   ;;  %v1176_v30 = vld [vmem:[%s1320_s16 + $0x30] sm:$0xff]  }
  0x35   : > { %1090 = vmatprep.mubr.bf16.mxu0 %v1171_v21  ;;  %1098 = vmatprep.mubr.bf16.mxu1 %v1172_v22  ;;  %v1170_v26 = vld [vmem:[%s1318_s15] sm:$0xff]   ;;  %v1174_v28 = vld [vmem:[%s1320_s16 + $0x28] sm:$0xff]   ;;  %v1177_v31 = vld [vmem:[%s1320_s16 + $0x18] sm:$0xff]  }
  0x36   : > { %v1178_v32 = vld [vmem:[%s1320_s16 + $0x38] sm:$0xff]   ;;  %v480_v33 = vld [vmem:[#allocation2 + $0x10] sm:$0xff]  ;;  %v478_v37 = vld [vmem:[#allocation2] sm:$0xff] }
  0x37   : > { %1077 = vmatpush3.bf16.msra.mxu0 %v1164_v18  ;;  %1115 = vmatpush3.bf16.msra.mxu1 %v1164_v18  ;;  %v488_v34 = vld [vmem:[#allocation2 + $0x50] sm:$0xff]  ;;  %v486_v38 = vld [vmem:[#allocation2 + $0x40] sm:$0xff]  ;;  %v481_v43 = vld [vmem:[#allocation2 + $0x18] sm:$0xff] }
  0x38   : > { %1078 = vmatprep.subr.bf16.mxu0 %v1165_v19  ;;  %1108 = vmatprep.subr.bf16.mxu1 %v1165_v19  ;;  %v489_v44 = vld [vmem:[#allocation2 + $0x58] sm:$0xff]  ;;  %v479_v49 = vld [vmem:[#allocation2 + $0x8] sm:$0xff]  ;;  %v484_v55 = vld [vmem:[#allocation2 + $0x30] sm:$0xff] }
  0x39   : > { %v487_v50 = vld [vmem:[#allocation2 + $0x48] sm:$0xff]  ;;  %v492_v56 = vld [vmem:[#allocation2 + $0x70] sm:$0xff]  ;;  %v482_v61 = vld [vmem:[#allocation2 + $0x20] sm:$0xff] }
  0x3a   : > { %v490_v62 = vld [vmem:[#allocation2 + $0x60] sm:$0xff]  ;;  %v485_v3 = vld [vmem:[#allocation2 + $0x38] sm:$0xff]  ;;  %v483_v9 = vld [vmem:[#allocation2 + $0x28] sm:$0xff] }
  0x3b   : > { %1079 = vmatpush3.bf16.msra.mxu0 %v1165_v19  ;;  %1116 = vmatpush3.bf16.msra.mxu1 %v1165_v19  ;;  %v493_v4 = vld [vmem:[#allocation2 + $0x78] sm:$0xff]  ;;  %v491_v10 = vld [vmem:[#allocation2 + $0x68] sm:$0xff] }
  0x3c   : > { %1080 = vmatprep.subr.bf16.mxu0 %v1166_v20  ;;  %1109 = vmatprep.subr.bf16.mxu1 %v1166_v20 }
  0x3f   : > { %1081 = vmatpush3.bf16.msra.mxu0 %v1166_v20  ;;  %1117 = vmatpush3.bf16.msra.mxu1 %v1166_v20 }
  0x40   : > { %1082 = vmatprep.subr.bf16.mxu0 %v1167_v23  ;;  %1110 = vmatprep.subr.bf16.mxu1 %v1167_v23 }
  0x43   : > { %1083 = vmatpush3.bf16.msra.mxu0 %v1167_v23  ;;  %1118 = vmatpush3.bf16.msra.mxu1 %v1167_v23 }
  0x44   : > { %1084 = vmatprep.subr.bf16.mxu0 %v1168_v24  ;;  %1111 = vmatprep.subr.bf16.mxu1 %v1168_v24 }
  0x47   : > { %1085 = vmatpush3.bf16.msra.mxu0 %v1168_v24  ;;  %1119 = vmatpush3.bf16.msra.mxu1 %v1168_v24 }
  0x48   : > { %1086 = vmatprep.subr.bf16.mxu0 %v1169_v25  ;;  %1112 = vmatprep.subr.bf16.mxu1 %v1169_v25 }
  0x4b   : > { %1087 = vmatpush3.bf16.msra.mxu0 %v1169_v25  ;;  %1120 = vmatpush3.bf16.msra.mxu1 %v1169_v25 }
  0x4c   : > { %1088 = vmatprep.subr.bf16.mxu0 %v1170_v26  ;;  %1113 = vmatprep.subr.bf16.mxu1 %v1170_v26 }
  0x4f   : > { %1089 = vmatpush3.bf16.msra.mxu0 %v1170_v26  ;;  %1121 = vmatpush3.bf16.msra.mxu1 %v1170_v26 }
  0x52   : > { %1091 = vmatmul.mubr.bf16.vlgmr.msra.gmra.mxu0 %v1173_v27  ;;  %1099 = vmatmul.mubr.bf16.vlgmr.msra.gmra.mxu1 %v1174_v28 }
  0x53   : > { %1094 = vmatprep.mubr.bf16.mxu0 %v1175_v29  ;;  %1102 = vmatprep.mubr.bf16.mxu1 %v1176_v30 }
  0x5a   : > { %1095 = vmatmul.mubr.bf16.gmra.mxu0 %v1177_v31  ;;  %1103 = vmatmul.mubr.bf16.gmra.mxu1 %v1178_v32 }
 0x112   : > { %v1092_v35 = vpop.f32.mrf.mxu0  ;;  %v1100_v36 = vpop.f32.mrf.mxu1 }
 0x113   : > { %v721_v39 = vadd.f32 %v1092_v35, %v480_v33  ;;  %v729_v40 = vadd.f32 %v1100_v36, %v488_v34 }
 0x114   : > { %v656_v41 = vpop.f32.mrf.mxu0  ;;  %v688_v42 = vpop.f32.mrf.mxu1 }
 0x115   : > { %738 = vst.msk [vmem:[#allocation2 + $0x10] sm:$0xff] %vm735_vm1, %v721_v39  ;;  %746 = vst.msk [vmem:[#allocation2 + $0x50] sm:$0xff] %vm735_vm1, %v729_v40  ;;  %v719_v45 = vadd.f32 %v656_v41, %v478_v37  ;;  %v727_v46 = vadd.f32 %v688_v42, %v486_v38 }
 0x116   : > { %v1093_v47 = vpop.f32.mrf.mxu0  ;;  %v1101_v48 = vpop.f32.mrf.mxu1 }
 0x117   : > { %736 = vst.msk [vmem:[#allocation2] sm:$0xff] %vm735_vm1, %v719_v45  ;;  %744 = vst.msk [vmem:[#allocation2 + $0x40] sm:$0xff] %vm735_vm1, %v727_v46  ;;  %v722_v51 = vadd.f32 %v1093_v47, %v481_v43  ;;  %v730_v52 = vadd.f32 %v1101_v48, %v489_v44 }
 0x118   : > { %v659_v53 = vpop.f32.mrf.mxu0  ;;  %v691_v54 = vpop.f32.mrf.mxu1 }
 0x119   : > { %739 = vst.msk [vmem:[#allocation2 + $0x18] sm:$0xff] %vm735_vm1, %v722_v51  ;;  %747 = vst.msk [vmem:[#allocation2 + $0x58] sm:$0xff] %vm735_vm1, %v730_v52  ;;  %v720_v57 = vadd.f32 %v659_v53, %v479_v49  ;;  %v728_v58 = vadd.f32 %v691_v54, %v487_v50 }
 0x11a   : > { %v1096_v59 = vpop.f32.mrf.mxu0  ;;  %v1104_v60 = vpop.f32.mrf.mxu1 }
 0x11b   : > { %737 = vst.msk [vmem:[#allocation2 + $0x8] sm:$0xff] %vm735_vm1, %v720_v57  ;;  %745 = vst.msk [vmem:[#allocation2 + $0x48] sm:$0xff] %vm735_vm1, %v728_v58  ;;  %v725_v63 = vadd.f32 %v1096_v59, %v484_v55  ;;  %v733_v0 = vadd.f32 %v1104_v60, %v492_v56 }
 0x11c   : > { %v672_v1 = vpop.f32.mrf.mxu0  ;;  %v704_v2 = vpop.f32.mrf.mxu1 }
 0x11d   : > { %742 = vst.msk [vmem:[#allocation2 + $0x30] sm:$0xff] %vm735_vm1, %v725_v63  ;;  %750 = vst.msk [vmem:[#allocation2 + $0x70] sm:$0xff] %vm735_vm1, %v733_v0  ;;  %v723_v5 = vadd.f32 %v672_v1, %v482_v61  ;;  %v731_v6 = vadd.f32 %v704_v2, %v490_v62 }
 0x11e   : > { %v1097_v7 = vpop.f32.mrf.mxu0  ;;  %v1105_v8 = vpop.f32.mrf.mxu1 }
 0x11f   : > { %740 = vst.msk [vmem:[#allocation2 + $0x20] sm:$0xff] %vm735_vm1, %v723_v5  ;;  %748 = vst.msk [vmem:[#allocation2 + $0x60] sm:$0xff] %vm735_vm1, %v731_v6  ;;  %v726_v11 = vadd.f32 %v1097_v7, %v485_v3  ;;  %v734_v12 = vadd.f32 %v1105_v8, %v493_v4  ;;  %755 = sbr.rel (%p1051_p11) target bundleno = 316 (0x13c), region = 89 }
 0x120   : > { %v675_v13 = vpop.f32.mrf.mxu0  ;;  %v707_v14 = vpop.f32.mrf.mxu1 }
 0x121   : > { %743 = vst.msk [vmem:[#allocation2 + $0x38] sm:$0xff] %vm735_vm1, %v726_v11  ;;  %751 = vst.msk [vmem:[#allocation2 + $0x78] sm:$0xff] %vm735_vm1, %v734_v12  ;;  %v724_v15 = vadd.f32 %v675_v13, %v483_v9  ;;  %v732_v16 = vadd.f32 %v707_v14, %v491_v10 }
 0x123   : > { %741 = vst.msk [vmem:[#allocation2 + $0x28] sm:$0xff] %vm735_vm1, %v724_v15  ;;  %749 = vst.msk [vmem:[#allocation2 + $0x68] sm:$0xff] %vm735_vm1, %v732_v16 }
 0x124   : > { %v756_v17 = vld [vmem:[#allocation2] sm:$0xff]  ;;  %v757_v21 = vld [vmem:[#allocation2 + $0x8] sm:$0xff]  ;;  %v758_v24 = vld [vmem:[#allocation2 + $0x10] sm:$0xff] }
 0x125   : > { %v1375_v18 = vld [vmem:[%s1543_s2] ss:$0 sm:$0xff]  ;;  %v759_v25 = vld [vmem:[#allocation2 + $0x18] sm:$0xff]  ;;  %v819_v27 = vld [vmem:[%s1545_s4 + $0x8] sm:$0xff] }
 0x126   : > { %v1380_v19 = vld [vmem:[%s1544_s3] ss:$0 sm:$0xff]  ;;  %v779_v20 = vmul.f32 %v1375_v18, %v756_v17  ;;  %v780_v23 = vmul.f32 %v1375_v18, %v757_v21  ;;  %v781_v28 = vmul.f32 %v1375_v18, %v758_v24  ;;  %v820_v29 = vld [vmem:[%s1545_s4 + $0x10] sm:$0xff]  ;;  %v782_v30 = vmul.f32 %v1375_v18, %v759_v25  ;;  %v821_v33 = vld [vmem:[%s1545_s4 + $0x18] sm:$0xff] }
 0x127   : > { %v818_v22 = vld [vmem:[%s1545_s4] sm:$0xff]  ;;  %v762_v36 = vld [vmem:[#allocation2 + $0x30] sm:$0xff]  ;;  %v823_v45 = vld [vmem:[%s1545_s4 + $0x28] sm:$0xff] }
 0x128   : > { %v802_v26 = vadd.f32 %v1380_v19, %v779_v20  ;;  %v760_v31 = vld [vmem:[#allocation2 + $0x20] sm:$0xff]  ;;  %v803_v32 = vadd.f32 %v1380_v19, %v780_v23  ;;  %v804_v38 = vadd.f32 %v1380_v19, %v781_v28  ;;  %v805_v39 = vadd.f32 %v1380_v19, %v782_v30  ;;  %v763_v42 = vld [vmem:[#allocation2 + $0x38] sm:$0xff]  ;;  %v824_v53 = vld [vmem:[%s1545_s4 + $0x30] sm:$0xff] }
 0x129   : > { %v783_v34 = vmul.f32 %v1375_v18, %v760_v31  ;;  %v822_v40 = vld [vmem:[%s1545_s4 + $0x20] sm:$0xff]  ;;  %v785_v46 = vmul.f32 %v1375_v18, %v762_v36  ;;  %v786_v47 = vmul.f32 %v1375_v18, %v763_v42  ;;  %v825_v54 = vld [vmem:[%s1545_s4 + $0x38] sm:$0xff]  ;;  %v765_v55 = vld [vmem:[#allocation2 + $0x48] sm:$0xff] }
 0x12a   : > { %v761_v35 = vld [vmem:[#allocation2 + $0x28] sm:$0xff]  ;;  %v834_v37 = vadd.f32 %v818_v22, %v802_v26  ;;  %v835_v43 = vadd.f32 %v819_v27, %v803_v32  ;;  %v764_v48 = vld [vmem:[#allocation2 + $0x40] sm:$0xff]  ;;  %v836_v50 = vadd.f32 %v820_v29, %v804_v38  ;;  %v837_v51 = vadd.f32 %v821_v33, %v805_v39  ;;  %v766_v60 = vld [vmem:[#allocation2 + $0x50] sm:$0xff] }
 0x12b   : > { %v784_v41 = vmul.f32 %v1375_v18, %v761_v35  ;;  %v806_v44 = vadd.f32 %v1380_v19, %v783_v34  ;;  %v808_v58 = vadd.f32 %v1380_v19, %v785_v46  ;;  %v809_v59 = vadd.f32 %v1380_v19, %v786_v47  ;;  %v767_v61 = vld [vmem:[#allocation2 + $0x58] sm:$0xff]  ;;  %v768_v2 = vld [vmem:[#allocation2 + $0x60] sm:$0xff]  ;;  %v769_v8 = vld [vmem:[#allocation2 + $0x68] sm:$0xff] }
 0x12c   : > { %v850_v49 = vmax.f32 %v834_v37, 0.0  ;;  %v851_v56 = vmax.f32 %v835_v43, 0.0  ;;  %v852_v62 = vmax.f32 %v836_v50, 0.0  ;;  %v853_v63 = vmax.f32 %v837_v51, 0.0  ;;  %v826_v6 = vld [vmem:[%s1545_s4 + $0x40] sm:$0xff]  ;;  %v827_v11 = vld [vmem:[%s1545_s4 + $0x48] sm:$0xff] }
 0x12d   : > { %v807_v52 = vadd.f32 %v1380_v19, %v784_v41  ;;  %v838_v57 = vadd.f32 %v822_v40, %v806_v44  ;;  %v787_v1 = vmul.f32 %v1375_v18, %v764_v48  ;;  %v840_v4 = vadd.f32 %v824_v53, %v808_v58  ;;  %v770_v14 = vld [vmem:[#allocation2 + $0x70] sm:$0xff]  ;;  %v771_v15 = vld [vmem:[#allocation2 + $0x78] sm:$0xff]  ;;  %v830_v27 = vld [vmem:[%s1545_s4 + $0x60] sm:$0xff] }
 0x12e   : > { %866 = vst.msk [vmem:[%s1546_s5] sm:$0xff] %vm735_vm1, %v850_v49  ;;  %867 = vst.msk [vmem:[%s1546_s5 + $0x8] sm:$0xff] %vm735_vm1, %v851_v56  ;;  %v841_v5 = vadd.f32 %v825_v54, %v809_v59  ;;  %v788_v7 = vmul.f32 %v1375_v18, %v765_v55  ;;  %v789_v12 = vmul.f32 %v1375_v18, %v766_v60  ;;  %v828_v21 = vld [vmem:[%s1545_s4 + $0x50] sm:$0xff]  ;;  %v829_v22 = vld [vmem:[%s1545_s4 + $0x58] sm:$0xff] }
 0x12f   : > { %v839_v0 = vadd.f32 %v823_v45, %v807_v52  ;;  %v854_v3 = vmax.f32 %v838_v57, 0.0  ;;  %868 = vst.msk [vmem:[%s1546_s5 + $0x10] sm:$0xff] %vm735_vm1, %v852_v62  ;;  %869 = vst.msk [vmem:[%s1546_s5 + $0x18] sm:$0xff] %vm735_vm1, %v853_v63  ;;  %v810_v10 = vadd.f32 %v1380_v19, %v787_v1  ;;  %v790_v13 = vmul.f32 %v1375_v18, %v767_v61  ;;  %v831_v31 = vld [vmem:[%s1545_s4 + $0x68] sm:$0xff]  ;;  %v832_v38 = vld [vmem:[%s1545_s4 + $0x70] sm:$0xff] }
 0x130   : > { %v856_v16 = vmax.f32 %v840_v4, 0.0  ;;  %v857_v17 = vmax.f32 %v841_v5, 0.0  ;;  %v811_v20 = vadd.f32 %v1380_v19, %v788_v7  ;;  %v791_v23 = vmul.f32 %v1375_v18, %v768_v2  ;;  %v833_v39 = vld [vmem:[%s1545_s4 + $0x78] sm:$0xff] }
 0x131   : > { %v855_v9 = vmax.f32 %v839_v0, 0.0  ;;  %870 = vst.msk [vmem:[%s1546_s5 + $0x20] sm:$0xff] %vm735_vm1, %v854_v3  ;;  %v842_v24 = vadd.f32 %v826_v6, %v810_v10  ;;  %v812_v25 = vadd.f32 %v1380_v19, %v789_v12  ;;  %v813_v26 = vadd.f32 %v1380_v19, %v790_v13 }
 0x132   : > { %v792_v28 = vmul.f32 %v1375_v18, %v769_v8  ;;  %872 = vst.msk [vmem:[%s1546_s5 + $0x30] sm:$0xff] %vm735_vm1, %v856_v16  ;;  %873 = vst.msk [vmem:[%s1546_s5 + $0x38] sm:$0xff] %vm735_vm1, %v857_v17  ;;  %v843_v29 = vadd.f32 %v827_v11, %v811_v20  ;;  %v814_v30 = vadd.f32 %v1380_v19, %v791_v23 }
 0x133   : > { %871 = vst.msk [vmem:[%s1546_s5 + $0x28] sm:$0xff] %vm735_vm1, %v855_v9  ;;  %v793_v32 = vmul.f32 %v1375_v18, %v770_v14  ;;  %v794_v33 = vmul.f32 %v1375_v18, %v771_v15  ;;  %v858_v34 = vmax.f32 %v842_v24, 0.0  ;;  %v844_v35 = vadd.f32 %v828_v21, %v812_v25 }
 0x134   : > { %v845_v36 = vadd.f32 %v829_v22, %v813_v26  ;;  %v815_v37 = vadd.f32 %v1380_v19, %v792_v28  ;;  %v859_v40 = vmax.f32 %v843_v29, 0.0  ;;  %v846_v41 = vadd.f32 %v830_v27, %v814_v30 }
 0x135   : > { %v816_v42 = vadd.f32 %v1380_v19, %v793_v32  ;;  %v817_v43 = vadd.f32 %v1380_v19, %v794_v33  ;;  %874 = vst.msk [vmem:[%s1546_s5 + $0x40] sm:$0xff] %vm735_vm1, %v858_v34  ;;  %v860_v18 = vmax.f32 %v844_v35, 0.0 }
 0x136   : > { %v861_v44 = vmax.f32 %v845_v36, 0.0  ;;  %v847_v45 = vadd.f32 %v831_v31, %v815_v37  ;;  %875 = vst.msk [vmem:[%s1546_s5 + $0x48] sm:$0xff] %vm735_vm1, %v859_v40  ;;  %v862_v46 = vmax.f32 %v846_v41, 0.0 }
 0x137   : > { %v848_v47 = vadd.f32 %v832_v38, %v816_v42  ;;  %v849_v48 = vadd.f32 %v833_v39, %v817_v43  ;;  %876 = vst.msk [vmem:[%s1546_s5 + $0x50] sm:$0xff] %vm735_vm1, %v860_v18 }
 0x138   : > { %877 = vst.msk [vmem:[%s1546_s5 + $0x58] sm:$0xff] %vm735_vm1, %v861_v44  ;;  %v863_v19 = vmax.f32 %v847_v45, 0.0  ;;  %878 = vst.msk [vmem:[%s1546_s5 + $0x60] sm:$0xff] %vm735_vm1, %v862_v46 }
 0x139   : > { %v864_v49 = vmax.f32 %v848_v47, 0.0  ;;  %v865_v50 = vmax.f32 %v849_v48, 0.0 }
 0x13a   : > { %879 = vst.msk [vmem:[%s1546_s5 + $0x68] sm:$0xff] %vm735_vm1, %v863_v19 }
 0x13b   : > { %880 = vst.msk [vmem:[%s1546_s5 + $0x70] sm:$0xff] %vm735_vm1, %v864_v49  ;;  %881 = vst.msk [vmem:[%s1546_s5 + $0x78] sm:$0xff] %vm735_vm1, %v865_v50 }
 0x13c PF: > { %s15_s22 = sadd.s32 1, %s1217_s22   ;;  %s1547_s18 = smov %s1205_s19 }
 0x13d   : > { %p12_p12 = scmp.ge.s32.totalorder %s15_s22, 7   ;;  %s1548_s19 = smov %s1285_s26 }
 0x13e   : > { %s1549_s20 = smov %s1213_s21  ;;  %s1550_s21 = smov %s1552_s23 }
 0x13f   :  { %14 = sbr.rel (!%p12_p12) target bundleno = 3 (0x3), region = 136 }

// kernel: _lambda_.27
= control target key start
LH: loop header
LB: loop body
LE: loop exit
PB: predicated region body
PF: predicated region fallthrough
CT: control target
= control target key end

     0   :  { %s834_s15 = smov 0   ;;  %s836_s16 = smov 0   ;;  %s936_s0 = inlined_call_operand.vmem [shape: bf16[32,640], index: 0, kind: input, shape index: {}]   ;;  %s937_s1 = inlined_call_operand.vmem [shape: bf16[640,128], index: 1, kind: input, shape index: {}]   ;;  %s938_s2 = inlined_call_operand.vmem [shape: f32[1,128], index: 2, kind: input, shape index: {}]   ;;  %s939_s3 = inlined_call_operand.vmem [shape: f32[1,128], index: 3, kind: input, shape index: {}]   ;;  %s940_s4 = inlined_call_operand.vmem [shape: f32[32,128], index: 4, kind: output, shape index: {}]  }
   0x1   :  { %s838_s17 = smov 0   ;;  %s840_s18 = smov 0  }
   0x2   :  { %s842_s19 = smov 0  }
   0x3 LB: > { %s26_s20 = sadd.s32 1, %s802_s18  ;;  %p49_p1 = scmp.ne.s32.totalorder %s794_s16, %s790_s15  ;;  %s806_s19 = sphi %s842_s19, %s14_s19   ;;  %s802_s18 = sphi %s840_s18, %s944_s18   ;;  %s798_s17 = sphi %s838_s17, %s943_s17   ;;  %s794_s16 = sphi %s836_s16, %s942_s16   ;;  %s790_s15 = sphi %s834_s15, %s941_s15  }
   0x4   : > { %p27_p0 = scmp.ge.s32.totalorder %s26_s20, 5  ;;  %p50_p2 = scmp.eq.s32.totalorder %s806_s19, 0 }
   0x5   : > { %s42_s22 = sadd.s32 1, %s794_s16  ;;  %p662_p5 = scmp.ge.s32.totalorder %s806_s19, 5 }
   0x6   : > { %s946_s20 = smov (%p27_p0, %s26_s20), 0  ;;  %p51_p3 = por %p50_p2, %p49_p1 }
   0x7   : > { %s38_s21 = ssub.s32 %s802_s18, %s946_s20  ;;  %195 = sbr.rel (%p662_p5) target bundleno = 18 (0x12), region = 24 }
   0x8   : > { %p40_p4 = scmp.eq.s32.totalorder %s38_s21, 0 }
   0xa   : > { %s869_s23 = scalar_select %p40_p4, %s794_s16, %s42_s22  }
   0xc   : > { %198 = sbr.rel (!%p51_p3) target bundleno = 18 (0x12), region = 28  ;;  %s200_s24 = sand.u32 (%p51_p3), 1, %s794_s16  }
   0xd   : > { %s664_s25 = sshll.u32 (%p51_p3), %s802_s18, 2  ;;  %s663_s26 = sshll.u32 (%p51_p3), %s200_s24, 4 }
   0xe   : > { %s207_s29 = scalar_lea.vmem (%p51_p3), %s936_s0, %s664_s25  ;;  %s202_s30 = scalar_lea.vmem (%p51_p3), [#allocation3], %s663_s26 }
   0xf   : > { %v224_v0 = vld [vmem:[%s207_s29] sm:$0xf] (%p51_p3)  ;;  %v226_v1 = vld [vmem:[%s207_s29 + $0x14] sm:$0xf] (%p51_p3)  ;;  %v228_v2 = vld [vmem:[%s207_s29 + $0x28] sm:$0xf] (%p51_p3) }
  0x10   : > { %225 = vst [vmem:[%s202_s30] sm:$0xf] (%p51_p3), %v224_v0  ;;  %227 = vst [vmem:[%s202_s30 + $0x4] sm:$0xf] (%p51_p3), %v226_v1  ;;  %v230_v3 = vld [vmem:[%s207_s29 + $0x3c] sm:$0xf] (%p51_p3) }
  0x11   : > { %229 = vst [vmem:[%s202_s30 + $0x8] sm:$0xf] %v228_v2  ;;  %231 = vst [vmem:[%s202_s30 + $0xc] sm:$0xf] %v230_v3 }
  0x12 PF: > { %p665_p6 = scmp.ge.s32.totalorder %s806_s19, 1  ;;  %p274_p7 = scmp.lt.s32.totalorder %s806_s19, 6 }
  0x14   : > { %p275_p8 = pnand %p665_p6, %p274_p7 }
  0x15   : > { %s281_s5 = sand.u32 (!%p275_p8), 1, %s790_s15   ;;  %s667_s6 = sshll.u32 (!%p275_p8), %s798_s17, 4 }
  0x16   : > { %278 = sbr.rel (%p275_p8) target bundleno = 284 (0x11c), region = 73  ;;  %s881_s7 = sshll.u32 (!%p275_p8), %s281_s5, 4 }
  0x17   : > { %p325_p9 = scmp.lt.s32.totalorder (!%p275_p8), %s667_s6, 79  ;;  %s283_s12 = scalar_lea.vmem (!%p275_p8), [#allocation3], %s881_s7 }
  0x18   : > { %p669_p10 = scmp.ne.s32.totalorder (!%p275_p8), %s798_s17, 0 }
  0x1b   : > { %s948_s6 = smov (!%p325_p9, %s667_s6), 79  ;;  %352 = sbr.rel (%p669_p10) target bundleno = 35 (0x23), region = 81 }
  0x1c   : > { %s668_s8 = sshll.u32 %s948_s6, 2 }
  0x1d   : > { %s886_s11 = scalar_lea.vmem %s937_s1, %s668_s8 }
  0x20   : > { %v808_v4 = vmov 0.0  }
  0x21   : > { %353 = vst [vmem:[#allocation2 + $0x10] sm:$0xff] %v808_v4  ;;  %354 = vst [vmem:[#allocation2] sm:$0xff] %v808_v4 }
  0x22   : > { %355 = vst [vmem:[#allocation2 + $0x18] sm:$0xff] %v808_v4  ;;  %356 = vst [vmem:[#allocation2 + $0x8] sm:$0xff] %v808_v4 }
  0x23 PF: > { %v758_v5 = vld [vmem:[%s886_s11 + $0x38] sm:$0xff]   ;;  %v759_v6 = vld [vmem:[%s886_s11 + $0x30] sm:$0xff]   ;;  %v760_v7 = vld [vmem:[%s886_s11 + $0x28] sm:$0xff]   ;;  %p680_p11 = scmp.ne.s32.totalorder %s798_s17, 4 }
  0x24   : > { %697 = vmatprep.subr.bf16.mxu0 %v758_v5  ;;  %v761_v8 = vld [vmem:[%s886_s11 + $0x20] sm:$0xff]   ;;  %v762_v10 = vld [vmem:[%s886_s11 + $0x18] sm:$0xff]   ;;  %v763_v11 = vld [vmem:[%s886_s11 + $0x10] sm:$0xff]  }
  0x25   : > { %698 = vmatpush3.bf16.msra.mxu0 %v758_v5  ;;  %v766_v9 = vld [vmem:[%s283_s12] sm:$0xff]   ;;  %v764_v12 = vld [vmem:[%s886_s11 + $0x8] sm:$0xff]  }
  0x26   : > { %699 = vmatprep.subr.bf16.mxu0 %v759_v6  ;;  %713 = vmatprep.mubr.bf16.mxu0 %v766_v9  ;;  %v765_v13 = vld [vmem:[%s886_s11] sm:$0xff]   ;;  %v767_v14 = vld [vmem:[%s283_s12 + $0x8] sm:$0xff]  }
  0x28   : > { %v357_v17 = vld [vmem:[#allocation2 + $0x10] sm:$0xff]  ;;  %v358_v23 = vld [vmem:[#allocation2] sm:$0xff] }
  0x29   : > { %700 = vmatpush3.bf16.msra.mxu0 %v759_v6  ;;  %v359_v15 = vld [vmem:[#allocation2 + $0x18] sm:$0xff]  ;;  %v360_v20 = vld [vmem:[#allocation2 + $0x8] sm:$0xff] }
  0x2a   : > { %701 = vmatprep.subr.bf16.mxu0 %v760_v7 }
  0x2d   : > { %702 = vmatpush3.bf16.msra.mxu0 %v760_v7 }
  0x2e   : > { %703 = vmatprep.subr.bf16.mxu0 %v761_v8 }
  0x31   : > { %704 = vmatpush3.bf16.msra.mxu0 %v761_v8 }
  0x32   : > { %705 = vmatprep.subr.bf16.mxu0 %v762_v10 }
  0x35   : > { %706 = vmatpush3.bf16.msra.mxu0 %v762_v10 }
  0x36   : > { %707 = vmatprep.subr.bf16.mxu0 %v763_v11 }
  0x39   : > { %708 = vmatpush3.bf16.msra.mxu0 %v763_v11 }
  0x3a   : > { %709 = vmatprep.subr.bf16.mxu0 %v764_v12 }
  0x3d   : > { %710 = vmatpush3.bf16.msra.mxu0 %v764_v12 }
  0x3e   : > { %711 = vmatprep.subr.bf16.mxu0 %v765_v13 }
  0x41   : > { %712 = vmatpush3.bf16.msra.mxu0 %v765_v13 }
  0x44   : > { %714 = vmatmul.mubr.bf16.vlgmr.msra.gmra.mxu0 %v767_v14 }
 0x104   : > { %v715_v16 = vpop.f32.mrf.mxu0 }
 0x105   : > { %v492_v18 = vadd.f32 %v715_v16, %v359_v15 }
 0x106   : > { %v475_v19 = vpop.f32.mrf.mxu0 }
 0x107   : > { %496 = vst [vmem:[#allocation2 + $0x18] sm:$0xff] %v492_v18  ;;  %v490_v21 = vadd.f32 %v475_v19, %v357_v17 }
 0x108   : > { %v716_v22 = vpop.f32.mrf.mxu0 }
 0x109   : > { %494 = vst [vmem:[#allocation2 + $0x10] sm:$0xff] %v490_v21  ;;  %v493_v24 = vadd.f32 %v716_v22, %v360_v20  ;;  %501 = sbr.rel (%p680_p11) target bundleno = 284 (0x11c), region = 85 }
 0x10a   : > { %v478_v25 = vpop.f32.mrf.mxu0 }
 0x10b   : > { %497 = vst [vmem:[#allocation2 + $0x8] sm:$0xff] %v493_v24  ;;  %v491_v26 = vadd.f32 %v478_v25, %v358_v23 }
 0x10d   : > { %495 = vst [vmem:[#allocation2] sm:$0xff] %v491_v26 }
 0x10e   : > { %v681_v28 = vld [vmem:[%s938_s2] ss:$0 sm:$0xff]  ;;  %v504_v32 = vld [vmem:[#allocation2 + $0x18] sm:$0xff] }
 0x10f   : > { %v682_v29 = vld [vmem:[%s939_s3] ss:$0 sm:$0xff]  ;;  %v515_v35 = vmul.f32 %v681_v28, %v504_v32 }
 0x110   : > { %v502_v27 = vld [vmem:[#allocation2 + $0x10] sm:$0xff] }
 0x111   : > { %v513_v30 = vmul.f32 %v681_v28, %v502_v27  ;;  %v526_v39 = vadd.f32 %v682_v29, %v515_v35 }
 0x112   : > { %v505_v33 = vld [vmem:[#allocation2 + $0x8] sm:$0xff] }
 0x113   : > { %v516_v36 = vmul.f32 %v681_v28, %v505_v33  ;;  %v524_v37 = vadd.f32 %v682_v29, %v513_v30  ;;  %v530_v43 = vmax.f32 %v526_v39, 0.0 }
 0x114   : > { %v503_v31 = vld [vmem:[#allocation2] sm:$0xff] }
 0x115   : > { %v514_v34 = vmul.f32 %v681_v28, %v503_v31  ;;  %v527_v40 = vadd.f32 %v682_v29, %v516_v36  ;;  %v528_v41 = vmax.f32 %v524_v37, 0.0  ;;  %534 = vst [vmem:[%s940_s4 + $0x10] sm:$0xff] %v530_v43 }
 0x117   : > { %v525_v38 = vadd.f32 %v682_v29, %v514_v34  ;;  %v531_v44 = vmax.f32 %v527_v40, 0.0  ;;  %532 = vst [vmem:[%s940_s4] sm:$0xff] %v528_v41 }
 0x119   : > { %v529_v42 = vmax.f32 %v525_v38, 0.0  ;;  %535 = vst [vmem:[%s940_s4 + $0x18] sm:$0xff] %v531_v44 }
 0x11b   : > { %533 = vst [vmem:[%s940_s4 + $0x8] sm:$0xff] %v529_v42 }
 0x11c PF: > { %s14_s19 = sadd.s32 1, %s806_s19   ;;  %s941_s15 = smov %s794_s16 }
 0x11d   : > { %p11_p12 = scmp.ge.s32.totalorder %s14_s19, 7   ;;  %s942_s16 = smov %s869_s23 }
 0x11e   : > { %s943_s17 = smov %s802_s18  ;;  %s944_s18 = smov %s946_s20 }
 0x11f   :  { %13 = sbr.rel (!%p11_p12) target bundleno = 3 (0x3), region = 129 }

// kernel: _lambda_.28
= control target key start
LH: loop header
LB: loop body
LE: loop exit
PB: predicated region body
PF: predicated region fallthrough
CT: control target
= control target key end

     0   :  { %s329_s1 = inlined_call_operand.vmem [shape: bf16[128,128], index: 1, kind: input, shape index: {}]   ;;  %s330_s0 = inlined_call_operand.vmem [shape: bf16[32,128], index: 0, kind: input, shape index: {}]   ;;  %s331_s2 = inlined_call_operand.vmem [shape: f32[1,128], index: 2, kind: input, shape index: {}]   ;;  %s332_s3 = inlined_call_operand.vmem [shape: f32[1,128], index: 3, kind: input, shape index: {}]   ;;  %s333_s4 = inlined_call_operand.vmem [shape: f32[32,128], index: 4, kind: output, shape index: {}]  }
   0x1   :  { %v246_v0 = vld [vmem:[%s329_s1 + $0x38] sm:$0xff]   ;;  %v247_v1 = vld [vmem:[%s329_s1 + $0x30] sm:$0xff]   ;;  %v248_v2 = vld [vmem:[%s329_s1 + $0x28] sm:$0xff]  }
   0x2   :  { %226 = vmatprep.subr.bf16.mxu0 %v246_v0  ;;  %v249_v3 = vld [vmem:[%s329_s1 + $0x20] sm:$0xff]   ;;  %v250_v5 = vld [vmem:[%s329_s1 + $0x18] sm:$0xff]   ;;  %v251_v6 = vld [vmem:[%s329_s1 + $0x10] sm:$0xff]  }
   0x3   :  { %227 = vmatpush3.bf16.msra.mxu0 %v246_v0  ;;  %v254_v4 = vld [vmem:[%s330_s0] sm:$0xff]   ;;  %v252_v7 = vld [vmem:[%s329_s1 + $0x8] sm:$0xff]  }
   0x4   :  { %228 = vmatprep.subr.bf16.mxu0 %v247_v1  ;;  %242 = vmatprep.mubr.bf16.mxu0 %v254_v4  ;;  %v253_v8 = vld [vmem:[%s329_s1] sm:$0xff]   ;;  %v255_v9 = vld [vmem:[%s330_s0 + $0x8] sm:$0xff]  }
   0x5   :  { %v214_v10 = vld [vmem:[%s331_s2] ss:$0 sm:$0xff] }
   0x6   :  { %v215_v12 = vld [vmem:[%s332_s3] ss:$0 sm:$0xff] }
   0x7   :  { %229 = vmatpush3.bf16.msra.mxu0 %v247_v1 }
   0x8   :  { %230 = vmatprep.subr.bf16.mxu0 %v248_v2 }
   0xb   :  { %231 = vmatpush3.bf16.msra.mxu0 %v248_v2 }
   0xc   :  { %232 = vmatprep.subr.bf16.mxu0 %v249_v3 }
   0xf   :  { %233 = vmatpush3.bf16.msra.mxu0 %v249_v3 }
  0x10   :  { %234 = vmatprep.subr.bf16.mxu0 %v250_v5 }
  0x13   :  { %235 = vmatpush3.bf16.msra.mxu0 %v250_v5 }
  0x14   :  { %236 = vmatprep.subr.bf16.mxu0 %v251_v6 }
  0x17   :  { %237 = vmatpush3.bf16.msra.mxu0 %v251_v6 }
  0x18   :  { %238 = vmatprep.subr.bf16.mxu0 %v252_v7 }
  0x1b   :  { %239 = vmatpush3.bf16.msra.mxu0 %v252_v7 }
  0x1c   :  { %240 = vmatprep.subr.bf16.mxu0 %v253_v8 }
  0x1f   :  { %241 = vmatpush3.bf16.msra.mxu0 %v253_v8 }
  0x22   :  { %243 = vmatmul.mubr.bf16.vlgmr.msra.gmra.mxu0 %v255_v9 }
  0xe2   :  { %v244_v11 = vpop.f32.mrf.mxu0 }
  0xe3   :  { %v183_v13 = vmul.f32 %v244_v11, %v214_v10 }
  0xe4   :  { %v144_v14 = vpop.f32.mrf.mxu0 }
  0xe5   :  { %v194_v15 = vadd.f32 %v215_v12, %v183_v13  ;;  %v181_v16 = vmul.f32 %v214_v10, %v144_v14 }
  0xe6   :  { %v245_v17 = vpop.f32.mrf.mxu0 }
  0xe7   :  { %198 = vst [vmem:[%s333_s4 + $0x10] sm:$0xff] %v194_v15  ;;  %v192_v18 = vadd.f32 %v215_v12, %v181_v16  ;;  %v184_v19 = vmul.f32 %v245_v17, %v214_v10 }
  0xe8   :  { %v147_v20 = vpop.f32.mrf.mxu0 }
  0xe9   :  { %196 = vst [vmem:[%s333_s4] sm:$0xff] %v192_v18  ;;  %v195_v21 = vadd.f32 %v215_v12, %v184_v19  ;;  %v182_v22 = vmul.f32 %v214_v10, %v147_v20 }
  0xeb   :  { %199 = vst [vmem:[%s333_s4 + $0x18] sm:$0xff] %v195_v21  ;;  %v193_v23 = vadd.f32 %v215_v12, %v182_v22 }
  0xed   :  { %197 = vst [vmem:[%s333_s4 + $0x8] sm:$0xff] %v193_v23 }

// kernel: _lambda_.30
= control target key start
LH: loop header
LB: loop body
LE: loop exit
PB: predicated region body
PF: predicated region fallthrough
CT: control target
= control target key end

     0   :  { %s834_s15 = smov 0   ;;  %s836_s16 = smov 0   ;;  %s936_s0 = inlined_call_operand.vmem [shape: bf16[32,1152], index: 0, kind: input, shape index: {}]   ;;  %s937_s1 = inlined_call_operand.vmem [shape: bf16[1152,128], index: 1, kind: input, shape index: {}]   ;;  %s938_s2 = inlined_call_operand.vmem [shape: f32[1,128], index: 2, kind: input, shape index: {}]   ;;  %s939_s3 = inlined_call_operand.vmem [shape: f32[1,128], index: 3, kind: input, shape index: {}]   ;;  %s940_s4 = inlined_call_operand.vmem [shape: f32[32,128], index: 4, kind: output, shape index: {}]  }
   0x1   :  { %s838_s17 = smov 0   ;;  %s840_s18 = smov 0  }
   0x2   :  { %s842_s19 = smov 0  }
   0x3 LB: > { %s26_s20 = sadd.s32 1, %s802_s18  ;;  %p49_p1 = scmp.ne.s32.totalorder %s794_s16, %s790_s15  ;;  %s806_s19 = sphi %s842_s19, %s14_s19   ;;  %s802_s18 = sphi %s840_s18, %s944_s18   ;;  %s798_s17 = sphi %s838_s17, %s943_s17   ;;  %s794_s16 = sphi %s836_s16, %s942_s16   ;;  %s790_s15 = sphi %s834_s15, %s941_s15  }
   0x4   : > { %p27_p0 = scmp.ge.s32.totalorder %s26_s20, 9  ;;  %p50_p2 = scmp.eq.s32.totalorder %s806_s19, 0 }
   0x5   : > { %s42_s22 = sadd.s32 1, %s794_s16  ;;  %p662_p5 = scmp.ge.s32.totalorder %s806_s19, 9 }
   0x6   : > { %s946_s20 = smov (%p27_p0, %s26_s20), 0  ;;  %p51_p3 = por %p50_p2, %p49_p1 }
   0x7   : > { %s38_s21 = ssub.s32 %s802_s18, %s946_s20  ;;  %195 = sbr.rel (%p662_p5) target bundleno = 18 (0x12), region = 24 }
   0x8   : > { %p40_p4 = scmp.eq.s32.totalorder %s38_s21, 0 }
   0xa   : > { %s869_s23 = scalar_select %p40_p4, %s794_s16, %s42_s22  }
   0xc   : > { %198 = sbr.rel (!%p51_p3) target bundleno = 18 (0x12), region = 28  ;;  %s200_s24 = sand.u32 (%p51_p3), 1, %s794_s16  }
   0xd   : > { %s664_s25 = sshll.u32 (%p51_p3), %s802_s18, 2  ;;  %s663_s26 = sshll.u32 (%p51_p3), %s200_s24, 4 }
   0xe   : > { %s207_s29 = scalar_lea.vmem (%p51_p3), %s936_s0, %s664_s25  ;;  %s202_s30 = scalar_lea.vmem (%p51_p3), [#allocation3], %s663_s26 }
   0xf   : > { %v224_v0 = vld [vmem:[%s207_s29] sm:$0xf] (%p51_p3)  ;;  %v226_v1 = vld [vmem:[%s207_s29 + $0x24] sm:$0xf] (%p51_p3)  ;;  %v228_v2 = vld [vmem:[%s207_s29 + $0x48] sm:$0xf] (%p51_p3) }
  0x10   : > { %225 = vst [vmem:[%s202_s30] sm:$0xf] (%p51_p3), %v224_v0  ;;  %227 = vst [vmem:[%s202_s30 + $0x4] sm:$0xf] (%p51_p3), %v226_v1  ;;  %v230_v3 = vld [vmem:[%s207_s29 + $0x6c] sm:$0xf] (%p51_p3) }
  0x11   : > { %229 = vst [vmem:[%s202_s30 + $0x8] sm:$0xf] %v228_v2  ;;  %231 = vst [vmem:[%s202_s30 + $0xc] sm:$0xf] %v230_v3 }
  0x12 PF: > { %p665_p6 = scmp.ge.s32.totalorder %s806_s19, 1  ;;  %p274_p7 = scmp.lt.s32.totalorder %s806_s19, 10 }
  0x14   : > { %p275_p8 = pnand %p665_p6, %p274_p7 }
  0x15   : > { %s281_s5 = sand.u32 (!%p275_p8), 1, %s790_s15   ;;  %s667_s6 = sshll.u32 (!%p275_p8), %s798_s17, 4 }
  0x16   : > { %278 = sbr.rel (%p275_p8) target bundleno = 284 (0x11c), region = 73  ;;  %s881_s7 = sshll.u32 (!%p275_p8), %s281_s5, 4 }
  0x17   : > { %p325_p9 = scmp.lt.s32.totalorder (!%p275_p8), %s667_s6, 143  ;;  %s283_s12 = scalar_lea.vmem (!%p275_p8), [#allocation3], %s881_s7 }
  0x18   : > { %p669_p10 = scmp.ne.s32.totalorder (!%p275_p8), %s798_s17, 0 }
  0x1b   : > { %s948_s6 = smov (!%p325_p9, %s667_s6), 143  ;;  %352 = sbr.rel (%p669_p10) target bundleno = 35 (0x23), region = 81 }
  0x1c   : > { %s668_s8 = sshll.u32 %s948_s6, 2 }
  0x1d   : > { %s886_s11 = scalar_lea.vmem %s937_s1, %s668_s8 }
  0x20   : > { %v808_v4 = vmov 0.0  }
  0x21   : > { %353 = vst [vmem:[#allocation2 + $0x10] sm:$0xff] %v808_v4  ;;  %354 = vst [vmem:[#allocation2] sm:$0xff] %v808_v4 }
  0x22   : > { %355 = vst [vmem:[#allocation2 + $0x18] sm:$0xff] %v808_v4  ;;  %356 = vst [vmem:[#allocation2 + $0x8] sm:$0xff] %v808_v4 }
  0x23 PF: > { %v758_v5 = vld [vmem:[%s886_s11 + $0x38] sm:$0xff]   ;;  %v759_v6 = vld [vmem:[%s886_s11 + $0x30] sm:$0xff]   ;;  %v760_v7 = vld [vmem:[%s886_s11 + $0x28] sm:$0xff]   ;;  %p680_p11 = scmp.ne.s32.totalorder %s798_s17, 8 }
  0x24   : > { %697 = vmatprep.subr.bf16.mxu0 %v758_v5  ;;  %v761_v8 = vld [vmem:[%s886_s11 + $0x20] sm:$0xff]   ;;  %v762_v10 = vld [vmem:[%s886_s11 + $0x18] sm:$0xff]   ;;  %v763_v11 = vld [vmem:[%s886_s11 + $0x10] sm:$0xff]  }
  0x25   : > { %698 = vmatpush3.bf16.msra.mxu0 %v758_v5  ;;  %v766_v9 = vld [vmem:[%s283_s12] sm:$0xff]   ;;  %v764_v12 = vld [vmem:[%s886_s11 + $0x8] sm:$0xff]  }
  0x26   : > { %699 = vmatprep.subr.bf16.mxu0 %v759_v6  ;;  %713 = vmatprep.mubr.bf16.mxu0 %v766_v9  ;;  %v765_v13 = vld [vmem:[%s886_s11] sm:$0xff]   ;;  %v767_v14 = vld [vmem:[%s283_s12 + $0x8] sm:$0xff]  }
  0x28   : > { %v357_v17 = vld [vmem:[#allocation2 + $0x10] sm:$0xff]  ;;  %v358_v23 = vld [vmem:[#allocation2] sm:$0xff] }
  0x29   : > { %700 = vmatpush3.bf16.msra.mxu0 %v759_v6  ;;  %v359_v15 = vld [vmem:[#allocation2 + $0x18] sm:$0xff]  ;;  %v360_v20 = vld [vmem:[#allocation2 + $0x8] sm:$0xff] }
  0x2a   : > { %701 = vmatprep.subr.bf16.mxu0 %v760_v7 }
  0x2d   : > { %702 = vmatpush3.bf16.msra.mxu0 %v760_v7 }
  0x2e   : > { %703 = vmatprep.subr.bf16.mxu0 %v761_v8 }
  0x31   : > { %704 = vmatpush3.bf16.msra.mxu0 %v761_v8 }
  0x32   : > { %705 = vmatprep.subr.bf16.mxu0 %v762_v10 }
  0x35   : > { %706 = vmatpush3.bf16.msra.mxu0 %v762_v10 }
  0x36   : > { %707 = vmatprep.subr.bf16.mxu0 %v763_v11 }
  0x39   : > { %708 = vmatpush3.bf16.msra.mxu0 %v763_v11 }
  0x3a   : > { %709 = vmatprep.subr.bf16.mxu0 %v764_v12 }
  0x3d   : > { %710 = vmatpush3.bf16.msra.mxu0 %v764_v12 }
  0x3e   : > { %711 = vmatprep.subr.bf16.mxu0 %v765_v13 }
  0x41   : > { %712 = vmatpush3.bf16.msra.mxu0 %v765_v13 }
  0x44   : > { %714 = vmatmul.mubr.bf16.vlgmr.msra.gmra.mxu0 %v767_v14 }
 0x104   : > { %v715_v16 = vpop.f32.mrf.mxu0 }
 0x105   : > { %v492_v18 = vadd.f32 %v715_v16, %v359_v15 }
 0x106   : > { %v475_v19 = vpop.f32.mrf.mxu0 }
 0x107   : > { %496 = vst [vmem:[#allocation2 + $0x18] sm:$0xff] %v492_v18  ;;  %v490_v21 = vadd.f32 %v475_v19, %v357_v17 }
 0x108   : > { %v716_v22 = vpop.f32.mrf.mxu0 }
 0x109   : > { %494 = vst [vmem:[#allocation2 + $0x10] sm:$0xff] %v490_v21  ;;  %v493_v24 = vadd.f32 %v716_v22, %v360_v20  ;;  %501 = sbr.rel (%p680_p11) target bundleno = 284 (0x11c), region = 85 }
 0x10a   : > { %v478_v25 = vpop.f32.mrf.mxu0 }
 0x10b   : > { %497 = vst [vmem:[#allocation2 + $0x8] sm:$0xff] %v493_v24  ;;  %v491_v26 = vadd.f32 %v478_v25, %v358_v23 }
 0x10d   : > { %495 = vst [vmem:[#allocation2] sm:$0xff] %v491_v26 }
 0x10e   : > { %v681_v28 = vld [vmem:[%s938_s2] ss:$0 sm:$0xff]  ;;  %v504_v32 = vld [vmem:[#allocation2 + $0x18] sm:$0xff] }
 0x10f   : > { %v682_v29 = vld [vmem:[%s939_s3] ss:$0 sm:$0xff]  ;;  %v515_v35 = vmul.f32 %v681_v28, %v504_v32 }
 0x110   : > { %v502_v27 = vld [vmem:[#allocation2 + $0x10] sm:$0xff] }
 0x111   : > { %v513_v30 = vmul.f32 %v681_v28, %v502_v27  ;;  %v526_v39 = vadd.f32 %v682_v29, %v515_v35 }
 0x112   : > { %v505_v33 = vld [vmem:[#allocation2 + $0x8] sm:$0xff] }
 0x113   : > { %v516_v36 = vmul.f32 %v681_v28, %v505_v33  ;;  %v524_v37 = vadd.f32 %v682_v29, %v513_v30  ;;  %v530_v43 = vmax.f32 %v526_v39, 0.0 }
 0x114   : > { %v503_v31 = vld [vmem:[#allocation2] sm:$0xff] }
 0x115   : > { %v514_v34 = vmul.f32 %v681_v28, %v503_v31  ;;  %v527_v40 = vadd.f32 %v682_v29, %v516_v36  ;;  %v528_v41 = vmax.f32 %v524_v37, 0.0  ;;  %534 = vst [vmem:[%s940_s4 + $0x10] sm:$0xff] %v530_v43 }
 0x117   : > { %v525_v38 = vadd.f32 %v682_v29, %v514_v34  ;;  %v531_v44 = vmax.f32 %v527_v40, 0.0  ;;  %532 = vst [vmem:[%s940_s4] sm:$0xff] %v528_v41 }
 0x119   : > { %v529_v42 = vmax.f32 %v525_v38, 0.0  ;;  %535 = vst [vmem:[%s940_s4 + $0x18] sm:$0xff] %v531_v44 }
 0x11b   : > { %533 = vst [vmem:[%s940_s4 + $0x8] sm:$0xff] %v529_v42 }
 0x11c PF: > { %s14_s19 = sadd.s32 1, %s806_s19   ;;  %s941_s15 = smov %s794_s16 }
 0x11d   : > { %p11_p12 = scmp.ge.s32.totalorder %s14_s19, 11   ;;  %s942_s16 = smov %s869_s23 }
 0x11e   : > { %s943_s17 = smov %s802_s18  ;;  %s944_s18 = smov %s946_s20 }
 0x11f   :  { %13 = sbr.rel (!%p11_p12) target bundleno = 3 (0x3), region = 129 }

// kernel: _lambda_.29
= control target key start
LH: loop header
LB: loop body
LE: loop exit
PB: predicated region body
PF: predicated region fallthrough
CT: control target
= control target key end

     0   :  { %s926_s18 = smov 0   ;;  %s928_s19 = smov 0   ;;  %s1040_s0 = inlined_call_operand.vmem [shape: bf16[32,1152], index: 0, kind: input, shape index: {}]   ;;  %s1041_s1 = inlined_call_operand.vmem [shape: bf16[1152,128], index: 1, kind: input, shape index: {}]   ;;  %s1042_s2 = inlined_call_operand.vmem [shape: f32[1,128], index: 2, kind: input, shape index: {}]   ;;  %s1043_s3 = inlined_call_operand.vmem [shape: f32[1,128], index: 3, kind: input, shape index: {}]   ;;  %s1044_s4 = inlined_call_operand.vmem [shape: f32[32,128], index: 4, kind: input, shape index: {}]   ;;  %s1045_s5 = inlined_call_operand.vmem [shape: f32[32,128], index: 5, kind: output, shape index: {}]  }
   0x1   :  { %s930_s20 = smov 0   ;;  %s932_s21 = smov 0  }
   0x2   :  { %s934_s22 = smov 0  }
   0x3 LB: > { %s27_s23 = sadd.s32 1, %s889_s21  ;;  %p50_p1 = scmp.ne.s32.totalorder %s881_s19, %s877_s18  ;;  %s893_s22 = sphi %s934_s22, %s15_s22   ;;  %s889_s21 = sphi %s932_s21, %s1049_s21   ;;  %s885_s20 = sphi %s930_s20, %s1048_s20   ;;  %s881_s19 = sphi %s928_s19, %s1047_s19   ;;  %s877_s18 = sphi %s926_s18, %s1046_s18  }
   0x4   : > { %p28_p0 = scmp.ge.s32.totalorder %s27_s23, 9  ;;  %p51_p2 = scmp.eq.s32.totalorder %s893_s22, 0 }
   0x5   : > { %s43_s25 = sadd.s32 1, %s881_s19  ;;  %p749_p5 = scmp.ge.s32.totalorder %s893_s22, 9 }
   0x6   : > { %s1051_s23 = smov (%p28_p0, %s27_s23), 0  ;;  %p52_p3 = por %p51_p2, %p50_p1 }
   0x7   : > { %s39_s24 = ssub.s32 %s889_s21, %s1051_s23  ;;  %236 = sbr.rel (%p749_p5) target bundleno = 18 (0x12), region = 28 }
   0x8   : > { %p41_p4 = scmp.eq.s32.totalorder %s39_s24, 0 }
   0xa   : > { %s961_s26 = scalar_select %p41_p4, %s881_s19, %s43_s25  }
   0xc   : > { %239 = sbr.rel (!%p52_p3) target bundleno = 18 (0x12), region = 32  ;;  %s241_s27 = sand.u32 (%p52_p3), 1, %s881_s19  }
   0xd   : > { %s751_s28 = sshll.u32 (%p52_p3), %s889_s21, 2  ;;  %s750_s29 = sshll.u32 (%p52_p3), %s241_s27, 4 }
   0xe   : > { %s248_s7 = scalar_lea.vmem (%p52_p3), %s1040_s0, %s751_s28  ;;  %s243_s8 = scalar_lea.vmem (%p52_p3), [#allocation3], %s750_s29 }
   0xf   : > { %v265_v0 = vld [vmem:[%s248_s7] sm:$0xf] (%p52_p3)  ;;  %v267_v1 = vld [vmem:[%s248_s7 + $0x24] sm:$0xf] (%p52_p3)  ;;  %v269_v2 = vld [vmem:[%s248_s7 + $0x48] sm:$0xf] (%p52_p3) }
  0x10   : > { %266 = vst [vmem:[%s243_s8] sm:$0xf] (%p52_p3), %v265_v0  ;;  %268 = vst [vmem:[%s243_s8 + $0x4] sm:$0xf] (%p52_p3), %v267_v1  ;;  %v271_v3 = vld [vmem:[%s248_s7 + $0x6c] sm:$0xf] (%p52_p3) }
  0x11   : > { %270 = vst [vmem:[%s243_s8 + $0x8] sm:$0xf] %v269_v2  ;;  %272 = vst [vmem:[%s243_s8 + $0xc] sm:$0xf] %v271_v3 }
  0x12 PF: > { %p752_p6 = scmp.ge.s32.totalorder %s893_s22, 1  ;;  %p315_p7 = scmp.lt.s32.totalorder %s893_s22, 10 }
  0x14   : > { %p316_p8 = pnand %p752_p6, %p315_p7 }
  0x15   : > { %s322_s9 = sand.u32 (!%p316_p8), 1, %s877_s18   ;;  %s754_s10 = sshll.u32 (!%p316_p8), %s885_s20, 4 }
  0x16   : > { %319 = sbr.rel (%p316_p8) target bundleno = 286 (0x11e), region = 77  ;;  %s973_s11 = sshll.u32 (!%p316_p8), %s322_s9, 4 }
  0x17   : > { %p376_p9 = scmp.lt.s32.totalorder (!%p316_p8), %s754_s10, 143  ;;  %s324_s16 = scalar_lea.vmem (!%p316_p8), [#allocation3], %s973_s11 }
  0x18   : > { %p756_p10 = scmp.ne.s32.totalorder (!%p316_p8), %s885_s20, 0 }
  0x1b   : > { %s1053_s10 = smov (!%p376_p9, %s754_s10), 143  ;;  %412 = sbr.rel (%p756_p10) target bundleno = 35 (0x23), region = 85 }
  0x1c   : > { %s755_s12 = sshll.u32 %s1053_s10, 2 }
  0x1d   : > { %s978_s15 = scalar_lea.vmem %s1041_s1, %s755_s12 }
  0x20   : > { %v895_v4 = vmov 0.0  }
  0x21   : > { %413 = vst [vmem:[#allocation2 + $0x10] sm:$0xff] %v895_v4  ;;  %414 = vst [vmem:[#allocation2] sm:$0xff] %v895_v4 }
  0x22   : > { %415 = vst [vmem:[#allocation2 + $0x18] sm:$0xff] %v895_v4  ;;  %416 = vst [vmem:[#allocation2 + $0x8] sm:$0xff] %v895_v4 }
  0x23 PF: > { %v845_v5 = vld [vmem:[%s978_s15 + $0x38] sm:$0xff]   ;;  %v846_v6 = vld [vmem:[%s978_s15 + $0x30] sm:$0xff]   ;;  %v847_v7 = vld [vmem:[%s978_s15 + $0x28] sm:$0xff]   ;;  %p767_p11 = scmp.ne.s32.totalorder %s885_s20, 8 }
  0x24   : > { %784 = vmatprep.subr.bf16.mxu0 %v845_v5  ;;  %v848_v8 = vld [vmem:[%s978_s15 + $0x20] sm:$0xff]   ;;  %v849_v10 = vld [vmem:[%s978_s15 + $0x18] sm:$0xff]   ;;  %v850_v11 = vld [vmem:[%s978_s15 + $0x10] sm:$0xff]  }
  0x25   : > { %785 = vmatpush3.bf16.msra.mxu0 %v845_v5  ;;  %v853_v9 = vld [vmem:[%s324_s16] sm:$0xff]   ;;  %v851_v12 = vld [vmem:[%s978_s15 + $0x8] sm:$0xff]  }
  0x26   : > { %786 = vmatprep.subr.bf16.mxu0 %v846_v6  ;;  %800 = vmatprep.mubr.bf16.mxu0 %v853_v9  ;;  %v852_v13 = vld [vmem:[%s978_s15] sm:$0xff]   ;;  %v854_v14 = vld [vmem:[%s324_s16 + $0x8] sm:$0xff]  }
  0x28   : > { %v417_v17 = vld [vmem:[#allocation2 + $0x10] sm:$0xff]  ;;  %v418_v23 = vld [vmem:[#allocation2] sm:$0xff] }
  0x29   : > { %787 = vmatpush3.bf16.msra.mxu0 %v846_v6  ;;  %v419_v15 = vld [vmem:[#allocation2 + $0x18] sm:$0xff]  ;;  %v420_v20 = vld [vmem:[#allocation2 + $0x8] sm:$0xff] }
  0x2a   : > { %788 = vmatprep.subr.bf16.mxu0 %v847_v7 }
  0x2d   : > { %789 = vmatpush3.bf16.msra.mxu0 %v847_v7 }
  0x2e   : > { %790 = vmatprep.subr.bf16.mxu0 %v848_v8 }
  0x31   : > { %791 = vmatpush3.bf16.msra.mxu0 %v848_v8 }
  0x32   : > { %792 = vmatprep.subr.bf16.mxu0 %v849_v10 }
  0x35   : > { %793 = vmatpush3.bf16.msra.mxu0 %v849_v10 }
  0x36   : > { %794 = vmatprep.subr.bf16.mxu0 %v850_v11 }
  0x39   : > { %795 = vmatpush3.bf16.msra.mxu0 %v850_v11 }
  0x3a   : > { %796 = vmatprep.subr.bf16.mxu0 %v851_v12 }
  0x3d   : > { %797 = vmatpush3.bf16.msra.mxu0 %v851_v12 }
  0x3e   : > { %798 = vmatprep.subr.bf16.mxu0 %v852_v13 }
  0x41   : > { %799 = vmatpush3.bf16.msra.mxu0 %v852_v13 }
  0x44   : > { %801 = vmatmul.mubr.bf16.vlgmr.msra.gmra.mxu0 %v854_v14 }
 0x104   : > { %v802_v16 = vpop.f32.mrf.mxu0 }
 0x105   : > { %v552_v18 = vadd.f32 %v802_v16, %v419_v15 }
 0x106   : > { %v535_v19 = vpop.f32.mrf.mxu0 }
 0x107   : > { %556 = vst [vmem:[#allocation2 + $0x18] sm:$0xff] %v552_v18  ;;  %v550_v21 = vadd.f32 %v535_v19, %v417_v17 }
 0x108   : > { %v803_v22 = vpop.f32.mrf.mxu0 }
 0x109   : > { %554 = vst [vmem:[#allocation2 + $0x10] sm:$0xff] %v550_v21  ;;  %v553_v24 = vadd.f32 %v803_v22, %v420_v20  ;;  %561 = sbr.rel (%p767_p11) target bundleno = 286 (0x11e), region = 89 }
 0x10a   : > { %v538_v25 = vpop.f32.mrf.mxu0 }
 0x10b   : > { %557 = vst [vmem:[#allocation2 + $0x8] sm:$0xff] %v553_v24  ;;  %v551_v26 = vadd.f32 %v538_v25, %v418_v23 }
 0x10d   : > { %555 = vst [vmem:[#allocation2] sm:$0xff] %v551_v26 }
 0x10e   : > { %v768_v28 = vld [vmem:[%s1042_s2] ss:$0 sm:$0xff]  ;;  %v564_v34 = vld [vmem:[#allocation2 + $0x18] sm:$0xff]  ;;  %v589_v37 = vld [vmem:[%s1044_s4 + $0x8] sm:$0xff] }
 0x10f   : > { %v769_v29 = vld [vmem:[%s1043_s3] ss:$0 sm:$0xff]  ;;  %v575_v38 = vmul.f32 %v768_v28, %v564_v34  ;;  %v590_v41 = vld [vmem:[%s1044_s4 + $0x10] sm:$0xff]  ;;  %v591_v42 = vld [vmem:[%s1044_s4 + $0x18] sm:$0xff] }
 0x110   : > { %v562_v27 = vld [vmem:[#allocation2 + $0x10] sm:$0xff]  ;;  %v588_v32 = vld [vmem:[%s1044_s4] sm:$0xff] }
 0x111   : > { %v573_v30 = vmul.f32 %v768_v28, %v562_v27  ;;  %v586_v44 = vadd.f32 %v769_v29, %v575_v38 }
 0x112   : > { %v565_v35 = vld [vmem:[#allocation2 + $0x8] sm:$0xff] }
 0x113   : > { %v584_v36 = vadd.f32 %v769_v29, %v573_v30  ;;  %v576_v39 = vmul.f32 %v768_v28, %v565_v35  ;;  %v594_v48 = vadd.f32 %v590_v41, %v586_v44 }
 0x114   : > { %v563_v31 = vld [vmem:[#allocation2] sm:$0xff] }
 0x115   : > { %v574_v33 = vmul.f32 %v768_v28, %v563_v31  ;;  %v592_v43 = vadd.f32 %v588_v32, %v584_v36  ;;  %v587_v45 = vadd.f32 %v769_v29, %v576_v39  ;;  %v598_v51 = vmax.f32 %v594_v48, 0.0 }
 0x117   : > { %v585_v40 = vadd.f32 %v769_v29, %v574_v33  ;;  %v596_v47 = vmax.f32 %v592_v43, 0.0  ;;  %v595_v49 = vadd.f32 %v591_v42, %v587_v45  ;;  %602 = vst [vmem:[%s1045_s5 + $0x10] sm:$0xff] %v598_v51 }
 0x119   : > { %v593_v46 = vadd.f32 %v589_v37, %v585_v40  ;;  %600 = vst [vmem:[%s1045_s5] sm:$0xff] %v596_v47  ;;  %v599_v52 = vmax.f32 %v595_v49, 0.0 }
 0x11b   : > { %v597_v50 = vmax.f32 %v593_v46, 0.0  ;;  %603 = vst [vmem:[%s1045_s5 + $0x18] sm:$0xff] %v599_v52 }
 0x11d   : > { %601 = vst [vmem:[%s1045_s5 + $0x8] sm:$0xff] %v597_v50 }
 0x11e PF: > { %s15_s22 = sadd.s32 1, %s893_s22   ;;  %s1046_s18 = smov %s881_s19 }
 0x11f   : > { %p12_p12 = scmp.ge.s32.totalorder %s15_s22, 11   ;;  %s1047_s19 = smov %s961_s26 }
 0x120   : > { %s1048_s20 = smov %s889_s21  ;;  %s1049_s21 = smov %s1051_s23 }
 0x121   :  { %14 = sbr.rel (!%p12_p12) target bundleno = 3 (0x3), region = 136 }

// kernel: _lambda_.32
= control target key start
LH: loop header
LB: loop body
LE: loop exit
PB: predicated region body
PF: predicated region fallthrough
CT: control target
= control target key end

     0   :  { %s770_s15 = smov 0   ;;  %s772_s16 = smov 0   ;;  %s843_s0 = inlined_call_operand.vmem [shape: bf16[8,1152], index: 0, kind: input, shape index: {}]   ;;  %s844_s1 = inlined_call_operand.vmem [shape: bf16[1152,256], index: 1, kind: input, shape index: {}]   ;;  %s845_s2 = inlined_call_operand.vmem [shape: f32[1,256], index: 2, kind: input, shape index: {}]   ;;  %s846_s3 = inlined_call_operand.vmem [shape: f32[1,256], index: 3, kind: input, shape index: {}]   ;;  %s847_s4 = inlined_call_operand.vmem [shape: f32[8,256], index: 4, kind: output, shape index: {}]  }
   0x1   :  { %s774_s17 = smov 0  }
   0x2 LB: > { %s26_s18 = sadd.s32 1, %s737_s16  ;;  %p641_p0 = scmp.ge.s32.totalorder %s741_s17, 1  ;;  %s741_s17 = sphi %s774_s17, %s14_s17   ;;  %s737_s16 = sphi %s772_s16, %s849_s16   ;;  %s733_s15 = sphi %s770_s15, %s848_s15  }
   0x3   : > { %p27_p1 = scmp.ge.s32.totalorder %s26_s18, 9  ;;  %p227_p2 = scmp.lt.s32.totalorder %s741_s17, 10 }
   0x5   : > { %s851_s18 = smov (%p27_p1, %s26_s18), 0  ;;  %p228_p3 = pnand %p641_p0, %p227_p2 }
   0x6   : > { %p280_p4 = scmp.lt.s32.totalorder (!%p228_p3), %s733_s15, 8  ;;  %s643_s19 = sshll.u32 (!%p228_p3), %s733_s15, 4 }
   0x7   : > { %231 = sbr.rel (%p228_p3) target bundleno = 267 (0x10b), region = 36  ;;  %p288_p5 = scmp.lt.s32.totalorder (!%p228_p3), %s643_s19, 143 }
   0x8   : > { %p646_p6 = scmp.ne.s32.totalorder (!%p228_p3), %s733_s15, 0 }
   0xc   : > { %s281_s20 = scalar_select %p280_p4, %s733_s15, 8 }
   0xd   : > { %s853_s19 = smov (!%p288_p5, %s643_s19), 143  ;;  %322 = sbr.rel (%p646_p6) target bundleno = 20 (0x14), region = 40 }
   0xe   : > { %s642_s21 = sshll.u32 %s281_s20, 2  ;;  %s668_s25 = sshll.u32 %s853_s19, 3 }
   0xf   : > { %s796_s24 = scalar_lea.vmem %s843_s0, %s642_s21  ;;  %s801_s28 = scalar_lea.vmem %s844_s1, %s668_s25 }
  0x12   : > { %v743_v0 = vmov 0.0  }
  0x13   : > { %323 = vst [vmem:[#allocation2] sm:$0xff] %v743_v0  ;;  %324 = vst [vmem:[#allocation2 + $0x8] sm:$0xff] %v743_v0 }
  0x14 PF: > { %v695_v1 = vld [vmem:[%s801_s28 + $0x74] ss:$8 sps:$4 sm:$0xff]   ;;  %v697_v2 = vld [vmem:[%s801_s28 + $0x70] ss:$8 sps:$4 sm:$0xff]   ;;  %v744_v3 = vmov 0   ;;  %p663_p7 = scmp.ne.s32.totalorder %s733_s15, 8 }
  0x15   : > { %456 = vmatprep.mubr.bf16.mxu0 %v744_v3  ;;  %424 = vmatprep.subr.bf16.mxu0 %v695_v1  ;;  %v698_v4 = vld [vmem:[%s801_s28 + $0x64] ss:$8 sps:$4 sm:$0xff]   ;;  %v700_v5 = vld [vmem:[%s801_s28 + $0x60] ss:$8 sps:$4 sm:$0xff]   ;;  %v701_v6 = vld [vmem:[%s801_s28 + $0x54] ss:$8 sps:$4 sm:$0xff]  }
  0x16   : > { %425 = vmatpush1.bf16.msra.mxu0 %v697_v2  ;;  %v703_v7 = vld [vmem:[%s801_s28 + $0x50] ss:$8 sps:$4 sm:$0xff]   ;;  %v704_v8 = vld [vmem:[%s801_s28 + $0x44] ss:$8 sps:$4 sm:$0xff]   ;;  %v706_v9 = vld [vmem:[%s801_s28 + $0x40] ss:$8 sps:$4 sm:$0xff]  }
  0x17   : > { %426 = vmatprep.subr.bf16.mxu0 %v698_v4  ;;  %v707_v10 = vld [vmem:[%s801_s28 + $0x34] ss:$8 sps:$4 sm:$0xff]   ;;  %v709_v11 = vld [vmem:[%s801_s28 + $0x30] ss:$8 sps:$4 sm:$0xff]   ;;  %v710_v12 = vld [vmem:[%s801_s28 + $0x24] ss:$8 sps:$4 sm:$0xff]  }
  0x18   : > { %v712_v13 = vld [vmem:[%s801_s28 + $0x20] ss:$8 sps:$4 sm:$0xff]   ;;  %v713_v14 = vld [vmem:[%s801_s28 + $0x14] ss:$8 sps:$4 sm:$0xff]   ;;  %v715_v15 = vld [vmem:[%s801_s28 + $0x10] ss:$8 sps:$4 sm:$0xff]  }
  0x19   : > { %v716_v16 = vld [vmem:[%s801_s28 + $0x4] ss:$8 sps:$4 sm:$0xff]   ;;  %v718_v17 = vld [vmem:[%s801_s28] ss:$8 sps:$4 sm:$0xff]  }
  0x1a   : > { %427 = vmatpush1.bf16.msra.mxu0 %v700_v5  ;;  %v327_v18 = vld [vmem:[%s796_s24] sm:$0xf]  ;;  %v326_v21 = vld [vmem:[#allocation2 + $0x8] sm:$0xff] }
  0x1b   : > { %428 = vmatprep.subr.bf16.mxu0 %v701_v6  ;;  %v325_v19 = vld [vmem:[#allocation2] sm:$0xff] }
  0x1e   : > { %429 = vmatpush1.bf16.msra.mxu0 %v703_v7 }
  0x1f   : > { %430 = vmatprep.subr.bf16.mxu0 %v704_v8 }
  0x22   : > { %431 = vmatpush1.bf16.msra.mxu0 %v706_v9 }
  0x23   : > { %432 = vmatprep.subr.bf16.mxu0 %v707_v10 }
  0x26   : > { %433 = vmatpush1.bf16.msra.mxu0 %v709_v11 }
  0x27   : > { %434 = vmatprep.subr.bf16.mxu0 %v710_v12 }
  0x2a   : > { %435 = vmatpush1.bf16.msra.mxu0 %v712_v13 }
  0x2b   : > { %436 = vmatprep.subr.bf16.mxu0 %v713_v14 }
  0x2e   : > { %437 = vmatpush1.bf16.msra.mxu0 %v715_v15 }
  0x2f   : > { %438 = vmatprep.subr.bf16.mxu0 %v716_v16 }
  0x32   : > { %439 = vmatpush1.bf16.msra.mxu0 %v718_v17 }
  0x35   : > { %457 = vmatmul.mubr.bf16.vlgmr.msra.gmra.mxu0 %v327_v18 }
  0xf5   : > { %v458_v20 = vpop.f32.mrf.mxu0 }
  0xf6   : > { %v465_v22 = vadd.f32 %v458_v20, %v325_v19 }
  0xf7   : > { %v460_v23 = vpop.f32.mrf.mxu0  ;;  %472 = sbr.rel (%p663_p7) target bundleno = 267 (0x10b), region = 44 }
  0xf8   : > { %467 = vst [vmem:[#allocation2] sm:$0xff] %v465_v22  ;;  %v466_v24 = vadd.f32 %v460_v23, %v326_v21 }
  0xf9   : > { %v462_v25 = vpop.f32.mrf.mxu0 }
  0xfa   : > { %468 = vst [vmem:[#allocation2 + $0x8] sm:$0xff] %v466_v24 }
  0xfb   : > { %v463_v26 = vpop.f32.mrf.mxu0 }
  0xfc   : > { %v477_v27 = vlaneseq  ;;  %v475_v29 = vld [vmem:[%s845_s2] sm:$0x3] }
  0xfd   : > { %v489_v30 = vld [vmem:[%s846_s3] sm:$0x3] }
  0xfe   : > { %v478_v28 = vshrl.u32 %v477_v27, 7 }
  0xff   : > { %v473_v33 = vld [vmem:[#allocation2] sm:$0xff] }
 0x100   : > { %v479_v31 = vsub.s32 0, %v478_v28  ;;  %v483_v32 = vsub.s32 1, %v478_v28 }
 0x101   : > { %v474_v34 = vld [vmem:[#allocation2 + $0x8] sm:$0xff] }
 0x102   : > { %v480_v35 = vrot.slane %v475_v29, %v479_v31  ;;  %v494_v36 = vrot.slane %v489_v30, %v479_v31  ;;  %v484_v37 = vrot.slane %v475_v29, %v483_v32  ;;  %v498_v38 = vrot.slane %v489_v30, %v483_v32 }
 0x104   : > { %v487_v39 = vmul.f32 %v480_v35, %v473_v33  ;;  %v488_v40 = vmul.f32 %v484_v37, %v474_v34 }
 0x106   : > { %v501_v41 = vadd.f32 %v494_v36, %v487_v39  ;;  %v502_v42 = vadd.f32 %v498_v38, %v488_v40 }
 0x108   : > { %v503_v43 = vmax.f32 %v501_v41, 0.0  ;;  %v504_v44 = vmax.f32 %v502_v42, 0.0 }
 0x10a   : > { %505 = vst [vmem:[%s847_s4] sm:$0xff] %v503_v43  ;;  %506 = vst [vmem:[%s847_s4 + $0x8] sm:$0xff] %v504_v44 }
 0x10b PF: > { %s14_s17 = sadd.s32 1, %s741_s17   ;;  %s848_s15 = smov %s737_s16 }
 0x10c   : > { %p11_p8 = scmp.ge.s32.totalorder %s14_s17, 11   ;;  %s849_s16 = smov %s851_s18 }
 0x10e   :  { %13 = sbr.rel (!%p11_p8) target bundleno = 2 (0x2), region = 83 }

// kernel: _lambda_.33
= control target key start
LH: loop header
LB: loop body
LE: loop exit
PB: predicated region body
PF: predicated region fallthrough
CT: control target
= control target key end

     0   :  { %v248_v1 = vmov 0   ;;  %v175_v18 = vlaneseq  ;;  %s337_s1 = inlined_call_operand.vmem [shape: bf16[128,256], index: 1, kind: input, shape index: {}]   ;;  %s338_s0 = inlined_call_operand.vmem [shape: bf16[8,128], index: 0, kind: input, shape index: {}]   ;;  %s339_s2 = inlined_call_operand.vmem [shape: f32[1,256], index: 2, kind: input, shape index: {}]   ;;  %s340_s3 = inlined_call_operand.vmem [shape: f32[1,256], index: 3, kind: input, shape index: {}]   ;;  %s341_s4 = inlined_call_operand.vmem [shape: f32[8,256], index: 4, kind: output, shape index: {}]  }
   0x1   :  { %v224_v0 = vld [vmem:[%s337_s1 + $0x74] ss:$8 sps:$4 sm:$0xff]   ;;  %155 = vmatprep.mubr.bf16.mxu0 %v248_v1  ;;  %v226_v2 = vld [vmem:[%s337_s1 + $0x70] ss:$8 sps:$4 sm:$0xff]   ;;  %v227_v3 = vld [vmem:[%s337_s1 + $0x64] ss:$8 sps:$4 sm:$0xff]  }
   0x2   :  { %123 = vmatprep.subr.bf16.mxu0 %v224_v0  ;;  %v229_v4 = vld [vmem:[%s337_s1 + $0x60] ss:$8 sps:$4 sm:$0xff]   ;;  %v230_v5 = vld [vmem:[%s337_s1 + $0x54] ss:$8 sps:$4 sm:$0xff]   ;;  %v232_v6 = vld [vmem:[%s337_s1 + $0x50] ss:$8 sps:$4 sm:$0xff]  }
   0x3   :  { %124 = vmatpush1.bf16.msra.mxu0 %v226_v2  ;;  %v233_v7 = vld [vmem:[%s337_s1 + $0x44] ss:$8 sps:$4 sm:$0xff]   ;;  %v235_v8 = vld [vmem:[%s337_s1 + $0x40] ss:$8 sps:$4 sm:$0xff]   ;;  %v236_v9 = vld [vmem:[%s337_s1 + $0x34] ss:$8 sps:$4 sm:$0xff]  }
   0x4   :  { %125 = vmatprep.subr.bf16.mxu0 %v227_v3  ;;  %v238_v10 = vld [vmem:[%s337_s1 + $0x30] ss:$8 sps:$4 sm:$0xff]   ;;  %v239_v11 = vld [vmem:[%s337_s1 + $0x24] ss:$8 sps:$4 sm:$0xff]   ;;  %v241_v12 = vld [vmem:[%s337_s1 + $0x20] ss:$8 sps:$4 sm:$0xff]  }
   0x5   :  { %v242_v13 = vld [vmem:[%s337_s1 + $0x14] ss:$8 sps:$4 sm:$0xff]   ;;  %v244_v14 = vld [vmem:[%s337_s1 + $0x10] ss:$8 sps:$4 sm:$0xff]   ;;  %v245_v15 = vld [vmem:[%s337_s1 + $0x4] ss:$8 sps:$4 sm:$0xff]  }
   0x6   :  { %v247_v16 = vld [vmem:[%s337_s1] ss:$8 sps:$4 sm:$0xff]   ;;  %v176_v19 = vshrl.u32 %v175_v18, 7 }
   0x7   :  { %126 = vmatpush1.bf16.msra.mxu0 %v229_v4  ;;  %v26_v17 = vld [vmem:[%s338_s0] sm:$0xf] }
   0x8   :  { %127 = vmatprep.subr.bf16.mxu0 %v230_v5  ;;  %v177_v20 = vsub.s32 0, %v176_v19  ;;  %v173_v21 = vld [vmem:[%s339_s2] sm:$0x3]  ;;  %v181_v22 = vsub.s32 1, %v176_v19 }
   0x9   :  { %v187_v23 = vld [vmem:[%s340_s3] sm:$0x3] }
   0xa   :  { %v178_v24 = vrot.slane %v173_v21, %v177_v20  ;;  %v192_v25 = vrot.slane %v187_v23, %v177_v20  ;;  %v182_v26 = vrot.slane %v173_v21, %v181_v22  ;;  %v196_v29 = vrot.slane %v187_v23, %v181_v22 }
   0xb   :  { %128 = vmatpush1.bf16.msra.mxu0 %v232_v6 }
   0xc   :  { %129 = vmatprep.subr.bf16.mxu0 %v233_v7 }
   0xf   :  { %130 = vmatpush1.bf16.msra.mxu0 %v235_v8 }
  0x10   :  { %131 = vmatprep.subr.bf16.mxu0 %v236_v9 }
  0x13   :  { %132 = vmatpush1.bf16.msra.mxu0 %v238_v10 }
  0x14   :  { %133 = vmatprep.subr.bf16.mxu0 %v239_v11 }
  0x17   :  { %134 = vmatpush1.bf16.msra.mxu0 %v241_v12 }
  0x18   :  { %135 = vmatprep.subr.bf16.mxu0 %v242_v13 }
  0x1b   :  { %136 = vmatpush1.bf16.msra.mxu0 %v244_v14 }
  0x1c   :  { %137 = vmatprep.subr.bf16.mxu0 %v245_v15 }
  0x1f   :  { %138 = vmatpush1.bf16.msra.mxu0 %v247_v16 }
  0x22   :  { %156 = vmatmul.mubr.bf16.vlgmr.msra.gmra.mxu0 %v26_v17 }
  0xe2   :  { %v157_v27 = vpop.f32.mrf.mxu0 }
  0xe3   :  { %v185_v28 = vmul.f32 %v178_v24, %v157_v27 }
  0xe4   :  { %v159_v30 = vpop.f32.mrf.mxu0 }
  0xe5   :  { %v199_v31 = vadd.f32 %v192_v25, %v185_v28  ;;  %v186_v32 = vmul.f32 %v182_v26, %v159_v30 }
  0xe6   :  { %v161_v33 = vpop.f32.mrf.mxu0 }
  0xe7   :  { %201 = vst [vmem:[%s341_s4] sm:$0xff] %v199_v31  ;;  %v200_v34 = vadd.f32 %v196_v29, %v186_v32 }
  0xe8   :  { %v162_v35 = vpop.f32.mrf.mxu0 }
  0xe9   :  { %202 = vst [vmem:[%s341_s4 + $0x8] sm:$0xff] %v200_v34 }

// kernel: _lambda_.34
= control target key start
LH: loop header
LB: loop body
LE: loop exit
PB: predicated region body
PF: predicated region fallthrough
CT: control target
= control target key end

     0   :  { %s1014_s18 = smov 0   ;;  %s1016_s19 = smov 0   ;;  %s1108_s0 = inlined_call_operand.vmem [shape: bf16[8,2304], index: 0, kind: input, shape index: {}]   ;;  %s1109_s1 = inlined_call_operand.vmem [shape: bf16[2304,256], index: 1, kind: input, shape index: {}]   ;;  %s1110_s2 = inlined_call_operand.vmem [shape: f32[1,256], index: 2, kind: input, shape index: {}]   ;;  %s1111_s3 = inlined_call_operand.vmem [shape: f32[1,256], index: 3, kind: input, shape index: {}]   ;;  %s1112_s4 = inlined_call_operand.vmem [shape: f32[8,256], index: 4, kind: input, shape index: {}]   ;;  %s1113_s5 = inlined_call_operand.vmem [shape: f32[8,256], index: 5, kind: output, shape index: {}]  }
   0x1   :  { %s1018_s20 = smov 0  }
   0x2 LB: > { %s27_s21 = sadd.s32 1, %s977_s19  ;;  %p837_p0 = scmp.ge.s32.totalorder %s981_s20, 1  ;;  %s981_s20 = sphi %s1018_s20, %s15_s20   ;;  %s977_s19 = sphi %s1016_s19, %s1115_s19   ;;  %s973_s18 = sphi %s1014_s18, %s1114_s18  }
   0x3   : > { %p28_p1 = scmp.ge.s32.totalorder %s27_s21, 9  ;;  %p271_p2 = scmp.lt.s32.totalorder %s981_s20, 10 }
   0x5   : > { %s1117_s21 = smov (%p28_p1, %s27_s21), 0  ;;  %p272_p3 = pnand %p837_p0, %p271_p2 }
   0x6   : > { %s838_s22 = sshll.u32 (!%p272_p3), %s973_s18, 1  ;;  %s840_s23 = sshll.u32 (!%p272_p3), %s973_s18, 5 }
   0x7   : > { %275 = sbr.rel (%p272_p3) target bundleno = 303 (0x12f), region = 40  ;;  %p337_p4 = scmp.lt.s32.totalorder (!%p272_p3), %s838_s22, 17 }
   0x8   : > { %p346_p5 = scmp.lt.s32.totalorder (!%p272_p3), %s840_s23, 287  ;;  %p843_p6 = scmp.ne.s32.totalorder (!%p272_p3), %s973_s18, 0 }
   0xc   : > { %s1119_s22 = smov (!%p337_p4, %s838_s22), 17  ;;  %s1121_s23 = smov (!%p346_p5, %s840_s23), 287 }
   0xd   : > { %s839_s24 = sshll.u32 %s1119_s22, 2  ;;  %s883_s28 = sshll.u32 %s1121_s23, 3 }
   0xe   : > { %s1039_s27 = scalar_lea.vmem %s1108_s0, %s839_s24  ;;  %s1044_s6 = scalar_lea.vmem %s1109_s1, %s883_s28 }
   0xf   : > { %389 = sbr.rel (%p843_p6) target bundleno = 22 (0x16), region = 44 }
  0x14   : > { %v983_v0 = vmov 0.0  }
  0x15   : > { %390 = vst [vmem:[#allocation2] sm:$0xff] %v983_v0  ;;  %391 = vst [vmem:[#allocation2 + $0x8] sm:$0xff] %v983_v0 }
  0x16 PF: > { %v909_v1 = vld [vmem:[%s1044_s6 + $0x74] ss:$8 sps:$4 sm:$0xff]   ;;  %v911_v2 = vld [vmem:[%s1044_s6 + $0x70] ss:$8 sps:$4 sm:$0xff]   ;;  %v912_v3 = vld [vmem:[%s1044_s6 + $0x64] ss:$8 sps:$4 sm:$0xff]  }
  0x17   : > { %594 = vmatprep.subr.bf16.mxu0 %v909_v1  ;;  %v914_v4 = vld [vmem:[%s1044_s6 + $0x60] ss:$8 sps:$4 sm:$0xff]   ;;  %v915_v5 = vld [vmem:[%s1044_s6 + $0x54] ss:$8 sps:$4 sm:$0xff]   ;;  %v917_v6 = vld [vmem:[%s1044_s6 + $0x50] ss:$8 sps:$4 sm:$0xff]  }
  0x18   : > { %595 = vmatpush1.bf16.msra.mxu0 %v911_v2  ;;  %v918_v7 = vld [vmem:[%s1044_s6 + $0x44] ss:$8 sps:$4 sm:$0xff]   ;;  %v920_v8 = vld [vmem:[%s1044_s6 + $0x40] ss:$8 sps:$4 sm:$0xff]   ;;  %v921_v9 = vld [vmem:[%s1044_s6 + $0x34] ss:$8 sps:$4 sm:$0xff]  }
  0x19   : > { %596 = vmatprep.subr.bf16.mxu0 %v912_v3  ;;  %v923_v10 = vld [vmem:[%s1044_s6 + $0x30] ss:$8 sps:$4 sm:$0xff]   ;;  %v924_v11 = vld [vmem:[%s1044_s6 + $0x24] ss:$8 sps:$4 sm:$0xff]   ;;  %v926_v12 = vld [vmem:[%s1044_s6 + $0x20] ss:$8 sps:$4 sm:$0xff]  }
  0x1a   : > { %v927_v13 = vld [vmem:[%s1044_s6 + $0x14] ss:$8 sps:$4 sm:$0xff]   ;;  %v394_v14 = vld [vmem:[%s1039_s27] sm:$0xff]  ;;  %v929_v16 = vld [vmem:[%s1044_s6 + $0x10] ss:$8 sps:$4 sm:$0xff]   ;;  %p878_p7 = scmp.ne.s32.totalorder %s973_s18, 8 }
  0x1b   : > { %v845_v15 = vcombine.high %v394_v14, %v394_v14  ;;  %v930_v17 = vld [vmem:[%s1044_s6 + $0x4] ss:$8 sps:$4 sm:$0xff]   ;;  %v932_v18 = vld [vmem:[%s1044_s6] ss:$8 sps:$4 sm:$0xff]   ;;  %v933_v19 = vld [vmem:[%s1044_s6 + $0xf4] ss:$8 sps:$4 sm:$0xff]   ;;  %v844_v35 = vcombine.low %v394_v14, %v394_v14 }
  0x1c   : > { %597 = vmatpush1.bf16.msra.mxu0 %v914_v4  ;;  %v935_v20 = vld [vmem:[%s1044_s6 + $0xf0] ss:$8 sps:$4 sm:$0xff]   ;;  %v936_v21 = vld [vmem:[%s1044_s6 + $0xe4] ss:$8 sps:$4 sm:$0xff]   ;;  %v938_v22 = vld [vmem:[%s1044_s6 + $0xe0] ss:$8 sps:$4 sm:$0xff]  }
  0x1d   : > { %598 = vmatprep.subr.bf16.mxu0 %v915_v5  ;;  %626 = vmatprep.mubr.bf16.mxu0 %v845_v15  ;;  %v939_v23 = vld [vmem:[%s1044_s6 + $0xd4] ss:$8 sps:$4 sm:$0xff]   ;;  %v941_v24 = vld [vmem:[%s1044_s6 + $0xd0] ss:$8 sps:$4 sm:$0xff]   ;;  %v942_v25 = vld [vmem:[%s1044_s6 + $0xc4] ss:$8 sps:$4 sm:$0xff]  }
  0x1e   : > { %v944_v26 = vld [vmem:[%s1044_s6 + $0xc0] ss:$8 sps:$4 sm:$0xff]   ;;  %v945_v27 = vld [vmem:[%s1044_s6 + $0xb4] ss:$8 sps:$4 sm:$0xff]   ;;  %v947_v28 = vld [vmem:[%s1044_s6 + $0xb0] ss:$8 sps:$4 sm:$0xff]  }
  0x1f   : > { %v948_v29 = vld [vmem:[%s1044_s6 + $0xa4] ss:$8 sps:$4 sm:$0xff]   ;;  %v950_v30 = vld [vmem:[%s1044_s6 + $0xa0] ss:$8 sps:$4 sm:$0xff]   ;;  %v951_v31 = vld [vmem:[%s1044_s6 + $0x94] ss:$8 sps:$4 sm:$0xff]  }
  0x20   : > { %599 = vmatpush1.bf16.msra.mxu0 %v917_v6  ;;  %v953_v32 = vld [vmem:[%s1044_s6 + $0x90] ss:$8 sps:$4 sm:$0xff]   ;;  %v954_v33 = vld [vmem:[%s1044_s6 + $0x84] ss:$8 sps:$4 sm:$0xff]   ;;  %v956_v34 = vld [vmem:[%s1044_s6 + $0x80] ss:$8 sps:$4 sm:$0xff]  }
  0x21   : > { %600 = vmatprep.subr.bf16.mxu0 %v918_v7  ;;  %v392_v36 = vld [vmem:[#allocation2] sm:$0xff]  ;;  %v393_v38 = vld [vmem:[#allocation2 + $0x8] sm:$0xff] }
  0x24   : > { %601 = vmatpush1.bf16.msra.mxu0 %v920_v8 }
  0x25   : > { %602 = vmatprep.subr.bf16.mxu0 %v921_v9 }
  0x28   : > { %603 = vmatpush1.bf16.msra.mxu0 %v923_v10 }
  0x29   : > { %604 = vmatprep.subr.bf16.mxu0 %v924_v11 }
  0x2c   : > { %605 = vmatpush1.bf16.msra.mxu0 %v926_v12 }
  0x2d   : > { %606 = vmatprep.subr.bf16.mxu0 %v927_v13 }
  0x30   : > { %607 = vmatpush1.bf16.msra.mxu0 %v929_v16 }
  0x31   : > { %608 = vmatprep.subr.bf16.mxu0 %v930_v17 }
  0x34   : > { %609 = vmatpush1.bf16.msra.mxu0 %v932_v18 }
  0x35   : > { %610 = vmatprep.subr.bf16.mxu0 %v933_v19 }
  0x38   : > { %611 = vmatpush2.bf16.msra.mxu0 %v935_v20 }
  0x39   : > { %612 = vmatprep.subr.bf16.mxu0 %v936_v21 }
  0x3c   : > { %613 = vmatpush2.bf16.msra.mxu0 %v938_v22 }
  0x3d   : > { %614 = vmatprep.subr.bf16.mxu0 %v939_v23 }
  0x40   : > { %615 = vmatpush2.bf16.msra.mxu0 %v941_v24 }
  0x41   : > { %616 = vmatprep.subr.bf16.mxu0 %v942_v25 }
  0x44   : > { %617 = vmatpush2.bf16.msra.mxu0 %v944_v26 }
  0x45   : > { %618 = vmatprep.subr.bf16.mxu0 %v945_v27 }
  0x48   : > { %619 = vmatpush2.bf16.msra.mxu0 %v947_v28 }
  0x49   : > { %620 = vmatprep.subr.bf16.mxu0 %v948_v29 }
  0x4c   : > { %621 = vmatpush2.bf16.msra.mxu0 %v950_v30 }
  0x4d   : > { %622 = vmatprep.subr.bf16.mxu0 %v951_v31 }
  0x50   : > { %623 = vmatpush2.bf16.msra.mxu0 %v953_v32 }
  0x51   : > { %624 = vmatprep.subr.bf16.mxu0 %v954_v33 }
  0x54   : > { %625 = vmatpush2.bf16.msra.mxu0 %v956_v34 }
  0x57   : > { %627 = vmatmul.mubr.bf16.vlgmr.msra.gmra.mxu0 %v844_v35 }
 0x117   : > { %v628_v37 = vpop.f32.mrf.mxu0 }
 0x118   : > { %v635_v39 = vadd.f32 %v628_v37, %v392_v36 }
 0x119   : > { %v630_v40 = vpop.f32.mrf.mxu0  ;;  %642 = sbr.rel (%p878_p7) target bundleno = 303 (0x12f), region = 48 }
 0x11a   : > { %637 = vst [vmem:[#allocation2] sm:$0xff] %v635_v39  ;;  %v636_v41 = vadd.f32 %v630_v40, %v393_v38 }
 0x11b   : > { %v632_v42 = vpop.f32.mrf.mxu0 }
 0x11c   : > { %638 = vst [vmem:[#allocation2 + $0x8] sm:$0xff] %v636_v41 }
 0x11d   : > { %v633_v43 = vpop.f32.mrf.mxu0 }
 0x11e   : > { %v647_v44 = vlaneseq  ;;  %v645_v46 = vld [vmem:[%s1110_s2] sm:$0x3]  ;;  %v674_v59 = vld [vmem:[%s1112_s4 + $0x8] sm:$0xff] }
 0x11f   : > { %v659_v47 = vld [vmem:[%s1111_s3] sm:$0x3] }
 0x120   : > { %v648_v45 = vshrl.u32 %v647_v44, 7  ;;  %v673_v58 = vld [vmem:[%s1112_s4] sm:$0xff] }
 0x121   : > { %v643_v50 = vld [vmem:[#allocation2] sm:$0xff] }
 0x122   : > { %v649_v48 = vsub.s32 0, %v648_v45  ;;  %v653_v49 = vsub.s32 1, %v648_v45 }
 0x123   : > { %v644_v51 = vld [vmem:[#allocation2 + $0x8] sm:$0xff] }
 0x124   : > { %v650_v52 = vrot.slane %v645_v46, %v649_v48  ;;  %v664_v53 = vrot.slane %v659_v47, %v649_v48  ;;  %v654_v54 = vrot.slane %v645_v46, %v653_v49  ;;  %v668_v55 = vrot.slane %v659_v47, %v653_v49 }
 0x126   : > { %v657_v56 = vmul.f32 %v650_v52, %v643_v50  ;;  %v658_v57 = vmul.f32 %v654_v54, %v644_v51 }
 0x128   : > { %v671_v60 = vadd.f32 %v664_v53, %v657_v56  ;;  %v672_v61 = vadd.f32 %v668_v55, %v658_v57 }
 0x12a   : > { %v675_v62 = vadd.f32 %v673_v58, %v671_v60  ;;  %v676_v63 = vadd.f32 %v674_v59, %v672_v61 }
 0x12c   : > { %v677_v0 = vmax.f32 %v675_v62, 0.0  ;;  %v678_v1 = vmax.f32 %v676_v63, 0.0 }
 0x12e   : > { %679 = vst [vmem:[%s1113_s5] sm:$0xff] %v677_v0  ;;  %680 = vst [vmem:[%s1113_s5 + $0x8] sm:$0xff] %v678_v1 }
 0x12f PF: > { %s15_s20 = sadd.s32 1, %s981_s20   ;;  %s1114_s18 = smov %s977_s19 }
 0x130   : > { %p12_p8 = scmp.ge.s32.totalorder %s15_s20, 11   ;;  %s1115_s19 = smov %s1117_s21 }
 0x132   :  { %14 = sbr.rel (!%p12_p8) target bundleno = 2 (0x2), region = 90 }

// kernel: _lambda_.35
= control target key start
LH: loop header
LB: loop body
LE: loop exit
PB: predicated region body
PF: predicated region fallthrough
CT: control target
= control target key end

     0   :  { %s920_s15 = smov 0   ;;  %s922_s16 = smov 0   ;;  %s1008_s0 = inlined_call_operand.vmem [shape: bf16[8,2304], index: 0, kind: input, shape index: {}]   ;;  %s1009_s1 = inlined_call_operand.vmem [shape: bf16[2304,256], index: 1, kind: input, shape index: {}]   ;;  %s1010_s2 = inlined_call_operand.vmem [shape: f32[1,256], index: 2, kind: input, shape index: {}]   ;;  %s1011_s3 = inlined_call_operand.vmem [shape: f32[1,256], index: 3, kind: input, shape index: {}]   ;;  %s1012_s4 = inlined_call_operand.vmem [shape: f32[8,256], index: 4, kind: output, shape index: {}]  }
   0x1   :  { %s924_s17 = smov 0  }
   0x2 LB: > { %s26_s18 = sadd.s32 1, %s888_s16  ;;  %p748_p0 = scmp.ge.s32.totalorder %s892_s17, 1  ;;  %s892_s17 = sphi %s924_s17, %s14_s17   ;;  %s888_s16 = sphi %s922_s16, %s1014_s16   ;;  %s884_s15 = sphi %s920_s15, %s1013_s15  }
   0x3   : > { %p27_p1 = scmp.ge.s32.totalorder %s26_s18, 9  ;;  %p229_p2 = scmp.lt.s32.totalorder %s892_s17, 10 }
   0x5   : > { %s1016_s18 = smov (%p27_p1, %s26_s18), 0  ;;  %p230_p3 = pnand %p748_p0, %p229_p2 }
   0x6   : > { %s749_s19 = sshll.u32 (!%p230_p3), %s884_s15, 1  ;;  %s751_s20 = sshll.u32 (!%p230_p3), %s884_s15, 5 }
   0x7   : > { %233 = sbr.rel (%p230_p3) target bundleno = 301 (0x12d), region = 36  ;;  %p284_p4 = scmp.lt.s32.totalorder (!%p230_p3), %s749_s19, 17 }
   0x8   : > { %p293_p5 = scmp.lt.s32.totalorder (!%p230_p3), %s751_s20, 287  ;;  %p754_p6 = scmp.ne.s32.totalorder (!%p230_p3), %s884_s15, 0 }
   0xc   : > { %s1018_s19 = smov (!%p284_p4, %s749_s19), 17  ;;  %s1020_s20 = smov (!%p293_p5, %s751_s20), 287 }
   0xd   : > { %s750_s21 = sshll.u32 %s1018_s19, 2  ;;  %s794_s25 = sshll.u32 %s1020_s20, 3 }
   0xe   : > { %s945_s24 = scalar_lea.vmem %s1008_s0, %s750_s21  ;;  %s950_s28 = scalar_lea.vmem %s1009_s1, %s794_s25 }
   0xf   : > { %326 = sbr.rel (%p754_p6) target bundleno = 22 (0x16), region = 40 }
  0x14   : > { %v894_v0 = vmov 0.0  }
  0x15   : > { %327 = vst [vmem:[#allocation2] sm:$0xff] %v894_v0  ;;  %328 = vst [vmem:[#allocation2 + $0x8] sm:$0xff] %v894_v0 }
  0x16 PF: > { %v820_v1 = vld [vmem:[%s950_s28 + $0x74] ss:$8 sps:$4 sm:$0xff]   ;;  %v822_v2 = vld [vmem:[%s950_s28 + $0x70] ss:$8 sps:$4 sm:$0xff]   ;;  %v823_v3 = vld [vmem:[%s950_s28 + $0x64] ss:$8 sps:$4 sm:$0xff]  }
  0x17   : > { %531 = vmatprep.subr.bf16.mxu0 %v820_v1  ;;  %v825_v4 = vld [vmem:[%s950_s28 + $0x60] ss:$8 sps:$4 sm:$0xff]   ;;  %v826_v5 = vld [vmem:[%s950_s28 + $0x54] ss:$8 sps:$4 sm:$0xff]   ;;  %v828_v6 = vld [vmem:[%s950_s28 + $0x50] ss:$8 sps:$4 sm:$0xff]  }
  0x18   : > { %532 = vmatpush1.bf16.msra.mxu0 %v822_v2  ;;  %v829_v7 = vld [vmem:[%s950_s28 + $0x44] ss:$8 sps:$4 sm:$0xff]   ;;  %v831_v8 = vld [vmem:[%s950_s28 + $0x40] ss:$8 sps:$4 sm:$0xff]   ;;  %v832_v9 = vld [vmem:[%s950_s28 + $0x34] ss:$8 sps:$4 sm:$0xff]  }
  0x19   : > { %533 = vmatprep.subr.bf16.mxu0 %v823_v3  ;;  %v834_v10 = vld [vmem:[%s950_s28 + $0x30] ss:$8 sps:$4 sm:$0xff]   ;;  %v835_v11 = vld [vmem:[%s950_s28 + $0x24] ss:$8 sps:$4 sm:$0xff]   ;;  %v837_v12 = vld [vmem:[%s950_s28 + $0x20] ss:$8 sps:$4 sm:$0xff]  }
  0x1a   : > { %v838_v13 = vld [vmem:[%s950_s28 + $0x14] ss:$8 sps:$4 sm:$0xff]   ;;  %v331_v14 = vld [vmem:[%s945_s24] sm:$0xff]  ;;  %v840_v16 = vld [vmem:[%s950_s28 + $0x10] ss:$8 sps:$4 sm:$0xff]   ;;  %p789_p7 = scmp.ne.s32.totalorder %s884_s15, 8 }
  0x1b   : > { %v756_v15 = vcombine.high %v331_v14, %v331_v14  ;;  %v841_v17 = vld [vmem:[%s950_s28 + $0x4] ss:$8 sps:$4 sm:$0xff]   ;;  %v843_v18 = vld [vmem:[%s950_s28] ss:$8 sps:$4 sm:$0xff]   ;;  %v844_v19 = vld [vmem:[%s950_s28 + $0xf4] ss:$8 sps:$4 sm:$0xff]   ;;  %v755_v35 = vcombine.low %v331_v14, %v331_v14 }
  0x1c   : > { %534 = vmatpush1.bf16.msra.mxu0 %v825_v4  ;;  %v846_v20 = vld [vmem:[%s950_s28 + $0xf0] ss:$8 sps:$4 sm:$0xff]   ;;  %v847_v21 = vld [vmem:[%s950_s28 + $0xe4] ss:$8 sps:$4 sm:$0xff]   ;;  %v849_v22 = vld [vmem:[%s950_s28 + $0xe0] ss:$8 sps:$4 sm:$0xff]  }
  0x1d   : > { %535 = vmatprep.subr.bf16.mxu0 %v826_v5  ;;  %563 = vmatprep.mubr.bf16.mxu0 %v756_v15  ;;  %v850_v23 = vld [vmem:[%s950_s28 + $0xd4] ss:$8 sps:$4 sm:$0xff]   ;;  %v852_v24 = vld [vmem:[%s950_s28 + $0xd0] ss:$8 sps:$4 sm:$0xff]   ;;  %v853_v25 = vld [vmem:[%s950_s28 + $0xc4] ss:$8 sps:$4 sm:$0xff]  }
  0x1e   : > { %v855_v26 = vld [vmem:[%s950_s28 + $0xc0] ss:$8 sps:$4 sm:$0xff]   ;;  %v856_v27 = vld [vmem:[%s950_s28 + $0xb4] ss:$8 sps:$4 sm:$0xff]   ;;  %v858_v28 = vld [vmem:[%s950_s28 + $0xb0] ss:$8 sps:$4 sm:$0xff]  }
  0x1f   : > { %v859_v29 = vld [vmem:[%s950_s28 + $0xa4] ss:$8 sps:$4 sm:$0xff]   ;;  %v861_v30 = vld [vmem:[%s950_s28 + $0xa0] ss:$8 sps:$4 sm:$0xff]   ;;  %v862_v31 = vld [vmem:[%s950_s28 + $0x94] ss:$8 sps:$4 sm:$0xff]  }
  0x20   : > { %536 = vmatpush1.bf16.msra.mxu0 %v828_v6  ;;  %v864_v32 = vld [vmem:[%s950_s28 + $0x90] ss:$8 sps:$4 sm:$0xff]   ;;  %v865_v33 = vld [vmem:[%s950_s28 + $0x84] ss:$8 sps:$4 sm:$0xff]   ;;  %v867_v34 = vld [vmem:[%s950_s28 + $0x80] ss:$8 sps:$4 sm:$0xff]  }
  0x21   : > { %537 = vmatprep.subr.bf16.mxu0 %v829_v7  ;;  %v329_v36 = vld [vmem:[#allocation2] sm:$0xff]  ;;  %v330_v38 = vld [vmem:[#allocation2 + $0x8] sm:$0xff] }
  0x24   : > { %538 = vmatpush1.bf16.msra.mxu0 %v831_v8 }
  0x25   : > { %539 = vmatprep.subr.bf16.mxu0 %v832_v9 }
  0x28   : > { %540 = vmatpush1.bf16.msra.mxu0 %v834_v10 }
  0x29   : > { %541 = vmatprep.subr.bf16.mxu0 %v835_v11 }
  0x2c   : > { %542 = vmatpush1.bf16.msra.mxu0 %v837_v12 }
  0x2d   : > { %543 = vmatprep.subr.bf16.mxu0 %v838_v13 }
  0x30   : > { %544 = vmatpush1.bf16.msra.mxu0 %v840_v16 }
  0x31   : > { %545 = vmatprep.subr.bf16.mxu0 %v841_v17 }
  0x34   : > { %546 = vmatpush1.bf16.msra.mxu0 %v843_v18 }
  0x35   : > { %547 = vmatprep.subr.bf16.mxu0 %v844_v19 }
  0x38   : > { %548 = vmatpush2.bf16.msra.mxu0 %v846_v20 }
  0x39   : > { %549 = vmatprep.subr.bf16.mxu0 %v847_v21 }
  0x3c   : > { %550 = vmatpush2.bf16.msra.mxu0 %v849_v22 }
  0x3d   : > { %551 = vmatprep.subr.bf16.mxu0 %v850_v23 }
  0x40   : > { %552 = vmatpush2.bf16.msra.mxu0 %v852_v24 }
  0x41   : > { %553 = vmatprep.subr.bf16.mxu0 %v853_v25 }
  0x44   : > { %554 = vmatpush2.bf16.msra.mxu0 %v855_v26 }
  0x45   : > { %555 = vmatprep.subr.bf16.mxu0 %v856_v27 }
  0x48   : > { %556 = vmatpush2.bf16.msra.mxu0 %v858_v28 }
  0x49   : > { %557 = vmatprep.subr.bf16.mxu0 %v859_v29 }
  0x4c   : > { %558 = vmatpush2.bf16.msra.mxu0 %v861_v30 }
  0x4d   : > { %559 = vmatprep.subr.bf16.mxu0 %v862_v31 }
  0x50   : > { %560 = vmatpush2.bf16.msra.mxu0 %v864_v32 }
  0x51   : > { %561 = vmatprep.subr.bf16.mxu0 %v865_v33 }
  0x54   : > { %562 = vmatpush2.bf16.msra.mxu0 %v867_v34 }
  0x57   : > { %564 = vmatmul.mubr.bf16.vlgmr.msra.gmra.mxu0 %v755_v35 }
 0x117   : > { %v565_v37 = vpop.f32.mrf.mxu0 }
 0x118   : > { %v572_v39 = vadd.f32 %v565_v37, %v329_v36 }
 0x119   : > { %v567_v40 = vpop.f32.mrf.mxu0  ;;  %579 = sbr.rel (%p789_p7) target bundleno = 301 (0x12d), region = 44 }
 0x11a   : > { %574 = vst [vmem:[#allocation2] sm:$0xff] %v572_v39  ;;  %v573_v41 = vadd.f32 %v567_v40, %v330_v38 }
 0x11b   : > { %v569_v42 = vpop.f32.mrf.mxu0 }
 0x11c   : > { %575 = vst [vmem:[#allocation2 + $0x8] sm:$0xff] %v573_v41 }
 0x11d   : > { %v570_v43 = vpop.f32.mrf.mxu0 }
 0x11e   : > { %v584_v44 = vlaneseq  ;;  %v582_v46 = vld [vmem:[%s1010_s2] sm:$0x3] }
 0x11f   : > { %v596_v47 = vld [vmem:[%s1011_s3] sm:$0x3] }
 0x120   : > { %v585_v45 = vshrl.u32 %v584_v44, 7 }
 0x121   : > { %v580_v50 = vld [vmem:[#allocation2] sm:$0xff] }
 0x122   : > { %v586_v48 = vsub.s32 0, %v585_v45  ;;  %v590_v49 = vsub.s32 1, %v585_v45 }
 0x123   : > { %v581_v51 = vld [vmem:[#allocation2 + $0x8] sm:$0xff] }
 0x124   : > { %v587_v52 = vrot.slane %v582_v46, %v586_v48  ;;  %v601_v53 = vrot.slane %v596_v47, %v586_v48  ;;  %v591_v54 = vrot.slane %v582_v46, %v590_v49  ;;  %v605_v55 = vrot.slane %v596_v47, %v590_v49 }
 0x126   : > { %v594_v56 = vmul.f32 %v587_v52, %v580_v50  ;;  %v595_v57 = vmul.f32 %v591_v54, %v581_v51 }
 0x128   : > { %v608_v58 = vadd.f32 %v601_v53, %v594_v56  ;;  %v609_v59 = vadd.f32 %v605_v55, %v595_v57 }
 0x12a   : > { %v610_v60 = vmax.f32 %v608_v58, 0.0  ;;  %v611_v61 = vmax.f32 %v609_v59, 0.0 }
 0x12c   : > { %612 = vst [vmem:[%s1012_s4] sm:$0xff] %v610_v60  ;;  %613 = vst [vmem:[%s1012_s4 + $0x8] sm:$0xff] %v611_v61 }
 0x12d PF: > { %s14_s17 = sadd.s32 1, %s892_s17   ;;  %s1013_s15 = smov %s888_s16 }
 0x12e   : > { %p11_p8 = scmp.ge.s32.totalorder %s14_s17, 11   ;;  %s1014_s16 = smov %s1016_s18 }
 0x130   :  { %13 = sbr.rel (!%p11_p8) target bundleno = 2 (0x2), region = 83 }

// kernel: _lambda_.37
= control target key start
LH: loop header
LB: loop body
LE: loop exit
PB: predicated region body
PF: predicated region fallthrough
CT: control target
= control target key end

     0   :  { %s1137_s15 = smov 0   ;;  %s1139_s16 = smov 0   ;;  %s1361_s0 = inlined_call_operand.vmem [shape: bf16[8,2304], index: 0, kind: input, shape index: {}]   ;;  %s1362_s1 = inlined_call_operand.vmem [shape: bf16[2304,512], index: 1, kind: input, shape index: {}]   ;;  %s1363_s2 = inlined_call_operand.vmem [shape: f32[1,512], index: 2, kind: input, shape index: {}]   ;;  %s1364_s3 = inlined_call_operand.vmem [shape: f32[1,512], index: 3, kind: input, shape index: {}]   ;;  %s1365_s4 = inlined_call_operand.vmem [shape: f32[8,512], index: 4, kind: output, shape index: {}]  }
   0x1   :  { %s1141_s17 = smov 0   ;;  %s1143_s18 = smov 0  }
   0x2   :  { %s1145_s19 = smov 0   ;;  %s1147_s20 = smov 0  }
   0x3   :  { %s1149_s21 = smov 0  }
   0x4 LB: > { %s26_s22 = sadd.s32 1, %s1101_s19  ;;  %s29_s23 = sadd.s32 1, %s1105_s20  ;;  %s1109_s21 = sphi %s1149_s21, %s14_s21   ;;  %s1105_s20 = sphi %s1147_s20, %s1371_s20   ;;  %s1101_s19 = sphi %s1145_s19, %s1370_s19   ;;  %s1097_s18 = sphi %s1143_s18, %s1369_s18   ;;  %s1093_s17 = sphi %s1141_s17, %s1368_s17   ;;  %s1089_s16 = sphi %s1139_s16, %s1367_s16   ;;  %s1085_s15 = sphi %s1137_s15, %s1366_s15  }
   0x5   : > { %p27_p0 = scmp.ge.s32.totalorder %s26_s22, 9  ;;  %p77_p1 = scmp.ne.s32.totalorder %s1089_s16, %s1085_s15 }
   0x6   : > { %p78_p2 = scmp.eq.s32.totalorder %s1109_s21, 0  ;;  %s70_s27 = sadd.s32 1, %s1089_s16 }
   0x7   : > { %s1373_s22 = smov (%p27_p0, %s26_s22), 0  ;;  %s1375_s23 = smov (!%p27_p0, %s29_s23), %s1105_s20 }
   0x8   : > { %p79_p3 = por %p78_p2, %p77_p1  ;;  %p31_p4 = scmp.ge.s32.totalorder %s1375_s23, 2 }
   0x9   : > { %s65_s24 = ssub.s32 %s1101_s19, %s1373_s22  ;;  %p895_p6 = scmp.ge.s32.totalorder %s1109_s21, 18 }
   0xa   : > { %s1377_s23 = smov (%p31_p4, %s1375_s23), 0 }
   0xb   : > { %s66_s25 = ssub.s32 %s1105_s20, %s1377_s23  ;;  %183 = sbr.rel (%p895_p6) target bundleno = 39 (0x27), region = 16 }
   0xc   : > { %s67_s26 = sor.u32 %s66_s25, %s65_s24 }
   0xd   : > { %p68_p5 = scmp.eq.s32.totalorder %s67_s26, 0 }
   0xf   : > { %s1188_s28 = scalar_select %p68_p5, %s1089_s16, %s70_s27  }
  0x10   : > { %199 = sbr.rel (!%p79_p3) target bundleno = 39 (0x27), region = 24  ;;  %s201_s29 = sand.u32 (%p79_p3), 1, %s1089_s16  }
  0x11   : > { %s898_s30 = sshll.u32 (%p79_p3), %s1105_s20, 1  ;;  %s896_s5 = sshll.u32 (%p79_p3), %s201_s29, 8 }
  0x12   : > { %s947_s6 = sshll.u32 (%p79_p3), %s1101_s19, 7  ;;  %s1202_s12 = scalar_lea.vmem (%p79_p3), [#allocation3], %s896_s5 }
  0x13   : > { %s207_s7 = sadd.s32 (%p79_p3), %s947_s6, %s898_s30 }
  0x14   : > { %s900_s8 = sshll.u32 (%p79_p3), %s207_s7, 2 }
  0x15   : > { %s1197_s11 = scalar_lea.vmem %s1362_s1, %s900_s8 }
  0x16   : > { %v300_v0 = vld [vmem:[%s1197_s11] sm:$0xff]  ;;  %v302_v1 = vld [vmem:[%s1197_s11 + $0x10] sm:$0xff] }
  0x17   : > { %v304_v2 = vld [vmem:[%s1197_s11 + $0x20] sm:$0xff]  ;;  %301 = vst [vmem:[%s1202_s12] sm:$0xff] %v300_v0  ;;  %303 = vst [vmem:[%s1202_s12 + $0x8] sm:$0xff] %v302_v1  ;;  %v306_v3 = vld [vmem:[%s1197_s11 + $0x30] sm:$0xff] }
  0x18   : > { %305 = vst [vmem:[%s1202_s12 + $0x10] sm:$0xff] %v304_v2  ;;  %v308_v4 = vld [vmem:[%s1197_s11 + $0x40] sm:$0xff]  ;;  %v310_v5 = vld [vmem:[%s1197_s11 + $0x50] sm:$0xff]  ;;  %307 = vst [vmem:[%s1202_s12 + $0x18] sm:$0xff] %v306_v3 }
  0x19   : > { %309 = vst [vmem:[%s1202_s12 + $0x20] sm:$0xff] %v308_v4  ;;  %311 = vst [vmem:[%s1202_s12 + $0x28] sm:$0xff] %v310_v5  ;;  %v312_v6 = vld [vmem:[%s1197_s11 + $0x60] sm:$0xff]  ;;  %v314_v7 = vld [vmem:[%s1197_s11 + $0x70] sm:$0xff] }
  0x1a   : > { %v316_v8 = vld [vmem:[%s1197_s11 + $0x80] sm:$0xff]  ;;  %313 = vst [vmem:[%s1202_s12 + $0x30] sm:$0xff] %v312_v6  ;;  %315 = vst [vmem:[%s1202_s12 + $0x38] sm:$0xff] %v314_v7  ;;  %v318_v9 = vld [vmem:[%s1197_s11 + $0x90] sm:$0xff] }
  0x1b   : > { %317 = vst [vmem:[%s1202_s12 + $0x40] sm:$0xff] %v316_v8  ;;  %v320_v10 = vld [vmem:[%s1197_s11 + $0xa0] sm:$0xff]  ;;  %v322_v11 = vld [vmem:[%s1197_s11 + $0xb0] sm:$0xff]  ;;  %319 = vst [vmem:[%s1202_s12 + $0x48] sm:$0xff] %v318_v9 }
  0x1c   : > { %321 = vst [vmem:[%s1202_s12 + $0x50] sm:$0xff] %v320_v10  ;;  %323 = vst [vmem:[%s1202_s12 + $0x58] sm:$0xff] %v322_v11  ;;  %v324_v12 = vld [vmem:[%s1197_s11 + $0xc0] sm:$0xff]  ;;  %v326_v13 = vld [vmem:[%s1197_s11 + $0xd0] sm:$0xff] }
  0x1d   : > { %v328_v14 = vld [vmem:[%s1197_s11 + $0xe0] sm:$0xff]  ;;  %325 = vst [vmem:[%s1202_s12 + $0x60] sm:$0xff] %v324_v12  ;;  %327 = vst [vmem:[%s1202_s12 + $0x68] sm:$0xff] %v326_v13  ;;  %v330_v15 = vld [vmem:[%s1197_s11 + $0xf0] sm:$0xff] }
  0x1e   : > { %329 = vst [vmem:[%s1202_s12 + $0x70] sm:$0xff] %v328_v14  ;;  %v332_v16 = vld [vmem:[%s1197_s11 + $0x100] sm:$0xff]  ;;  %v334_v17 = vld [vmem:[%s1197_s11 + $0x110] sm:$0xff]  ;;  %331 = vst [vmem:[%s1202_s12 + $0x78] sm:$0xff] %v330_v15 }
  0x1f   : > { %333 = vst [vmem:[%s1202_s12 + $0x80] sm:$0xff] %v332_v16  ;;  %335 = vst [vmem:[%s1202_s12 + $0x88] sm:$0xff] %v334_v17  ;;  %v336_v18 = vld [vmem:[%s1197_s11 + $0x120] sm:$0xff]  ;;  %v338_v19 = vld [vmem:[%s1197_s11 + $0x130] sm:$0xff] }
  0x20   : > { %v340_v20 = vld [vmem:[%s1197_s11 + $0x140] sm:$0xff]  ;;  %337 = vst [vmem:[%s1202_s12 + $0x90] sm:$0xff] %v336_v18  ;;  %339 = vst [vmem:[%s1202_s12 + $0x98] sm:$0xff] %v338_v19  ;;  %v342_v21 = vld [vmem:[%s1197_s11 + $0x150] sm:$0xff] }
  0x21   : > { %341 = vst [vmem:[%s1202_s12 + $0xa0] sm:$0xff] %v340_v20  ;;  %v344_v22 = vld [vmem:[%s1197_s11 + $0x160] sm:$0xff]  ;;  %v346_v23 = vld [vmem:[%s1197_s11 + $0x170] sm:$0xff]  ;;  %343 = vst [vmem:[%s1202_s12 + $0xa8] sm:$0xff] %v342_v21 }
  0x22   : > { %345 = vst [vmem:[%s1202_s12 + $0xb0] sm:$0xff] %v344_v22  ;;  %347 = vst [vmem:[%s1202_s12 + $0xb8] sm:$0xff] %v346_v23  ;;  %v348_v24 = vld [vmem:[%s1197_s11 + $0x180] sm:$0xff]  ;;  %v350_v25 = vld [vmem:[%s1197_s11 + $0x190] sm:$0xff] }
  0x23   : > { %v352_v26 = vld [vmem:[%s1197_s11 + $0x1a0] sm:$0xff]  ;;  %349 = vst [vmem:[%s1202_s12 + $0xc0] sm:$0xff] %v348_v24  ;;  %351 = vst [vmem:[%s1202_s12 + $0xc8] sm:$0xff] %v350_v25  ;;  %v354_v27 = vld [vmem:[%s1197_s11 + $0x1b0] sm:$0xff] }
  0x24   : > { %353 = vst [vmem:[%s1202_s12 + $0xd0] sm:$0xff] %v352_v26  ;;  %v356_v28 = vld [vmem:[%s1197_s11 + $0x1c0] sm:$0xff]  ;;  %v358_v29 = vld [vmem:[%s1197_s11 + $0x1d0] sm:$0xff]  ;;  %355 = vst [vmem:[%s1202_s12 + $0xd8] sm:$0xff] %v354_v27 }
  0x25   : > { %357 = vst [vmem:[%s1202_s12 + $0xe0] sm:$0xff] %v356_v28  ;;  %359 = vst [vmem:[%s1202_s12 + $0xe8] sm:$0xff] %v358_v29  ;;  %v360_v30 = vld [vmem:[%s1197_s11 + $0x1e0] sm:$0xff]  ;;  %v362_v31 = vld [vmem:[%s1197_s11 + $0x1f0] sm:$0xff] }
  0x26   : > { %361 = vst [vmem:[%s1202_s12 + $0xf0] sm:$0xff] %v360_v30  ;;  %363 = vst [vmem:[%s1202_s12 + $0xf8] sm:$0xff] %v362_v31 }
  0x27 PF: > { %p901_p7 = scmp.ge.s32.totalorder %s1109_s21, 1  ;;  %p384_p8 = scmp.lt.s32.totalorder %s1109_s21, 19 }
  0x29   : > { %p385_p9 = pnand %p901_p7, %p384_p8 }
  0x2a   : > { %s391_s13 = sand.u32 (!%p385_p9), 1, %s1085_s15   ;;  %s903_s14 = sshll.u32 (!%p385_p9), %s1093_s17, 1 }
  0x2b   : > { %388 = sbr.rel (%p385_p9) target bundleno = 337 (0x151), region = 70  ;;  %s902_s24 = sshll.u32 (!%p385_p9), %s391_s13, 8 }
  0x2c   : > { %p440_p10 = scmp.lt.s32.totalorder (!%p385_p9), %s903_s14, 17  ;;  %s905_s25 = sshll.u32 (!%p385_p9), %s1097_s18, 1 }
  0x2d   : > { %p450_p11 = scmp.lt.s32.totalorder (!%p385_p9), %s905_s25, 3  ;;  %s1291_s13 = scalar_lea.vmem (!%p385_p9), [#allocation3], %s902_s24 }
  0x2e   : > { %p909_p12 = scmp.ne.s32.totalorder (!%p385_p9), %s1093_s17, 0 }
  0x30   : > { %s1379_s14 = smov (!%p440_p10, %s903_s14), 17  ;;  %s1381_s25 = smov (!%p450_p11, %s905_s25), 3 }
  0x31   : > { %s904_s26 = sshll.u32 %s1379_s14, 2  ;;  %s452_s15 = scalar_lea.vmem %s1363_s2, %s1381_s25 }
  0x32   : > { %s1273_s30 = scalar_lea.vmem %s1361_s0, %s904_s26  ;;  %s457_s18 = scalar_lea.vmem %s1364_s3, %s1381_s25 }
  0x33   : > { %s908_s9 = sshll.u32 %s1381_s25, 3  ;;  %472 = sbr.rel (%p909_p12) target bundleno = 58 (0x3a), region = 78 }
  0x34   : > { %s1289_s12 = scalar_lea.vmem %s1365_s4, %s908_s9 }
  0x38   : > { %v1111_v32 = vmov 0.0  }
  0x39   : > { %473 = vst [vmem:[#allocation2] sm:$0xff] %v1111_v32  ;;  %474 = vst [vmem:[#allocation2 + $0x8] sm:$0xff] %v1111_v32 }
  0x3a PF: > { %v1005_v33 = vld [vmem:[%s1291_s13 + $0x74] ss:$8 sps:$4 sm:$0xff]   ;;  %v1007_v34 = vld [vmem:[%s1291_s13 + $0x70] ss:$8 sps:$4 sm:$0xff]   ;;  %v1008_v35 = vld [vmem:[%s1291_s13 + $0x64] ss:$8 sps:$4 sm:$0xff]  }
  0x3b   : > { %677 = vmatprep.subr.bf16.mxu0 %v1005_v33  ;;  %v1010_v36 = vld [vmem:[%s1291_s13 + $0x60] ss:$8 sps:$4 sm:$0xff]   ;;  %v1011_v37 = vld [vmem:[%s1291_s13 + $0x54] ss:$8 sps:$4 sm:$0xff]   ;;  %v1013_v38 = vld [vmem:[%s1291_s13 + $0x50] ss:$8 sps:$4 sm:$0xff]  }
  0x3c   : > { %678 = vmatpush1.bf16.msra.mxu0 %v1007_v34  ;;  %v1014_v39 = vld [vmem:[%s1291_s13 + $0x44] ss:$8 sps:$4 sm:$0xff]   ;;  %v1016_v40 = vld [vmem:[%s1291_s13 + $0x40] ss:$8 sps:$4 sm:$0xff]   ;;  %v1017_v41 = vld [vmem:[%s1291_s13 + $0x34] ss:$8 sps:$4 sm:$0xff]  }
  0x3d   : > { %679 = vmatprep.subr.bf16.mxu0 %v1008_v35  ;;  %v1019_v42 = vld [vmem:[%s1291_s13 + $0x30] ss:$8 sps:$4 sm:$0xff]   ;;  %v1020_v43 = vld [vmem:[%s1291_s13 + $0x24] ss:$8 sps:$4 sm:$0xff]   ;;  %v1022_v44 = vld [vmem:[%s1291_s13 + $0x20] ss:$8 sps:$4 sm:$0xff]  }
  0x3e   : > { %v1023_v45 = vld [vmem:[%s1291_s13 + $0x14] ss:$8 sps:$4 sm:$0xff]   ;;  %v1025_v48 = vld [vmem:[%s1291_s13 + $0x10] ss:$8 sps:$4 sm:$0xff]   ;;  %v1026_v49 = vld [vmem:[%s1291_s13 + $0x4] ss:$8 sps:$4 sm:$0xff]  }
  0x3f   : > { %v477_v46 = vld [vmem:[%s1273_s30] sm:$0xff]  ;;  %v1028_v50 = vld [vmem:[%s1291_s13] ss:$8 sps:$4 sm:$0xff]   ;;  %v1032_v53 = vld [vmem:[%s1291_s13 + $0xe4] ss:$8 sps:$4 sm:$0xff]   ;;  %p944_p13 = scmp.ne.s32.totalorder %s1093_s17, 8 }
  0x40   : > { %680 = vmatpush1.bf16.msra.mxu0 %v1010_v36  ;;  %v911_v47 = vcombine.high %v477_v46, %v477_v46  ;;  %v1029_v51 = vld [vmem:[%s1291_s13 + $0xf4] ss:$8 sps:$4 sm:$0xff]   ;;  %v1031_v52 = vld [vmem:[%s1291_s13 + $0xf0] ss:$8 sps:$4 sm:$0xff]   ;;  %v1034_v54 = vld [vmem:[%s1291_s13 + $0xe0] ss:$8 sps:$4 sm:$0xff]   ;;  %v910_v3 = vcombine.low %v477_v46, %v477_v46 }
  0x41   : > { %681 = vmatprep.subr.bf16.mxu0 %v1011_v37  ;;  %v1035_v55 = vld [vmem:[%s1291_s13 + $0xd4] ss:$8 sps:$4 sm:$0xff]   ;;  %v1037_v56 = vld [vmem:[%s1291_s13 + $0xd0] ss:$8 sps:$4 sm:$0xff]   ;;  %v1038_v57 = vld [vmem:[%s1291_s13 + $0xc4] ss:$8 sps:$4 sm:$0xff]  }
  0x42   : > { %709 = vmatprep.mubr.bf16.mxu0 %v911_v47  ;;  %v1040_v58 = vld [vmem:[%s1291_s13 + $0xc0] ss:$8 sps:$4 sm:$0xff]   ;;  %v1041_v59 = vld [vmem:[%s1291_s13 + $0xb4] ss:$8 sps:$4 sm:$0xff]   ;;  %v1043_v60 = vld [vmem:[%s1291_s13 + $0xb0] ss:$8 sps:$4 sm:$0xff]  }
  0x43   : > { %v1044_v61 = vld [vmem:[%s1291_s13 + $0xa4] ss:$8 sps:$4 sm:$0xff]   ;;  %v1046_v62 = vld [vmem:[%s1291_s13 + $0xa0] ss:$8 sps:$4 sm:$0xff]   ;;  %v1047_v63 = vld [vmem:[%s1291_s13 + $0x94] ss:$8 sps:$4 sm:$0xff]  }
  0x44   : > { %682 = vmatpush1.bf16.msra.mxu0 %v1013_v38  ;;  %v1049_v0 = vld [vmem:[%s1291_s13 + $0x90] ss:$8 sps:$4 sm:$0xff]   ;;  %v1050_v1 = vld [vmem:[%s1291_s13 + $0x84] ss:$8 sps:$4 sm:$0xff]   ;;  %v1052_v2 = vld [vmem:[%s1291_s13 + $0x80] ss:$8 sps:$4 sm:$0xff]  }
  0x45   : > { %683 = vmatprep.subr.bf16.mxu0 %v1014_v39  ;;  %v475_v4 = vld [vmem:[#allocation2] sm:$0xff]  ;;  %v476_v6 = vld [vmem:[#allocation2 + $0x8] sm:$0xff] }
  0x48   : > { %684 = vmatpush1.bf16.msra.mxu0 %v1016_v40 }
  0x49   : > { %685 = vmatprep.subr.bf16.mxu0 %v1017_v41 }
  0x4c   : > { %686 = vmatpush1.bf16.msra.mxu0 %v1019_v42 }
  0x4d   : > { %687 = vmatprep.subr.bf16.mxu0 %v1020_v43 }
  0x50   : > { %688 = vmatpush1.bf16.msra.mxu0 %v1022_v44 }
  0x51   : > { %689 = vmatprep.subr.bf16.mxu0 %v1023_v45 }
  0x54   : > { %690 = vmatpush1.bf16.msra.mxu0 %v1025_v48 }
  0x55   : > { %691 = vmatprep.subr.bf16.mxu0 %v1026_v49 }
  0x58   : > { %692 = vmatpush1.bf16.msra.mxu0 %v1028_v50 }
  0x59   : > { %693 = vmatprep.subr.bf16.mxu0 %v1029_v51 }
  0x5c   : > { %694 = vmatpush2.bf16.msra.mxu0 %v1031_v52 }
  0x5d   : > { %695 = vmatprep.subr.bf16.mxu0 %v1032_v53 }
  0x60   : > { %696 = vmatpush2.bf16.msra.mxu0 %v1034_v54 }
  0x61   : > { %697 = vmatprep.subr.bf16.mxu0 %v1035_v55 }
  0x64   : > { %698 = vmatpush2.bf16.msra.mxu0 %v1037_v56 }
  0x65   : > { %699 = vmatprep.subr.bf16.mxu0 %v1038_v57 }
  0x68   : > { %700 = vmatpush2.bf16.msra.mxu0 %v1040_v58 }
  0x69   : > { %701 = vmatprep.subr.bf16.mxu0 %v1041_v59 }
  0x6c   : > { %702 = vmatpush2.bf16.msra.mxu0 %v1043_v60 }
  0x6d   : > { %703 = vmatprep.subr.bf16.mxu0 %v1044_v61 }
  0x70   : > { %704 = vmatpush2.bf16.msra.mxu0 %v1046_v62 }
  0x71   : > { %705 = vmatprep.subr.bf16.mxu0 %v1047_v63 }
  0x74   : > { %706 = vmatpush2.bf16.msra.mxu0 %v1049_v0 }
  0x75   : > { %707 = vmatprep.subr.bf16.mxu0 %v1050_v1 }
  0x78   : > { %708 = vmatpush2.bf16.msra.mxu0 %v1052_v2 }
  0x7b   : > { %710 = vmatmul.mubr.bf16.vlgmr.msra.gmra.mxu0 %v910_v3 }
 0x13b   : > { %v711_v5 = vpop.f32.mrf.mxu0 }
 0x13c   : > { %v718_v7 = vadd.f32 %v711_v5, %v475_v4 }
 0x13d   : > { %v713_v8 = vpop.f32.mrf.mxu0  ;;  %725 = sbr.rel (%p944_p13) target bundleno = 337 (0x151), region = 82 }
 0x13e   : > { %720 = vst [vmem:[#allocation2] sm:$0xff] %v718_v7  ;;  %v719_v9 = vadd.f32 %v713_v8, %v476_v6 }
 0x13f   : > { %v715_v10 = vpop.f32.mrf.mxu0 }
 0x140   : > { %721 = vst [vmem:[#allocation2 + $0x8] sm:$0xff] %v719_v9 }
 0x141   : > { %v716_v11 = vpop.f32.mrf.mxu0 }
 0x142   : > { %v730_v12 = vlaneseq  ;;  %v728_v14 = vld [vmem:[%s452_s15] sm:$0x3] }
 0x143   : > { %v742_v15 = vld [vmem:[%s457_s18] sm:$0x3] }
 0x144   : > { %v731_v13 = vshrl.u32 %v730_v12, 7 }
 0x145   : > { %v726_v18 = vld [vmem:[#allocation2] sm:$0xff] }
 0x146   : > { %v732_v16 = vsub.s32 0, %v731_v13  ;;  %v736_v17 = vsub.s32 1, %v731_v13 }
 0x147   : > { %v727_v19 = vld [vmem:[#allocation2 + $0x8] sm:$0xff] }
 0x148   : > { %v733_v20 = vrot.slane %v728_v14, %v732_v16  ;;  %v747_v21 = vrot.slane %v742_v15, %v732_v16  ;;  %v737_v22 = vrot.slane %v728_v14, %v736_v17  ;;  %v751_v23 = vrot.slane %v742_v15, %v736_v17 }
 0x14a   : > { %v740_v24 = vmul.f32 %v733_v20, %v726_v18  ;;  %v741_v25 = vmul.f32 %v737_v22, %v727_v19 }
 0x14c   : > { %v754_v26 = vadd.f32 %v747_v21, %v740_v24  ;;  %v755_v27 = vadd.f32 %v751_v23, %v741_v25 }
 0x14e   : > { %v756_v28 = vmax.f32 %v754_v26, 0.0  ;;  %v757_v29 = vmax.f32 %v755_v27, 0.0 }
 0x150   : > { %758 = vst [vmem:[%s1289_s12] sm:$0xff] %v756_v28  ;;  %759 = vst [vmem:[%s1289_s12 + $0x8] sm:$0xff] %v757_v29 }
 0x151 PF: > { %s14_s21 = sadd.s32 1, %s1109_s21   ;;  %s1366_s15 = smov %s1089_s16 }
 0x152   : > { %p11_p0 = scmp.ge.s32.totalorder %s14_s21, 20   ;;  %s1367_s16 = smov %s1188_s28 }
 0x153   : > { %s1368_s17 = smov %s1101_s19  ;;  %s1369_s18 = smov %s1105_s20 }
 0x154   : > { %s1370_s19 = smov %s1373_s22  ;;  %s1371_s20 = smov %s1377_s23 }
 0x155   :  { %13 = sbr.rel (!%p11_p0) target bundleno = 4 (0x4), region = 126 }

// kernel: _lambda_.38
= control target key start
LH: loop header
LB: loop body
LE: loop exit
PB: predicated region body
PF: predicated region fallthrough
CT: control target
= control target key end

     0   :  { %s1095_s15 = smov 0   ;;  %s1097_s16 = smov 0   ;;  %s1277_s0 = inlined_call_operand.vmem [shape: bf16[8,256], index: 0, kind: input, shape index: {}]   ;;  %s1278_s1 = inlined_call_operand.vmem [shape: bf16[256,512], index: 1, kind: input, shape index: {}]   ;;  %s1279_s2 = inlined_call_operand.vmem [shape: f32[1,512], index: 2, kind: input, shape index: {}]   ;;  %s1280_s3 = inlined_call_operand.vmem [shape: f32[1,512], index: 3, kind: input, shape index: {}]   ;;  %s1281_s4 = inlined_call_operand.vmem [shape: f32[8,512], index: 4, kind: output, shape index: {}]  }
   0x1   :  { %s1099_s17 = smov 0   ;;  %s1101_s18 = smov 0  }
   0x2   :  { %s1103_s19 = smov 0  }
   0x3 LB: > { %s29_s20 = sadd.s32 1, %s1064_s18  ;;  %p77_p1 = scmp.ne.s32.totalorder %s1056_s16, %s1052_s15  ;;  %s1068_s19 = sphi %s1103_s19, %s14_s19   ;;  %s1064_s18 = sphi %s1101_s18, %s1285_s18   ;;  %s1060_s17 = sphi %s1099_s17, %s1284_s17   ;;  %s1056_s16 = sphi %s1097_s16, %s1283_s16   ;;  %s1052_s15 = sphi %s1095_s15, %s1282_s15  }
   0x4   : > { %p31_p0 = scmp.ge.s32.totalorder %s29_s20, 2  ;;  %p78_p2 = scmp.eq.s32.totalorder %s1068_s19, 0 }
   0x5   : > { %s70_s22 = sadd.s32 1, %s1056_s16  ;;  %p893_p5 = scmp.ge.s32.totalorder %s1068_s19, 2 }
   0x6   : > { %s1287_s20 = smov (%p31_p0, %s29_s20), 0  ;;  %p79_p3 = por %p78_p2, %p77_p1 }
   0x7   : > { %s66_s21 = ssub.s32 %s1064_s18, %s1287_s20  ;;  %196 = sbr.rel (%p893_p5) target bundleno = 32 (0x20), region = 20 }
   0x8   : > { %p68_p4 = scmp.eq.s32.totalorder %s66_s21, 0 }
   0xa   : > { %s1130_s23 = scalar_select %p68_p4, %s1056_s16, %s70_s22  }
   0xc   : > { %199 = sbr.rel (!%p79_p3) target bundleno = 32 (0x20), region = 24  ;;  %s201_s24 = sand.u32 (%p79_p3), 1, %s1056_s16  }
   0xd   : > { %s939_s25 = sshll.u32 (%p79_p3), %s1064_s18, 3  ;;  %s894_s26 = sshll.u32 (%p79_p3), %s201_s24, 8 }
   0xe   : > { %s1138_s29 = scalar_lea.vmem (%p79_p3), %s1278_s1, %s939_s25  ;;  %s1143_s30 = scalar_lea.vmem (%p79_p3), [#allocation3], %s894_s26 }
   0xf   : > { %v300_v0 = vld [vmem:[%s1138_s29] sm:$0xff] (%p79_p3)  ;;  %v302_v1 = vld [vmem:[%s1138_s29 + $0x10] sm:$0xff] (%p79_p3) }
  0x10   : > { %v304_v2 = vld [vmem:[%s1138_s29 + $0x20] sm:$0xff] (%p79_p3)  ;;  %301 = vst [vmem:[%s1143_s30] sm:$0xff] (%p79_p3), %v300_v0  ;;  %303 = vst [vmem:[%s1143_s30 + $0x8] sm:$0xff] (%p79_p3), %v302_v1  ;;  %v306_v3 = vld [vmem:[%s1138_s29 + $0x30] sm:$0xff] (%p79_p3) }
  0x11   : > { %305 = vst [vmem:[%s1143_s30 + $0x10] sm:$0xff] %v304_v2  ;;  %v308_v4 = vld [vmem:[%s1138_s29 + $0x40] sm:$0xff]  ;;  %v310_v5 = vld [vmem:[%s1138_s29 + $0x50] sm:$0xff]  ;;  %307 = vst [vmem:[%s1143_s30 + $0x18] sm:$0xff] %v306_v3 }
  0x12   : > { %309 = vst [vmem:[%s1143_s30 + $0x20] sm:$0xff] %v308_v4  ;;  %311 = vst [vmem:[%s1143_s30 + $0x28] sm:$0xff] %v310_v5  ;;  %v312_v6 = vld [vmem:[%s1138_s29 + $0x60] sm:$0xff]  ;;  %v314_v7 = vld [vmem:[%s1138_s29 + $0x70] sm:$0xff] }
  0x13   : > { %v316_v8 = vld [vmem:[%s1138_s29 + $0x80] sm:$0xff]  ;;  %313 = vst [vmem:[%s1143_s30 + $0x30] sm:$0xff] %v312_v6  ;;  %315 = vst [vmem:[%s1143_s30 + $0x38] sm:$0xff] %v314_v7  ;;  %v318_v9 = vld [vmem:[%s1138_s29 + $0x90] sm:$0xff] }
  0x14   : > { %317 = vst [vmem:[%s1143_s30 + $0x40] sm:$0xff] %v316_v8  ;;  %v320_v10 = vld [vmem:[%s1138_s29 + $0xa0] sm:$0xff]  ;;  %v322_v11 = vld [vmem:[%s1138_s29 + $0xb0] sm:$0xff]  ;;  %319 = vst [vmem:[%s1143_s30 + $0x48] sm:$0xff] %v318_v9 }
  0x15   : > { %321 = vst [vmem:[%s1143_s30 + $0x50] sm:$0xff] %v320_v10  ;;  %323 = vst [vmem:[%s1143_s30 + $0x58] sm:$0xff] %v322_v11  ;;  %v324_v12 = vld [vmem:[%s1138_s29 + $0xc0] sm:$0xff]  ;;  %v326_v13 = vld [vmem:[%s1138_s29 + $0xd0] sm:$0xff] }
  0x16   : > { %v328_v14 = vld [vmem:[%s1138_s29 + $0xe0] sm:$0xff]  ;;  %325 = vst [vmem:[%s1143_s30 + $0x60] sm:$0xff] %v324_v12  ;;  %327 = vst [vmem:[%s1143_s30 + $0x68] sm:$0xff] %v326_v13  ;;  %v330_v15 = vld [vmem:[%s1138_s29 + $0xf0] sm:$0xff] }
  0x17   : > { %329 = vst [vmem:[%s1143_s30 + $0x70] sm:$0xff] %v328_v14  ;;  %v332_v16 = vld [vmem:[%s1138_s29 + $0x100] sm:$0xff]  ;;  %v334_v17 = vld [vmem:[%s1138_s29 + $0x110] sm:$0xff]  ;;  %331 = vst [vmem:[%s1143_s30 + $0x78] sm:$0xff] %v330_v15 }
  0x18   : > { %333 = vst [vmem:[%s1143_s30 + $0x80] sm:$0xff] %v332_v16  ;;  %335 = vst [vmem:[%s1143_s30 + $0x88] sm:$0xff] %v334_v17  ;;  %v336_v18 = vld [vmem:[%s1138_s29 + $0x120] sm:$0xff]  ;;  %v338_v19 = vld [vmem:[%s1138_s29 + $0x130] sm:$0xff] }
  0x19   : > { %v340_v20 = vld [vmem:[%s1138_s29 + $0x140] sm:$0xff]  ;;  %337 = vst [vmem:[%s1143_s30 + $0x90] sm:$0xff] %v336_v18  ;;  %339 = vst [vmem:[%s1143_s30 + $0x98] sm:$0xff] %v338_v19  ;;  %v342_v21 = vld [vmem:[%s1138_s29 + $0x150] sm:$0xff] }
  0x1a   : > { %341 = vst [vmem:[%s1143_s30 + $0xa0] sm:$0xff] %v340_v20  ;;  %v344_v22 = vld [vmem:[%s1138_s29 + $0x160] sm:$0xff]  ;;  %v346_v23 = vld [vmem:[%s1138_s29 + $0x170] sm:$0xff]  ;;  %343 = vst [vmem:[%s1143_s30 + $0xa8] sm:$0xff] %v342_v21 }
  0x1b   : > { %345 = vst [vmem:[%s1143_s30 + $0xb0] sm:$0xff] %v344_v22  ;;  %347 = vst [vmem:[%s1143_s30 + $0xb8] sm:$0xff] %v346_v23  ;;  %v348_v24 = vld [vmem:[%s1138_s29 + $0x180] sm:$0xff]  ;;  %v350_v25 = vld [vmem:[%s1138_s29 + $0x190] sm:$0xff] }
  0x1c   : > { %v352_v26 = vld [vmem:[%s1138_s29 + $0x1a0] sm:$0xff]  ;;  %349 = vst [vmem:[%s1143_s30 + $0xc0] sm:$0xff] %v348_v24  ;;  %351 = vst [vmem:[%s1143_s30 + $0xc8] sm:$0xff] %v350_v25  ;;  %v354_v27 = vld [vmem:[%s1138_s29 + $0x1b0] sm:$0xff] }
  0x1d   : > { %353 = vst [vmem:[%s1143_s30 + $0xd0] sm:$0xff] %v352_v26  ;;  %v356_v28 = vld [vmem:[%s1138_s29 + $0x1c0] sm:$0xff]  ;;  %v358_v29 = vld [vmem:[%s1138_s29 + $0x1d0] sm:$0xff]  ;;  %355 = vst [vmem:[%s1143_s30 + $0xd8] sm:$0xff] %v354_v27 }
  0x1e   : > { %357 = vst [vmem:[%s1143_s30 + $0xe0] sm:$0xff] %v356_v28  ;;  %359 = vst [vmem:[%s1143_s30 + $0xe8] sm:$0xff] %v358_v29  ;;  %v360_v30 = vld [vmem:[%s1138_s29 + $0x1e0] sm:$0xff]  ;;  %v362_v31 = vld [vmem:[%s1138_s29 + $0x1f0] sm:$0xff] }
  0x1f   : > { %361 = vst [vmem:[%s1143_s30 + $0xf0] sm:$0xff] %v360_v30  ;;  %363 = vst [vmem:[%s1143_s30 + $0xf8] sm:$0xff] %v362_v31 }
  0x20 PF: > { %p897_p6 = scmp.ge.s32.totalorder %s1068_s19, 1  ;;  %p384_p7 = scmp.lt.s32.totalorder %s1068_s19, 3 }
  0x22   : > { %p385_p8 = pnand %p897_p6, %p384_p7 }
  0x23   : > { %s391_s5 = sand.u32 (!%p385_p8), 1, %s1052_s15   ;;  %s899_s10 = sshll.u32 (!%p385_p8), %s1060_s17, 1 }
  0x24   : > { %388 = sbr.rel (%p385_p8) target bundleno = 306 (0x132), region = 70  ;;  %s898_s8 = sshll.u32 (!%p385_p8), %s391_s5, 8 }
  0x25   : > { %s1216_s9 = scalar_lea.vmem (!%p385_p8), [#allocation3], %s898_s8  ;;  %p450_p9 = scmp.lt.s32.totalorder (!%p385_p8), %s899_s10, 3 }
  0x29   : > { %v1212_v32 = vld [vmem:[%s1277_s0] sm:$0xff]  ;;  %v980_v34 = vld [vmem:[%s1216_s9 + $0x74] ss:$8 sps:$4 sm:$0xff]   ;;  %v982_v35 = vld [vmem:[%s1216_s9 + $0x70] ss:$8 sps:$4 sm:$0xff]   ;;  %v729_v3 = vlaneseq  ;;  %s1289_s10 = smov (!%p450_p9, %s899_s10), 3 }
  0x2a   : > { %v904_v33 = vcombine.high %v1212_v32, %v1212_v32  ;;  %677 = vmatprep.subr.bf16.mxu0 %v980_v34  ;;  %v983_v36 = vld [vmem:[%s1216_s9 + $0x64] ss:$8 sps:$4 sm:$0xff]   ;;  %v985_v37 = vld [vmem:[%s1216_s9 + $0x60] ss:$8 sps:$4 sm:$0xff]   ;;  %v986_v38 = vld [vmem:[%s1216_s9 + $0x54] ss:$8 sps:$4 sm:$0xff]   ;;  %v903_v2 = vcombine.low %v1212_v32, %v1212_v32  ;;  %s452_s13 = scalar_lea.vmem %s1279_s2, %s1289_s10  ;;  %s457_s21 = scalar_lea.vmem %s1280_s3, %s1289_s10 }
  0x2b   : > { %678 = vmatpush1.bf16.msra.mxu0 %v982_v35  ;;  %v988_v39 = vld [vmem:[%s1216_s9 + $0x50] ss:$8 sps:$4 sm:$0xff]   ;;  %v989_v40 = vld [vmem:[%s1216_s9 + $0x44] ss:$8 sps:$4 sm:$0xff]   ;;  %v991_v41 = vld [vmem:[%s1216_s9 + $0x40] ss:$8 sps:$4 sm:$0xff]  }
  0x2c   : > { %709 = vmatprep.mubr.bf16.mxu0 %v904_v33  ;;  %679 = vmatprep.subr.bf16.mxu0 %v983_v36  ;;  %v992_v42 = vld [vmem:[%s1216_s9 + $0x34] ss:$8 sps:$4 sm:$0xff]   ;;  %v994_v43 = vld [vmem:[%s1216_s9 + $0x30] ss:$8 sps:$4 sm:$0xff]   ;;  %v995_v44 = vld [vmem:[%s1216_s9 + $0x24] ss:$8 sps:$4 sm:$0xff]  }
  0x2d   : > { %v997_v45 = vld [vmem:[%s1216_s9 + $0x20] ss:$8 sps:$4 sm:$0xff]   ;;  %v998_v46 = vld [vmem:[%s1216_s9 + $0x14] ss:$8 sps:$4 sm:$0xff]   ;;  %v1000_v47 = vld [vmem:[%s1216_s9 + $0x10] ss:$8 sps:$4 sm:$0xff]  }
  0x2e   : > { %v1001_v48 = vld [vmem:[%s1216_s9 + $0x4] ss:$8 sps:$4 sm:$0xff]   ;;  %v1003_v49 = vld [vmem:[%s1216_s9] ss:$8 sps:$4 sm:$0xff]   ;;  %v1004_v50 = vld [vmem:[%s1216_s9 + $0xf4] ss:$8 sps:$4 sm:$0xff]  }
  0x2f   : > { %680 = vmatpush1.bf16.msra.mxu0 %v985_v37  ;;  %v1006_v51 = vld [vmem:[%s1216_s9 + $0xf0] ss:$8 sps:$4 sm:$0xff]   ;;  %v1007_v52 = vld [vmem:[%s1216_s9 + $0xe4] ss:$8 sps:$4 sm:$0xff]   ;;  %v1009_v53 = vld [vmem:[%s1216_s9 + $0xe0] ss:$8 sps:$4 sm:$0xff]  }
  0x30   : > { %681 = vmatprep.subr.bf16.mxu0 %v986_v38  ;;  %v1010_v54 = vld [vmem:[%s1216_s9 + $0xd4] ss:$8 sps:$4 sm:$0xff]   ;;  %v1012_v55 = vld [vmem:[%s1216_s9 + $0xd0] ss:$8 sps:$4 sm:$0xff]   ;;  %v1013_v56 = vld [vmem:[%s1216_s9 + $0xc4] ss:$8 sps:$4 sm:$0xff]  }
  0x31   : > { %v1015_v57 = vld [vmem:[%s1216_s9 + $0xc0] ss:$8 sps:$4 sm:$0xff]   ;;  %v1016_v58 = vld [vmem:[%s1216_s9 + $0xb4] ss:$8 sps:$4 sm:$0xff]   ;;  %v1018_v59 = vld [vmem:[%s1216_s9 + $0xb0] ss:$8 sps:$4 sm:$0xff]  }
  0x32   : > { %v1019_v60 = vld [vmem:[%s1216_s9 + $0xa4] ss:$8 sps:$4 sm:$0xff]   ;;  %v1021_v61 = vld [vmem:[%s1216_s9 + $0xa0] ss:$8 sps:$4 sm:$0xff]   ;;  %v1022_v62 = vld [vmem:[%s1216_s9 + $0x94] ss:$8 sps:$4 sm:$0xff]  }
  0x33   : > { %682 = vmatpush1.bf16.msra.mxu0 %v988_v39  ;;  %v1024_v63 = vld [vmem:[%s1216_s9 + $0x90] ss:$8 sps:$4 sm:$0xff]   ;;  %v1025_v0 = vld [vmem:[%s1216_s9 + $0x84] ss:$8 sps:$4 sm:$0xff]   ;;  %v1027_v1 = vld [vmem:[%s1216_s9 + $0x80] ss:$8 sps:$4 sm:$0xff]  }
  0x34   : > { %683 = vmatprep.subr.bf16.mxu0 %v989_v40  ;;  %v730_v4 = vshrl.u32 %v729_v3, 7  ;;  %v727_v6 = vld [vmem:[%s452_s13] sm:$0x3]  ;;  %s902_s22 = sshll.u32 %s1289_s10, 3 }
  0x35   : > { %v741_v8 = vld [vmem:[%s457_s21] sm:$0x3]  ;;  %s467_s25 = scalar_lea.vmem %s1281_s4, %s902_s22 }
  0x36   : > { %v731_v5 = vsub.s32 0, %v730_v4  ;;  %v735_v7 = vsub.s32 1, %v730_v4 }
  0x37   : > { %684 = vmatpush1.bf16.msra.mxu0 %v991_v41 }
  0x38   : > { %685 = vmatprep.subr.bf16.mxu0 %v992_v42  ;;  %v732_v9 = vrot.slane %v727_v6, %v731_v5  ;;  %v746_v10 = vrot.slane %v741_v8, %v731_v5  ;;  %v736_v11 = vrot.slane %v727_v6, %v735_v7  ;;  %v750_v14 = vrot.slane %v741_v8, %v735_v7 }
  0x3b   : > { %686 = vmatpush1.bf16.msra.mxu0 %v994_v43 }
  0x3c   : > { %687 = vmatprep.subr.bf16.mxu0 %v995_v44 }
  0x3f   : > { %688 = vmatpush1.bf16.msra.mxu0 %v997_v45 }
  0x40   : > { %689 = vmatprep.subr.bf16.mxu0 %v998_v46 }
  0x43   : > { %690 = vmatpush1.bf16.msra.mxu0 %v1000_v47 }
  0x44   : > { %691 = vmatprep.subr.bf16.mxu0 %v1001_v48 }
  0x47   : > { %692 = vmatpush1.bf16.msra.mxu0 %v1003_v49 }
  0x48   : > { %693 = vmatprep.subr.bf16.mxu0 %v1004_v50 }
  0x4b   : > { %694 = vmatpush2.bf16.msra.mxu0 %v1006_v51 }
  0x4c   : > { %695 = vmatprep.subr.bf16.mxu0 %v1007_v52 }
  0x4f   : > { %696 = vmatpush2.bf16.msra.mxu0 %v1009_v53 }
  0x50   : > { %697 = vmatprep.subr.bf16.mxu0 %v1010_v54 }
  0x53   : > { %698 = vmatpush2.bf16.msra.mxu0 %v1012_v55 }
  0x54   : > { %699 = vmatprep.subr.bf16.mxu0 %v1013_v56 }
  0x57   : > { %700 = vmatpush2.bf16.msra.mxu0 %v1015_v57 }
  0x58   : > { %701 = vmatprep.subr.bf16.mxu0 %v1016_v58 }
  0x5b   : > { %702 = vmatpush2.bf16.msra.mxu0 %v1018_v59 }
  0x5c   : > { %703 = vmatprep.subr.bf16.mxu0 %v1019_v60 }
  0x5f   : > { %704 = vmatpush2.bf16.msra.mxu0 %v1021_v61 }
  0x60   : > { %705 = vmatprep.subr.bf16.mxu0 %v1022_v62 }
  0x63   : > { %706 = vmatpush2.bf16.msra.mxu0 %v1024_v63 }
  0x64   : > { %707 = vmatprep.subr.bf16.mxu0 %v1025_v0 }
  0x67   : > { %708 = vmatpush2.bf16.msra.mxu0 %v1027_v1 }
  0x6a   : > { %710 = vmatmul.mubr.bf16.vlgmr.msra.gmra.mxu0 %v903_v2 }
 0x12a   : > { %v711_v12 = vpop.f32.mrf.mxu0 }
 0x12b   : > { %v739_v13 = vmul.f32 %v732_v9, %v711_v12 }
 0x12c   : > { %v713_v15 = vpop.f32.mrf.mxu0 }
 0x12d   : > { %v753_v16 = vadd.f32 %v746_v10, %v739_v13  ;;  %v740_v17 = vmul.f32 %v736_v11, %v713_v15 }
 0x12e   : > { %v715_v18 = vpop.f32.mrf.mxu0 }
 0x12f   : > { %755 = vst [vmem:[%s467_s25] sm:$0xff] %v753_v16  ;;  %v754_v19 = vadd.f32 %v750_v14, %v740_v17 }
 0x130   : > { %v716_v20 = vpop.f32.mrf.mxu0 }
 0x131   : > { %756 = vst [vmem:[%s467_s25 + $0x8] sm:$0xff] %v754_v19 }
 0x132 PF: > { %s14_s19 = sadd.s32 1, %s1068_s19   ;;  %s1282_s15 = smov %s1056_s16 }
 0x133   : > { %p11_p10 = scmp.ge.s32.totalorder %s14_s19, 4   ;;  %s1283_s16 = smov %s1130_s23 }
 0x134   : > { %s1284_s17 = smov %s1064_s18  ;;  %s1285_s18 = smov %s1287_s20 }
 0x135   :  { %13 = sbr.rel (!%p11_p10) target bundleno = 3 (0x3), region = 126 }

// kernel: _lambda_.39
= control target key start
LH: loop header
LB: loop body
LE: loop exit
PB: predicated region body
PF: predicated region fallthrough
CT: control target
= control target key end

     0   :  { %s1682_s18 = smov 0   ;;  %s1684_s19 = smov 0   ;;  %s2010_s0 = inlined_call_operand.vmem [shape: bf16[8,4608], index: 0, kind: input, shape index: {}]   ;;  %s2011_s1 = inlined_call_operand.vmem [shape: bf16[4608,512], index: 1, kind: input, shape index: {}]   ;;  %s2012_s2 = inlined_call_operand.vmem [shape: f32[1,512], index: 2, kind: input, shape index: {}]   ;;  %s2013_s3 = inlined_call_operand.vmem [shape: f32[1,512], index: 3, kind: input, shape index: {}]   ;;  %s2014_s4 = inlined_call_operand.vmem [shape: f32[8,512], index: 4, kind: input, shape index: {}]   ;;  %s2015_s5 = inlined_call_operand.vmem [shape: f32[8,512], index: 5, kind: output, shape index: {}]  }
   0x1   :  { %s1686_s20 = smov 0   ;;  %s1688_s21 = smov 0  }
   0x2   :  { %s1690_s22 = smov 0   ;;  %s1692_s23 = smov 0  }
   0x3   :  { %s1694_s24 = smov 0  }
   0x4 LB: > { %s27_s25 = sadd.s32 1, %s1641_s22  ;;  %s30_s26 = sadd.s32 1, %s1645_s23  ;;  %s1649_s24 = sphi %s1694_s24, %s15_s24   ;;  %s1645_s23 = sphi %s1692_s23, %s2021_s23   ;;  %s1641_s22 = sphi %s1690_s22, %s2020_s22   ;;  %s1637_s21 = sphi %s1688_s21, %s2019_s21   ;;  %s1633_s20 = sphi %s1686_s20, %s2018_s20   ;;  %s1629_s19 = sphi %s1684_s19, %s2017_s19   ;;  %s1625_s18 = sphi %s1682_s18, %s2016_s18  }
   0x5   : > { %p28_p0 = scmp.ge.s32.totalorder %s27_s25, 9  ;;  %p78_p1 = scmp.ne.s32.totalorder %s1629_s19, %s1625_s18 }
   0x6   : > { %p79_p2 = scmp.eq.s32.totalorder %s1649_s24, 0  ;;  %s71_s30 = sadd.s32 1, %s1629_s19 }
   0x7   : > { %s2023_s25 = smov (%p28_p0, %s27_s25), 0  ;;  %s2025_s26 = smov (!%p28_p0, %s30_s26), %s1645_s23 }
   0x8   : > { %p80_p3 = por %p79_p2, %p78_p1  ;;  %p32_p4 = scmp.ge.s32.totalorder %s2025_s26, 2 }
   0x9   : > { %s66_s27 = ssub.s32 %s1641_s22, %s2023_s25  ;;  %p1349_p6 = scmp.ge.s32.totalorder %s1649_s24, 18 }
   0xa   : > { %s2027_s26 = smov (%p32_p4, %s2025_s26), 0 }
   0xb   : > { %s67_s28 = ssub.s32 %s1645_s23, %s2027_s26  ;;  %212 = sbr.rel (%p1349_p6) target bundleno = 55 (0x37), region = 16 }
   0xc   : > { %s68_s29 = sor.u32 %s67_s28, %s66_s27 }
   0xd   : > { %p69_p5 = scmp.eq.s32.totalorder %s68_s29, 0 }
   0xf   : > { %s1733_s6 = scalar_select %p69_p5, %s1629_s19, %s71_s30  }
  0x10   : > { %228 = sbr.rel (!%p80_p3) target bundleno = 55 (0x37), region = 24  ;;  %s230_s7 = sand.u32 (%p80_p3), 1, %s1629_s19  }
  0x11   : > { %s1352_s8 = sshll.u32 (%p80_p3), %s1645_s23, 1  ;;  %s1350_s9 = sshll.u32 (%p80_p3), %s230_s7, 9 }
  0x12   : > { %s1437_s10 = sshll.u32 (%p80_p3), %s1641_s22, 8  ;;  %s1747_s16 = scalar_lea.vmem (%p80_p3), [#allocation3], %s1350_s9 }
  0x13   : > { %s236_s11 = sadd.s32 (%p80_p3), %s1437_s10, %s1352_s8 }
  0x14   : > { %s1354_s12 = sshll.u32 (%p80_p3), %s236_s11, 2 }
  0x15   : > { %s1742_s15 = scalar_lea.vmem %s2011_s1, %s1354_s12 }
  0x16   : > { %v393_v0 = vld [vmem:[%s1742_s15] sm:$0xff]  ;;  %v395_v1 = vld [vmem:[%s1742_s15 + $0x10] sm:$0xff] }
  0x17   : > { %v397_v2 = vld [vmem:[%s1742_s15 + $0x20] sm:$0xff]  ;;  %394 = vst [vmem:[%s1747_s16] sm:$0xff] %v393_v0  ;;  %396 = vst [vmem:[%s1747_s16 + $0x8] sm:$0xff] %v395_v1  ;;  %v399_v3 = vld [vmem:[%s1742_s15 + $0x30] sm:$0xff] }
  0x18   : > { %398 = vst [vmem:[%s1747_s16 + $0x10] sm:$0xff] %v397_v2  ;;  %v401_v4 = vld [vmem:[%s1742_s15 + $0x40] sm:$0xff]  ;;  %v403_v5 = vld [vmem:[%s1742_s15 + $0x50] sm:$0xff]  ;;  %400 = vst [vmem:[%s1747_s16 + $0x18] sm:$0xff] %v399_v3 }
  0x19   : > { %402 = vst [vmem:[%s1747_s16 + $0x20] sm:$0xff] %v401_v4  ;;  %404 = vst [vmem:[%s1747_s16 + $0x28] sm:$0xff] %v403_v5  ;;  %v405_v6 = vld [vmem:[%s1742_s15 + $0x60] sm:$0xff]  ;;  %v407_v7 = vld [vmem:[%s1742_s15 + $0x70] sm:$0xff] }
  0x1a   : > { %v409_v8 = vld [vmem:[%s1742_s15 + $0x80] sm:$0xff]  ;;  %406 = vst [vmem:[%s1747_s16 + $0x30] sm:$0xff] %v405_v6  ;;  %408 = vst [vmem:[%s1747_s16 + $0x38] sm:$0xff] %v407_v7  ;;  %v411_v9 = vld [vmem:[%s1742_s15 + $0x90] sm:$0xff] }
  0x1b   : > { %410 = vst [vmem:[%s1747_s16 + $0x40] sm:$0xff] %v409_v8  ;;  %v413_v10 = vld [vmem:[%s1742_s15 + $0xa0] sm:$0xff]  ;;  %v415_v11 = vld [vmem:[%s1742_s15 + $0xb0] sm:$0xff]  ;;  %412 = vst [vmem:[%s1747_s16 + $0x48] sm:$0xff] %v411_v9 }
  0x1c   : > { %414 = vst [vmem:[%s1747_s16 + $0x50] sm:$0xff] %v413_v10  ;;  %416 = vst [vmem:[%s1747_s16 + $0x58] sm:$0xff] %v415_v11  ;;  %v417_v12 = vld [vmem:[%s1742_s15 + $0xc0] sm:$0xff]  ;;  %v419_v13 = vld [vmem:[%s1742_s15 + $0xd0] sm:$0xff] }
  0x1d   : > { %v421_v14 = vld [vmem:[%s1742_s15 + $0xe0] sm:$0xff]  ;;  %418 = vst [vmem:[%s1747_s16 + $0x60] sm:$0xff] %v417_v12  ;;  %420 = vst [vmem:[%s1747_s16 + $0x68] sm:$0xff] %v419_v13  ;;  %v423_v15 = vld [vmem:[%s1742_s15 + $0xf0] sm:$0xff] }
  0x1e   : > { %422 = vst [vmem:[%s1747_s16 + $0x70] sm:$0xff] %v421_v14  ;;  %v425_v16 = vld [vmem:[%s1742_s15 + $0x100] sm:$0xff]  ;;  %v427_v17 = vld [vmem:[%s1742_s15 + $0x110] sm:$0xff]  ;;  %424 = vst [vmem:[%s1747_s16 + $0x78] sm:$0xff] %v423_v15 }
  0x1f   : > { %426 = vst [vmem:[%s1747_s16 + $0x80] sm:$0xff] %v425_v16  ;;  %428 = vst [vmem:[%s1747_s16 + $0x88] sm:$0xff] %v427_v17  ;;  %v429_v18 = vld [vmem:[%s1742_s15 + $0x120] sm:$0xff]  ;;  %v431_v19 = vld [vmem:[%s1742_s15 + $0x130] sm:$0xff] }
  0x20   : > { %v433_v20 = vld [vmem:[%s1742_s15 + $0x140] sm:$0xff]  ;;  %430 = vst [vmem:[%s1747_s16 + $0x90] sm:$0xff] %v429_v18  ;;  %432 = vst [vmem:[%s1747_s16 + $0x98] sm:$0xff] %v431_v19  ;;  %v435_v21 = vld [vmem:[%s1742_s15 + $0x150] sm:$0xff] }
  0x21   : > { %434 = vst [vmem:[%s1747_s16 + $0xa0] sm:$0xff] %v433_v20  ;;  %v437_v22 = vld [vmem:[%s1742_s15 + $0x160] sm:$0xff]  ;;  %v439_v23 = vld [vmem:[%s1742_s15 + $0x170] sm:$0xff]  ;;  %436 = vst [vmem:[%s1747_s16 + $0xa8] sm:$0xff] %v435_v21 }
  0x22   : > { %438 = vst [vmem:[%s1747_s16 + $0xb0] sm:$0xff] %v437_v22  ;;  %440 = vst [vmem:[%s1747_s16 + $0xb8] sm:$0xff] %v439_v23  ;;  %v441_v24 = vld [vmem:[%s1742_s15 + $0x180] sm:$0xff]  ;;  %v443_v25 = vld [vmem:[%s1742_s15 + $0x190] sm:$0xff] }
  0x23   : > { %v445_v26 = vld [vmem:[%s1742_s15 + $0x1a0] sm:$0xff]  ;;  %442 = vst [vmem:[%s1747_s16 + $0xc0] sm:$0xff] %v441_v24  ;;  %444 = vst [vmem:[%s1747_s16 + $0xc8] sm:$0xff] %v443_v25  ;;  %v447_v27 = vld [vmem:[%s1742_s15 + $0x1b0] sm:$0xff] }
  0x24   : > { %446 = vst [vmem:[%s1747_s16 + $0xd0] sm:$0xff] %v445_v26  ;;  %v449_v28 = vld [vmem:[%s1742_s15 + $0x1c0] sm:$0xff]  ;;  %v451_v29 = vld [vmem:[%s1742_s15 + $0x1d0] sm:$0xff]  ;;  %448 = vst [vmem:[%s1747_s16 + $0xd8] sm:$0xff] %v447_v27 }
  0x25   : > { %450 = vst [vmem:[%s1747_s16 + $0xe0] sm:$0xff] %v449_v28  ;;  %452 = vst [vmem:[%s1747_s16 + $0xe8] sm:$0xff] %v451_v29  ;;  %v453_v30 = vld [vmem:[%s1742_s15 + $0x1e0] sm:$0xff]  ;;  %v455_v31 = vld [vmem:[%s1742_s15 + $0x1f0] sm:$0xff] }
  0x26   : > { %v457_v32 = vld [vmem:[%s1742_s15 + $0x200] sm:$0xff]  ;;  %454 = vst [vmem:[%s1747_s16 + $0xf0] sm:$0xff] %v453_v30  ;;  %456 = vst [vmem:[%s1747_s16 + $0xf8] sm:$0xff] %v455_v31  ;;  %v459_v33 = vld [vmem:[%s1742_s15 + $0x210] sm:$0xff] }
  0x27   : > { %458 = vst [vmem:[%s1747_s16 + $0x100] sm:$0xff] %v457_v32  ;;  %v461_v34 = vld [vmem:[%s1742_s15 + $0x220] sm:$0xff]  ;;  %v463_v35 = vld [vmem:[%s1742_s15 + $0x230] sm:$0xff]  ;;  %460 = vst [vmem:[%s1747_s16 + $0x108] sm:$0xff] %v459_v33 }
  0x28   : > { %462 = vst [vmem:[%s1747_s16 + $0x110] sm:$0xff] %v461_v34  ;;  %464 = vst [vmem:[%s1747_s16 + $0x118] sm:$0xff] %v463_v35  ;;  %v465_v36 = vld [vmem:[%s1742_s15 + $0x240] sm:$0xff]  ;;  %v467_v37 = vld [vmem:[%s1742_s15 + $0x250] sm:$0xff] }
  0x29   : > { %v469_v38 = vld [vmem:[%s1742_s15 + $0x260] sm:$0xff]  ;;  %466 = vst [vmem:[%s1747_s16 + $0x120] sm:$0xff] %v465_v36  ;;  %468 = vst [vmem:[%s1747_s16 + $0x128] sm:$0xff] %v467_v37  ;;  %v471_v39 = vld [vmem:[%s1742_s15 + $0x270] sm:$0xff] }
  0x2a   : > { %470 = vst [vmem:[%s1747_s16 + $0x130] sm:$0xff] %v469_v38  ;;  %v473_v40 = vld [vmem:[%s1742_s15 + $0x280] sm:$0xff]  ;;  %v475_v41 = vld [vmem:[%s1742_s15 + $0x290] sm:$0xff]  ;;  %472 = vst [vmem:[%s1747_s16 + $0x138] sm:$0xff] %v471_v39 }
  0x2b   : > { %474 = vst [vmem:[%s1747_s16 + $0x140] sm:$0xff] %v473_v40  ;;  %476 = vst [vmem:[%s1747_s16 + $0x148] sm:$0xff] %v475_v41  ;;  %v477_v42 = vld [vmem:[%s1742_s15 + $0x2a0] sm:$0xff]  ;;  %v479_v43 = vld [vmem:[%s1742_s15 + $0x2b0] sm:$0xff] }
  0x2c   : > { %v481_v44 = vld [vmem:[%s1742_s15 + $0x2c0] sm:$0xff]  ;;  %478 = vst [vmem:[%s1747_s16 + $0x150] sm:$0xff] %v477_v42  ;;  %480 = vst [vmem:[%s1747_s16 + $0x158] sm:$0xff] %v479_v43  ;;  %v483_v45 = vld [vmem:[%s1742_s15 + $0x2d0] sm:$0xff] }
  0x2d   : > { %482 = vst [vmem:[%s1747_s16 + $0x160] sm:$0xff] %v481_v44  ;;  %v485_v46 = vld [vmem:[%s1742_s15 + $0x2e0] sm:$0xff]  ;;  %v487_v47 = vld [vmem:[%s1742_s15 + $0x2f0] sm:$0xff]  ;;  %484 = vst [vmem:[%s1747_s16 + $0x168] sm:$0xff] %v483_v45 }
  0x2e   : > { %486 = vst [vmem:[%s1747_s16 + $0x170] sm:$0xff] %v485_v46  ;;  %488 = vst [vmem:[%s1747_s16 + $0x178] sm:$0xff] %v487_v47  ;;  %v489_v48 = vld [vmem:[%s1742_s15 + $0x300] sm:$0xff]  ;;  %v491_v49 = vld [vmem:[%s1742_s15 + $0x310] sm:$0xff] }
  0x2f   : > { %v493_v50 = vld [vmem:[%s1742_s15 + $0x320] sm:$0xff]  ;;  %490 = vst [vmem:[%s1747_s16 + $0x180] sm:$0xff] %v489_v48  ;;  %492 = vst [vmem:[%s1747_s16 + $0x188] sm:$0xff] %v491_v49  ;;  %v495_v51 = vld [vmem:[%s1742_s15 + $0x330] sm:$0xff] }
  0x30   : > { %494 = vst [vmem:[%s1747_s16 + $0x190] sm:$0xff] %v493_v50  ;;  %v497_v52 = vld [vmem:[%s1742_s15 + $0x340] sm:$0xff]  ;;  %v499_v53 = vld [vmem:[%s1742_s15 + $0x350] sm:$0xff]  ;;  %496 = vst [vmem:[%s1747_s16 + $0x198] sm:$0xff] %v495_v51 }
  0x31   : > { %498 = vst [vmem:[%s1747_s16 + $0x1a0] sm:$0xff] %v497_v52  ;;  %500 = vst [vmem:[%s1747_s16 + $0x1a8] sm:$0xff] %v499_v53  ;;  %v501_v54 = vld [vmem:[%s1742_s15 + $0x360] sm:$0xff]  ;;  %v503_v55 = vld [vmem:[%s1742_s15 + $0x370] sm:$0xff] }
  0x32   : > { %v505_v56 = vld [vmem:[%s1742_s15 + $0x380] sm:$0xff]  ;;  %502 = vst [vmem:[%s1747_s16 + $0x1b0] sm:$0xff] %v501_v54  ;;  %504 = vst [vmem:[%s1747_s16 + $0x1b8] sm:$0xff] %v503_v55  ;;  %v507_v57 = vld [vmem:[%s1742_s15 + $0x390] sm:$0xff] }
  0x33   : > { %506 = vst [vmem:[%s1747_s16 + $0x1c0] sm:$0xff] %v505_v56  ;;  %v509_v58 = vld [vmem:[%s1742_s15 + $0x3a0] sm:$0xff]  ;;  %v511_v59 = vld [vmem:[%s1742_s15 + $0x3b0] sm:$0xff]  ;;  %508 = vst [vmem:[%s1747_s16 + $0x1c8] sm:$0xff] %v507_v57 }
  0x34   : > { %510 = vst [vmem:[%s1747_s16 + $0x1d0] sm:$0xff] %v509_v58  ;;  %512 = vst [vmem:[%s1747_s16 + $0x1d8] sm:$0xff] %v511_v59  ;;  %v513_v60 = vld [vmem:[%s1742_s15 + $0x3c0] sm:$0xff]  ;;  %v515_v61 = vld [vmem:[%s1742_s15 + $0x3d0] sm:$0xff] }
  0x35   : > { %v517_v62 = vld [vmem:[%s1742_s15 + $0x3e0] sm:$0xff]  ;;  %514 = vst [vmem:[%s1747_s16 + $0x1e0] sm:$0xff] %v513_v60  ;;  %516 = vst [vmem:[%s1747_s16 + $0x1e8] sm:$0xff] %v515_v61  ;;  %v519_v63 = vld [vmem:[%s1742_s15 + $0x3f0] sm:$0xff] }
  0x36   : > { %518 = vst [vmem:[%s1747_s16 + $0x1f0] sm:$0xff] %v517_v62  ;;  %520 = vst [vmem:[%s1747_s16 + $0x1f8] sm:$0xff] %v519_v63 }
  0x37 PF: > { %p1355_p7 = scmp.ge.s32.totalorder %s1649_s24, 1  ;;  %p554_p8 = scmp.lt.s32.totalorder %s1649_s24, 19 }
  0x39   : > { %p555_p9 = pnand %p1355_p7, %p554_p8 }
  0x3a   : > { %s561_s17 = sand.u32 (!%p555_p9), 1, %s1625_s18   ;;  %s1357_s27 = sshll.u32 (!%p555_p9), %s1633_s20, 2 }
  0x3b   : > { %558 = sbr.rel (%p555_p9) target bundleno = 357 (0x165), region = 74  ;;  %s1356_s28 = sshll.u32 (!%p555_p9), %s561_s17, 9 }
  0x3c   : > { %p621_p10 = scmp.lt.s32.totalorder (!%p555_p9), %s1357_s27, 35  ;;  %s1359_s29 = sshll.u32 (!%p555_p9), %s1637_s21, 1 }
  0x3d   : > { %p631_p11 = scmp.lt.s32.totalorder (!%p555_p9), %s1359_s29, 3  ;;  %s1905_s8 = scalar_lea.vmem (!%p555_p9), [#allocation3], %s1356_s28 }
  0x3e   : > { %p1365_p12 = scmp.ne.s32.totalorder (!%p555_p9), %s1633_s20, 0 }
  0x40   : > { %s2029_s27 = smov (!%p621_p10, %s1357_s27), 35  ;;  %s2031_s29 = smov (!%p631_p11, %s1359_s29), 3 }
  0x41   : > { %s1358_s30 = sshll.u32 %s2029_s27, 2  ;;  %s633_s18 = scalar_lea.vmem %s2012_s2, %s2031_s29 }
  0x42   : > { %s1882_s9 = scalar_lea.vmem %s2010_s0, %s1358_s30  ;;  %s638_s21 = scalar_lea.vmem %s2013_s3, %s2031_s29 }
  0x43   : > { %s1362_s14 = sshll.u32 %s2031_s29, 3  ;;  %663 = sbr.rel (%p1365_p12) target bundleno = 74 (0x4a), region = 82 }
  0x44   : > { %s1898_s17 = scalar_lea.vmem %s2014_s4, %s1362_s14  ;;  %s1903_s7 = scalar_lea.vmem %s2015_s5, %s1362_s14 }
  0x48   : > { %v1651_v0 = vmov 0.0  }
  0x49   : > { %664 = vst [vmem:[#allocation2] sm:$0xff] %v1651_v0  ;;  %665 = vst [vmem:[#allocation2 + $0x8] sm:$0xff] %v1651_v0 }
  0x4a PF: > { %v1495_v1 = vld [vmem:[%s1905_s8 + $0x74] ss:$8 sps:$4 sm:$0xff]   ;;  %v1499_v3 = vld [vmem:[%s1905_s8 + $0x70] ss:$8 sps:$4 sm:$0xff]   ;;  %v1501_v5 = vld [vmem:[%s1905_s8 + $0x64] ss:$8 sps:$4 sm:$0xff]  }
  0x4b   : > { %v1497_v2 = vld [vmem:[%s1905_s8 + $0x174] ss:$8 sps:$4 sm:$0xff]   ;;  %1068 = vmatprep.subr.bf16.mxu0 %v1495_v1  ;;  %v1500_v4 = vld [vmem:[%s1905_s8 + $0x170] ss:$8 sps:$4 sm:$0xff]   ;;  %v1503_v6 = vld [vmem:[%s1905_s8 + $0x164] ss:$8 sps:$4 sm:$0xff]  }
  0x4c   : > { %1109 = vmatprep.subr.bf16.mxu1 %v1497_v2  ;;  %1069 = vmatpush1.bf16.msra.mxu0 %v1499_v3  ;;  %v1505_v7 = vld [vmem:[%s1905_s8 + $0x60] ss:$8 sps:$4 sm:$0xff]   ;;  %v1507_v9 = vld [vmem:[%s1905_s8 + $0x54] ss:$8 sps:$4 sm:$0xff]   ;;  %v1511_v11 = vld [vmem:[%s1905_s8 + $0x50] ss:$8 sps:$4 sm:$0xff]  }
  0x4d   : > { %1110 = vmatpush1.bf16.msra.mxu1 %v1500_v4  ;;  %1070 = vmatprep.subr.bf16.mxu0 %v1501_v5  ;;  %v1506_v8 = vld [vmem:[%s1905_s8 + $0x160] ss:$8 sps:$4 sm:$0xff]   ;;  %v1509_v10 = vld [vmem:[%s1905_s8 + $0x154] ss:$8 sps:$4 sm:$0xff]   ;;  %v1512_v12 = vld [vmem:[%s1905_s8 + $0x150] ss:$8 sps:$4 sm:$0xff]  }
  0x4e   : > { %1111 = vmatprep.subr.bf16.mxu1 %v1503_v6  ;;  %v1513_v13 = vld [vmem:[%s1905_s8 + $0x44] ss:$8 sps:$4 sm:$0xff]   ;;  %v1517_v15 = vld [vmem:[%s1905_s8 + $0x40] ss:$8 sps:$4 sm:$0xff]   ;;  %v1519_v17 = vld [vmem:[%s1905_s8 + $0x34] ss:$8 sps:$4 sm:$0xff]  }
  0x4f   : > { %v1515_v14 = vld [vmem:[%s1905_s8 + $0x144] ss:$8 sps:$4 sm:$0xff]   ;;  %v1518_v16 = vld [vmem:[%s1905_s8 + $0x140] ss:$8 sps:$4 sm:$0xff]   ;;  %v1521_v18 = vld [vmem:[%s1905_s8 + $0x134] ss:$8 sps:$4 sm:$0xff]  }
  0x50   : > { %1071 = vmatpush1.bf16.msra.mxu0 %v1505_v7  ;;  %v1523_v19 = vld [vmem:[%s1905_s8 + $0x30] ss:$8 sps:$4 sm:$0xff]   ;;  %v1525_v21 = vld [vmem:[%s1905_s8 + $0x24] ss:$8 sps:$4 sm:$0xff]   ;;  %v1529_v23 = vld [vmem:[%s1905_s8 + $0x20] ss:$8 sps:$4 sm:$0xff]  }
  0x51   : > { %1112 = vmatpush1.bf16.msra.mxu1 %v1506_v8  ;;  %1072 = vmatprep.subr.bf16.mxu0 %v1507_v9  ;;  %v1524_v20 = vld [vmem:[%s1905_s8 + $0x130] ss:$8 sps:$4 sm:$0xff]   ;;  %v1527_v22 = vld [vmem:[%s1905_s8 + $0x124] ss:$8 sps:$4 sm:$0xff]   ;;  %v1530_v24 = vld [vmem:[%s1905_s8 + $0x120] ss:$8 sps:$4 sm:$0xff]  }
  0x52   : > { %1113 = vmatprep.subr.bf16.mxu1 %v1509_v10  ;;  %v1531_v25 = vld [vmem:[%s1905_s8 + $0x14] ss:$8 sps:$4 sm:$0xff]   ;;  %v1535_v27 = vld [vmem:[%s1905_s8 + $0x10] ss:$8 sps:$4 sm:$0xff]   ;;  %v1537_v29 = vld [vmem:[%s1905_s8 + $0x4] ss:$8 sps:$4 sm:$0xff]  }
  0x53   : > { %v1533_v26 = vld [vmem:[%s1905_s8 + $0x114] ss:$8 sps:$4 sm:$0xff]   ;;  %v1536_v28 = vld [vmem:[%s1905_s8 + $0x110] ss:$8 sps:$4 sm:$0xff]   ;;  %v1539_v30 = vld [vmem:[%s1905_s8 + $0x104] ss:$8 sps:$4 sm:$0xff]  }
  0x54   : > { %1073 = vmatpush1.bf16.msra.mxu0 %v1511_v11  ;;  %v1541_v31 = vld [vmem:[%s1905_s8] ss:$8 sps:$4 sm:$0xff]   ;;  %v1543_v33 = vld [vmem:[%s1905_s8 + $0xf4] ss:$8 sps:$4 sm:$0xff]   ;;  %v1547_v35 = vld [vmem:[%s1905_s8 + $0xf0] ss:$8 sps:$4 sm:$0xff]  }
  0x55   : > { %1114 = vmatpush1.bf16.msra.mxu1 %v1512_v12  ;;  %1074 = vmatprep.subr.bf16.mxu0 %v1513_v13  ;;  %v1542_v32 = vld [vmem:[%s1905_s8 + $0x100] ss:$8 sps:$4 sm:$0xff]   ;;  %v1545_v34 = vld [vmem:[%s1905_s8 + $0x1f4] ss:$8 sps:$4 sm:$0xff]   ;;  %v1548_v36 = vld [vmem:[%s1905_s8 + $0x1f0] ss:$8 sps:$4 sm:$0xff]  }
  0x56   : > { %1115 = vmatprep.subr.bf16.mxu1 %v1515_v14  ;;  %v1549_v37 = vld [vmem:[%s1905_s8 + $0xe4] ss:$8 sps:$4 sm:$0xff]   ;;  %v1553_v39 = vld [vmem:[%s1905_s8 + $0xe0] ss:$8 sps:$4 sm:$0xff]   ;;  %v1555_v41 = vld [vmem:[%s1905_s8 + $0xd4] ss:$8 sps:$4 sm:$0xff]  }
  0x57   : > { %v1551_v38 = vld [vmem:[%s1905_s8 + $0x1e4] ss:$8 sps:$4 sm:$0xff]   ;;  %v1554_v40 = vld [vmem:[%s1905_s8 + $0x1e0] ss:$8 sps:$4 sm:$0xff]   ;;  %v1557_v42 = vld [vmem:[%s1905_s8 + $0x1d4] ss:$8 sps:$4 sm:$0xff]  }
  0x58   : > { %1075 = vmatpush1.bf16.msra.mxu0 %v1517_v15  ;;  %v1559_v43 = vld [vmem:[%s1905_s8 + $0xd0] ss:$8 sps:$4 sm:$0xff]   ;;  %v1561_v45 = vld [vmem:[%s1905_s8 + $0xc4] ss:$8 sps:$4 sm:$0xff]   ;;  %v1565_v50 = vld [vmem:[%s1905_s8 + $0xc0] ss:$8 sps:$4 sm:$0xff]  }
  0x59   : > { %1116 = vmatpush1.bf16.msra.mxu1 %v1518_v16  ;;  %1076 = vmatprep.subr.bf16.mxu0 %v1519_v17  ;;  %v1560_v44 = vld [vmem:[%s1905_s8 + $0x1d0] ss:$8 sps:$4 sm:$0xff]   ;;  %v1563_v46 = vld [vmem:[%s1905_s8 + $0x1c4] ss:$8 sps:$4 sm:$0xff]   ;;  %v1566_v51 = vld [vmem:[%s1905_s8 + $0x1c0] ss:$8 sps:$4 sm:$0xff]  }
  0x5a   : > { %1117 = vmatprep.subr.bf16.mxu1 %v1521_v18  ;;  %v668_v47 = vld [vmem:[%s1882_s9] sm:$0xff]  ;;  %v669_v49 = vld [vmem:[%s1882_s9 + $0x8] sm:$0xff]  ;;  %v1573_v57 = vld [vmem:[%s1905_s8 + $0xa4] ss:$8 sps:$4 sm:$0xff]   ;;  %p1434_p13 = scmp.ne.s32.totalorder %s1633_s20, 8 }
  0x5b   : > { %v1367_v48 = vcombine.high %v668_v47, %v668_v47  ;;  %v1369_v52 = vcombine.high %v669_v49, %v669_v49  ;;  %v1567_v53 = vld [vmem:[%s1905_s8 + $0xb4] ss:$8 sps:$4 sm:$0xff]   ;;  %v1571_v55 = vld [vmem:[%s1905_s8 + $0xb0] ss:$8 sps:$4 sm:$0xff]   ;;  %v1575_v58 = vld [vmem:[%s1905_s8 + $0x1a4] ss:$8 sps:$4 sm:$0xff]   ;;  %v1366_v5 = vcombine.low %v668_v47, %v668_v47  ;;  %v1368_v6 = vcombine.low %v669_v49, %v669_v49 }
  0x5c   : > { %1077 = vmatpush1.bf16.msra.mxu0 %v1523_v19  ;;  %v1569_v54 = vld [vmem:[%s1905_s8 + $0x1b4] ss:$8 sps:$4 sm:$0xff]   ;;  %v1572_v56 = vld [vmem:[%s1905_s8 + $0x1b0] ss:$8 sps:$4 sm:$0xff]   ;;  %v1577_v59 = vld [vmem:[%s1905_s8 + $0xa0] ss:$8 sps:$4 sm:$0xff]  }
  0x5d   : > { %1118 = vmatpush1.bf16.msra.mxu1 %v1524_v20  ;;  %1078 = vmatprep.subr.bf16.mxu0 %v1525_v21  ;;  %v1578_v60 = vld [vmem:[%s1905_s8 + $0x1a0] ss:$8 sps:$4 sm:$0xff]   ;;  %v1579_v61 = vld [vmem:[%s1905_s8 + $0x94] ss:$8 sps:$4 sm:$0xff]   ;;  %v1583_v63 = vld [vmem:[%s1905_s8 + $0x90] ss:$8 sps:$4 sm:$0xff]  }
  0x5e   : > { %1119 = vmatprep.subr.bf16.mxu1 %v1527_v22  ;;  %1100 = vmatprep.mubr.bf16.mxu0 %v1367_v48  ;;  %v1581_v62 = vld [vmem:[%s1905_s8 + $0x194] ss:$8 sps:$4 sm:$0xff]   ;;  %v1584_v0 = vld [vmem:[%s1905_s8 + $0x190] ss:$8 sps:$4 sm:$0xff]   ;;  %v1585_v1 = vld [vmem:[%s1905_s8 + $0x84] ss:$8 sps:$4 sm:$0xff]  }
  0x5f   : > { %1141 = vmatprep.mubr.bf16.mxu1 %v1369_v52  ;;  %v1587_v2 = vld [vmem:[%s1905_s8 + $0x184] ss:$8 sps:$4 sm:$0xff]   ;;  %v1589_v3 = vld [vmem:[%s1905_s8 + $0x80] ss:$8 sps:$4 sm:$0xff]   ;;  %v666_v8 = vld [vmem:[#allocation2] sm:$0xff] }
  0x60   : > { %1079 = vmatpush1.bf16.msra.mxu0 %v1529_v23  ;;  %v1590_v4 = vld [vmem:[%s1905_s8 + $0x180] ss:$8 sps:$4 sm:$0xff]   ;;  %v667_v12 = vld [vmem:[#allocation2 + $0x8] sm:$0xff] }
  0x61   : > { %1120 = vmatpush1.bf16.msra.mxu1 %v1530_v24  ;;  %1080 = vmatprep.subr.bf16.mxu0 %v1531_v25 }
  0x62   : > { %1121 = vmatprep.subr.bf16.mxu1 %v1533_v26 }
  0x64   : > { %1081 = vmatpush1.bf16.msra.mxu0 %v1535_v27 }
  0x65   : > { %1122 = vmatpush1.bf16.msra.mxu1 %v1536_v28  ;;  %1082 = vmatprep.subr.bf16.mxu0 %v1537_v29 }
  0x66   : > { %1123 = vmatprep.subr.bf16.mxu1 %v1539_v30 }
  0x68   : > { %1083 = vmatpush1.bf16.msra.mxu0 %v1541_v31 }
  0x69   : > { %1124 = vmatpush1.bf16.msra.mxu1 %v1542_v32  ;;  %1084 = vmatprep.subr.bf16.mxu0 %v1543_v33 }
  0x6a   : > { %1125 = vmatprep.subr.bf16.mxu1 %v1545_v34 }
  0x6c   : > { %1085 = vmatpush2.bf16.msra.mxu0 %v1547_v35 }
  0x6d   : > { %1126 = vmatpush2.bf16.msra.mxu1 %v1548_v36  ;;  %1086 = vmatprep.subr.bf16.mxu0 %v1549_v37 }
  0x6e   : > { %1127 = vmatprep.subr.bf16.mxu1 %v1551_v38 }
  0x70   : > { %1087 = vmatpush2.bf16.msra.mxu0 %v1553_v39 }
  0x71   : > { %1128 = vmatpush2.bf16.msra.mxu1 %v1554_v40  ;;  %1088 = vmatprep.subr.bf16.mxu0 %v1555_v41 }
  0x72   : > { %1129 = vmatprep.subr.bf16.mxu1 %v1557_v42 }
  0x74   : > { %1089 = vmatpush2.bf16.msra.mxu0 %v1559_v43 }
  0x75   : > { %1130 = vmatpush2.bf16.msra.mxu1 %v1560_v44  ;;  %1090 = vmatprep.subr.bf16.mxu0 %v1561_v45 }
  0x76   : > { %1131 = vmatprep.subr.bf16.mxu1 %v1563_v46 }
  0x78   : > { %1091 = vmatpush2.bf16.msra.mxu0 %v1565_v50 }
  0x79   : > { %1132 = vmatpush2.bf16.msra.mxu1 %v1566_v51  ;;  %1092 = vmatprep.subr.bf16.mxu0 %v1567_v53 }
  0x7a   : > { %1133 = vmatprep.subr.bf16.mxu1 %v1569_v54 }
  0x7c   : > { %1093 = vmatpush2.bf16.msra.mxu0 %v1571_v55 }
  0x7d   : > { %1134 = vmatpush2.bf16.msra.mxu1 %v1572_v56  ;;  %1094 = vmatprep.subr.bf16.mxu0 %v1573_v57 }
  0x7e   : > { %1135 = vmatprep.subr.bf16.mxu1 %v1575_v58 }
  0x80   : > { %1095 = vmatpush2.bf16.msra.mxu0 %v1577_v59 }
  0x81   : > { %1136 = vmatpush2.bf16.msra.mxu1 %v1578_v60  ;;  %1096 = vmatprep.subr.bf16.mxu0 %v1579_v61 }
  0x82   : > { %1137 = vmatprep.subr.bf16.mxu1 %v1581_v62 }
  0x84   : > { %1097 = vmatpush2.bf16.msra.mxu0 %v1583_v63 }
  0x85   : > { %1138 = vmatpush2.bf16.msra.mxu1 %v1584_v0  ;;  %1098 = vmatprep.subr.bf16.mxu0 %v1585_v1 }
  0x86   : > { %1139 = vmatprep.subr.bf16.mxu1 %v1587_v2 }
  0x88   : > { %1099 = vmatpush2.bf16.msra.mxu0 %v1589_v3 }
  0x89   : > { %1140 = vmatpush2.bf16.msra.mxu1 %v1590_v4 }
  0x8b   : > { %1101 = vmatmul.mubr.bf16.vlgmr.msra.gmra.mxu0 %v1366_v5 }
  0x8c   : > { %1142 = vmatmul.mubr.bf16.vlgmr.msra.gmra.mxu1 %v1368_v6 }
 0x14b   : > { %v1102_v7 = vpop.f32.mrf.mxu0 }
 0x14c   : > { %v1143_v9 = vpop.f32.mrf.mxu1 }
 0x14d   : > { %v1144_v10 = vadd.f32 %v1143_v9, %v1102_v7  ;;  %v1104_v11 = vpop.f32.mrf.mxu0 }
 0x14e   : > { %v1145_v13 = vpop.f32.mrf.mxu1 }
 0x14f   : > { %v1150_v14 = vadd.f32 %v1144_v10, %v666_v8  ;;  %v1146_v15 = vadd.f32 %v1145_v13, %v1104_v11  ;;  %v1106_v16 = vpop.f32.mrf.mxu0  ;;  %1157 = sbr.rel (%p1434_p13) target bundleno = 357 (0x165), region = 86 }
 0x150   : > { %v1147_v17 = vpop.f32.mrf.mxu1 }
 0x151   : > { %1152 = vst [vmem:[#allocation2] sm:$0xff] %v1150_v14  ;;  %v1151_v18 = vadd.f32 %v1146_v15, %v667_v12  ;;  %v1107_v19 = vpop.f32.mrf.mxu0 }
 0x152   : > { %v1148_v20 = vpop.f32.mrf.mxu1 }
 0x153   : > { %1153 = vst [vmem:[#allocation2 + $0x8] sm:$0xff] %v1151_v18 }
 0x154   : > { %v1162_v21 = vlaneseq  ;;  %v1160_v23 = vld [vmem:[%s633_s18] sm:$0x3]  ;;  %v1189_v36 = vld [vmem:[%s1898_s17 + $0x8] sm:$0xff] }
 0x155   : > { %v1174_v24 = vld [vmem:[%s638_s21] sm:$0x3] }
 0x156   : > { %v1163_v22 = vshrl.u32 %v1162_v21, 7  ;;  %v1188_v35 = vld [vmem:[%s1898_s17] sm:$0xff] }
 0x158   : > { %v1164_v25 = vsub.s32 0, %v1163_v22  ;;  %v1168_v26 = vsub.s32 1, %v1163_v22  ;;  %v1158_v27 = vld [vmem:[#allocation2] sm:$0xff] }
 0x15a   : > { %v1159_v28 = vld [vmem:[#allocation2 + $0x8] sm:$0xff]  ;;  %v1165_v29 = vrot.slane %v1160_v23, %v1164_v25  ;;  %v1179_v30 = vrot.slane %v1174_v24, %v1164_v25  ;;  %v1169_v31 = vrot.slane %v1160_v23, %v1168_v26  ;;  %v1183_v32 = vrot.slane %v1174_v24, %v1168_v26 }
 0x15c   : > { %v1172_v33 = vmul.f32 %v1165_v29, %v1158_v27  ;;  %v1173_v34 = vmul.f32 %v1169_v31, %v1159_v28 }
 0x15e   : > { %v1186_v37 = vadd.f32 %v1179_v30, %v1172_v33  ;;  %v1187_v38 = vadd.f32 %v1183_v32, %v1173_v34 }
 0x160   : > { %v1190_v39 = vadd.f32 %v1188_v35, %v1186_v37  ;;  %v1191_v40 = vadd.f32 %v1189_v36, %v1187_v38 }
 0x162   : > { %v1192_v41 = vmax.f32 %v1190_v39, 0.0  ;;  %v1193_v42 = vmax.f32 %v1191_v40, 0.0 }
 0x164   : > { %1194 = vst [vmem:[%s1903_s7] sm:$0xff] %v1192_v41  ;;  %1195 = vst [vmem:[%s1903_s7 + $0x8] sm:$0xff] %v1193_v42 }
 0x165 PF: > { %s15_s24 = sadd.s32 1, %s1649_s24   ;;  %s2016_s18 = smov %s1629_s19 }
 0x166   : > { %p12_p0 = scmp.ge.s32.totalorder %s15_s24, 20   ;;  %s2017_s19 = smov %s1733_s6 }
 0x167   : > { %s2018_s20 = smov %s1641_s22  ;;  %s2019_s21 = smov %s1645_s23 }
 0x168   : > { %s2020_s22 = smov %s2023_s25  ;;  %s2021_s23 = smov %s2027_s26 }
 0x169   :  { %14 = sbr.rel (!%p12_p0) target bundleno = 4 (0x4), region = 133 }

// kernel: _lambda_.40
= control target key start
LH: loop header
LB: loop body
LE: loop exit
PB: predicated region body
PF: predicated region fallthrough
CT: control target
= control target key end

     0   :  { %s1590_s15 = smov 0   ;;  %s1592_s16 = smov 0   ;;  %s1911_s0 = inlined_call_operand.vmem [shape: bf16[8,4608], index: 0, kind: input, shape index: {}]   ;;  %s1912_s1 = inlined_call_operand.vmem [shape: bf16[4608,512], index: 1, kind: input, shape index: {}]   ;;  %s1913_s2 = inlined_call_operand.vmem [shape: f32[1,512], index: 2, kind: input, shape index: {}]   ;;  %s1914_s3 = inlined_call_operand.vmem [shape: f32[1,512], index: 3, kind: input, shape index: {}]   ;;  %s1915_s4 = inlined_call_operand.vmem [shape: f32[8,512], index: 4, kind: output, shape index: {}]  }
   0x1   :  { %s1594_s17 = smov 0   ;;  %s1596_s18 = smov 0  }
   0x2   :  { %s1598_s19 = smov 0   ;;  %s1600_s20 = smov 0  }
   0x3   :  { %s1602_s21 = smov 0  }
   0x4 LB: > { %s26_s22 = sadd.s32 1, %s1554_s19  ;;  %s29_s23 = sadd.s32 1, %s1558_s20  ;;  %s1562_s21 = sphi %s1602_s21, %s14_s21   ;;  %s1558_s20 = sphi %s1600_s20, %s1921_s20   ;;  %s1554_s19 = sphi %s1598_s19, %s1920_s19   ;;  %s1550_s18 = sphi %s1596_s18, %s1919_s18   ;;  %s1546_s17 = sphi %s1594_s17, %s1918_s17   ;;  %s1542_s16 = sphi %s1592_s16, %s1917_s16   ;;  %s1538_s15 = sphi %s1590_s15, %s1916_s15  }
   0x5   : > { %p27_p0 = scmp.ge.s32.totalorder %s26_s22, 9  ;;  %p77_p1 = scmp.ne.s32.totalorder %s1542_s16, %s1538_s15 }
   0x6   : > { %p78_p2 = scmp.eq.s32.totalorder %s1562_s21, 0  ;;  %s70_s27 = sadd.s32 1, %s1542_s16 }
   0x7   : > { %s1923_s22 = smov (%p27_p0, %s26_s22), 0  ;;  %s1925_s23 = smov (!%p27_p0, %s29_s23), %s1558_s20 }
   0x8   : > { %p79_p3 = por %p78_p2, %p77_p1  ;;  %p31_p4 = scmp.ge.s32.totalorder %s1925_s23, 2 }
   0x9   : > { %s65_s24 = ssub.s32 %s1554_s19, %s1923_s22  ;;  %p1264_p6 = scmp.ge.s32.totalorder %s1562_s21, 18 }
   0xa   : > { %s1927_s23 = smov (%p31_p4, %s1925_s23), 0 }
   0xb   : > { %s66_s25 = ssub.s32 %s1558_s20, %s1927_s23  ;;  %183 = sbr.rel (%p1264_p6) target bundleno = 55 (0x37), region = 16 }
   0xc   : > { %s67_s26 = sor.u32 %s66_s25, %s65_s24 }
   0xd   : > { %p68_p5 = scmp.eq.s32.totalorder %s67_s26, 0 }
   0xf   : > { %s1641_s28 = scalar_select %p68_p5, %s1542_s16, %s70_s27  }
  0x10   : > { %199 = sbr.rel (!%p79_p3) target bundleno = 55 (0x37), region = 24  ;;  %s201_s29 = sand.u32 (%p79_p3), 1, %s1542_s16  }
  0x11   : > { %s1267_s30 = sshll.u32 (%p79_p3), %s1558_s20, 1  ;;  %s1265_s5 = sshll.u32 (%p79_p3), %s201_s29, 9 }
  0x12   : > { %s1350_s6 = sshll.u32 (%p79_p3), %s1554_s19, 8  ;;  %s1655_s12 = scalar_lea.vmem (%p79_p3), [#allocation3], %s1265_s5 }
  0x13   : > { %s207_s7 = sadd.s32 (%p79_p3), %s1350_s6, %s1267_s30 }
  0x14   : > { %s1269_s8 = sshll.u32 (%p79_p3), %s207_s7, 2 }
  0x15   : > { %s1650_s11 = scalar_lea.vmem %s1912_s1, %s1269_s8 }
  0x16   : > { %v364_v0 = vld [vmem:[%s1650_s11] sm:$0xff]  ;;  %v366_v1 = vld [vmem:[%s1650_s11 + $0x10] sm:$0xff] }
  0x17   : > { %v368_v2 = vld [vmem:[%s1650_s11 + $0x20] sm:$0xff]  ;;  %365 = vst [vmem:[%s1655_s12] sm:$0xff] %v364_v0  ;;  %367 = vst [vmem:[%s1655_s12 + $0x8] sm:$0xff] %v366_v1  ;;  %v370_v3 = vld [vmem:[%s1650_s11 + $0x30] sm:$0xff] }
  0x18   : > { %369 = vst [vmem:[%s1655_s12 + $0x10] sm:$0xff] %v368_v2  ;;  %v372_v4 = vld [vmem:[%s1650_s11 + $0x40] sm:$0xff]  ;;  %v374_v5 = vld [vmem:[%s1650_s11 + $0x50] sm:$0xff]  ;;  %371 = vst [vmem:[%s1655_s12 + $0x18] sm:$0xff] %v370_v3 }
  0x19   : > { %373 = vst [vmem:[%s1655_s12 + $0x20] sm:$0xff] %v372_v4  ;;  %375 = vst [vmem:[%s1655_s12 + $0x28] sm:$0xff] %v374_v5  ;;  %v376_v6 = vld [vmem:[%s1650_s11 + $0x60] sm:$0xff]  ;;  %v378_v7 = vld [vmem:[%s1650_s11 + $0x70] sm:$0xff] }
  0x1a   : > { %v380_v8 = vld [vmem:[%s1650_s11 + $0x80] sm:$0xff]  ;;  %377 = vst [vmem:[%s1655_s12 + $0x30] sm:$0xff] %v376_v6  ;;  %379 = vst [vmem:[%s1655_s12 + $0x38] sm:$0xff] %v378_v7  ;;  %v382_v9 = vld [vmem:[%s1650_s11 + $0x90] sm:$0xff] }
  0x1b   : > { %381 = vst [vmem:[%s1655_s12 + $0x40] sm:$0xff] %v380_v8  ;;  %v384_v10 = vld [vmem:[%s1650_s11 + $0xa0] sm:$0xff]  ;;  %v386_v11 = vld [vmem:[%s1650_s11 + $0xb0] sm:$0xff]  ;;  %383 = vst [vmem:[%s1655_s12 + $0x48] sm:$0xff] %v382_v9 }
  0x1c   : > { %385 = vst [vmem:[%s1655_s12 + $0x50] sm:$0xff] %v384_v10  ;;  %387 = vst [vmem:[%s1655_s12 + $0x58] sm:$0xff] %v386_v11  ;;  %v388_v12 = vld [vmem:[%s1650_s11 + $0xc0] sm:$0xff]  ;;  %v390_v13 = vld [vmem:[%s1650_s11 + $0xd0] sm:$0xff] }
  0x1d   : > { %v392_v14 = vld [vmem:[%s1650_s11 + $0xe0] sm:$0xff]  ;;  %389 = vst [vmem:[%s1655_s12 + $0x60] sm:$0xff] %v388_v12  ;;  %391 = vst [vmem:[%s1655_s12 + $0x68] sm:$0xff] %v390_v13  ;;  %v394_v15 = vld [vmem:[%s1650_s11 + $0xf0] sm:$0xff] }
  0x1e   : > { %393 = vst [vmem:[%s1655_s12 + $0x70] sm:$0xff] %v392_v14  ;;  %v396_v16 = vld [vmem:[%s1650_s11 + $0x100] sm:$0xff]  ;;  %v398_v17 = vld [vmem:[%s1650_s11 + $0x110] sm:$0xff]  ;;  %395 = vst [vmem:[%s1655_s12 + $0x78] sm:$0xff] %v394_v15 }
  0x1f   : > { %397 = vst [vmem:[%s1655_s12 + $0x80] sm:$0xff] %v396_v16  ;;  %399 = vst [vmem:[%s1655_s12 + $0x88] sm:$0xff] %v398_v17  ;;  %v400_v18 = vld [vmem:[%s1650_s11 + $0x120] sm:$0xff]  ;;  %v402_v19 = vld [vmem:[%s1650_s11 + $0x130] sm:$0xff] }
  0x20   : > { %v404_v20 = vld [vmem:[%s1650_s11 + $0x140] sm:$0xff]  ;;  %401 = vst [vmem:[%s1655_s12 + $0x90] sm:$0xff] %v400_v18  ;;  %403 = vst [vmem:[%s1655_s12 + $0x98] sm:$0xff] %v402_v19  ;;  %v406_v21 = vld [vmem:[%s1650_s11 + $0x150] sm:$0xff] }
  0x21   : > { %405 = vst [vmem:[%s1655_s12 + $0xa0] sm:$0xff] %v404_v20  ;;  %v408_v22 = vld [vmem:[%s1650_s11 + $0x160] sm:$0xff]  ;;  %v410_v23 = vld [vmem:[%s1650_s11 + $0x170] sm:$0xff]  ;;  %407 = vst [vmem:[%s1655_s12 + $0xa8] sm:$0xff] %v406_v21 }
  0x22   : > { %409 = vst [vmem:[%s1655_s12 + $0xb0] sm:$0xff] %v408_v22  ;;  %411 = vst [vmem:[%s1655_s12 + $0xb8] sm:$0xff] %v410_v23  ;;  %v412_v24 = vld [vmem:[%s1650_s11 + $0x180] sm:$0xff]  ;;  %v414_v25 = vld [vmem:[%s1650_s11 + $0x190] sm:$0xff] }
  0x23   : > { %v416_v26 = vld [vmem:[%s1650_s11 + $0x1a0] sm:$0xff]  ;;  %413 = vst [vmem:[%s1655_s12 + $0xc0] sm:$0xff] %v412_v24  ;;  %415 = vst [vmem:[%s1655_s12 + $0xc8] sm:$0xff] %v414_v25  ;;  %v418_v27 = vld [vmem:[%s1650_s11 + $0x1b0] sm:$0xff] }
  0x24   : > { %417 = vst [vmem:[%s1655_s12 + $0xd0] sm:$0xff] %v416_v26  ;;  %v420_v28 = vld [vmem:[%s1650_s11 + $0x1c0] sm:$0xff]  ;;  %v422_v29 = vld [vmem:[%s1650_s11 + $0x1d0] sm:$0xff]  ;;  %419 = vst [vmem:[%s1655_s12 + $0xd8] sm:$0xff] %v418_v27 }
  0x25   : > { %421 = vst [vmem:[%s1655_s12 + $0xe0] sm:$0xff] %v420_v28  ;;  %423 = vst [vmem:[%s1655_s12 + $0xe8] sm:$0xff] %v422_v29  ;;  %v424_v30 = vld [vmem:[%s1650_s11 + $0x1e0] sm:$0xff]  ;;  %v426_v31 = vld [vmem:[%s1650_s11 + $0x1f0] sm:$0xff] }
  0x26   : > { %v428_v32 = vld [vmem:[%s1650_s11 + $0x200] sm:$0xff]  ;;  %425 = vst [vmem:[%s1655_s12 + $0xf0] sm:$0xff] %v424_v30  ;;  %427 = vst [vmem:[%s1655_s12 + $0xf8] sm:$0xff] %v426_v31  ;;  %v430_v33 = vld [vmem:[%s1650_s11 + $0x210] sm:$0xff] }
  0x27   : > { %429 = vst [vmem:[%s1655_s12 + $0x100] sm:$0xff] %v428_v32  ;;  %v432_v34 = vld [vmem:[%s1650_s11 + $0x220] sm:$0xff]  ;;  %v434_v35 = vld [vmem:[%s1650_s11 + $0x230] sm:$0xff]  ;;  %431 = vst [vmem:[%s1655_s12 + $0x108] sm:$0xff] %v430_v33 }
  0x28   : > { %433 = vst [vmem:[%s1655_s12 + $0x110] sm:$0xff] %v432_v34  ;;  %435 = vst [vmem:[%s1655_s12 + $0x118] sm:$0xff] %v434_v35  ;;  %v436_v36 = vld [vmem:[%s1650_s11 + $0x240] sm:$0xff]  ;;  %v438_v37 = vld [vmem:[%s1650_s11 + $0x250] sm:$0xff] }
  0x29   : > { %v440_v38 = vld [vmem:[%s1650_s11 + $0x260] sm:$0xff]  ;;  %437 = vst [vmem:[%s1655_s12 + $0x120] sm:$0xff] %v436_v36  ;;  %439 = vst [vmem:[%s1655_s12 + $0x128] sm:$0xff] %v438_v37  ;;  %v442_v39 = vld [vmem:[%s1650_s11 + $0x270] sm:$0xff] }
  0x2a   : > { %441 = vst [vmem:[%s1655_s12 + $0x130] sm:$0xff] %v440_v38  ;;  %v444_v40 = vld [vmem:[%s1650_s11 + $0x280] sm:$0xff]  ;;  %v446_v41 = vld [vmem:[%s1650_s11 + $0x290] sm:$0xff]  ;;  %443 = vst [vmem:[%s1655_s12 + $0x138] sm:$0xff] %v442_v39 }
  0x2b   : > { %445 = vst [vmem:[%s1655_s12 + $0x140] sm:$0xff] %v444_v40  ;;  %447 = vst [vmem:[%s1655_s12 + $0x148] sm:$0xff] %v446_v41  ;;  %v448_v42 = vld [vmem:[%s1650_s11 + $0x2a0] sm:$0xff]  ;;  %v450_v43 = vld [vmem:[%s1650_s11 + $0x2b0] sm:$0xff] }
  0x2c   : > { %v452_v44 = vld [vmem:[%s1650_s11 + $0x2c0] sm:$0xff]  ;;  %449 = vst [vmem:[%s1655_s12 + $0x150] sm:$0xff] %v448_v42  ;;  %451 = vst [vmem:[%s1655_s12 + $0x158] sm:$0xff] %v450_v43  ;;  %v454_v45 = vld [vmem:[%s1650_s11 + $0x2d0] sm:$0xff] }
  0x2d   : > { %453 = vst [vmem:[%s1655_s12 + $0x160] sm:$0xff] %v452_v44  ;;  %v456_v46 = vld [vmem:[%s1650_s11 + $0x2e0] sm:$0xff]  ;;  %v458_v47 = vld [vmem:[%s1650_s11 + $0x2f0] sm:$0xff]  ;;  %455 = vst [vmem:[%s1655_s12 + $0x168] sm:$0xff] %v454_v45 }
  0x2e   : > { %457 = vst [vmem:[%s1655_s12 + $0x170] sm:$0xff] %v456_v46  ;;  %459 = vst [vmem:[%s1655_s12 + $0x178] sm:$0xff] %v458_v47  ;;  %v460_v48 = vld [vmem:[%s1650_s11 + $0x300] sm:$0xff]  ;;  %v462_v49 = vld [vmem:[%s1650_s11 + $0x310] sm:$0xff] }
  0x2f   : > { %v464_v50 = vld [vmem:[%s1650_s11 + $0x320] sm:$0xff]  ;;  %461 = vst [vmem:[%s1655_s12 + $0x180] sm:$0xff] %v460_v48  ;;  %463 = vst [vmem:[%s1655_s12 + $0x188] sm:$0xff] %v462_v49  ;;  %v466_v51 = vld [vmem:[%s1650_s11 + $0x330] sm:$0xff] }
  0x30   : > { %465 = vst [vmem:[%s1655_s12 + $0x190] sm:$0xff] %v464_v50  ;;  %v468_v52 = vld [vmem:[%s1650_s11 + $0x340] sm:$0xff]  ;;  %v470_v53 = vld [vmem:[%s1650_s11 + $0x350] sm:$0xff]  ;;  %467 = vst [vmem:[%s1655_s12 + $0x198] sm:$0xff] %v466_v51 }
  0x31   : > { %469 = vst [vmem:[%s1655_s12 + $0x1a0] sm:$0xff] %v468_v52  ;;  %471 = vst [vmem:[%s1655_s12 + $0x1a8] sm:$0xff] %v470_v53  ;;  %v472_v54 = vld [vmem:[%s1650_s11 + $0x360] sm:$0xff]  ;;  %v474_v55 = vld [vmem:[%s1650_s11 + $0x370] sm:$0xff] }
  0x32   : > { %v476_v56 = vld [vmem:[%s1650_s11 + $0x380] sm:$0xff]  ;;  %473 = vst [vmem:[%s1655_s12 + $0x1b0] sm:$0xff] %v472_v54  ;;  %475 = vst [vmem:[%s1655_s12 + $0x1b8] sm:$0xff] %v474_v55  ;;  %v478_v57 = vld [vmem:[%s1650_s11 + $0x390] sm:$0xff] }
  0x33   : > { %477 = vst [vmem:[%s1655_s12 + $0x1c0] sm:$0xff] %v476_v56  ;;  %v480_v58 = vld [vmem:[%s1650_s11 + $0x3a0] sm:$0xff]  ;;  %v482_v59 = vld [vmem:[%s1650_s11 + $0x3b0] sm:$0xff]  ;;  %479 = vst [vmem:[%s1655_s12 + $0x1c8] sm:$0xff] %v478_v57 }
  0x34   : > { %481 = vst [vmem:[%s1655_s12 + $0x1d0] sm:$0xff] %v480_v58  ;;  %483 = vst [vmem:[%s1655_s12 + $0x1d8] sm:$0xff] %v482_v59  ;;  %v484_v60 = vld [vmem:[%s1650_s11 + $0x3c0] sm:$0xff]  ;;  %v486_v61 = vld [vmem:[%s1650_s11 + $0x3d0] sm:$0xff] }
  0x35   : > { %v488_v62 = vld [vmem:[%s1650_s11 + $0x3e0] sm:$0xff]  ;;  %485 = vst [vmem:[%s1655_s12 + $0x1e0] sm:$0xff] %v484_v60  ;;  %487 = vst [vmem:[%s1655_s12 + $0x1e8] sm:$0xff] %v486_v61  ;;  %v490_v63 = vld [vmem:[%s1650_s11 + $0x3f0] sm:$0xff] }
  0x36   : > { %489 = vst [vmem:[%s1655_s12 + $0x1f0] sm:$0xff] %v488_v62  ;;  %491 = vst [vmem:[%s1655_s12 + $0x1f8] sm:$0xff] %v490_v63 }
  0x37 PF: > { %p1270_p7 = scmp.ge.s32.totalorder %s1562_s21, 1  ;;  %p512_p8 = scmp.lt.s32.totalorder %s1562_s21, 19 }
  0x39   : > { %p513_p9 = pnand %p1270_p7, %p512_p8 }
  0x3a   : > { %s519_s13 = sand.u32 (!%p513_p9), 1, %s1538_s15   ;;  %s1272_s14 = sshll.u32 (!%p513_p9), %s1546_s17, 2 }
  0x3b   : > { %516 = sbr.rel (%p513_p9) target bundleno = 355 (0x163), region = 70  ;;  %s1271_s24 = sshll.u32 (!%p513_p9), %s519_s13, 9 }
  0x3c   : > { %p568_p10 = scmp.lt.s32.totalorder (!%p513_p9), %s1272_s14, 35  ;;  %s1274_s25 = sshll.u32 (!%p513_p9), %s1550_s18, 1 }
  0x3d   : > { %p578_p11 = scmp.lt.s32.totalorder (!%p513_p9), %s1274_s25, 3  ;;  %s1808_s13 = scalar_lea.vmem (!%p513_p9), [#allocation3], %s1271_s24 }
  0x3e   : > { %p1278_p12 = scmp.ne.s32.totalorder (!%p513_p9), %s1546_s17, 0 }
  0x40   : > { %s1929_s14 = smov (!%p568_p10, %s1272_s14), 35  ;;  %s1931_s25 = smov (!%p578_p11, %s1274_s25), 3 }
  0x41   : > { %s1273_s26 = sshll.u32 %s1929_s14, 2  ;;  %s580_s15 = scalar_lea.vmem %s1913_s2, %s1931_s25 }
  0x42   : > { %s1790_s30 = scalar_lea.vmem %s1911_s0, %s1273_s26  ;;  %s585_s18 = scalar_lea.vmem %s1914_s3, %s1931_s25 }
  0x43   : > { %s1277_s9 = sshll.u32 %s1931_s25, 3  ;;  %600 = sbr.rel (%p1278_p12) target bundleno = 74 (0x4a), region = 78 }
  0x44   : > { %s1806_s12 = scalar_lea.vmem %s1915_s4, %s1277_s9 }
  0x48   : > { %v1564_v0 = vmov 0.0  }
  0x49   : > { %601 = vst [vmem:[#allocation2] sm:$0xff] %v1564_v0  ;;  %602 = vst [vmem:[#allocation2 + $0x8] sm:$0xff] %v1564_v0 }
  0x4a PF: > { %v1408_v1 = vld [vmem:[%s1808_s13 + $0x74] ss:$8 sps:$4 sm:$0xff]   ;;  %v1412_v3 = vld [vmem:[%s1808_s13 + $0x70] ss:$8 sps:$4 sm:$0xff]   ;;  %v1414_v5 = vld [vmem:[%s1808_s13 + $0x64] ss:$8 sps:$4 sm:$0xff]  }
  0x4b   : > { %v1410_v2 = vld [vmem:[%s1808_s13 + $0x174] ss:$8 sps:$4 sm:$0xff]   ;;  %1005 = vmatprep.subr.bf16.mxu0 %v1408_v1  ;;  %v1413_v4 = vld [vmem:[%s1808_s13 + $0x170] ss:$8 sps:$4 sm:$0xff]   ;;  %v1416_v6 = vld [vmem:[%s1808_s13 + $0x164] ss:$8 sps:$4 sm:$0xff]  }
  0x4c   : > { %1046 = vmatprep.subr.bf16.mxu1 %v1410_v2  ;;  %1006 = vmatpush1.bf16.msra.mxu0 %v1412_v3  ;;  %v1418_v7 = vld [vmem:[%s1808_s13 + $0x60] ss:$8 sps:$4 sm:$0xff]   ;;  %v1420_v9 = vld [vmem:[%s1808_s13 + $0x54] ss:$8 sps:$4 sm:$0xff]   ;;  %v1424_v11 = vld [vmem:[%s1808_s13 + $0x50] ss:$8 sps:$4 sm:$0xff]  }
  0x4d   : > { %1047 = vmatpush1.bf16.msra.mxu1 %v1413_v4  ;;  %1007 = vmatprep.subr.bf16.mxu0 %v1414_v5  ;;  %v1419_v8 = vld [vmem:[%s1808_s13 + $0x160] ss:$8 sps:$4 sm:$0xff]   ;;  %v1422_v10 = vld [vmem:[%s1808_s13 + $0x154] ss:$8 sps:$4 sm:$0xff]   ;;  %v1425_v12 = vld [vmem:[%s1808_s13 + $0x150] ss:$8 sps:$4 sm:$0xff]  }
  0x4e   : > { %1048 = vmatprep.subr.bf16.mxu1 %v1416_v6  ;;  %v1426_v13 = vld [vmem:[%s1808_s13 + $0x44] ss:$8 sps:$4 sm:$0xff]   ;;  %v1430_v15 = vld [vmem:[%s1808_s13 + $0x40] ss:$8 sps:$4 sm:$0xff]   ;;  %v1432_v17 = vld [vmem:[%s1808_s13 + $0x34] ss:$8 sps:$4 sm:$0xff]  }
  0x4f   : > { %v1428_v14 = vld [vmem:[%s1808_s13 + $0x144] ss:$8 sps:$4 sm:$0xff]   ;;  %v1431_v16 = vld [vmem:[%s1808_s13 + $0x140] ss:$8 sps:$4 sm:$0xff]   ;;  %v1434_v18 = vld [vmem:[%s1808_s13 + $0x134] ss:$8 sps:$4 sm:$0xff]  }
  0x50   : > { %1008 = vmatpush1.bf16.msra.mxu0 %v1418_v7  ;;  %v1436_v19 = vld [vmem:[%s1808_s13 + $0x30] ss:$8 sps:$4 sm:$0xff]   ;;  %v1438_v21 = vld [vmem:[%s1808_s13 + $0x24] ss:$8 sps:$4 sm:$0xff]   ;;  %v1442_v23 = vld [vmem:[%s1808_s13 + $0x20] ss:$8 sps:$4 sm:$0xff]  }
  0x51   : > { %1049 = vmatpush1.bf16.msra.mxu1 %v1419_v8  ;;  %1009 = vmatprep.subr.bf16.mxu0 %v1420_v9  ;;  %v1437_v20 = vld [vmem:[%s1808_s13 + $0x130] ss:$8 sps:$4 sm:$0xff]   ;;  %v1440_v22 = vld [vmem:[%s1808_s13 + $0x124] ss:$8 sps:$4 sm:$0xff]   ;;  %v1443_v24 = vld [vmem:[%s1808_s13 + $0x120] ss:$8 sps:$4 sm:$0xff]  }
  0x52   : > { %1050 = vmatprep.subr.bf16.mxu1 %v1422_v10  ;;  %v1444_v25 = vld [vmem:[%s1808_s13 + $0x14] ss:$8 sps:$4 sm:$0xff]   ;;  %v1448_v27 = vld [vmem:[%s1808_s13 + $0x10] ss:$8 sps:$4 sm:$0xff]   ;;  %v1450_v29 = vld [vmem:[%s1808_s13 + $0x4] ss:$8 sps:$4 sm:$0xff]  }
  0x53   : > { %v1446_v26 = vld [vmem:[%s1808_s13 + $0x114] ss:$8 sps:$4 sm:$0xff]   ;;  %v1449_v28 = vld [vmem:[%s1808_s13 + $0x110] ss:$8 sps:$4 sm:$0xff]   ;;  %v1452_v30 = vld [vmem:[%s1808_s13 + $0x104] ss:$8 sps:$4 sm:$0xff]  }
  0x54   : > { %1010 = vmatpush1.bf16.msra.mxu0 %v1424_v11  ;;  %v1454_v31 = vld [vmem:[%s1808_s13] ss:$8 sps:$4 sm:$0xff]   ;;  %v1456_v33 = vld [vmem:[%s1808_s13 + $0xf4] ss:$8 sps:$4 sm:$0xff]   ;;  %v1460_v35 = vld [vmem:[%s1808_s13 + $0xf0] ss:$8 sps:$4 sm:$0xff]  }
  0x55   : > { %1051 = vmatpush1.bf16.msra.mxu1 %v1425_v12  ;;  %1011 = vmatprep.subr.bf16.mxu0 %v1426_v13  ;;  %v1455_v32 = vld [vmem:[%s1808_s13 + $0x100] ss:$8 sps:$4 sm:$0xff]   ;;  %v1458_v34 = vld [vmem:[%s1808_s13 + $0x1f4] ss:$8 sps:$4 sm:$0xff]   ;;  %v1461_v36 = vld [vmem:[%s1808_s13 + $0x1f0] ss:$8 sps:$4 sm:$0xff]  }
  0x56   : > { %1052 = vmatprep.subr.bf16.mxu1 %v1428_v14  ;;  %v1462_v37 = vld [vmem:[%s1808_s13 + $0xe4] ss:$8 sps:$4 sm:$0xff]   ;;  %v1466_v39 = vld [vmem:[%s1808_s13 + $0xe0] ss:$8 sps:$4 sm:$0xff]   ;;  %v1468_v41 = vld [vmem:[%s1808_s13 + $0xd4] ss:$8 sps:$4 sm:$0xff]  }
  0x57   : > { %v1464_v38 = vld [vmem:[%s1808_s13 + $0x1e4] ss:$8 sps:$4 sm:$0xff]   ;;  %v1467_v40 = vld [vmem:[%s1808_s13 + $0x1e0] ss:$8 sps:$4 sm:$0xff]   ;;  %v1470_v42 = vld [vmem:[%s1808_s13 + $0x1d4] ss:$8 sps:$4 sm:$0xff]  }
  0x58   : > { %1012 = vmatpush1.bf16.msra.mxu0 %v1430_v15  ;;  %v1472_v43 = vld [vmem:[%s1808_s13 + $0xd0] ss:$8 sps:$4 sm:$0xff]   ;;  %v1474_v45 = vld [vmem:[%s1808_s13 + $0xc4] ss:$8 sps:$4 sm:$0xff]   ;;  %v1478_v50 = vld [vmem:[%s1808_s13 + $0xc0] ss:$8 sps:$4 sm:$0xff]  }
  0x59   : > { %1053 = vmatpush1.bf16.msra.mxu1 %v1431_v16  ;;  %1013 = vmatprep.subr.bf16.mxu0 %v1432_v17  ;;  %v1473_v44 = vld [vmem:[%s1808_s13 + $0x1d0] ss:$8 sps:$4 sm:$0xff]   ;;  %v1476_v46 = vld [vmem:[%s1808_s13 + $0x1c4] ss:$8 sps:$4 sm:$0xff]   ;;  %v1479_v51 = vld [vmem:[%s1808_s13 + $0x1c0] ss:$8 sps:$4 sm:$0xff]  }
  0x5a   : > { %1054 = vmatprep.subr.bf16.mxu1 %v1434_v18  ;;  %v605_v47 = vld [vmem:[%s1790_s30] sm:$0xff]  ;;  %v606_v49 = vld [vmem:[%s1790_s30 + $0x8] sm:$0xff]  ;;  %v1486_v57 = vld [vmem:[%s1808_s13 + $0xa4] ss:$8 sps:$4 sm:$0xff]   ;;  %p1347_p13 = scmp.ne.s32.totalorder %s1546_s17, 8 }
  0x5b   : > { %v1280_v48 = vcombine.high %v605_v47, %v605_v47  ;;  %v1282_v52 = vcombine.high %v606_v49, %v606_v49  ;;  %v1480_v53 = vld [vmem:[%s1808_s13 + $0xb4] ss:$8 sps:$4 sm:$0xff]   ;;  %v1484_v55 = vld [vmem:[%s1808_s13 + $0xb0] ss:$8 sps:$4 sm:$0xff]   ;;  %v1488_v58 = vld [vmem:[%s1808_s13 + $0x1a4] ss:$8 sps:$4 sm:$0xff]   ;;  %v1279_v5 = vcombine.low %v605_v47, %v605_v47  ;;  %v1281_v6 = vcombine.low %v606_v49, %v606_v49 }
  0x5c   : > { %1014 = vmatpush1.bf16.msra.mxu0 %v1436_v19  ;;  %v1482_v54 = vld [vmem:[%s1808_s13 + $0x1b4] ss:$8 sps:$4 sm:$0xff]   ;;  %v1485_v56 = vld [vmem:[%s1808_s13 + $0x1b0] ss:$8 sps:$4 sm:$0xff]   ;;  %v1490_v59 = vld [vmem:[%s1808_s13 + $0xa0] ss:$8 sps:$4 sm:$0xff]  }
  0x5d   : > { %1055 = vmatpush1.bf16.msra.mxu1 %v1437_v20  ;;  %1015 = vmatprep.subr.bf16.mxu0 %v1438_v21  ;;  %v1491_v60 = vld [vmem:[%s1808_s13 + $0x1a0] ss:$8 sps:$4 sm:$0xff]   ;;  %v1492_v61 = vld [vmem:[%s1808_s13 + $0x94] ss:$8 sps:$4 sm:$0xff]   ;;  %v1496_v63 = vld [vmem:[%s1808_s13 + $0x90] ss:$8 sps:$4 sm:$0xff]  }
  0x5e   : > { %1056 = vmatprep.subr.bf16.mxu1 %v1440_v22  ;;  %1037 = vmatprep.mubr.bf16.mxu0 %v1280_v48  ;;  %v1494_v62 = vld [vmem:[%s1808_s13 + $0x194] ss:$8 sps:$4 sm:$0xff]   ;;  %v1497_v0 = vld [vmem:[%s1808_s13 + $0x190] ss:$8 sps:$4 sm:$0xff]   ;;  %v1498_v1 = vld [vmem:[%s1808_s13 + $0x84] ss:$8 sps:$4 sm:$0xff]  }
  0x5f   : > { %1078 = vmatprep.mubr.bf16.mxu1 %v1282_v52  ;;  %v1500_v2 = vld [vmem:[%s1808_s13 + $0x184] ss:$8 sps:$4 sm:$0xff]   ;;  %v1502_v3 = vld [vmem:[%s1808_s13 + $0x80] ss:$8 sps:$4 sm:$0xff]   ;;  %v603_v8 = vld [vmem:[#allocation2] sm:$0xff] }
  0x60   : > { %1016 = vmatpush1.bf16.msra.mxu0 %v1442_v23  ;;  %v1503_v4 = vld [vmem:[%s1808_s13 + $0x180] ss:$8 sps:$4 sm:$0xff]   ;;  %v604_v12 = vld [vmem:[#allocation2 + $0x8] sm:$0xff] }
  0x61   : > { %1057 = vmatpush1.bf16.msra.mxu1 %v1443_v24  ;;  %1017 = vmatprep.subr.bf16.mxu0 %v1444_v25 }
  0x62   : > { %1058 = vmatprep.subr.bf16.mxu1 %v1446_v26 }
  0x64   : > { %1018 = vmatpush1.bf16.msra.mxu0 %v1448_v27 }
  0x65   : > { %1059 = vmatpush1.bf16.msra.mxu1 %v1449_v28  ;;  %1019 = vmatprep.subr.bf16.mxu0 %v1450_v29 }
  0x66   : > { %1060 = vmatprep.subr.bf16.mxu1 %v1452_v30 }
  0x68   : > { %1020 = vmatpush1.bf16.msra.mxu0 %v1454_v31 }
  0x69   : > { %1061 = vmatpush1.bf16.msra.mxu1 %v1455_v32  ;;  %1021 = vmatprep.subr.bf16.mxu0 %v1456_v33 }
  0x6a   : > { %1062 = vmatprep.subr.bf16.mxu1 %v1458_v34 }
  0x6c   : > { %1022 = vmatpush2.bf16.msra.mxu0 %v1460_v35 }
  0x6d   : > { %1063 = vmatpush2.bf16.msra.mxu1 %v1461_v36  ;;  %1023 = vmatprep.subr.bf16.mxu0 %v1462_v37 }
  0x6e   : > { %1064 = vmatprep.subr.bf16.mxu1 %v1464_v38 }
  0x70   : > { %1024 = vmatpush2.bf16.msra.mxu0 %v1466_v39 }
  0x71   : > { %1065 = vmatpush2.bf16.msra.mxu1 %v1467_v40  ;;  %1025 = vmatprep.subr.bf16.mxu0 %v1468_v41 }
  0x72   : > { %1066 = vmatprep.subr.bf16.mxu1 %v1470_v42 }
  0x74   : > { %1026 = vmatpush2.bf16.msra.mxu0 %v1472_v43 }
  0x75   : > { %1067 = vmatpush2.bf16.msra.mxu1 %v1473_v44  ;;  %1027 = vmatprep.subr.bf16.mxu0 %v1474_v45 }
  0x76   : > { %1068 = vmatprep.subr.bf16.mxu1 %v1476_v46 }
  0x78   : > { %1028 = vmatpush2.bf16.msra.mxu0 %v1478_v50 }
  0x79   : > { %1069 = vmatpush2.bf16.msra.mxu1 %v1479_v51  ;;  %1029 = vmatprep.subr.bf16.mxu0 %v1480_v53 }
  0x7a   : > { %1070 = vmatprep.subr.bf16.mxu1 %v1482_v54 }
  0x7c   : > { %1030 = vmatpush2.bf16.msra.mxu0 %v1484_v55 }
  0x7d   : > { %1071 = vmatpush2.bf16.msra.mxu1 %v1485_v56  ;;  %1031 = vmatprep.subr.bf16.mxu0 %v1486_v57 }
  0x7e   : > { %1072 = vmatprep.subr.bf16.mxu1 %v1488_v58 }
  0x80   : > { %1032 = vmatpush2.bf16.msra.mxu0 %v1490_v59 }
  0x81   : > { %1073 = vmatpush2.bf16.msra.mxu1 %v1491_v60  ;;  %1033 = vmatprep.subr.bf16.mxu0 %v1492_v61 }
  0x82   : > { %1074 = vmatprep.subr.bf16.mxu1 %v1494_v62 }
  0x84   : > { %1034 = vmatpush2.bf16.msra.mxu0 %v1496_v63 }
  0x85   : > { %1075 = vmatpush2.bf16.msra.mxu1 %v1497_v0  ;;  %1035 = vmatprep.subr.bf16.mxu0 %v1498_v1 }
  0x86   : > { %1076 = vmatprep.subr.bf16.mxu1 %v1500_v2 }
  0x88   : > { %1036 = vmatpush2.bf16.msra.mxu0 %v1502_v3 }
  0x89   : > { %1077 = vmatpush2.bf16.msra.mxu1 %v1503_v4 }
  0x8b   : > { %1038 = vmatmul.mubr.bf16.vlgmr.msra.gmra.mxu0 %v1279_v5 }
  0x8c   : > { %1079 = vmatmul.mubr.bf16.vlgmr.msra.gmra.mxu1 %v1281_v6 }
 0x14b   : > { %v1039_v7 = vpop.f32.mrf.mxu0 }
 0x14c   : > { %v1080_v9 = vpop.f32.mrf.mxu1 }
 0x14d   : > { %v1081_v10 = vadd.f32 %v1080_v9, %v1039_v7  ;;  %v1041_v11 = vpop.f32.mrf.mxu0 }
 0x14e   : > { %v1082_v13 = vpop.f32.mrf.mxu1 }
 0x14f   : > { %v1087_v14 = vadd.f32 %v1081_v10, %v603_v8  ;;  %v1083_v15 = vadd.f32 %v1082_v13, %v1041_v11  ;;  %v1043_v16 = vpop.f32.mrf.mxu0  ;;  %1094 = sbr.rel (%p1347_p13) target bundleno = 355 (0x163), region = 82 }
 0x150   : > { %v1084_v17 = vpop.f32.mrf.mxu1 }
 0x151   : > { %1089 = vst [vmem:[#allocation2] sm:$0xff] %v1087_v14  ;;  %v1088_v18 = vadd.f32 %v1083_v15, %v604_v12  ;;  %v1044_v19 = vpop.f32.mrf.mxu0 }
 0x152   : > { %v1085_v20 = vpop.f32.mrf.mxu1 }
 0x153   : > { %1090 = vst [vmem:[#allocation2 + $0x8] sm:$0xff] %v1088_v18 }
 0x154   : > { %v1099_v21 = vlaneseq  ;;  %v1097_v23 = vld [vmem:[%s580_s15] sm:$0x3] }
 0x155   : > { %v1111_v24 = vld [vmem:[%s585_s18] sm:$0x3] }
 0x156   : > { %v1100_v22 = vshrl.u32 %v1099_v21, 7 }
 0x158   : > { %v1101_v25 = vsub.s32 0, %v1100_v22  ;;  %v1105_v26 = vsub.s32 1, %v1100_v22  ;;  %v1095_v27 = vld [vmem:[#allocation2] sm:$0xff] }
 0x15a   : > { %v1096_v28 = vld [vmem:[#allocation2 + $0x8] sm:$0xff]  ;;  %v1102_v29 = vrot.slane %v1097_v23, %v1101_v25  ;;  %v1116_v30 = vrot.slane %v1111_v24, %v1101_v25  ;;  %v1106_v31 = vrot.slane %v1097_v23, %v1105_v26  ;;  %v1120_v32 = vrot.slane %v1111_v24, %v1105_v26 }
 0x15c   : > { %v1109_v33 = vmul.f32 %v1102_v29, %v1095_v27  ;;  %v1110_v34 = vmul.f32 %v1106_v31, %v1096_v28 }
 0x15e   : > { %v1123_v35 = vadd.f32 %v1116_v30, %v1109_v33  ;;  %v1124_v36 = vadd.f32 %v1120_v32, %v1110_v34 }
 0x160   : > { %v1125_v37 = vmax.f32 %v1123_v35, 0.0  ;;  %v1126_v38 = vmax.f32 %v1124_v36, 0.0 }
 0x162   : > { %1127 = vst [vmem:[%s1806_s12] sm:$0xff] %v1125_v37  ;;  %1128 = vst [vmem:[%s1806_s12 + $0x8] sm:$0xff] %v1126_v38 }
 0x163 PF: > { %s14_s21 = sadd.s32 1, %s1562_s21   ;;  %s1916_s15 = smov %s1542_s16 }
 0x164   : > { %p11_p0 = scmp.ge.s32.totalorder %s14_s21, 20   ;;  %s1917_s16 = smov %s1641_s28 }
 0x165   : > { %s1918_s17 = smov %s1554_s19  ;;  %s1919_s18 = smov %s1558_s20 }
 0x166   : > { %s1920_s19 = smov %s1923_s22  ;;  %s1921_s20 = smov %s1927_s23 }
 0x167   :  { %13 = sbr.rel (!%p11_p0) target bundleno = 4 (0x4), region = 126 }

</bundles_post_ra>
